<compile_context>
chip_gen: v7x
topology: tpu7x:2x2x1
jax: 0.10.0
libtpu: 0.0.40
codegen_flags: <defaults>
</compile_context>

<pallas_src>
import functools

import jax
import jax.numpy as jnp
from jax.experimental import pallas as pl
from jax.experimental.pallas import tpu as pltpu

_F32 = jnp.float32
_BF16 = jnp.bfloat16

_BLOCK_KEYS = ("ln1_g", "ln1_b", "wqkv", "bqkv", "wo", "bo",
               "ln2_g", "ln2_b", "w1", "b1", "w2", "b2")


def _resident(a):
    """Full-array BlockSpec with a constant index_map: DMA'd once, stays resident."""
    nd = a.ndim
    return pl.BlockSpec(a.shape, lambda *_: (0,) * nd)


def _layernorm(v, g, b, eps=1e-5):
    mu = jnp.mean(v, axis=-1, keepdims=True)
    var = jnp.mean(jnp.square(v - mu), axis=-1, keepdims=True)
    return (v - mu) * jax.lax.rsqrt(var + eps) * g + b


# --------------------------------------------------------------------------
# Shared transformer block body (runs on a (B_blk, N, D) token block in VMEM)
# --------------------------------------------------------------------------

def _transformer_block(x, ln1g, ln1b, wqkv, bqkv, wo, bo,
                       ln2g, ln2b, w1, b1, w2, b2, *, heads):
    Bb, N, D = x.shape
    Dh = D // heads

    # ---- attention ----
    h2 = _layernorm(x, ln1g, ln1b).reshape(Bb * N, D).astype(_BF16)
    # softmax scale (1/sqrt(Dh)) is pre-folded into the q columns of wqkv/bqkv.
    qkv = jnp.dot(h2, wqkv, preferred_element_type=_F32) + bqkv        # (Bb*N, 3D)

    heads_out = []
    for hh in range(heads):
        # batched-over-Bb attention per head; lane slices kept 2-D + leading-dim
        # reshapes only, which lower robustly on Mosaic.
        q = qkv[:, hh * Dh:(hh + 1) * Dh].reshape(Bb, N, Dh).astype(_BF16)
        k = qkv[:, D + hh * Dh:D + (hh + 1) * Dh].reshape(Bb, N, Dh).astype(_BF16)
        v = qkv[:, 2 * D + hh * Dh:2 * D + (hh + 1) * Dh].reshape(Bb, N, Dh).astype(_BF16)
        s = jnp.einsum('bnd,bmd->bnm', q, k, preferred_element_type=_F32)
        s = s - jnp.max(s, axis=-1, keepdims=True)
        p = jnp.exp(s)                                                  # f32 softmax
        p = p * pl.reciprocal(jnp.sum(p, axis=-1, keepdims=True), approx=True)
        heads_out.append(jnp.einsum('bnm,bmd->bnd', p.astype(_BF16), v,
                                    preferred_element_type=_F32))
    o = jnp.concatenate(heads_out, axis=-1).reshape(Bb * N, D).astype(_BF16)
    attn = jnp.dot(o, wo, preferred_element_type=_F32) + bo             # single out-proj
    x = x + attn.reshape(Bb, N, D)

    # ---- MLP ----
    h2 = _layernorm(x, ln2g, ln2b).reshape(Bb * N, D).astype(_BF16)
    h2 = jnp.dot(h2, w1, preferred_element_type=_F32) + b1
    # TODO(synk): PyTorch nn.GELU defaults to exact erf GELU; tanh approximation
    # is kept here for robust Mosaic lowering.
    h2 = jax.nn.gelu(h2)
    h2 = jnp.dot(h2.astype(_BF16), w2, preferred_element_type=_F32) + b2
    return x + h2.reshape(Bb, N, D)


# --------------------------------------------------------------------------
# Spatial transformer: all depth layers + final CLS LayerNorm in one kernel
# --------------------------------------------------------------------------

def _spatial_kernel(tok_ref,
                    ln1g, ln1b, wqkv, bqkv, wo, bo, ln2g, ln2b, w1, b1, w2, b2,
                    lnfg, lnfb,
                    cls_ref, tok_vmem, *, heads):
    l = pl.program_id(1)

    @pl.when(l == 0)
    def _():
        tok_vmem[...] = tok_ref[...]

    x = _transformer_block(
        tok_vmem[...],
        ln1g[0], ln1b[0], wqkv[0], bqkv[0], wo[0], bo[0],
        ln2g[0], ln2b[0], w1[0], b1[0], w2[0], b2[0], heads=heads)
    tok_vmem[...] = x

    @pl.when(l == pl.num_programs(1) - 1)
    def _():
        # LayerNorm is per-token -> normalize only the CLS token we keep.
        cls_ref[0] = _layernorm(x[:, 0, :], lnfg[...], lnfb[...])


def spatial_transformer_features(tok, blocks, lnf_g, lnf_b, heads, batch_block=2):
    """tok: (B*F, n_tok, D) -> CLS features (B*F, D); single fused pallas_call."""
    BF, n_tok, D = tok.shape
    L = blocks["wqkv"].shape[0]
    bb = batch_block if BF % batch_block == 0 else BF
    nb = BF // bb
    stacked = [blocks[k] for k in _BLOCK_KEYS]

    def wspec(w):
        return pl.BlockSpec((1,) + w.shape[1:], lambda b, l: (l, 0, 0))

    cls = pl.pallas_call(
        functools.partial(_spatial_kernel, heads=heads),
        out_shape=jax.ShapeDtypeStruct((nb, bb, D), _F32),
        grid=(nb, L),
        in_specs=[pl.BlockSpec((bb, n_tok, D), lambda b, l: (b, 0, 0))]
                 + [wspec(w) for w in stacked]
                 + [_resident(lnf_g), _resident(lnf_b)],
        out_specs=pl.BlockSpec((1, bb, D), lambda b, l: (b, 0, 0)),
        scratch_shapes=[pltpu.VMEM((bb, n_tok, D), _F32)],
        compiler_params=pltpu.CompilerParams(
            dimension_semantics=("parallel", "arbitrary"),
            vmem_limit_bytes=64 * 1024 * 1024),
        # TODO(synk): at real ViT dims (D=768, hidden=3072) also tile w1/w2 along
        # the hidden axis (extra "arbitrary" grid axis + f32 accumulator) for v7x.
    )(tok, *stacked, lnf_g, lnf_b)
    return cls.reshape(BF, D)


# --------------------------------------------------------------------------
# Temporal transformer + final LayerNorm + classifier head in one kernel
# --------------------------------------------------------------------------

def _temporal_kernel(tok_ref,
                     ln1g, ln1b, wqkv, bqkv, wo, bo, ln2g, ln2b, w1, b1, w2, b2,
                     hlng, hlnb, hw, hb,
                     logits_ref, tok_vmem, *, heads):
    l = pl.program_id(0)

    @pl.when(l == 0)
    def _():
        tok_vmem[...] = tok_ref[...]

    x = _transformer_block(
        tok_vmem[...],
        ln1g[0], ln1b[0], wqkv[0], bqkv[0], wo[0], bo[0],
        ln2g[0], ln2b[0], w1[0], b1[0], w2[0], b2[0], heads=heads)
    tok_vmem[...] = x

    @pl.when(l == pl.num_programs(0) - 1)
    def _():
        B, F, D = x.shape
        h = _layernorm(x.reshape(B * F, D), hlng[...], hlnb[...])
        logits_ref[...] = jnp.dot(h.astype(_BF16), hw[...],
                                  preferred_element_type=_F32) + hb[...]


def temporal_transformer_head(x, blocks, head, heads):
    """x: (B, F, D) -> lane-padded logits (B*F, nc_pad); fused blocks + LN + head."""
    B, F, D = x.shape
    L = blocks["wqkv"].shape[0]
    ncp = head["w"].shape[1]
    stacked = [blocks[k] for k in _BLOCK_KEYS]

    def wspec(w):
        return pl.BlockSpec((1,) + w.shape[1:], lambda l: (l, 0, 0))

    return pl.pallas_call(
        functools.partial(_temporal_kernel, heads=heads),
        out_shape=jax.ShapeDtypeStruct((B * F, ncp), _F32),
        grid=(L,),
        in_specs=[pl.BlockSpec((B, F, D), lambda l: (0, 0, 0))]
                 + [wspec(w) for w in stacked]
                 + [_resident(head["ln_g"]), _resident(head["ln_b"]),
                    _resident(head["w"]), _resident(head["b"])],
        out_specs=pl.BlockSpec((B * F, ncp), lambda l: (0, 0)),
        scratch_shapes=[pltpu.VMEM((B, F, D), _F32)],
        compiler_params=pltpu.CompilerParams(
            dimension_semantics=("arbitrary",),
            vmem_limit_bytes=64 * 1024 * 1024),
    )(x, *stacked, head["ln_g"], head["ln_b"], head["w"], head["b"])


# --------------------------------------------------------------------------
# Patch-embed linear (bf16 weight at rest, M-tiled, CostEstimate)
# --------------------------------------------------------------------------

def _linear_kernel(x_ref, w_ref, b_ref, o_ref, *, act):
    y = jnp.dot(x_ref[...].astype(_BF16), w_ref[...],
                preferred_element_type=_F32) + b_ref[...]
    if act == "relu":
        y = jnp.maximum(y, 0.0)
    elif act == "sigmoid":
        y = jax.nn.sigmoid(y)
    o_ref[...] = y


def pallas_linear(x, w, b, act="none", tile_m=512):
    """(M, K) @ (K, N) + (1, N); grid over M rows, bf16 weight resident in VMEM."""
    M, K = x.shape
    N = w.shape[1]
    tm = M if M <= tile_m else tile_m
    flops = 2 * M * K * N
    bytes_accessed = (x.size * x.dtype.itemsize + w.size * w.dtype.itemsize
                      + b.size * b.dtype.itemsize + M * N * 4)
    return pl.pallas_call(
        functools.partial(_linear_kernel, act=act),
        out_shape=jax.ShapeDtypeStruct((M, N), _F32),
        grid=(pl.cdiv(M, tm),),
        in_specs=[pl.BlockSpec((tm, K), lambda i: (i, 0)),
                  pl.BlockSpec((K, N), lambda i: (0, 0)),     # resident weight (bf16)
                  pl.BlockSpec((1, N), lambda i: (0, 0))],    # resident bias
        out_specs=pl.BlockSpec((tm, N), lambda i: (i, 0)),
        compiler_params=pltpu.CompilerParams(
            dimension_semantics=("parallel",)),
        cost_estimate=pl.CostEstimate(flops=flops, transcendentals=0,
                                      bytes_accessed=bytes_accessed),
    )(x, w, b)


# --------------------------------------------------------------------------
# BCFM: fused 3x3 conv (relu) + 1x1 FISM (sigmoid), lane-dense outputs
# --------------------------------------------------------------------------

def _bcfm_kernel(cols_ref, wc_ref, bc_ref, wf_ref, bf_ref, fus_ref, fism_ref):
    cols = cols_ref[...]                                                # bf16
    fusion = jnp.dot(wc_ref[...], cols,
                     preferred_element_type=_F32) + bc_ref[...]         # (3, tc)
    fusion = jnp.maximum(fusion, 0.0)
    fism = jnp.dot(wf_ref[...], fusion.astype(_BF16),
                   preferred_element_type=_F32) + bf_ref[...]            # (1, tc)
    fus_ref[...] = fusion
    fism_ref[...] = jax.nn.sigmoid(fism)


def im2col3x3_cmajor(x):
    """(N, C, H, W), pad=1, stride=1 -> (C*9, N*H*W); rows ordered (c, kh, kw)
    to match a flattened conv weight, columns ordered (n, h, w)."""
    N, C, H, W = x.shape
    xp = jnp.pad(x, ((0, 0), (0, 0), (1, 1), (1, 1)))
    wins = [xp[:, :, di:di + H, dj:dj + W] for di in range(3) for dj in range(3)]
    cols = jnp.stack(wins, axis=2)               # (N, C, 9, H, W)
    cols = cols.transpose(1, 2, 0, 3, 4)         # (C, 9, N, H, W)
    return cols.reshape(C * 9, N * H * W)


def bcfm_forward(p, rgbl, rgbr, tile_c=2048):
    """Per-frame binocular fusion. rgbl/rgbr: (N, 3, H, W) ->
    fusion (N, 3, H, W), FISM (N, 1, H, W)."""
    # TODO(synk): rgbD_net internals are not given in the reference module;
    # deterministic stand-in = 3x3 conv fusion (relu) + 1x1 conv sigmoid saliency.
    N, C, H, W = rgbl.shape
    x = jnp.concatenate([rgbl, rgbr], axis=1)                  # (N, 6, H, W)
    cols = im2col3x3_cmajor(x).astype(_BF16)                   # bf16 halves cols DMA
    M = N * H * W
    tc = M if M <= tile_c else tile_c                          # tile_c % 128 == 0
    fusion, fism = pl.pallas_call(
        _bcfm_kernel,
        out_shape=(jax.ShapeDtypeStruct((3, M), _F32),
                   jax.ShapeDtypeStruct((1, M), _F32)),
        grid=(pl.cdiv(M, tc),),
        in_specs=[pl.BlockSpec((6 * 9, tc), lambda j: (0, j)),
                  _resident(p["conv_w"]), _resident(p["conv_b"]),
                  _resident(p["fism_w"]), _resident(p["fism_b"])],
        out_specs=(pl.BlockSpec((3, tc), lambda j: (0, j)),
                   pl.BlockSpec((1, tc), lambda j: (0, j))),
        compiler_params=pltpu.CompilerParams(
            dimension_semantics=("parallel",)),
    )(cols, p["conv_w"], p["conv_b"], p["fism_w"], p["fism_b"])
    fusion = fusion.reshape(3, N, H, W).transpose(1, 0, 2, 3)
    fism = fism.reshape(N, 1, H, W)          # columns are (n, h, w)-ordered
    return fusion, fism


# --------------------------------------------------------------------------
# ViT / VTN forward (glue in JAX, compute in fused Pallas kernels)
# --------------------------------------------------------------------------

def vit_forward_features(p, x, cfg):
    """timm-style ViT forward_features + CLS select on images x: (N, 3, H, W) -> (N, D)."""
    N, C, H, W = x.shape
    P, D = cfg["patch"], cfg["dim"]
    nh, nw = H // P, W // P
    patches = (
        x.reshape(N, C, nh, P, nw, P)
        .transpose(0, 2, 4, 1, 3, 5)
        .reshape(N * nh * nw, C * P * P)
    )
    tok = pallas_linear(patches, p["patch_w"], p["patch_b"]).reshape(N, nh * nw, D)
    cls = jnp.broadcast_to(p["cls"], (N, 1, D))
    tok = jnp.concatenate([cls, tok], axis=1) + p["pos"]
    # all depth layers + final CLS LayerNorm fused into one pallas_call
    return spatial_transformer_features(tok, p["blocks"], p["lnf_g"], p["lnf_b"],
                                        heads=cfg["heads"])


def vtn_forward(params, cfg, rgbl, rgbr):
    """rgbl, rgbr: (B, F, 3, H, W) -> (logits (B, F, num_classes),
    all_FISM (B, F, 1, H, W)). `params` must come from prepare_params()."""
    B, F, C, H, W = rgbl.shape
    D = cfg["dim"]
    nc = cfg["num_classes"]

    # per-frame BCFM; collapsing (b, f) == the PyTorch frame loop + cat(dim=1)
    lf = rgbl.reshape(B * F, C, H, W)
    rf = rgbr.reshape(B * F, C, H, W)
    fusion, fism = bcfm_forward(params["bcfm"], lf, rf)
    all_FISM = fism.reshape(B, F, 1, H, W)

    # collapse_frames -> frozen spatial transformer -> CLS token (CLS-before-LN)
    feats = vit_forward_features(params["vit"], fusion, cfg)        # (B*F, D)
    feats = jax.lax.stop_gradient(feats)     # spatial_frozen == True (no_grad)

    # spatial2temporal -> temporal transformer + mlp_head, fused in one kernel
    x = feats.reshape(B, F, D)
    logits_pad = temporal_transformer_head(x, params["temporal"]["blocks"],
                                           params["head"], heads=cfg["heads"])
    logits = logits_pad[:, :nc].reshape(B, F, nc)
    return logits, all_FISM


# --------------------------------------------------------------------------
# Deterministic parameter init + kernel-ready preprocessing
# --------------------------------------------------------------------------

CFG = dict(
    B=2, frames=2, C=3, H=16, W=16,
    patch=4, dim=32, heads=4,
    depth_spatial=1, depth_temporal=1,
    mlp_ratio=4, num_classes=5,
)


def init_params(key, cfg):
    keys = iter(jax.random.split(key, 64))

    def nrm(shape, s=0.02):
        return s * jax.random.normal(next(keys), shape, dtype=jnp.float32)

    D = cfg["dim"]
    P = cfg["patch"]
    hidden = cfg["mlp_ratio"] * D
    n_tok = (cfg["H"] // P) * (cfg["W"] // P) + 1

    def block():
        return dict(
            ln1_g=jnp.ones((1, D), jnp.float32), ln1_b=jnp.zeros((1, D), jnp.float32),
            wqkv=nrm((D, 3 * D)), bqkv=jnp.zeros((1, 3 * D), jnp.float32),
            wo=nrm((D, D)), bo=jnp.zeros((1, D), jnp.float32),
            ln2_g=jnp.ones((1, D), jnp.float32), ln2_b=jnp.zeros((1, D), jnp.float32),
            w1=nrm((D, hidden)), b1=jnp.zeros((1, hidden), jnp.float32),
            w2=nrm((hidden, D)), b2=jnp.zeros((1, D), jnp.float32),
        )

    return dict(
        bcfm=dict(
            conv_w=nrm((3, 6, 3, 3), 0.1), conv_b=jnp.zeros((1, 3), jnp.float32),
            fism_w=nrm((1, 3, 1, 1), 0.1), fism_b=jnp.zeros((1, 1), jnp.float32),
        ),
        vit=dict(
            patch_w=nrm((3 * P * P, D)), patch_b=jnp.zeros((1, D), jnp.float32),
            cls=nrm((1, 1, D)), pos=nrm((1, n_tok, D)),
            blocks=[block() for _ in range(cfg["depth_spatial"])],
            lnf_g=jnp.ones((1, D), jnp.float32), lnf_b=jnp.zeros((1, D), jnp.float32),
        ),
        temporal=dict(blocks=[block() for _ in range(cfg["depth_temporal"])]),
        head=dict(
            ln_g=jnp.ones((1, D), jnp.float32), ln_b=jnp.zeros((1, D), jnp.float32),
            w=nrm((D, cfg["num_classes"])),
            b=jnp.zeros((1, cfg["num_classes"]), jnp.float32),
        ),
    )


def prepare_params(params, cfg):
    """One-time preprocessing: stack per-layer weights along a depth axis,
    fold the softmax scale into q, cast matmul weights to bf16 at rest, and
    lane-pad the head to 128 output columns."""
    D = cfg["dim"]
    Dh = D // cfg["heads"]
    scale = 1.0 / float(Dh) ** 0.5
    nc = cfg["num_classes"]
    nc_pad = ((nc + 127) // 128) * 128

    def stack_blocks(blocks):
        out = {k: jnp.stack([b[k] for b in blocks], axis=0) for k in _BLOCK_KEYS}
        out["wqkv"] = out["wqkv"].at[:, :, :D].multiply(scale).astype(_BF16)
        out["bqkv"] = out["bqkv"].at[:, :, :D].multiply(scale)
        out["wo"] = out["wo"].astype(_BF16)
        out["w1"] = out["w1"].astype(_BF16)
        out["w2"] = out["w2"].astype(_BF16)
        return out

    return dict(
        bcfm=dict(
            conv_w=params["bcfm"]["conv_w"].reshape(3, 6 * 9).astype(_BF16),
            conv_b=params["bcfm"]["conv_b"].reshape(3, 1),
            fism_w=params["bcfm"]["fism_w"].reshape(1, 3).astype(_BF16),
            fism_b=params["bcfm"]["fism_b"].reshape(1, 1),
        ),
        vit=dict(
            patch_w=params["vit"]["patch_w"].astype(_BF16),
            patch_b=params["vit"]["patch_b"],
            cls=params["vit"]["cls"], pos=params["vit"]["pos"],
            blocks=stack_blocks(params["vit"]["blocks"]),
            lnf_g=params["vit"]["lnf_g"], lnf_b=params["vit"]["lnf_b"],
        ),
        temporal=dict(blocks=stack_blocks(params["temporal"]["blocks"])),
        head=dict(
            ln_g=params["head"]["ln_g"], ln_b=params["head"]["ln_b"],
            w=jnp.pad(params["head"]["w"], ((0, 0), (0, nc_pad - nc))).astype(_BF16),
            b=jnp.pad(params["head"]["b"], ((0, 0), (0, nc_pad - nc))),
        ),
    )


# --------------------------------------------------------------------------

if __name__ == "__main__":
    cfg = CFG
    key = jax.random.PRNGKey(0)
    k_l, k_r, k_p = jax.random.split(key, 3)
    shape = (cfg["B"], cfg["frames"], cfg["C"], cfg["H"], cfg["W"])
    rgbl = jax.random.normal(k_l, shape, dtype=jnp.float32)
    rgbr = jax.random.normal(k_r, shape, dtype=jnp.float32)
    params = prepare_params(init_params(k_p, cfg), cfg)

    fwd = jax.jit(functools.partial(vtn_forward, params, cfg))
    logits, all_fism = fwd(rgbl, rgbr)
    jax.block_until_ready((logits, all_fism))

    assert logits.shape == (cfg["B"], cfg["frames"], cfg["num_classes"]), logits.shape
    assert all_fism.shape == (cfg["B"], cfg["frames"], 1, cfg["H"], cfg["W"]), all_fism.shape
    assert jnp.all(jnp.isfinite(logits)) and jnp.all(jnp.isfinite(all_fism))
    print("KERNEL_OK")
</pallas_src>

<mosaic_0001>
module attributes {stable_mosaic.version = 11 : i64} {
  func.func @_bcfm_kernel(%arg0: i32, %arg1: memref<54x1024xbf16, #tpu.memory_space<vmem>>, %arg2: memref<3x54xbf16, #tpu.memory_space<vmem>>, %arg3: memref<3x1xf32, #tpu.memory_space<vmem>>, %arg4: memref<1x3xbf16, #tpu.memory_space<vmem>>, %arg5: memref<1x1xf32, #tpu.memory_space<vmem>>, %arg6: memref<3x1024xf32, #tpu.memory_space<vmem>>, %arg7: memref<1x1024xf32, #tpu.memory_space<vmem>>) attributes {dimension_semantics = [#tpu.dimension_semantics<parallel>], iteration_bounds = array<i64: 1>, scalar_prefetch = 0 : i64, scratch_operands = 0 : i64, tpu.core_type = #tpu.core_type<tc>, window_params = [{transform_indices = @transform_0, window_bounds = array<i64: 54, 1024>}, {pipeline_mode = #tpu.pipeline_mode<synchronous>, transform_indices = @transform_1, window_bounds = array<i64: 3, 54>}, {pipeline_mode = #tpu.pipeline_mode<synchronous>, transform_indices = @transform_2, window_bounds = array<i64: 3, 1>}, {pipeline_mode = #tpu.pipeline_mode<synchronous>, transform_indices = @transform_3, window_bounds = array<i64: 1, 3>}, {pipeline_mode = #tpu.pipeline_mode<synchronous>, transform_indices = @transform_4, window_bounds = array<i64: 1, 1>}, {transform_indices = @transform_5, window_bounds = array<i64: 3, 1024>}, {transform_indices = @transform_6, window_bounds = array<i64: 1, 1024>}]} {
    %c0 = arith.constant 0 : index
    %c0_0 = arith.constant 0 : index
    %0 = vector.load %arg1[%c0, %c0_0] : memref<54x1024xbf16, #tpu.memory_space<vmem>>, vector<54x1024xbf16>
    %c0_1 = arith.constant 0 : index
    %c0_2 = arith.constant 0 : index
    %1 = vector.load %arg2[%c0_1, %c0_2] : memref<3x54xbf16, #tpu.memory_space<vmem>>, vector<3x54xbf16>
    %cst = arith.constant dense<0.000000e+00> : vector<3x1024xf32>
    %2 = tpu.matmul %1, %0, %cst {dimension_numbers = #tpu.dot_dimension_numbers<[1], [0], [0], [1], [0, 0, 1, 1], [], []>} : vector<3x54xbf16>, vector<54x1024xbf16>, vector<3x1024xf32> -> vector<3x1024xf32>
    %c0_3 = arith.constant 0 : index
    %c0_4 = arith.constant 0 : index
    %3 = vector.load %arg3[%c0_3, %c0_4] : memref<3x1xf32, #tpu.memory_space<vmem>>, vector<3x1xf32>
    %4 = vector.broadcast %3 : vector<3x1xf32> to vector<3x1024xf32>
    %5 = arith.addf %2, %4 : vector<3x1024xf32>
    %cst_5 = arith.constant 0.000000e+00 : f32
    %6 = vector.broadcast %cst_5 : f32 to vector<3x1024xf32>
    %7 = arith.maximumf %5, %6 : vector<3x1024xf32>
    %c0_6 = arith.constant 0 : index
    %c0_7 = arith.constant 0 : index
    %8 = vector.load %arg4[%c0_6, %c0_7] : memref<1x3xbf16, #tpu.memory_space<vmem>>, vector<1x3xbf16>
    %9 = arith.truncf %7 : vector<3x1024xf32> to vector<3x1024xbf16>
    %cst_8 = arith.constant dense<0.000000e+00> : vector<1x1024xf32>
    %10 = tpu.matmul %8, %9, %cst_8 {dimension_numbers = #tpu.dot_dimension_numbers<[1], [0], [0], [1], [0, 0, 1, 1], [], []>} : vector<1x3xbf16>, vector<3x1024xbf16>, vector<1x1024xf32> -> vector<1x1024xf32>
    %c0_9 = arith.constant 0 : index
    %c0_10 = arith.constant 0 : index
    %11 = vector.load %arg5[%c0_9, %c0_10] : memref<1x1xf32, #tpu.memory_space<vmem>>, vector<1x1xf32>
    %12 = vector.broadcast %11 : vector<1x1xf32> to vector<1x1024xf32>
    %13 = arith.addf %10, %12 : vector<1x1024xf32>
    %c0_11 = arith.constant 0 : index
    %c0_12 = arith.constant 0 : index
    %14 = vector.load %arg6[%c0_11, %c0_12] : memref<3x1024xf32, #tpu.memory_space<vmem>>, vector<3x1024xf32>
    tpu.vector_store %arg6[%c0_11, %c0_12], %7 {strides = array<i32>} : memref<3x1024xf32, #tpu.memory_space<vmem>>, vector<3x1024xf32>,
    %15 = arith.negf %13 : vector<1x1024xf32>
    %16 = math.exp %15 : vector<1x1024xf32>
    %cst_13 = arith.constant 1.000000e+00 : f32
    %17 = vector.broadcast %cst_13 : f32 to vector<1x1024xf32>
    %18 = arith.addf %17, %16 : vector<1x1024xf32>
    %19 = arith.divf %17, %18 : vector<1x1024xf32>
    %c0_14 = arith.constant 0 : index
    %c0_15 = arith.constant 0 : index
    %20 = vector.load %arg7[%c0_14, %c0_15] : memref<1x1024xf32, #tpu.memory_space<vmem>>, vector<1x1024xf32>
    tpu.vector_store %arg7[%c0_14, %c0_15], %19 {strides = array<i32>} : memref<1x1024xf32, #tpu.memory_space<vmem>>, vector<1x1024xf32>,
    return
  }
  func.func @transform_0(%arg0: i32) -> (i32, i32) {
    %c0_i32 = arith.constant 0 : i32
    %c0_i32_0 = arith.constant 0 : i32
    return %c0_i32, %arg0 : i32, i32
  }
  func.func @transform_1(%arg0: i32) -> (i32, i32) {
    %c0_i32 = arith.constant 0 : i32
    %c0_i32_0 = arith.constant 0 : i32
    %c0_i32_1 = arith.constant 0 : i32
    return %c0_i32, %c0_i32_0 : i32, i32
  }
  func.func @transform_2(%arg0: i32) -> (i32, i32) {
    %c0_i32 = arith.constant 0 : i32
    %c0_i32_0 = arith.constant 0 : i32
    %c0_i32_1 = arith.constant 0 : i32
    return %c0_i32, %c0_i32_0 : i32, i32
  }
  func.func @transform_3(%arg0: i32) -> (i32, i32) {
    %c0_i32 = arith.constant 0 : i32
    %c0_i32_0 = arith.constant 0 : i32
    %c0_i32_1 = arith.constant 0 : i32
    return %c0_i32, %c0_i32_0 : i32, i32
  }
  func.func @transform_4(%arg0: i32) -> (i32, i32) {
    %c0_i32 = arith.constant 0 : i32
    %c0_i32_0 = arith.constant 0 : i32
    %c0_i32_1 = arith.constant 0 : i32
    return %c0_i32, %c0_i32_0 : i32, i32
  }
  func.func @transform_5(%arg0: i32) -> (i32, i32) {
    %c0_i32 = arith.constant 0 : i32
    %c0_i32_0 = arith.constant 0 : i32
    return %c0_i32, %arg0 : i32, i32
  }
  func.func @transform_6(%arg0: i32) -> (i32, i32) {
    %c0_i32 = arith.constant 0 : i32
    %c0_i32_0 = arith.constant 0 : i32
    return %c0_i32, %arg0 : i32, i32
  }
}

module attributes {stable_mosaic.version = 11 : i64} {
  func.func @_linear_kernel(%arg0: i32, %arg1: memref<64x48xf32, #tpu.memory_space<vmem>>, %arg2: memref<48x32xbf16, #tpu.memory_space<vmem>>, %arg3: memref<1x32xf32, #tpu.memory_space<vmem>>, %arg4: memref<64x32xf32, #tpu.memory_space<vmem>>) attributes {dimension_semantics = [#tpu.dimension_semantics<parallel>], iteration_bounds = array<i64: 1>, scalar_prefetch = 0 : i64, scratch_operands = 0 : i64, tpu.core_type = #tpu.core_type<tc>, window_params = [{transform_indices = @transform_0, window_bounds = array<i64: 64, 48>}, {pipeline_mode = #tpu.pipeline_mode<synchronous>, transform_indices = @transform_1, window_bounds = array<i64: 48, 32>}, {pipeline_mode = #tpu.pipeline_mode<synchronous>, transform_indices = @transform_2, window_bounds = array<i64: 1, 32>}, {transform_indices = @transform_3, window_bounds = array<i64: 64, 32>}]} {
    %c0 = arith.constant 0 : index
    %c0_0 = arith.constant 0 : index
    %0 = vector.load %arg1[%c0, %c0_0] : memref<64x48xf32, #tpu.memory_space<vmem>>, vector<64x48xf32>
    %1 = arith.truncf %0 : vector<64x48xf32> to vector<64x48xbf16>
    %c0_1 = arith.constant 0 : index
    %c0_2 = arith.constant 0 : index
    %2 = vector.load %arg2[%c0_1, %c0_2] : memref<48x32xbf16, #tpu.memory_space<vmem>>, vector<48x32xbf16>
    %cst = arith.constant dense<0.000000e+00> : vector<64x32xf32>
    %3 = tpu.matmul %1, %2, %cst {dimension_numbers = #tpu.dot_dimension_numbers<[1], [0], [0], [1], [0, 0, 1, 1], [], []>} : vector<64x48xbf16>, vector<48x32xbf16>, vector<64x32xf32> -> vector<64x32xf32>
    %c0_3 = arith.constant 0 : index
    %c0_4 = arith.constant 0 : index
    %4 = vector.load %arg3[%c0_3, %c0_4] : memref<1x32xf32, #tpu.memory_space<vmem>>, vector<1x32xf32>
    %5 = vector.broadcast %4 : vector<1x32xf32> to vector<64x32xf32>
    %6 = arith.addf %3, %5 : vector<64x32xf32>
    %c0_5 = arith.constant 0 : index
    %c0_6 = arith.constant 0 : index
    %7 = vector.load %arg4[%c0_5, %c0_6] : memref<64x32xf32, #tpu.memory_space<vmem>>, vector<64x32xf32>
    tpu.vector_store %arg4[%c0_5, %c0_6], %6 {strides = array<i32>} : memref<64x32xf32, #tpu.memory_space<vmem>>, vector<64x32xf32>,
    return
  }
  func.func @transform_0(%arg0: i32) -> (i32, i32) {
    %c0_i32 = arith.constant 0 : i32
    %c0_i32_0 = arith.constant 0 : i32
    return %arg0, %c0_i32 : i32, i32
  }
  func.func @transform_1(%arg0: i32) -> (i32, i32) {
    %c0_i32 = arith.constant 0 : i32
    %c0_i32_0 = arith.constant 0 : i32
    %c0_i32_1 = arith.constant 0 : i32
    return %c0_i32, %c0_i32_0 : i32, i32
  }
  func.func @transform_2(%arg0: i32) -> (i32, i32) {
    %c0_i32 = arith.constant 0 : i32
    %c0_i32_0 = arith.constant 0 : i32
    %c0_i32_1 = arith.constant 0 : i32
    return %c0_i32, %c0_i32_0 : i32, i32
  }
  func.func @transform_3(%arg0: i32) -> (i32, i32) {
    %c0_i32 = arith.constant 0 : i32
    %c0_i32_0 = arith.constant 0 : i32
    return %arg0, %c0_i32 : i32, i32
  }
}

module attributes {stable_mosaic.version = 11 : i64} {
  func.func @_temporal_kernel(%arg0: i32, %arg1: memref<2x2x32xf32, #tpu.memory_space<vmem>>, %arg2: memref<1x1x32xf32, #tpu.memory_space<vmem>>, %arg3: memref<1x1x32xf32, #tpu.memory_space<vmem>>, %arg4: memref<1x32x96xbf16, #tpu.memory_space<vmem>>, %arg5: memref<1x1x96xf32, #tpu.memory_space<vmem>>, %arg6: memref<1x32x32xbf16, #tpu.memory_space<vmem>>, %arg7: memref<1x1x32xf32, #tpu.memory_space<vmem>>, %arg8: memref<1x1x32xf32, #tpu.memory_space<vmem>>, %arg9: memref<1x1x32xf32, #tpu.memory_space<vmem>>, %arg10: memref<1x32x128xbf16, #tpu.memory_space<vmem>>, %arg11: memref<1x1x128xf32, #tpu.memory_space<vmem>>, %arg12: memref<1x128x32xbf16, #tpu.memory_space<vmem>>, %arg13: memref<1x1x32xf32, #tpu.memory_space<vmem>>, %arg14: memref<1x32xf32, #tpu.memory_space<vmem>>, %arg15: memref<1x32xf32, #tpu.memory_space<vmem>>, %arg16: memref<32x128xbf16, #tpu.memory_space<vmem>>, %arg17: memref<1x128xf32, #tpu.memory_space<vmem>>, %arg18: memref<4x128xf32, #tpu.memory_space<vmem>>, %arg19: memref<2x2x32xf32, #tpu.memory_space<vmem>>) attributes {dimension_semantics = [#tpu.dimension_semantics<arbitrary>], iteration_bounds = array<i64: 1>, scalar_prefetch = 0 : i64, scratch_operands = 1 : i64, tpu.core_type = #tpu.core_type<tc>, window_params = [{pipeline_mode = #tpu.pipeline_mode<synchronous>, transform_indices = @transform_0, window_bounds = array<i64: 2, 2, 32>}, {transform_indices = @transform_1, window_bounds = array<i64: 1, 1, 32>}, {transform_indices = @transform_2, window_bounds = array<i64: 1, 1, 32>}, {transform_indices = @transform_3, window_bounds = array<i64: 1, 32, 96>}, {transform_indices = @transform_4, window_bounds = array<i64: 1, 1, 96>}, {transform_indices = @transform_5, window_bounds = array<i64: 1, 32, 32>}, {transform_indices = @transform_6, window_bounds = array<i64: 1, 1, 32>}, {transform_indices = @transform_7, window_bounds = array<i64: 1, 1, 32>}, {transform_indices = @transform_8, window_bounds = array<i64: 1, 1, 32>}, {transform_indices = @transform_9, window_bounds = array<i64: 1, 32, 128>}, {transform_indices = @transform_10, window_bounds = array<i64: 1, 1, 128>}, {transform_indices = @transform_11, window_bounds = array<i64: 1, 128, 32>}, {transform_indices = @transform_12, window_bounds = array<i64: 1, 1, 32>}, {pipeline_mode = #tpu.pipeline_mode<synchronous>, transform_indices = @transform_13, window_bounds = array<i64: 1, 32>}, {pipeline_mode = #tpu.pipeline_mode<synchronous>, transform_indices = @transform_14, window_bounds = array<i64: 1, 32>}, {pipeline_mode = #tpu.pipeline_mode<synchronous>, transform_indices = @transform_15, window_bounds = array<i64: 32, 128>}, {pipeline_mode = #tpu.pipeline_mode<synchronous>, transform_indices = @transform_16, window_bounds = array<i64: 1, 128>}, {pipeline_mode = #tpu.pipeline_mode<synchronous>, transform_indices = @transform_17, window_bounds = array<i64: 4, 128>}]} {
    %c0_i32 = arith.constant 0 : i32
    %0 = arith.cmpi eq, %arg0, %c0_i32 : i32
    %1 = arith.extui %0 : i1 to i32
    %c0_i32_0 = arith.constant 0 : i32
    %2 = arith.cmpi ne, %1, %c0_i32_0 : i32
    scf.if %2 {
      %c0_77 = arith.constant 0 : index
      %c0_78 = arith.constant 0 : index
      %c0_79 = arith.constant 0 : index
      %205 = vector.load %arg1[%c0_77, %c0_78, %c0_79] : memref<2x2x32xf32, #tpu.memory_space<vmem>>, vector<2x2x32xf32>
      %c0_80 = arith.constant 0 : index
      %c0_81 = arith.constant 0 : index
      %c0_82 = arith.constant 0 : index
      %206 = vector.load %arg19[%c0_80, %c0_81, %c0_82] : memref<2x2x32xf32, #tpu.memory_space<vmem>>, vector<2x2x32xf32>
      tpu.vector_store %arg19[%c0_80, %c0_81, %c0_82], %205 {strides = array<i32>} : memref<2x2x32xf32, #tpu.memory_space<vmem>>, vector<2x2x32xf32>,
    } else {
    }
    %c0 = arith.constant 0 : index
    %c0_1 = arith.constant 0 : index
    %c0_2 = arith.constant 0 : index
    %3 = vector.load %arg19[%c0, %c0_1, %c0_2] : memref<2x2x32xf32, #tpu.memory_space<vmem>>, vector<2x2x32xf32>
    %c0_3 = arith.constant 0 : index
    %c0_4 = arith.constant 0 : index
    %c0_5 = arith.constant 0 : index
    %4 = vector.load %arg2[%c0_3, %c0_4, %c0_5] : memref<1x1x32xf32, #tpu.memory_space<vmem>>, vector<1x1x32xf32>
    %5 = vector.shape_cast %4 : vector<1x1x32xf32> to vector<1x32xf32>
    %c0_6 = arith.constant 0 : index
    %c0_7 = arith.constant 0 : index
    %c0_8 = arith.constant 0 : index
    %6 = vector.load %arg3[%c0_6, %c0_7, %c0_8] : memref<1x1x32xf32, #tpu.memory_space<vmem>>, vector<1x1x32xf32>
    %7 = vector.shape_cast %6 : vector<1x1x32xf32> to vector<1x32xf32>
    %c0_9 = arith.constant 0 : index
    %c0_10 = arith.constant 0 : index
    %c0_11 = arith.constant 0 : index
    %8 = vector.load %arg4[%c0_9, %c0_10, %c0_11] : memref<1x32x96xbf16, #tpu.memory_space<vmem>>, vector<1x32x96xbf16>
    %9 = vector.shape_cast %8 : vector<1x32x96xbf16> to vector<32x96xbf16>
    %c0_12 = arith.constant 0 : index
    %c0_13 = arith.constant 0 : index
    %c0_14 = arith.constant 0 : index
    %10 = vector.load %arg5[%c0_12, %c0_13, %c0_14] : memref<1x1x96xf32, #tpu.memory_space<vmem>>, vector<1x1x96xf32>
    %11 = vector.shape_cast %10 : vector<1x1x96xf32> to vector<1x96xf32>
    %c0_15 = arith.constant 0 : index
    %c0_16 = arith.constant 0 : index
    %c0_17 = arith.constant 0 : index
    %12 = vector.load %arg6[%c0_15, %c0_16, %c0_17] : memref<1x32x32xbf16, #tpu.memory_space<vmem>>, vector<1x32x32xbf16>
    %13 = vector.shape_cast %12 : vector<1x32x32xbf16> to vector<32x32xbf16>
    %c0_18 = arith.constant 0 : index
    %c0_19 = arith.constant 0 : index
    %c0_20 = arith.constant 0 : index
    %14 = vector.load %arg7[%c0_18, %c0_19, %c0_20] : memref<1x1x32xf32, #tpu.memory_space<vmem>>, vector<1x1x32xf32>
    %15 = vector.shape_cast %14 : vector<1x1x32xf32> to vector<1x32xf32>
    %c0_21 = arith.constant 0 : index
    %c0_22 = arith.constant 0 : index
    %c0_23 = arith.constant 0 : index
    %16 = vector.load %arg8[%c0_21, %c0_22, %c0_23] : memref<1x1x32xf32, #tpu.memory_space<vmem>>, vector<1x1x32xf32>
    %17 = vector.shape_cast %16 : vector<1x1x32xf32> to vector<1x32xf32>
    %c0_24 = arith.constant 0 : index
    %c0_25 = arith.constant 0 : index
    %c0_26 = arith.constant 0 : index
    %18 = vector.load %arg9[%c0_24, %c0_25, %c0_26] : memref<1x1x32xf32, #tpu.memory_space<vmem>>, vector<1x1x32xf32>
    %19 = vector.shape_cast %18 : vector<1x1x32xf32> to vector<1x32xf32>
    %c0_27 = arith.constant 0 : index
    %c0_28 = arith.constant 0 : index
    %c0_29 = arith.constant 0 : index
    %20 = vector.load %arg10[%c0_27, %c0_28, %c0_29] : memref<1x32x128xbf16, #tpu.memory_space<vmem>>, vector<1x32x128xbf16>
    %21 = vector.shape_cast %20 : vector<1x32x128xbf16> to vector<32x128xbf16>
    %c0_30 = arith.constant 0 : index
    %c0_31 = arith.constant 0 : index
    %c0_32 = arith.constant 0 : index
    %22 = vector.load %arg11[%c0_30, %c0_31, %c0_32] : memref<1x1x128xf32, #tpu.memory_space<vmem>>, vector<1x1x128xf32>
    %23 = vector.shape_cast %22 : vector<1x1x128xf32> to vector<1x128xf32>
    %c0_33 = arith.constant 0 : index
    %c0_34 = arith.constant 0 : index
    %c0_35 = arith.constant 0 : index
    %24 = vector.load %arg12[%c0_33, %c0_34, %c0_35] : memref<1x128x32xbf16, #tpu.memory_space<vmem>>, vector<1x128x32xbf16>
    %25 = vector.shape_cast %24 : vector<1x128x32xbf16> to vector<128x32xbf16>
    %c0_36 = arith.constant 0 : index
    %c0_37 = arith.constant 0 : index
    %c0_38 = arith.constant 0 : index
    %26 = vector.load %arg13[%c0_36, %c0_37, %c0_38] : memref<1x1x32xf32, #tpu.memory_space<vmem>>, vector<1x1x32xf32>
    %27 = vector.shape_cast %26 : vector<1x1x32xf32> to vector<1x32xf32>
    %cst = arith.constant dense<0.000000e+00> : vector<2x2xf32>
    %28 = vector.multi_reduction <add>, %3, %cst [2] : vector<2x2x32xf32> to vector<2x2xf32>
    %29 = vector.shape_cast %28 : vector<2x2xf32> to vector<2x2x1xf32>
    %cst_39 = arith.constant 3.200000e+01 : f32
    %30 = vector.broadcast %cst_39 : f32 to vector<2x2x1xf32>
    %31 = arith.divf %29, %30 : vector<2x2x1xf32>
    %32 = vector.broadcast %31 : vector<2x2x1xf32> to vector<2x2x32xf32>
    %33 = arith.subf %3, %32 : vector<2x2x32xf32>
    %34 = arith.mulf %33, %33 : vector<2x2x32xf32>
    %cst_40 = arith.constant dense<0.000000e+00> : vector<2x2xf32>
    %35 = vector.multi_reduction <add>, %34, %cst_40 [2] : vector<2x2x32xf32> to vector<2x2xf32>
    %36 = vector.shape_cast %35 : vector<2x2xf32> to vector<2x2x1xf32>
    %cst_41 = arith.constant 3.200000e+01 : f32
    %37 = vector.broadcast %cst_41 : f32 to vector<2x2x1xf32>
    %38 = arith.divf %36, %37 : vector<2x2x1xf32>
    %39 = vector.broadcast %31 : vector<2x2x1xf32> to vector<2x2x32xf32>
    %40 = arith.subf %3, %39 : vector<2x2x32xf32>
    %cst_42 = arith.constant 9.99999974E-6 : f32
    %41 = vector.broadcast %cst_42 : f32 to vector<2x2x1xf32>
    %42 = arith.addf %38, %41 : vector<2x2x1xf32>
    %43 = math.rsqrt %42 : vector<2x2x1xf32>
    %44 = vector.broadcast %43 : vector<2x2x1xf32> to vector<2x2x32xf32>
    %45 = arith.mulf %40, %44 : vector<2x2x32xf32>
    %46 = vector.shape_cast %5 : vector<1x32xf32> to vector<1x1x32xf32>
    %47 = vector.broadcast %46 : vector<1x1x32xf32> to vector<2x2x32xf32>
    %48 = arith.mulf %45, %47 : vector<2x2x32xf32>
    %49 = vector.shape_cast %7 : vector<1x32xf32> to vector<1x1x32xf32>
    %50 = vector.broadcast %49 : vector<1x1x32xf32> to vector<2x2x32xf32>
    %51 = arith.addf %48, %50 : vector<2x2x32xf32>
    %52 = vector.shape_cast %51 : vector<2x2x32xf32> to vector<4x32xf32>
    %53 = arith.truncf %52 : vector<4x32xf32> to vector<4x32xbf16>
    %cst_43 = arith.constant dense<0.000000e+00> : vector<4x96xf32>
    %54 = tpu.matmul %53, %9, %cst_43 {dimension_numbers = #tpu.dot_dimension_numbers<[1], [0], [0], [1], [0, 0, 1, 1], [], []>} : vector<4x32xbf16>, vector<32x96xbf16>, vector<4x96xf32> -> vector<4x96xf32>
    %55 = vector.broadcast %11 : vector<1x96xf32> to vector<4x96xf32>
    %56 = arith.addf %54, %55 : vector<4x96xf32>
    %57 = vector.extract_strided_slice %56 {offsets = [0, 0], sizes = [4, 8], strides = [1, 1]} : vector<4x96xf32> to vector<4x8xf32>
    %58 = vector.shape_cast %57 : vector<4x8xf32> to vector<2x2x8xf32>
    %59 = arith.truncf %58 : vector<2x2x8xf32> to vector<2x2x8xbf16>
    %60 = vector.extract_strided_slice %56 {offsets = [0, 32], sizes = [4, 8], strides = [1, 1]} : vector<4x96xf32> to vector<4x8xf32>
    %61 = vector.shape_cast %60 : vector<4x8xf32> to vector<2x2x8xf32>
    %62 = arith.truncf %61 : vector<2x2x8xf32> to vector<2x2x8xbf16>
    %63 = vector.extract_strided_slice %56 {offsets = [0, 64], sizes = [4, 8], strides = [1, 1]} : vector<4x96xf32> to vector<4x8xf32>
    %64 = vector.shape_cast %63 : vector<4x8xf32> to vector<2x2x8xf32>
    %65 = arith.truncf %64 : vector<2x2x8xf32> to vector<2x2x8xbf16>
    "tpu.trace_start"() <{level = 10 : i32, message = "bnd,bmd->bnm"}> : () -> ()
    %cst_44 = arith.constant dense<0.000000e+00> : vector<2x2x2xf32>
    %66 = tpu.matmul %59, %62, %cst_44 {dimension_numbers = #tpu.dot_dimension_numbers<[2], [2], [1], [1], [0, 0, 0, 1, 1, 1], [0], [0]>} : vector<2x2x8xbf16>, vector<2x2x8xbf16>, vector<2x2x2xf32> -> vector<2x2x2xf32>
    "tpu.trace_stop"() : () -> ()
    %cst_45 = arith.constant dense<0xFF800000> : vector<2x2xf32>
    %67 = vector.multi_reduction <maximumf>, %66, %cst_45 [2] : vector<2x2x2xf32> to vector<2x2xf32>
    %68 = vector.shape_cast %67 : vector<2x2xf32> to vector<2x2x1xf32>
    %69 = vector.broadcast %68 : vector<2x2x1xf32> to vector<2x2x2xf32>
    %70 = arith.subf %66, %69 : vector<2x2x2xf32>
    %71 = math.exp %70 : vector<2x2x2xf32>
    %cst_46 = arith.constant dense<0.000000e+00> : vector<2x2xf32>
    %72 = vector.multi_reduction <add>, %71, %cst_46 [2] : vector<2x2x2xf32> to vector<2x2xf32>
    %73 = vector.shape_cast %72 : vector<2x2xf32> to vector<2x2x1xf32>
    %74 = tpu.reciprocal %73 {approx = true} : vector<2x2x1xf32> -> vector<2x2x1xf32>
    %75 = vector.broadcast %74 : vector<2x2x1xf32> to vector<2x2x2xf32>
    %76 = arith.mulf %71, %75 : vector<2x2x2xf32>
    %77 = arith.truncf %76 : vector<2x2x2xf32> to vector<2x2x2xbf16>
    "tpu.trace_start"() <{level = 10 : i32, message = "bnm,bmd->bnd"}> : () -> ()
    %cst_47 = arith.constant dense<0.000000e+00> : vector<2x2x8xf32>
    %78 = tpu.matmul %77, %65, %cst_47 {dimension_numbers = #tpu.dot_dimension_numbers<[2], [1], [1], [2], [0, 0, 0, 1, 1, 2], [0], [0]>} : vector<2x2x2xbf16>, vector<2x2x8xbf16>, vector<2x2x8xf32> -> vector<2x2x8xf32>
    "tpu.trace_stop"() : () -> ()
    %79 = vector.extract_strided_slice %56 {offsets = [0, 8], sizes = [4, 8], strides = [1, 1]} : vector<4x96xf32> to vector<4x8xf32>
    %80 = vector.shape_cast %79 : vector<4x8xf32> to vector<2x2x8xf32>
    %81 = arith.truncf %80 : vector<2x2x8xf32> to vector<2x2x8xbf16>
    %82 = vector.extract_strided_slice %56 {offsets = [0, 40], sizes = [4, 8], strides = [1, 1]} : vector<4x96xf32> to vector<4x8xf32>
    %83 = vector.shape_cast %82 : vector<4x8xf32> to vector<2x2x8xf32>
    %84 = arith.truncf %83 : vector<2x2x8xf32> to vector<2x2x8xbf16>
    %85 = vector.extract_strided_slice %56 {offsets = [0, 72], sizes = [4, 8], strides = [1, 1]} : vector<4x96xf32> to vector<4x8xf32>
    %86 = vector.shape_cast %85 : vector<4x8xf32> to vector<2x2x8xf32>
    %87 = arith.truncf %86 : vector<2x2x8xf32> to vector<2x2x8xbf16>
    "tpu.trace_start"() <{level = 10 : i32, message = "bnd,bmd->bnm"}> : () -> ()
    %cst_48 = arith.constant dense<0.000000e+00> : vector<2x2x2xf32>
    %88 = tpu.matmul %81, %84, %cst_48 {dimension_numbers = #tpu.dot_dimension_numbers<[2], [2], [1], [1], [0, 0, 0, 1, 1, 1], [0], [0]>} : vector<2x2x8xbf16>, vector<2x2x8xbf16>, vector<2x2x2xf32> -> vector<2x2x2xf32>
    "tpu.trace_stop"() : () -> ()
    %cst_49 = arith.constant dense<0xFF800000> : vector<2x2xf32>
    %89 = vector.multi_reduction <maximumf>, %88, %cst_49 [2] : vector<2x2x2xf32> to vector<2x2xf32>
    %90 = vector.shape_cast %89 : vector<2x2xf32> to vector<2x2x1xf32>
    %91 = vector.broadcast %90 : vector<2x2x1xf32> to vector<2x2x2xf32>
    %92 = arith.subf %88, %91 : vector<2x2x2xf32>
    %93 = math.exp %92 : vector<2x2x2xf32>
    %cst_50 = arith.constant dense<0.000000e+00> : vector<2x2xf32>
    %94 = vector.multi_reduction <add>, %93, %cst_50 [2] : vector<2x2x2xf32> to vector<2x2xf32>
    %95 = vector.shape_cast %94 : vector<2x2xf32> to vector<2x2x1xf32>
    %96 = tpu.reciprocal %95 {approx = true} : vector<2x2x1xf32> -> vector<2x2x1xf32>
    %97 = vector.broadcast %96 : vector<2x2x1xf32> to vector<2x2x2xf32>
    %98 = arith.mulf %93, %97 : vector<2x2x2xf32>
    %99 = arith.truncf %98 : vector<2x2x2xf32> to vector<2x2x2xbf16>
    "tpu.trace_start"() <{level = 10 : i32, message = "bnm,bmd->bnd"}> : () -> ()
    %cst_51 = arith.constant dense<0.000000e+00> : vector<2x2x8xf32>
    %100 = tpu.matmul %99, %87, %cst_51 {dimension_numbers = #tpu.dot_dimension_numbers<[2], [1], [1], [2], [0, 0, 0, 1, 1, 2], [0], [0]>} : vector<2x2x2xbf16>, vector<2x2x8xbf16>, vector<2x2x8xf32> -> vector<2x2x8xf32>
    "tpu.trace_stop"() : () -> ()
    %101 = vector.extract_strided_slice %56 {offsets = [0, 16], sizes = [4, 8], strides = [1, 1]} : vector<4x96xf32> to vector<4x8xf32>
    %102 = vector.shape_cast %101 : vector<4x8xf32> to vector<2x2x8xf32>
    %103 = arith.truncf %102 : vector<2x2x8xf32> to vector<2x2x8xbf16>
    %104 = vector.extract_strided_slice %56 {offsets = [0, 48], sizes = [4, 8], strides = [1, 1]} : vector<4x96xf32> to vector<4x8xf32>
    %105 = vector.shape_cast %104 : vector<4x8xf32> to vector<2x2x8xf32>
    %106 = arith.truncf %105 : vector<2x2x8xf32> to vector<2x2x8xbf16>
    %107 = vector.extract_strided_slice %56 {offsets = [0, 80], sizes = [4, 8], strides = [1, 1]} : vector<4x96xf32> to vector<4x8xf32>
    %108 = vector.shape_cast %107 : vector<4x8xf32> to vector<2x2x8xf32>
    %109 = arith.truncf %108 : vector<2x2x8xf32> to vector<2x2x8xbf16>
    "tpu.trace_start"() <{level = 10 : i32, message = "bnd,bmd->bnm"}> : () -> ()
    %cst_52 = arith.constant dense<0.000000e+00> : vector<2x2x2xf32>
    %110 = tpu.matmul %103, %106, %cst_52 {dimension_numbers = #tpu.dot_dimension_numbers<[2], [2], [1], [1], [0, 0, 0, 1, 1, 1], [0], [0]>} : vector<2x2x8xbf16>, vector<2x2x8xbf16>, vector<2x2x2xf32> -> vector<2x2x2xf32>
    "tpu.trace_stop"() : () -> ()
    %cst_53 = arith.constant dense<0xFF800000> : vector<2x2xf32>
    %111 = vector.multi_reduction <maximumf>, %110, %cst_53 [2] : vector<2x2x2xf32> to vector<2x2xf32>
    %112 = vector.shape_cast %111 : vector<2x2xf32> to vector<2x2x1xf32>
    %113 = vector.broadcast %112 : vector<2x2x1xf32> to vector<2x2x2xf32>
    %114 = arith.subf %110, %113 : vector<2x2x2xf32>
    %115 = math.exp %114 : vector<2x2x2xf32>
    %cst_54 = arith.constant dense<0.000000e+00> : vector<2x2xf32>
    %116 = vector.multi_reduction <add>, %115, %cst_54 [2] : vector<2x2x2xf32> to vector<2x2xf32>
    %117 = vector.shape_cast %116 : vector<2x2xf32> to vector<2x2x1xf32>
    %118 = tpu.reciprocal %117 {approx = true} : vector<2x2x1xf32> -> vector<2x2x1xf32>
    %119 = vector.broadcast %118 : vector<2x2x1xf32> to vector<2x2x2xf32>
    %120 = arith.mulf %115, %119 : vector<2x2x2xf32>
    %121 = arith.truncf %120 : vector<2x2x2xf32> to vector<2x2x2xbf16>
    "tpu.trace_start"() <{level = 10 : i32, message = "bnm,bmd->bnd"}> : () -> ()
    %cst_55 = arith.constant dense<0.000000e+00> : vector<2x2x8xf32>
    %122 = tpu.matmul %121, %109, %cst_55 {dimension_numbers = #tpu.dot_dimension_numbers<[2], [1], [1], [2], [0, 0, 0, 1, 1, 2], [0], [0]>} : vector<2x2x2xbf16>, vector<2x2x8xbf16>, vector<2x2x8xf32> -> vector<2x2x8xf32>
    "tpu.trace_stop"() : () -> ()
    %123 = vector.extract_strided_slice %56 {offsets = [0, 24], sizes = [4, 8], strides = [1, 1]} : vector<4x96xf32> to vector<4x8xf32>
    %124 = vector.shape_cast %123 : vector<4x8xf32> to vector<2x2x8xf32>
    %125 = arith.truncf %124 : vector<2x2x8xf32> to vector<2x2x8xbf16>
    %126 = vector.extract_strided_slice %56 {offsets = [0, 56], sizes = [4, 8], strides = [1, 1]} : vector<4x96xf32> to vector<4x8xf32>
    %127 = vector.shape_cast %126 : vector<4x8xf32> to vector<2x2x8xf32>
    %128 = arith.truncf %127 : vector<2x2x8xf32> to vector<2x2x8xbf16>
    %129 = vector.extract_strided_slice %56 {offsets = [0, 88], sizes = [4, 8], strides = [1, 1]} : vector<4x96xf32> to vector<4x8xf32>
    %130 = vector.shape_cast %129 : vector<4x8xf32> to vector<2x2x8xf32>
    %131 = arith.truncf %130 : vector<2x2x8xf32> to vector<2x2x8xbf16>
    "tpu.trace_start"() <{level = 10 : i32, message = "bnd,bmd->bnm"}> : () -> ()
    %cst_56 = arith.constant dense<0.000000e+00> : vector<2x2x2xf32>
    %132 = tpu.matmul %125, %128, %cst_56 {dimension_numbers = #tpu.dot_dimension_numbers<[2], [2], [1], [1], [0, 0, 0, 1, 1, 1], [0], [0]>} : vector<2x2x8xbf16>, vector<2x2x8xbf16>, vector<2x2x2xf32> -> vector<2x2x2xf32>
    "tpu.trace_stop"() : () -> ()
    %cst_57 = arith.constant dense<0xFF800000> : vector<2x2xf32>
    %133 = vector.multi_reduction <maximumf>, %132, %cst_57 [2] : vector<2x2x2xf32> to vector<2x2xf32>
    %134 = vector.shape_cast %133 : vector<2x2xf32> to vector<2x2x1xf32>
    %135 = vector.broadcast %134 : vector<2x2x1xf32> to vector<2x2x2xf32>
    %136 = arith.subf %132, %135 : vector<2x2x2xf32>
    %137 = math.exp %136 : vector<2x2x2xf32>
    %cst_58 = arith.constant dense<0.000000e+00> : vector<2x2xf32>
    %138 = vector.multi_reduction <add>, %137, %cst_58 [2] : vector<2x2x2xf32> to vector<2x2xf32>
    %139 = vector.shape_cast %138 : vector<2x2xf32> to vector<2x2x1xf32>
    %140 = tpu.reciprocal %139 {approx = true} : vector<2x2x1xf32> -> vector<2x2x1xf32>
    %141 = vector.broadcast %140 : vector<2x2x1xf32> to vector<2x2x2xf32>
    %142 = arith.mulf %137, %141 : vector<2x2x2xf32>
    %143 = arith.truncf %142 : vector<2x2x2xf32> to vector<2x2x2xbf16>
    "tpu.trace_start"() <{level = 10 : i32, message = "bnm,bmd->bnd"}> : () -> ()
    %cst_59 = arith.constant dense<0.000000e+00> : vector<2x2x8xf32>
    %144 = tpu.matmul %143, %131, %cst_59 {dimension_numbers = #tpu.dot_dimension_numbers<[2], [1], [1], [2], [0, 0, 0, 1, 1, 2], [0], [0]>} : vector<2x2x2xbf16>, vector<2x2x8xbf16>, vector<2x2x8xf32> -> vector<2x2x8xf32>
    "tpu.trace_stop"() : () -> ()
    %145 = tpu.concatenate %78, %100, %122, %144 in 2 : vector<2x2x8xf32>, vector<2x2x8xf32>, vector<2x2x8xf32>, vector<2x2x8xf32> -> vector<2x2x32xf32>
    %146 = vector.shape_cast %145 : vector<2x2x32xf32> to vector<4x32xf32>
    %147 = arith.truncf %146 : vector<4x32xf32> to vector<4x32xbf16>
    %cst_60 = arith.constant dense<0.000000e+00> : vector<4x32xf32>
    %148 = tpu.matmul %147, %13, %cst_60 {dimension_numbers = #tpu.dot_dimension_numbers<[1], [0], [0], [1], [0, 0, 1, 1], [], []>} : vector<4x32xbf16>, vector<32x32xbf16>, vector<4x32xf32> -> vector<4x32xf32>
    %149 = vector.broadcast %15 : vector<1x32xf32> to vector<4x32xf32>
    %150 = arith.addf %148, %149 : vector<4x32xf32>
    %151 = vector.shape_cast %150 : vector<4x32xf32> to vector<2x2x32xf32>
    %152 = arith.addf %3, %151 : vector<2x2x32xf32>
    %cst_61 = arith.constant dense<0.000000e+00> : vector<2x2xf32>
    %153 = vector.multi_reduction <add>, %152, %cst_61 [2] : vector<2x2x32xf32> to vector<2x2xf32>
    %154 = vector.shape_cast %153 : vector<2x2xf32> to vector<2x2x1xf32>
    %cst_62 = arith.constant 3.200000e+01 : f32
    %155 = vector.broadcast %cst_62 : f32 to vector<2x2x1xf32>
    %156 = arith.divf %154, %155 : vector<2x2x1xf32>
    %157 = vector.broadcast %156 : vector<2x2x1xf32> to vector<2x2x32xf32>
    %158 = arith.subf %152, %157 : vector<2x2x32xf32>
    %159 = arith.mulf %158, %158 : vector<2x2x32xf32>
    %cst_63 = arith.constant dense<0.000000e+00> : vector<2x2xf32>
    %160 = vector.multi_reduction <add>, %159, %cst_63 [2] : vector<2x2x32xf32> to vector<2x2xf32>
    %161 = vector.shape_cast %160 : vector<2x2xf32> to vector<2x2x1xf32>
    %cst_64 = arith.constant 3.200000e+01 : f32
    %162 = vector.broadcast %cst_64 : f32 to vector<2x2x1xf32>
    %163 = arith.divf %161, %162 : vector<2x2x1xf32>
    %164 = vector.broadcast %156 : vector<2x2x1xf32> to vector<2x2x32xf32>
    %165 = arith.subf %152, %164 : vector<2x2x32xf32>
    %cst_65 = arith.constant 9.99999974E-6 : f32
    %166 = vector.broadcast %cst_65 : f32 to vector<2x2x1xf32>
    %167 = arith.addf %163, %166 : vector<2x2x1xf32>
    %168 = math.rsqrt %167 : vector<2x2x1xf32>
    %169 = vector.broadcast %168 : vector<2x2x1xf32> to vector<2x2x32xf32>
    %170 = arith.mulf %165, %169 : vector<2x2x32xf32>
    %171 = vector.shape_cast %17 : vector<1x32xf32> to vector<1x1x32xf32>
    %172 = vector.broadcast %171 : vector<1x1x32xf32> to vector<2x2x32xf32>
    %173 = arith.mulf %170, %172 : vector<2x2x32xf32>
    %174 = vector.shape_cast %19 : vector<1x32xf32> to vector<1x1x32xf32>
    %175 = vector.broadcast %174 : vector<1x1x32xf32> to vector<2x2x32xf32>
    %176 = arith.addf %173, %175 : vector<2x2x32xf32>
    %177 = vector.shape_cast %176 : vector<2x2x32xf32> to vector<4x32xf32>
    %178 = arith.truncf %177 : vector<4x32xf32> to vector<4x32xbf16>
    %cst_66 = arith.constant dense<0.000000e+00> : vector<4x128xf32>
    %179 = tpu.matmul %178, %21, %cst_66 {dimension_numbers = #tpu.dot_dimension_numbers<[1], [0], [0], [1], [0, 0, 1, 1], [], []>} : vector<4x32xbf16>, vector<32x128xbf16>, vector<4x128xf32> -> vector<4x128xf32>
    %180 = vector.broadcast %23 : vector<1x128xf32> to vector<4x128xf32>
    %181 = arith.addf %179, %180 : vector<4x128xf32>
    %182 = arith.mulf %181, %181 : vector<4x128xf32>
    %183 = arith.mulf %181, %182 : vector<4x128xf32>
    %cst_67 = arith.constant 4.471500e-02 : f32
    %184 = vector.broadcast %cst_67 : f32 to vector<4x128xf32>
    %185 = arith.mulf %184, %183 : vector<4x128xf32>
    %186 = arith.addf %181, %185 : vector<4x128xf32>
    %cst_68 = arith.constant 0.797884583 : f32
    %187 = vector.broadcast %cst_68 : f32 to vector<4x128xf32>
    %188 = arith.mulf %187, %186 : vector<4x128xf32>
    %189 = math.tanh %188 : vector<4x128xf32>
    %cst_69 = arith.constant 1.000000e+00 : f32
    %190 = vector.broadcast %cst_69 : f32 to vector<4x128xf32>
    %191 = arith.addf %190, %189 : vector<4x128xf32>
    %cst_70 = arith.constant 5.000000e-01 : f32
    %192 = vector.broadcast %cst_70 : f32 to vector<4x128xf32>
    %193 = arith.mulf %192, %191 : vector<4x128xf32>
    %194 = arith.mulf %181, %193 : vector<4x128xf32>
    %195 = arith.truncf %194 : vector<4x128xf32> to vector<4x128xbf16>
    %cst_71 = arith.constant dense<0.000000e+00> : vector<4x32xf32>
    %196 = tpu.matmul %195, %25, %cst_71 {dimension_numbers = #tpu.dot_dimension_numbers<[1], [0], [0], [1], [0, 0, 1, 1], [], []>} : vector<4x128xbf16>, vector<128x32xbf16>, vector<4x32xf32> -> vector<4x32xf32>
    %197 = vector.broadcast %27 : vector<1x32xf32> to vector<4x32xf32>
    %198 = arith.addf %196, %197 : vector<4x32xf32>
    %199 = vector.shape_cast %198 : vector<4x32xf32> to vector<2x2x32xf32>
    %200 = arith.addf %152, %199 : vector<2x2x32xf32>
    %c0_72 = arith.constant 0 : index
    %c0_73 = arith.constant 0 : index
    %c0_74 = arith.constant 0 : index
    %201 = vector.load %arg19[%c0_72, %c0_73, %c0_74] : memref<2x2x32xf32, #tpu.memory_space<vmem>>, vector<2x2x32xf32>
    tpu.vector_store %arg19[%c0_72, %c0_73, %c0_74], %200 {strides = array<i32>} : memref<2x2x32xf32, #tpu.memory_space<vmem>>, vector<2x2x32xf32>,
    %c0_i32_75 = arith.constant 0 : i32
    %202 = arith.cmpi eq, %arg0, %c0_i32_75 : i32
    %203 = arith.extui %202 : i1 to i32
    %c0_i32_76 = arith.constant 0 : i32
    %204 = arith.cmpi ne, %203, %c0_i32_76 : i32
    scf.if %204 {
      %205 = vector.shape_cast %200 : vector<2x2x32xf32> to vector<4x32xf32>
      %c0_77 = arith.constant 0 : index
      %c0_78 = arith.constant 0 : index
      %206 = vector.load %arg14[%c0_77, %c0_78] : memref<1x32xf32, #tpu.memory_space<vmem>>, vector<1x32xf32>
      %c0_79 = arith.constant 0 : index
      %c0_80 = arith.constant 0 : index
      %207 = vector.load %arg15[%c0_79, %c0_80] : memref<1x32xf32, #tpu.memory_space<vmem>>, vector<1x32xf32>
      %cst_81 = arith.constant dense<0.000000e+00> : vector<4xf32>
      %208 = vector.multi_reduction <add>, %205, %cst_81 [1] : vector<4x32xf32> to vector<4xf32>
      %209 = vector.shape_cast %208 : vector<4xf32> to vector<4x1xf32>
      %cst_82 = arith.constant 3.200000e+01 : f32
      %210 = vector.broadcast %cst_82 : f32 to vector<4x1xf32>
      %211 = arith.divf %209, %210 : vector<4x1xf32>
      %212 = vector.broadcast %211 : vector<4x1xf32> to vector<4x32xf32>
      %213 = arith.subf %205, %212 : vector<4x32xf32>
      %214 = arith.mulf %213, %213 : vector<4x32xf32>
      %cst_83 = arith.constant dense<0.000000e+00> : vector<4xf32>
      %215 = vector.multi_reduction <add>, %214, %cst_83 [1] : vector<4x32xf32> to vector<4xf32>
      %216 = vector.shape_cast %215 : vector<4xf32> to vector<4x1xf32>
      %cst_84 = arith.constant 3.200000e+01 : f32
      %217 = vector.broadcast %cst_84 : f32 to vector<4x1xf32>
      %218 = arith.divf %216, %217 : vector<4x1xf32>
      %219 = vector.broadcast %211 : vector<4x1xf32> to vector<4x32xf32>
      %220 = arith.subf %205, %219 : vector<4x32xf32>
      %cst_85 = arith.constant 9.99999974E-6 : f32
      %221 = vector.broadcast %cst_85 : f32 to vector<4x1xf32>
      %222 = arith.addf %218, %221 : vector<4x1xf32>
      %223 = math.rsqrt %222 : vector<4x1xf32>
      %224 = vector.broadcast %223 : vector<4x1xf32> to vector<4x32xf32>
      %225 = arith.mulf %220, %224 : vector<4x32xf32>
      %226 = vector.broadcast %206 : vector<1x32xf32> to vector<4x32xf32>
      %227 = arith.mulf %225, %226 : vector<4x32xf32>
      %228 = vector.broadcast %207 : vector<1x32xf32> to vector<4x32xf32>
      %229 = arith.addf %227, %228 : vector<4x32xf32>
      %230 = arith.truncf %229 : vector<4x32xf32> to vector<4x32xbf16>
      %c0_86 = arith.constant 0 : index
      %c0_87 = arith.constant 0 : index
      %231 = vector.load %arg16[%c0_86, %c0_87] : memref<32x128xbf16, #tpu.memory_space<vmem>>, vector<32x128xbf16>
      %cst_88 = arith.constant dense<0.000000e+00> : vector<4x128xf32>
      %232 = tpu.matmul %230, %231, %cst_88 {dimension_numbers = #tpu.dot_dimension_numbers<[1], [0], [0], [1], [0, 0, 1, 1], [], []>} : vector<4x32xbf16>, vector<32x128xbf16>, vector<4x128xf32> -> vector<4x128xf32>
      %c0_89 = arith.constant 0 : index
      %c0_90 = arith.constant 0 : index
      %233 = vector.load %arg17[%c0_89, %c0_90] : memref<1x128xf32, #tpu.memory_space<vmem>>, vector<1x128xf32>
      %234 = vector.broadcast %233 : vector<1x128xf32> to vector<4x128xf32>
      %235 = arith.addf %232, %234 : vector<4x128xf32>
      %c0_91 = arith.constant 0 : index
      %c0_92 = arith.constant 0 : index
      %236 = vector.load %arg18[%c0_91, %c0_92] : memref<4x128xf32, #tpu.memory_space<vmem>>, vector<4x128xf32>
      tpu.vector_store %arg18[%c0_91, %c0_92], %235 {strides = array<i32>} : memref<4x128xf32, #tpu.memory_space<vmem>>, vector<4x128xf32>,
    } else {
    }
    return
  }
  func.func @transform_0(%arg0: i32) -> (i32, i32, i32) {
    %c0_i32 = arith.constant 0 : i32
    %c0_i32_0 = arith.constant 0 : i32
    %c0_i32_1 = arith.constant 0 : i32
    %c0_i32_2 = arith.constant 0 : i32
    return %c0_i32, %c0_i32_0, %c0_i32_1 : i32, i32, i32
  }
  func.func @transform_1(%arg0: i32) -> (i32, i32, i32) {
    %c0_i32 = arith.constant 0 : i32
    %c0_i32_0 = arith.constant 0 : i32
    %c0_i32_1 = arith.constant 0 : i32
    return %arg0, %c0_i32, %c0_i32_0 : i32, i32, i32
  }
  func.func @transform_2(%arg0: i32) -> (i32, i32, i32) {
    %c0_i32 = arith.constant 0 : i32
    %c0_i32_0 = arith.constant 0 : i32
    %c0_i32_1 = arith.constant 0 : i32
    return %arg0, %c0_i32, %c0_i32_0 : i32, i32, i32
  }
  func.func @transform_3(%arg0: i32) -> (i32, i32, i32) {
    %c0_i32 = arith.constant 0 : i32
    %c0_i32_0 = arith.constant 0 : i32
    %c0_i32_1 = arith.constant 0 : i32
    return %arg0, %c0_i32, %c0_i32_0 : i32, i32, i32
  }
  func.func @transform_4(%arg0: i32) -> (i32, i32, i32) {
    %c0_i32 = arith.constant 0 : i32
    %c0_i32_0 = arith.constant 0 : i32
    %c0_i32_1 = arith.constant 0 : i32
    return %arg0, %c0_i32, %c0_i32_0 : i32, i32, i32
  }
  func.func @transform_5(%arg0: i32) -> (i32, i32, i32) {
    %c0_i32 = arith.constant 0 : i32
    %c0_i32_0 = arith.constant 0 : i32
    %c0_i32_1 = arith.constant 0 : i32
    return %arg0, %c0_i32, %c0_i32_0 : i32, i32, i32
  }
  func.func @transform_6(%arg0: i32) -> (i32, i32, i32) {
    %c0_i32 = arith.constant 0 : i32
    %c0_i32_0 = arith.constant 0 : i32
    %c0_i32_1 = arith.constant 0 : i32
    return %arg0, %c0_i32, %c0_i32_0 : i32, i32, i32
  }
  func.func @transform_7(%arg0: i32) -> (i32, i32, i32) {
    %c0_i32 = arith.constant 0 : i32
    %c0_i32_0 = arith.constant 0 : i32
    %c0_i32_1 = arith.constant 0 : i32
    return %arg0, %c0_i32, %c0_i32_0 : i32, i32, i32
  }
  func.func @transform_8(%arg0: i32) -> (i32, i32, i32) {
    %c0_i32 = arith.constant 0 : i32
    %c0_i32_0 = arith.constant 0 : i32
    %c0_i32_1 = arith.constant 0 : i32
    return %arg0, %c0_i32, %c0_i32_0 : i32, i32, i32
  }
  func.func @transform_9(%arg0: i32) -> (i32, i32, i32) {
    %c0_i32 = arith.constant 0 : i32
    %c0_i32_0 = arith.constant 0 : i32
    %c0_i32_1 = arith.constant 0 : i32
    return %arg0, %c0_i32, %c0_i32_0 : i32, i32, i32
  }
  func.func @transform_10(%arg0: i32) -> (i32, i32, i32) {
    %c0_i32 = arith.constant 0 : i32
    %c0_i32_0 = arith.constant 0 : i32
    %c0_i32_1 = arith.constant 0 : i32
    return %arg0, %c0_i32, %c0_i32_0 : i32, i32, i32
  }
  func.func @transform_11(%arg0: i32) -> (i32, i32, i32) {
    %c0_i32 = arith.constant 0 : i32
    %c0_i32_0 = arith.constant 0 : i32
    %c0_i32_1 = arith.constant 0 : i32
    return %arg0, %c0_i32, %c0_i32_0 : i32, i32, i32
  }
  func.func @transform_12(%arg0: i32) -> (i32, i32, i32) {
    %c0_i32 = arith.constant 0 : i32
    %c0_i32_0 = arith.constant 0 : i32
    %c0_i32_1 = arith.constant 0 : i32
    return %arg0, %c0_i32, %c0_i32_0 : i32, i32, i32
  }
  func.func @transform_13(%arg0: i32) -> (i32, i32) {
    %c0_i32 = arith.constant 0 : i32
    %c0_i32_0 = arith.constant 0 : i32
    %c0_i32_1 = arith.constant 0 : i32
    return %c0_i32, %c0_i32_0 : i32, i32
  }
  func.func @transform_14(%arg0: i32) -> (i32, i32) {
    %c0_i32 = arith.constant 0 : i32
    %c0_i32_0 = arith.constant 0 : i32
    %c0_i32_1 = arith.constant 0 : i32
    return %c0_i32, %c0_i32_0 : i32, i32
  }
  func.func @transform_15(%arg0: i32) -> (i32, i32) {
    %c0_i32 = arith.constant 0 : i32
    %c0_i32_0 = arith.constant 0 : i32
    %c0_i32_1 = arith.constant 0 : i32
    return %c0_i32, %c0_i32_0 : i32, i32
  }
  func.func @transform_16(%arg0: i32) -> (i32, i32) {
    %c0_i32 = arith.constant 0 : i32
    %c0_i32_0 = arith.constant 0 : i32
    %c0_i32_1 = arith.constant 0 : i32
    return %c0_i32, %c0_i32_0 : i32, i32
  }
  func.func @transform_17(%arg0: i32) -> (i32, i32) {
    %c0_i32 = arith.constant 0 : i32
    %c0_i32_0 = arith.constant 0 : i32
    %c0_i32_1 = arith.constant 0 : i32
    return %c0_i32, %c0_i32_0 : i32, i32
  }
}

module attributes {stable_mosaic.version = 11 : i64} {
  func.func @_spatial_kernel(%arg0: i32, %arg1: i32, %arg2: memref<2x17x32xf32, #tpu.memory_space<vmem>>, %arg3: memref<1x1x32xf32, #tpu.memory_space<vmem>>, %arg4: memref<1x1x32xf32, #tpu.memory_space<vmem>>, %arg5: memref<1x32x96xbf16, #tpu.memory_space<vmem>>, %arg6: memref<1x1x96xf32, #tpu.memory_space<vmem>>, %arg7: memref<1x32x32xbf16, #tpu.memory_space<vmem>>, %arg8: memref<1x1x32xf32, #tpu.memory_space<vmem>>, %arg9: memref<1x1x32xf32, #tpu.memory_space<vmem>>, %arg10: memref<1x1x32xf32, #tpu.memory_space<vmem>>, %arg11: memref<1x32x128xbf16, #tpu.memory_space<vmem>>, %arg12: memref<1x1x128xf32, #tpu.memory_space<vmem>>, %arg13: memref<1x128x32xbf16, #tpu.memory_space<vmem>>, %arg14: memref<1x1x32xf32, #tpu.memory_space<vmem>>, %arg15: memref<1x32xf32, #tpu.memory_space<vmem>>, %arg16: memref<1x32xf32, #tpu.memory_space<vmem>>, %arg17: memref<1x2x32xf32, #tpu.memory_space<vmem>>, %arg18: memref<2x17x32xf32, #tpu.memory_space<vmem>>) attributes {dimension_semantics = [#tpu.dimension_semantics<parallel>, #tpu.dimension_semantics<arbitrary>], iteration_bounds = array<i64: 2, 1>, scalar_prefetch = 0 : i64, scratch_operands = 1 : i64, tpu.core_type = #tpu.core_type<tc>, window_params = [{transform_indices = @transform_0, window_bounds = array<i64: 2, 17, 32>}, {transform_indices = @transform_1, window_bounds = array<i64: 1, 1, 32>}, {transform_indices = @transform_2, window_bounds = array<i64: 1, 1, 32>}, {transform_indices = @transform_3, window_bounds = array<i64: 1, 32, 96>}, {transform_indices = @transform_4, window_bounds = array<i64: 1, 1, 96>}, {transform_indices = @transform_5, window_bounds = array<i64: 1, 32, 32>}, {transform_indices = @transform_6, window_bounds = array<i64: 1, 1, 32>}, {transform_indices = @transform_7, window_bounds = array<i64: 1, 1, 32>}, {transform_indices = @transform_8, window_bounds = array<i64: 1, 1, 32>}, {transform_indices = @transform_9, window_bounds = array<i64: 1, 32, 128>}, {transform_indices = @transform_10, window_bounds = array<i64: 1, 1, 128>}, {transform_indices = @transform_11, window_bounds = array<i64: 1, 128, 32>}, {transform_indices = @transform_12, window_bounds = array<i64: 1, 1, 32>}, {pipeline_mode = #tpu.pipeline_mode<synchronous>, transform_indices = @transform_13, window_bounds = array<i64: 1, 32>}, {pipeline_mode = #tpu.pipeline_mode<synchronous>, transform_indices = @transform_14, window_bounds = array<i64: 1, 32>}, {transform_indices = @transform_15, window_bounds = array<i64: 1, 2, 32>}]} {
    %c0_i32 = arith.constant 0 : i32
    %0 = arith.cmpi eq, %arg1, %c0_i32 : i32
    %1 = arith.extui %0 : i1 to i32
    %c0_i32_0 = arith.constant 0 : i32
    %2 = arith.cmpi ne, %1, %c0_i32_0 : i32
    scf.if %2 {
      %c0_77 = arith.constant 0 : index
      %c0_78 = arith.constant 0 : index
      %c0_79 = arith.constant 0 : index
      %205 = vector.load %arg2[%c0_77, %c0_78, %c0_79] : memref<2x17x32xf32, #tpu.memory_space<vmem>>, vector<2x17x32xf32>
      %c0_80 = arith.constant 0 : index
      %c0_81 = arith.constant 0 : index
      %c0_82 = arith.constant 0 : index
      %206 = vector.load %arg18[%c0_80, %c0_81, %c0_82] : memref<2x17x32xf32, #tpu.memory_space<vmem>>, vector<2x17x32xf32>
      tpu.vector_store %arg18[%c0_80, %c0_81, %c0_82], %205 {strides = array<i32>} : memref<2x17x32xf32, #tpu.memory_space<vmem>>, vector<2x17x32xf32>,
    } else {
    }
    %c0 = arith.constant 0 : index
    %c0_1 = arith.constant 0 : index
    %c0_2 = arith.constant 0 : index
    %3 = vector.load %arg18[%c0, %c0_1, %c0_2] : memref<2x17x32xf32, #tpu.memory_space<vmem>>, vector<2x17x32xf32>
    %c0_3 = arith.constant 0 : index
    %c0_4 = arith.constant 0 : index
    %c0_5 = arith.constant 0 : index
    %4 = vector.load %arg3[%c0_3, %c0_4, %c0_5] : memref<1x1x32xf32, #tpu.memory_space<vmem>>, vector<1x1x32xf32>
    %5 = vector.shape_cast %4 : vector<1x1x32xf32> to vector<1x32xf32>
    %c0_6 = arith.constant 0 : index
    %c0_7 = arith.constant 0 : index
    %c0_8 = arith.constant 0 : index
    %6 = vector.load %arg4[%c0_6, %c0_7, %c0_8] : memref<1x1x32xf32, #tpu.memory_space<vmem>>, vector<1x1x32xf32>
    %7 = vector.shape_cast %6 : vector<1x1x32xf32> to vector<1x32xf32>
    %c0_9 = arith.constant 0 : index
    %c0_10 = arith.constant 0 : index
    %c0_11 = arith.constant 0 : index
    %8 = vector.load %arg5[%c0_9, %c0_10, %c0_11] : memref<1x32x96xbf16, #tpu.memory_space<vmem>>, vector<1x32x96xbf16>
    %9 = vector.shape_cast %8 : vector<1x32x96xbf16> to vector<32x96xbf16>
    %c0_12 = arith.constant 0 : index
    %c0_13 = arith.constant 0 : index
    %c0_14 = arith.constant 0 : index
    %10 = vector.load %arg6[%c0_12, %c0_13, %c0_14] : memref<1x1x96xf32, #tpu.memory_space<vmem>>, vector<1x1x96xf32>
    %11 = vector.shape_cast %10 : vector<1x1x96xf32> to vector<1x96xf32>
    %c0_15 = arith.constant 0 : index
    %c0_16 = arith.constant 0 : index
    %c0_17 = arith.constant 0 : index
    %12 = vector.load %arg7[%c0_15, %c0_16, %c0_17] : memref<1x32x32xbf16, #tpu.memory_space<vmem>>, vector<1x32x32xbf16>
    %13 = vector.shape_cast %12 : vector<1x32x32xbf16> to vector<32x32xbf16>
    %c0_18 = arith.constant 0 : index
    %c0_19 = arith.constant 0 : index
    %c0_20 = arith.constant 0 : index
    %14 = vector.load %arg8[%c0_18, %c0_19, %c0_20] : memref<1x1x32xf32, #tpu.memory_space<vmem>>, vector<1x1x32xf32>
    %15 = vector.shape_cast %14 : vector<1x1x32xf32> to vector<1x32xf32>
    %c0_21 = arith.constant 0 : index
    %c0_22 = arith.constant 0 : index
    %c0_23 = arith.constant 0 : index
    %16 = vector.load %arg9[%c0_21, %c0_22, %c0_23] : memref<1x1x32xf32, #tpu.memory_space<vmem>>, vector<1x1x32xf32>
    %17 = vector.shape_cast %16 : vector<1x1x32xf32> to vector<1x32xf32>
    %c0_24 = arith.constant 0 : index
    %c0_25 = arith.constant 0 : index
    %c0_26 = arith.constant 0 : index
    %18 = vector.load %arg10[%c0_24, %c0_25, %c0_26] : memref<1x1x32xf32, #tpu.memory_space<vmem>>, vector<1x1x32xf32>
    %19 = vector.shape_cast %18 : vector<1x1x32xf32> to vector<1x32xf32>
    %c0_27 = arith.constant 0 : index
    %c0_28 = arith.constant 0 : index
    %c0_29 = arith.constant 0 : index
    %20 = vector.load %arg11[%c0_27, %c0_28, %c0_29] : memref<1x32x128xbf16, #tpu.memory_space<vmem>>, vector<1x32x128xbf16>
    %21 = vector.shape_cast %20 : vector<1x32x128xbf16> to vector<32x128xbf16>
    %c0_30 = arith.constant 0 : index
    %c0_31 = arith.constant 0 : index
    %c0_32 = arith.constant 0 : index
    %22 = vector.load %arg12[%c0_30, %c0_31, %c0_32] : memref<1x1x128xf32, #tpu.memory_space<vmem>>, vector<1x1x128xf32>
    %23 = vector.shape_cast %22 : vector<1x1x128xf32> to vector<1x128xf32>
    %c0_33 = arith.constant 0 : index
    %c0_34 = arith.constant 0 : index
    %c0_35 = arith.constant 0 : index
    %24 = vector.load %arg13[%c0_33, %c0_34, %c0_35] : memref<1x128x32xbf16, #tpu.memory_space<vmem>>, vector<1x128x32xbf16>
    %25 = vector.shape_cast %24 : vector<1x128x32xbf16> to vector<128x32xbf16>
    %c0_36 = arith.constant 0 : index
    %c0_37 = arith.constant 0 : index
    %c0_38 = arith.constant 0 : index
    %26 = vector.load %arg14[%c0_36, %c0_37, %c0_38] : memref<1x1x32xf32, #tpu.memory_space<vmem>>, vector<1x1x32xf32>
    %27 = vector.shape_cast %26 : vector<1x1x32xf32> to vector<1x32xf32>
    %cst = arith.constant dense<0.000000e+00> : vector<2x17xf32>
    %28 = vector.multi_reduction <add>, %3, %cst [2] : vector<2x17x32xf32> to vector<2x17xf32>
    %29 = vector.shape_cast %28 : vector<2x17xf32> to vector<2x17x1xf32>
    %cst_39 = arith.constant 3.200000e+01 : f32
    %30 = vector.broadcast %cst_39 : f32 to vector<2x17x1xf32>
    %31 = arith.divf %29, %30 : vector<2x17x1xf32>
    %32 = vector.broadcast %31 : vector<2x17x1xf32> to vector<2x17x32xf32>
    %33 = arith.subf %3, %32 : vector<2x17x32xf32>
    %34 = arith.mulf %33, %33 : vector<2x17x32xf32>
    %cst_40 = arith.constant dense<0.000000e+00> : vector<2x17xf32>
    %35 = vector.multi_reduction <add>, %34, %cst_40 [2] : vector<2x17x32xf32> to vector<2x17xf32>
    %36 = vector.shape_cast %35 : vector<2x17xf32> to vector<2x17x1xf32>
    %cst_41 = arith.constant 3.200000e+01 : f32
    %37 = vector.broadcast %cst_41 : f32 to vector<2x17x1xf32>
    %38 = arith.divf %36, %37 : vector<2x17x1xf32>
    %39 = vector.broadcast %31 : vector<2x17x1xf32> to vector<2x17x32xf32>
    %40 = arith.subf %3, %39 : vector<2x17x32xf32>
    %cst_42 = arith.constant 9.99999974E-6 : f32
    %41 = vector.broadcast %cst_42 : f32 to vector<2x17x1xf32>
    %42 = arith.addf %38, %41 : vector<2x17x1xf32>
    %43 = math.rsqrt %42 : vector<2x17x1xf32>
    %44 = vector.broadcast %43 : vector<2x17x1xf32> to vector<2x17x32xf32>
    %45 = arith.mulf %40, %44 : vector<2x17x32xf32>
    %46 = vector.shape_cast %5 : vector<1x32xf32> to vector<1x1x32xf32>
    %47 = vector.broadcast %46 : vector<1x1x32xf32> to vector<2x17x32xf32>
    %48 = arith.mulf %45, %47 : vector<2x17x32xf32>
    %49 = vector.shape_cast %7 : vector<1x32xf32> to vector<1x1x32xf32>
    %50 = vector.broadcast %49 : vector<1x1x32xf32> to vector<2x17x32xf32>
    %51 = arith.addf %48, %50 : vector<2x17x32xf32>
    %52 = vector.shape_cast %51 : vector<2x17x32xf32> to vector<34x32xf32>
    %53 = arith.truncf %52 : vector<34x32xf32> to vector<34x32xbf16>
    %cst_43 = arith.constant dense<0.000000e+00> : vector<34x96xf32>
    %54 = tpu.matmul %53, %9, %cst_43 {dimension_numbers = #tpu.dot_dimension_numbers<[1], [0], [0], [1], [0, 0, 1, 1], [], []>} : vector<34x32xbf16>, vector<32x96xbf16>, vector<34x96xf32> -> vector<34x96xf32>
    %55 = vector.broadcast %11 : vector<1x96xf32> to vector<34x96xf32>
    %56 = arith.addf %54, %55 : vector<34x96xf32>
    %57 = vector.extract_strided_slice %56 {offsets = [0, 0], sizes = [34, 8], strides = [1, 1]} : vector<34x96xf32> to vector<34x8xf32>
    %58 = vector.shape_cast %57 : vector<34x8xf32> to vector<2x17x8xf32>
    %59 = arith.truncf %58 : vector<2x17x8xf32> to vector<2x17x8xbf16>
    %60 = vector.extract_strided_slice %56 {offsets = [0, 32], sizes = [34, 8], strides = [1, 1]} : vector<34x96xf32> to vector<34x8xf32>
    %61 = vector.shape_cast %60 : vector<34x8xf32> to vector<2x17x8xf32>
    %62 = arith.truncf %61 : vector<2x17x8xf32> to vector<2x17x8xbf16>
    %63 = vector.extract_strided_slice %56 {offsets = [0, 64], sizes = [34, 8], strides = [1, 1]} : vector<34x96xf32> to vector<34x8xf32>
    %64 = vector.shape_cast %63 : vector<34x8xf32> to vector<2x17x8xf32>
    %65 = arith.truncf %64 : vector<2x17x8xf32> to vector<2x17x8xbf16>
    "tpu.trace_start"() <{level = 10 : i32, message = "bnd,bmd->bnm"}> : () -> ()
    %cst_44 = arith.constant dense<0.000000e+00> : vector<2x17x17xf32>
    %66 = tpu.matmul %59, %62, %cst_44 {dimension_numbers = #tpu.dot_dimension_numbers<[2], [2], [1], [1], [0, 0, 0, 1, 1, 1], [0], [0]>} : vector<2x17x8xbf16>, vector<2x17x8xbf16>, vector<2x17x17xf32> -> vector<2x17x17xf32>
    "tpu.trace_stop"() : () -> ()
    %cst_45 = arith.constant dense<0xFF800000> : vector<2x17xf32>
    %67 = vector.multi_reduction <maximumf>, %66, %cst_45 [2] : vector<2x17x17xf32> to vector<2x17xf32>
    %68 = vector.shape_cast %67 : vector<2x17xf32> to vector<2x17x1xf32>
    %69 = vector.broadcast %68 : vector<2x17x1xf32> to vector<2x17x17xf32>
    %70 = arith.subf %66, %69 : vector<2x17x17xf32>
    %71 = math.exp %70 : vector<2x17x17xf32>
    %cst_46 = arith.constant dense<0.000000e+00> : vector<2x17xf32>
    %72 = vector.multi_reduction <add>, %71, %cst_46 [2] : vector<2x17x17xf32> to vector<2x17xf32>
    %73 = vector.shape_cast %72 : vector<2x17xf32> to vector<2x17x1xf32>
    %74 = tpu.reciprocal %73 {approx = true} : vector<2x17x1xf32> -> vector<2x17x1xf32>
    %75 = vector.broadcast %74 : vector<2x17x1xf32> to vector<2x17x17xf32>
    %76 = arith.mulf %71, %75 : vector<2x17x17xf32>
    %77 = arith.truncf %76 : vector<2x17x17xf32> to vector<2x17x17xbf16>
    "tpu.trace_start"() <{level = 10 : i32, message = "bnm,bmd->bnd"}> : () -> ()
    %cst_47 = arith.constant dense<0.000000e+00> : vector<2x17x8xf32>
    %78 = tpu.matmul %77, %65, %cst_47 {dimension_numbers = #tpu.dot_dimension_numbers<[2], [1], [1], [2], [0, 0, 0, 1, 1, 2], [0], [0]>} : vector<2x17x17xbf16>, vector<2x17x8xbf16>, vector<2x17x8xf32> -> vector<2x17x8xf32>
    "tpu.trace_stop"() : () -> ()
    %79 = vector.extract_strided_slice %56 {offsets = [0, 8], sizes = [34, 8], strides = [1, 1]} : vector<34x96xf32> to vector<34x8xf32>
    %80 = vector.shape_cast %79 : vector<34x8xf32> to vector<2x17x8xf32>
    %81 = arith.truncf %80 : vector<2x17x8xf32> to vector<2x17x8xbf16>
    %82 = vector.extract_strided_slice %56 {offsets = [0, 40], sizes = [34, 8], strides = [1, 1]} : vector<34x96xf32> to vector<34x8xf32>
    %83 = vector.shape_cast %82 : vector<34x8xf32> to vector<2x17x8xf32>
    %84 = arith.truncf %83 : vector<2x17x8xf32> to vector<2x17x8xbf16>
    %85 = vector.extract_strided_slice %56 {offsets = [0, 72], sizes = [34, 8], strides = [1, 1]} : vector<34x96xf32> to vector<34x8xf32>
    %86 = vector.shape_cast %85 : vector<34x8xf32> to vector<2x17x8xf32>
    %87 = arith.truncf %86 : vector<2x17x8xf32> to vector<2x17x8xbf16>
    "tpu.trace_start"() <{level = 10 : i32, message = "bnd,bmd->bnm"}> : () -> ()
    %cst_48 = arith.constant dense<0.000000e+00> : vector<2x17x17xf32>
    %88 = tpu.matmul %81, %84, %cst_48 {dimension_numbers = #tpu.dot_dimension_numbers<[2], [2], [1], [1], [0, 0, 0, 1, 1, 1], [0], [0]>} : vector<2x17x8xbf16>, vector<2x17x8xbf16>, vector<2x17x17xf32> -> vector<2x17x17xf32>
    "tpu.trace_stop"() : () -> ()
    %cst_49 = arith.constant dense<0xFF800000> : vector<2x17xf32>
    %89 = vector.multi_reduction <maximumf>, %88, %cst_49 [2] : vector<2x17x17xf32> to vector<2x17xf32>
    %90 = vector.shape_cast %89 : vector<2x17xf32> to vector<2x17x1xf32>
    %91 = vector.broadcast %90 : vector<2x17x1xf32> to vector<2x17x17xf32>
    %92 = arith.subf %88, %91 : vector<2x17x17xf32>
    %93 = math.exp %92 : vector<2x17x17xf32>
    %cst_50 = arith.constant dense<0.000000e+00> : vector<2x17xf32>
    %94 = vector.multi_reduction <add>, %93, %cst_50 [2] : vector<2x17x17xf32> to vector<2x17xf32>
    %95 = vector.shape_cast %94 : vector<2x17xf32> to vector<2x17x1xf32>
    %96 = tpu.reciprocal %95 {approx = true} : vector<2x17x1xf32> -> vector<2x17x1xf32>
    %97 = vector.broadcast %96 : vector<2x17x1xf32> to vector<2x17x17xf32>
    %98 = arith.mulf %93, %97 : vector<2x17x17xf32>
    %99 = arith.truncf %98 : vector<2x17x17xf32> to vector<2x17x17xbf16>
    "tpu.trace_start"() <{level = 10 : i32, message = "bnm,bmd->bnd"}> : () -> ()
    %cst_51 = arith.constant dense<0.000000e+00> : vector<2x17x8xf32>
    %100 = tpu.matmul %99, %87, %cst_51 {dimension_numbers = #tpu.dot_dimension_numbers<[2], [1], [1], [2], [0, 0, 0, 1, 1, 2], [0], [0]>} : vector<2x17x17xbf16>, vector<2x17x8xbf16>, vector<2x17x8xf32> -> vector<2x17x8xf32>
    "tpu.trace_stop"() : () -> ()
    %101 = vector.extract_strided_slice %56 {offsets = [0, 16], sizes = [34, 8], strides = [1, 1]} : vector<34x96xf32> to vector<34x8xf32>
    %102 = vector.shape_cast %101 : vector<34x8xf32> to vector<2x17x8xf32>
    %103 = arith.truncf %102 : vector<2x17x8xf32> to vector<2x17x8xbf16>
    %104 = vector.extract_strided_slice %56 {offsets = [0, 48], sizes = [34, 8], strides = [1, 1]} : vector<34x96xf32> to vector<34x8xf32>
    %105 = vector.shape_cast %104 : vector<34x8xf32> to vector<2x17x8xf32>
    %106 = arith.truncf %105 : vector<2x17x8xf32> to vector<2x17x8xbf16>
    %107 = vector.extract_strided_slice %56 {offsets = [0, 80], sizes = [34, 8], strides = [1, 1]} : vector<34x96xf32> to vector<34x8xf32>
    %108 = vector.shape_cast %107 : vector<34x8xf32> to vector<2x17x8xf32>
    %109 = arith.truncf %108 : vector<2x17x8xf32> to vector<2x17x8xbf16>
    "tpu.trace_start"() <{level = 10 : i32, message = "bnd,bmd->bnm"}> : () -> ()
    %cst_52 = arith.constant dense<0.000000e+00> : vector<2x17x17xf32>
    %110 = tpu.matmul %103, %106, %cst_52 {dimension_numbers = #tpu.dot_dimension_numbers<[2], [2], [1], [1], [0, 0, 0, 1, 1, 1], [0], [0]>} : vector<2x17x8xbf16>, vector<2x17x8xbf16>, vector<2x17x17xf32> -> vector<2x17x17xf32>
    "tpu.trace_stop"() : () -> ()
    %cst_53 = arith.constant dense<0xFF800000> : vector<2x17xf32>
    %111 = vector.multi_reduction <maximumf>, %110, %cst_53 [2] : vector<2x17x17xf32> to vector<2x17xf32>
    %112 = vector.shape_cast %111 : vector<2x17xf32> to vector<2x17x1xf32>
    %113 = vector.broadcast %112 : vector<2x17x1xf32> to vector<2x17x17xf32>
    %114 = arith.subf %110, %113 : vector<2x17x17xf32>
    %115 = math.exp %114 : vector<2x17x17xf32>
    %cst_54 = arith.constant dense<0.000000e+00> : vector<2x17xf32>
    %116 = vector.multi_reduction <add>, %115, %cst_54 [2] : vector<2x17x17xf32> to vector<2x17xf32>
    %117 = vector.shape_cast %116 : vector<2x17xf32> to vector<2x17x1xf32>
    %118 = tpu.reciprocal %117 {approx = true} : vector<2x17x1xf32> -> vector<2x17x1xf32>
    %119 = vector.broadcast %118 : vector<2x17x1xf32> to vector<2x17x17xf32>
    %120 = arith.mulf %115, %119 : vector<2x17x17xf32>
    %121 = arith.truncf %120 : vector<2x17x17xf32> to vector<2x17x17xbf16>
    "tpu.trace_start"() <{level = 10 : i32, message = "bnm,bmd->bnd"}> : () -> ()
    %cst_55 = arith.constant dense<0.000000e+00> : vector<2x17x8xf32>
    %122 = tpu.matmul %121, %109, %cst_55 {dimension_numbers = #tpu.dot_dimension_numbers<[2], [1], [1], [2], [0, 0, 0, 1, 1, 2], [0], [0]>} : vector<2x17x17xbf16>, vector<2x17x8xbf16>, vector<2x17x8xf32> -> vector<2x17x8xf32>
    "tpu.trace_stop"() : () -> ()
    %123 = vector.extract_strided_slice %56 {offsets = [0, 24], sizes = [34, 8], strides = [1, 1]} : vector<34x96xf32> to vector<34x8xf32>
    %124 = vector.shape_cast %123 : vector<34x8xf32> to vector<2x17x8xf32>
    %125 = arith.truncf %124 : vector<2x17x8xf32> to vector<2x17x8xbf16>
    %126 = vector.extract_strided_slice %56 {offsets = [0, 56], sizes = [34, 8], strides = [1, 1]} : vector<34x96xf32> to vector<34x8xf32>
    %127 = vector.shape_cast %126 : vector<34x8xf32> to vector<2x17x8xf32>
    %128 = arith.truncf %127 : vector<2x17x8xf32> to vector<2x17x8xbf16>
    %129 = vector.extract_strided_slice %56 {offsets = [0, 88], sizes = [34, 8], strides = [1, 1]} : vector<34x96xf32> to vector<34x8xf32>
    %130 = vector.shape_cast %129 : vector<34x8xf32> to vector<2x17x8xf32>
    %131 = arith.truncf %130 : vector<2x17x8xf32> to vector<2x17x8xbf16>
    "tpu.trace_start"() <{level = 10 : i32, message = "bnd,bmd->bnm"}> : () -> ()
    %cst_56 = arith.constant dense<0.000000e+00> : vector<2x17x17xf32>
    %132 = tpu.matmul %125, %128, %cst_56 {dimension_numbers = #tpu.dot_dimension_numbers<[2], [2], [1], [1], [0, 0, 0, 1, 1, 1], [0], [0]>} : vector<2x17x8xbf16>, vector<2x17x8xbf16>, vector<2x17x17xf32> -> vector<2x17x17xf32>
    "tpu.trace_stop"() : () -> ()
    %cst_57 = arith.constant dense<0xFF800000> : vector<2x17xf32>
    %133 = vector.multi_reduction <maximumf>, %132, %cst_57 [2] : vector<2x17x17xf32> to vector<2x17xf32>
    %134 = vector.shape_cast %133 : vector<2x17xf32> to vector<2x17x1xf32>
    %135 = vector.broadcast %134 : vector<2x17x1xf32> to vector<2x17x17xf32>
    %136 = arith.subf %132, %135 : vector<2x17x17xf32>
    %137 = math.exp %136 : vector<2x17x17xf32>
    %cst_58 = arith.constant dense<0.000000e+00> : vector<2x17xf32>
    %138 = vector.multi_reduction <add>, %137, %cst_58 [2] : vector<2x17x17xf32> to vector<2x17xf32>
    %139 = vector.shape_cast %138 : vector<2x17xf32> to vector<2x17x1xf32>
    %140 = tpu.reciprocal %139 {approx = true} : vector<2x17x1xf32> -> vector<2x17x1xf32>
    %141 = vector.broadcast %140 : vector<2x17x1xf32> to vector<2x17x17xf32>
    %142 = arith.mulf %137, %141 : vector<2x17x17xf32>
    %143 = arith.truncf %142 : vector<2x17x17xf32> to vector<2x17x17xbf16>
    "tpu.trace_start"() <{level = 10 : i32, message = "bnm,bmd->bnd"}> : () -> ()
    %cst_59 = arith.constant dense<0.000000e+00> : vector<2x17x8xf32>
    %144 = tpu.matmul %143, %131, %cst_59 {dimension_numbers = #tpu.dot_dimension_numbers<[2], [1], [1], [2], [0, 0, 0, 1, 1, 2], [0], [0]>} : vector<2x17x17xbf16>, vector<2x17x8xbf16>, vector<2x17x8xf32> -> vector<2x17x8xf32>
    "tpu.trace_stop"() : () -> ()
    %145 = tpu.concatenate %78, %100, %122, %144 in 2 : vector<2x17x8xf32>, vector<2x17x8xf32>, vector<2x17x8xf32>, vector<2x17x8xf32> -> vector<2x17x32xf32>
    %146 = vector.shape_cast %145 : vector<2x17x32xf32> to vector<34x32xf32>
    %147 = arith.truncf %146 : vector<34x32xf32> to vector<34x32xbf16>
    %cst_60 = arith.constant dense<0.000000e+00> : vector<34x32xf32>
    %148 = tpu.matmul %147, %13, %cst_60 {dimension_numbers = #tpu.dot_dimension_numbers<[1], [0], [0], [1], [0, 0, 1, 1], [], []>} : vector<34x32xbf16>, vector<32x32xbf16>, vector<34x32xf32> -> vector<34x32xf32>
    %149 = vector.broadcast %15 : vector<1x32xf32> to vector<34x32xf32>
    %150 = arith.addf %148, %149 : vector<34x32xf32>
    %151 = vector.shape_cast %150 : vector<34x32xf32> to vector<2x17x32xf32>
    %152 = arith.addf %3, %151 : vector<2x17x32xf32>
    %cst_61 = arith.constant dense<0.000000e+00> : vector<2x17xf32>
    %153 = vector.multi_reduction <add>, %152, %cst_61 [2] : vector<2x17x32xf32> to vector<2x17xf32>
    %154 = vector.shape_cast %153 : vector<2x17xf32> to vector<2x17x1xf32>
    %cst_62 = arith.constant 3.200000e+01 : f32
    %155 = vector.broadcast %cst_62 : f32 to vector<2x17x1xf32>
    %156 = arith.divf %154, %155 : vector<2x17x1xf32>
    %157 = vector.broadcast %156 : vector<2x17x1xf32> to vector<2x17x32xf32>
    %158 = arith.subf %152, %157 : vector<2x17x32xf32>
    %159 = arith.mulf %158, %158 : vector<2x17x32xf32>
    %cst_63 = arith.constant dense<0.000000e+00> : vector<2x17xf32>
    %160 = vector.multi_reduction <add>, %159, %cst_63 [2] : vector<2x17x32xf32> to vector<2x17xf32>
    %161 = vector.shape_cast %160 : vector<2x17xf32> to vector<2x17x1xf32>
    %cst_64 = arith.constant 3.200000e+01 : f32
    %162 = vector.broadcast %cst_64 : f32 to vector<2x17x1xf32>
    %163 = arith.divf %161, %162 : vector<2x17x1xf32>
    %164 = vector.broadcast %156 : vector<2x17x1xf32> to vector<2x17x32xf32>
    %165 = arith.subf %152, %164 : vector<2x17x32xf32>
    %cst_65 = arith.constant 9.99999974E-6 : f32
    %166 = vector.broadcast %cst_65 : f32 to vector<2x17x1xf32>
    %167 = arith.addf %163, %166 : vector<2x17x1xf32>
    %168 = math.rsqrt %167 : vector<2x17x1xf32>
    %169 = vector.broadcast %168 : vector<2x17x1xf32> to vector<2x17x32xf32>
    %170 = arith.mulf %165, %169 : vector<2x17x32xf32>
    %171 = vector.shape_cast %17 : vector<1x32xf32> to vector<1x1x32xf32>
    %172 = vector.broadcast %171 : vector<1x1x32xf32> to vector<2x17x32xf32>
    %173 = arith.mulf %170, %172 : vector<2x17x32xf32>
    %174 = vector.shape_cast %19 : vector<1x32xf32> to vector<1x1x32xf32>
    %175 = vector.broadcast %174 : vector<1x1x32xf32> to vector<2x17x32xf32>
    %176 = arith.addf %173, %175 : vector<2x17x32xf32>
    %177 = vector.shape_cast %176 : vector<2x17x32xf32> to vector<34x32xf32>
    %178 = arith.truncf %177 : vector<34x32xf32> to vector<34x32xbf16>
    %cst_66 = arith.constant dense<0.000000e+00> : vector<34x128xf32>
    %179 = tpu.matmul %178, %21, %cst_66 {dimension_numbers = #tpu.dot_dimension_numbers<[1], [0], [0], [1], [0, 0, 1, 1], [], []>} : vector<34x32xbf16>, vector<32x128xbf16>, vector<34x128xf32> -> vector<34x128xf32>
    %180 = vector.broadcast %23 : vector<1x128xf32> to vector<34x128xf32>
    %181 = arith.addf %179, %180 : vector<34x128xf32>
    %182 = arith.mulf %181, %181 : vector<34x128xf32>
    %183 = arith.mulf %181, %182 : vector<34x128xf32>
    %cst_67 = arith.constant 4.471500e-02 : f32
    %184 = vector.broadcast %cst_67 : f32 to vector<34x128xf32>
    %185 = arith.mulf %184, %183 : vector<34x128xf32>
    %186 = arith.addf %181, %185 : vector<34x128xf32>
    %cst_68 = arith.constant 0.797884583 : f32
    %187 = vector.broadcast %cst_68 : f32 to vector<34x128xf32>
    %188 = arith.mulf %187, %186 : vector<34x128xf32>
    %189 = math.tanh %188 : vector<34x128xf32>
    %cst_69 = arith.constant 1.000000e+00 : f32
    %190 = vector.broadcast %cst_69 : f32 to vector<34x128xf32>
    %191 = arith.addf %190, %189 : vector<34x128xf32>
    %cst_70 = arith.constant 5.000000e-01 : f32
    %192 = vector.broadcast %cst_70 : f32 to vector<34x128xf32>
    %193 = arith.mulf %192, %191 : vector<34x128xf32>
    %194 = arith.mulf %181, %193 : vector<34x128xf32>
    %195 = arith.truncf %194 : vector<34x128xf32> to vector<34x128xbf16>
    %cst_71 = arith.constant dense<0.000000e+00> : vector<34x32xf32>
    %196 = tpu.matmul %195, %25, %cst_71 {dimension_numbers = #tpu.dot_dimension_numbers<[1], [0], [0], [1], [0, 0, 1, 1], [], []>} : vector<34x128xbf16>, vector<128x32xbf16>, vector<34x32xf32> -> vector<34x32xf32>
    %197 = vector.broadcast %27 : vector<1x32xf32> to vector<34x32xf32>
    %198 = arith.addf %196, %197 : vector<34x32xf32>
    %199 = vector.shape_cast %198 : vector<34x32xf32> to vector<2x17x32xf32>
    %200 = arith.addf %152, %199 : vector<2x17x32xf32>
    %c0_72 = arith.constant 0 : index
    %c0_73 = arith.constant 0 : index
    %c0_74 = arith.constant 0 : index
    %201 = vector.load %arg18[%c0_72, %c0_73, %c0_74] : memref<2x17x32xf32, #tpu.memory_space<vmem>>, vector<2x17x32xf32>
    tpu.vector_store %arg18[%c0_72, %c0_73, %c0_74], %200 {strides = array<i32>} : memref<2x17x32xf32, #tpu.memory_space<vmem>>, vector<2x17x32xf32>,
    %c0_i32_75 = arith.constant 0 : i32
    %202 = arith.cmpi eq, %arg1, %c0_i32_75 : i32
    %203 = arith.extui %202 : i1 to i32
    %c0_i32_76 = arith.constant 0 : i32
    %204 = arith.cmpi ne, %203, %c0_i32_76 : i32
    scf.if %204 {
      %205 = vector.extract_strided_slice %200 {offsets = [0, 0, 0], sizes = [2, 1, 32], strides = [1, 1, 1]} : vector<2x17x32xf32> to vector<2x1x32xf32>
      %206 = vector.shape_cast %205 : vector<2x1x32xf32> to vector<2x32xf32>
      %c0_77 = arith.constant 0 : index
      %c0_78 = arith.constant 0 : index
      %207 = vector.load %arg15[%c0_77, %c0_78] : memref<1x32xf32, #tpu.memory_space<vmem>>, vector<1x32xf32>
      %c0_79 = arith.constant 0 : index
      %c0_80 = arith.constant 0 : index
      %208 = vector.load %arg16[%c0_79, %c0_80] : memref<1x32xf32, #tpu.memory_space<vmem>>, vector<1x32xf32>
      %cst_81 = arith.constant dense<0.000000e+00> : vector<2xf32>
      %209 = vector.multi_reduction <add>, %206, %cst_81 [1] : vector<2x32xf32> to vector<2xf32>
      %210 = vector.shape_cast %209 : vector<2xf32> to vector<2x1xf32>
      %cst_82 = arith.constant 3.200000e+01 : f32
      %211 = vector.broadcast %cst_82 : f32 to vector<2x1xf32>
      %212 = arith.divf %210, %211 : vector<2x1xf32>
      %213 = vector.broadcast %212 : vector<2x1xf32> to vector<2x32xf32>
      %214 = arith.subf %206, %213 : vector<2x32xf32>
      %215 = arith.mulf %214, %214 : vector<2x32xf32>
      %cst_83 = arith.constant dense<0.000000e+00> : vector<2xf32>
      %216 = vector.multi_reduction <add>, %215, %cst_83 [1] : vector<2x32xf32> to vector<2xf32>
      %217 = vector.shape_cast %216 : vector<2xf32> to vector<2x1xf32>
      %cst_84 = arith.constant 3.200000e+01 : f32
      %218 = vector.broadcast %cst_84 : f32 to vector<2x1xf32>
      %219 = arith.divf %217, %218 : vector<2x1xf32>
      %220 = vector.broadcast %212 : vector<2x1xf32> to vector<2x32xf32>
      %221 = arith.subf %206, %220 : vector<2x32xf32>
      %cst_85 = arith.constant 9.99999974E-6 : f32
      %222 = vector.broadcast %cst_85 : f32 to vector<2x1xf32>
      %223 = arith.addf %219, %222 : vector<2x1xf32>
      %224 = math.rsqrt %223 : vector<2x1xf32>
      %225 = vector.broadcast %224 : vector<2x1xf32> to vector<2x32xf32>
      %226 = arith.mulf %221, %225 : vector<2x32xf32>
      %227 = vector.broadcast %207 : vector<1x32xf32> to vector<2x32xf32>
      %228 = arith.mulf %226, %227 : vector<2x32xf32>
      %229 = vector.broadcast %208 : vector<1x32xf32> to vector<2x32xf32>
      %230 = arith.addf %228, %229 : vector<2x32xf32>
      %c0_86 = arith.constant 0 : index
      %c0_87 = arith.constant 0 : index
      %c0_88 = arith.constant 0 : index
      %231 = vector.load %arg17[%c0_86, %c0_87, %c0_88] : memref<1x2x32xf32, #tpu.memory_space<vmem>>, vector<1x2x32xf32>
      %232 = vector.shape_cast %231 : vector<1x2x32xf32> to vector<2x32xf32>
      %233 = vector.shape_cast %230 : vector<2x32xf32> to vector<1x2x32xf32>
      tpu.vector_store %arg17[%c0_86, %c0_87, %c0_88], %233 {strides = array<i32>} : memref<1x2x32xf32, #tpu.memory_space<vmem>>, vector<1x2x32xf32>,
    } else {
    }
    return
  }
  func.func @transform_0(%arg0: i32, %arg1: i32) -> (i32, i32, i32) {
    %c0_i32 = arith.constant 0 : i32
    %c0_i32_0 = arith.constant 0 : i32
    %c0_i32_1 = arith.constant 0 : i32
    return %arg0, %c0_i32, %c0_i32_0 : i32, i32, i32
  }
  func.func @transform_1(%arg0: i32, %arg1: i32) -> (i32, i32, i32) {
    %c0_i32 = arith.constant 0 : i32
    %c0_i32_0 = arith.constant 0 : i32
    %c0_i32_1 = arith.constant 0 : i32
    return %arg1, %c0_i32, %c0_i32_0 : i32, i32, i32
  }
  func.func @transform_2(%arg0: i32, %arg1: i32) -> (i32, i32, i32) {
    %c0_i32 = arith.constant 0 : i32
    %c0_i32_0 = arith.constant 0 : i32
    %c0_i32_1 = arith.constant 0 : i32
    return %arg1, %c0_i32, %c0_i32_0 : i32, i32, i32
  }
  func.func @transform_3(%arg0: i32, %arg1: i32) -> (i32, i32, i32) {
    %c0_i32 = arith.constant 0 : i32
    %c0_i32_0 = arith.constant 0 : i32
    %c0_i32_1 = arith.constant 0 : i32
    return %arg1, %c0_i32, %c0_i32_0 : i32, i32, i32
  }
  func.func @transform_4(%arg0: i32, %arg1: i32) -> (i32, i32, i32) {
    %c0_i32 = arith.constant 0 : i32
    %c0_i32_0 = arith.constant 0 : i32
    %c0_i32_1 = arith.constant 0 : i32
    return %arg1, %c0_i32, %c0_i32_0 : i32, i32, i32
  }
  func.func @transform_5(%arg0: i32, %arg1: i32) -> (i32, i32, i32) {
    %c0_i32 = arith.constant 0 : i32
    %c0_i32_0 = arith.constant 0 : i32
    %c0_i32_1 = arith.constant 0 : i32
    return %arg1, %c0_i32, %c0_i32_0 : i32, i32, i32
  }
  func.func @transform_6(%arg0: i32, %arg1: i32) -> (i32, i32, i32) {
    %c0_i32 = arith.constant 0 : i32
    %c0_i32_0 = arith.constant 0 : i32
    %c0_i32_1 = arith.constant 0 : i32
    return %arg1, %c0_i32, %c0_i32_0 : i32, i32, i32
  }
  func.func @transform_7(%arg0: i32, %arg1: i32) -> (i32, i32, i32) {
    %c0_i32 = arith.constant 0 : i32
    %c0_i32_0 = arith.constant 0 : i32
    %c0_i32_1 = arith.constant 0 : i32
    return %arg1, %c0_i32, %c0_i32_0 : i32, i32, i32
  }
  func.func @transform_8(%arg0: i32, %arg1: i32) -> (i32, i32, i32) {
    %c0_i32 = arith.constant 0 : i32
    %c0_i32_0 = arith.constant 0 : i32
    %c0_i32_1 = arith.constant 0 : i32
    return %arg1, %c0_i32, %c0_i32_0 : i32, i32, i32
  }
  func.func @transform_9(%arg0: i32, %arg1: i32) -> (i32, i32, i32) {
    %c0_i32 = arith.constant 0 : i32
    %c0_i32_0 = arith.constant 0 : i32
    %c0_i32_1 = arith.constant 0 : i32
    return %arg1, %c0_i32, %c0_i32_0 : i32, i32, i32
  }
  func.func @transform_10(%arg0: i32, %arg1: i32) -> (i32, i32, i32) {
    %c0_i32 = arith.constant 0 : i32
    %c0_i32_0 = arith.constant 0 : i32
    %c0_i32_1 = arith.constant 0 : i32
    return %arg1, %c0_i32, %c0_i32_0 : i32, i32, i32
  }
  func.func @transform_11(%arg0: i32, %arg1: i32) -> (i32, i32, i32) {
    %c0_i32 = arith.constant 0 : i32
    %c0_i32_0 = arith.constant 0 : i32
    %c0_i32_1 = arith.constant 0 : i32
    return %arg1, %c0_i32, %c0_i32_0 : i32, i32, i32
  }
  func.func @transform_12(%arg0: i32, %arg1: i32) -> (i32, i32, i32) {
    %c0_i32 = arith.constant 0 : i32
    %c0_i32_0 = arith.constant 0 : i32
    %c0_i32_1 = arith.constant 0 : i32
    return %arg1, %c0_i32, %c0_i32_0 : i32, i32, i32
  }
  func.func @transform_13(%arg0: i32, %arg1: i32) -> (i32, i32) {
    %c0_i32 = arith.constant 0 : i32
    %c0_i32_0 = arith.constant 0 : i32
    %c0_i32_1 = arith.constant 0 : i32
    return %c0_i32, %c0_i32_0 : i32, i32
  }
  func.func @transform_14(%arg0: i32, %arg1: i32) -> (i32, i32) {
    %c0_i32 = arith.constant 0 : i32
    %c0_i32_0 = arith.constant 0 : i32
    %c0_i32_1 = arith.constant 0 : i32
    return %c0_i32, %c0_i32_0 : i32, i32
  }
  func.func @transform_15(%arg0: i32, %arg1: i32) -> (i32, i32, i32) {
    %c0_i32 = arith.constant 0 : i32
    %c0_i32_0 = arith.constant 0 : i32
    %c0_i32_1 = arith.constant 0 : i32
    return %arg0, %c0_i32, %c0_i32_0 : i32, i32, i32
  }
}

</mosaic_0001>

<bundles_post_ra>
// kernel: vtn_forward.4
= control target key start
LH: loop header
LB: loop body
LE: loop exit
PB: predicated region body
PF: predicated region fallthrough
CT: control target
= control target key end

     0   :  { %s1067_s0 = inlined_call_operand.vmem [shape: bf16[54,1024], index: 0, kind: input, shape index: {}]   ;;  %s1068_s1 = inlined_call_operand.vmem [shape: bf16[3,54], index: 1, kind: input, shape index: {}]   ;;  %s1069_s2 = inlined_call_operand.vmem [shape: f32[3,1], index: 2, kind: input, shape index: {}]   ;;  %s1070_s3 = inlined_call_operand.vmem [shape: bf16[1,3], index: 3, kind: input, shape index: {}]   ;;  %s1071_s4 = inlined_call_operand.<no memory space> [shape: f32[1,1], index: 4, kind: input, shape index: {}]   ;;  %s1072_s5 = inlined_call_operand.vmem [shape: f32[3,1024], index: 5, kind: output, shape index: {0}]   ;;  %s1073_s6 = inlined_call_operand.hbm [shape: f32[1,1024], index: 6, kind: output, shape index: {1}]  }
   0x1   :  { %v12_v0 = vstv %s1071_s4 }
   0x2   :  { %13 = vst [vmem:[#allocation2] sm:$0x1] %v12_v0 }
   0x3   :  { %v26_v1 = vld [vmem:[%s1067_s0] sm:$0xff]  ;;  %v27_v3 = vld [vmem:[%s1067_s0 + $0x8] sm:$0xff]  ;;  %v883_v9 = vmov 0   ;;  %vm205_vm0 = vcmask 1042432   ;;  %v28_v33 = vld [vmem:[%s1067_s0 + $0x10] sm:$0xff] }
   0x4   :  { %v30_v2 = vld [vmem:[%s1067_s0 + $0x20] sm:$0xff]  ;;  %v31_v5 = vld [vmem:[%s1067_s0 + $0x28] sm:$0xff]  ;;  %262 = vmatprep.mubr.bf16.mxu0 %v883_v9  ;;  %303 = vmatprep.mubr.bf16.mxu1 %v883_v9  ;;  %v32_v34 = vld [vmem:[%s1067_s0 + $0x30] sm:$0xff] }
   0x5   :  { %v763_v4 = vcombine.high %v26_v1, %v30_v2  ;;  %v762_v6 = vcombine.low %v26_v1, %v30_v2  ;;  %v34_v7 = vld [vmem:[%s1067_s0 + $0x40] sm:$0xff]  ;;  %v765_v10 = vcombine.high %v27_v3, %v31_v5  ;;  %v764_v11 = vcombine.low %v27_v3, %v31_v5  ;;  %v35_v13 = vld [vmem:[%s1067_s0 + $0x48] sm:$0xff]  ;;  %818 = vset.pattern.permute.xlu0 %v883_v9 }
   0x6   :  { %v38_v8 = vld [vmem:[%s1067_s0 + $0x60] sm:$0xff]  ;;  %v39_v14 = vld [vmem:[%s1067_s0 + $0x68] sm:$0xff] }
   0x7   :  { %v771_v12 = vcombine.high %v34_v7, %v38_v8  ;;  %v42_v15 = vld [vmem:[%s1067_s0 + $0x80] sm:$0xff]  ;;  %230 = vmatprep.subr.bf16.mxu0 %v763_v4  ;;  %v773_v16 = vcombine.high %v35_v13, %v39_v14  ;;  %v43_v18 = vld [vmem:[%s1067_s0 + $0x88] sm:$0xff]  ;;  %271 = vmatprep.subr.bf16.mxu1 %v765_v10  ;;  %v770_v20 = vcombine.low %v34_v7, %v38_v8 }
   0x8   :  { %v46_v17 = vld [vmem:[%s1067_s0 + $0xa0] sm:$0xff]  ;;  %v47_v19 = vld [vmem:[%s1067_s0 + $0xa8] sm:$0xff]  ;;  %231 = vmatpush1.bf16.msra.mxu0 %v762_v6  ;;  %272 = vmatpush1.bf16.msra.mxu1 %v764_v11  ;;  %v772_v21 = vcombine.low %v35_v13, %v39_v14 }
   0x9   :  { %232 = vmatprep.subr.bf16.mxu0 %v771_v12  ;;  %v779_v22 = vcombine.high %v42_v15, %v46_v17  ;;  %273 = vmatprep.subr.bf16.mxu1 %v773_v16  ;;  %v781_v23 = vcombine.high %v43_v18, %v47_v19  ;;  %v50_v24 = vld [vmem:[%s1067_s0 + $0xc0] sm:$0x77]  ;;  %v51_v25 = vld [vmem:[%s1067_s0 + $0xc8] sm:$0x77]  ;;  %v778_v26 = vcombine.low %v42_v15, %v46_v17 }
   0xa   :  { %v780_v27 = vcombine.low %v43_v18, %v47_v19  ;;  %v787_v28 = vcombine.high %v50_v24, %v50_v24  ;;  %v786_v29 = vcombine.low %v50_v24, %v50_v24  ;;  %v55_v30 = vld [vmem:[%s1069_s2] sm:$0x7]  ;;  %v789_v31 = vcombine.high %v51_v25, %v51_v25 }
   0xb   :  { %v788_v32 = vcombine.low %v51_v25, %v51_v25 }
   0xc   :  { %233 = vmatpush1.bf16.msra.mxu0 %v770_v20  ;;  %274 = vmatpush1.bf16.msra.mxu1 %v772_v21 }
   0xd   :  { %234 = vmatprep.subr.bf16.mxu0 %v779_v22  ;;  %275 = vmatprep.subr.bf16.mxu1 %v781_v23 }
   0xe   :  { %14 = vsyncpa [#allocation4], 0  ;;  %v29_v35 = vld [vmem:[%s1067_s0 + $0x18] sm:$0xff]  ;;  %58 = vperm.xlu0 %818, %v55_v30   ;;  %v411_v37 = vld [vmem:[#allocation2] sm:$0x1]  ;;  %v207_v38 = vsel %vm205_vm0, %v786_v29, 0  ;;  %v767_v39 = vcombine.high %v28_v33, %v32_v34  ;;  %v766_v47 = vcombine.low %v28_v33, %v32_v34 }
   0xf   :  { %v33_v36 = vld [vmem:[%s1067_s0 + $0x38] sm:$0xff]  ;;  %v213_v40 = vsel %vm205_vm0, %v788_v32, 0  ;;  %v36_v42 = vld [vmem:[%s1067_s0 + $0x50] sm:$0xff]  ;;  %v54_v46 = vld [vmem:[%s1068_s1] sm:$0x3]  ;;  %vm201_vm1 = vcmask 441344  }
  0x10   :  { %235 = vmatpush1.bf16.msra.mxu0 %v778_v26  ;;  %276 = vmatpush1.bf16.msra.mxu1 %v780_v27  ;;  %v769_v41 = vcombine.high %v29_v35, %v33_v36  ;;  %v40_v43 = vld [vmem:[%s1067_s0 + $0x70] sm:$0xff]  ;;  %v37_v44 = vld [vmem:[%s1067_s0 + $0x58] sm:$0xff]  ;;  %v768_v48 = vcombine.low %v29_v35, %v33_v36  ;;  %vm425_vm2 = vcmask 1040384   ;;  %vm426_vm3 = vcmask 1041408   ;;  %v402_v36 = vld [vmem:[%s1070_s3] sm:$0x1] }
  0x11   :  { %794 = vmatprep.subr.msk.bf16.mxu0 %vm205_vm0, %v787_v28  ;;  %796 = vmatprep.subr.msk.bf16.mxu1 %vm205_vm0, %v789_v31  ;;  %v41_v45 = vld [vmem:[%s1067_s0 + $0x78] sm:$0xff]  ;;  %v775_v49 = vcombine.high %v36_v42, %v40_v43  ;;  %v44_v51 = vld [vmem:[%s1067_s0 + $0x90] sm:$0xff]  ;;  %v774_v55 = vcombine.low %v36_v42, %v40_v43  ;;  %v884_v11 = vmov 65535   ;;  %vm421_vm4 = vcmask 23552  }
  0x12   :  { %414 = vperm.xlu0 %818, %v411_v37   ;;  %v777_v50 = vcombine.high %v37_v44, %v41_v45  ;;  %v48_v52 = vld [vmem:[%s1067_s0 + $0xb0] sm:$0xff]  ;;  %v45_v53 = vld [vmem:[%s1067_s0 + $0x98] sm:$0xff]  ;;  %v776_v56 = vcombine.low %v37_v44, %v41_v45  ;;  %v427_v12 = vsel %vm425_vm2, 4294967295, %v884_v11 }
  0x13   :  { %v49_v54 = vld [vmem:[%s1067_s0 + $0xb8] sm:$0xff]  ;;  %v783_v57 = vcombine.high %v44_v51, %v48_v52  ;;  %v52_v59 = vld [vmem:[%s1067_s0 + $0xd0] sm:$0x77]  ;;  %v782_v61 = vcombine.low %v44_v51, %v48_v52  ;;  %v428_v24 = vsel %vm426_vm3, %v427_v12, 0 }
  0x14   :  { %237 = vmatpush1.bf16.msra.mxu0 %v207_v38  ;;  %278 = vmatpush1.bf16.msra.mxu1 %v213_v40  ;;  %v785_v58 = vcombine.high %v45_v53, %v49_v54  ;;  %v53_v60 = vld [vmem:[%s1067_s0 + $0xd8] sm:$0x77]  ;;  %v784_v62 = vcombine.low %v45_v53, %v49_v54  ;;  %v791_v63 = vcombine.high %v52_v59, %v52_v59 }
  0x15   :  { %312 = vmatprep.subr.bf16.mxu0 %v767_v39  ;;  %353 = vmatprep.subr.bf16.mxu1 %v769_v41  ;;  %v790_v0 = vcombine.low %v52_v59, %v52_v59  ;;  %v793_v1 = vcombine.high %v53_v60, %v53_v60  ;;  %v792_v2 = vcombine.low %v53_v60, %v53_v60 }
  0x17   :  { %795 = vmatmul.mubr.msk.bf16.vlgmr.msra.gmra.mrb[0].mxu0 %vm201_vm1, %v54_v46  ;;  %797 = vmatmul.mubr.msk.bf16.vlgmr.msra.gmra.mrb[0].mxu1 %vm201_vm1, %v54_v46  ;;  %v219_v3 = vsel %vm205_vm0, %v790_v0, 0  ;;  %v225_v4 = vsel %vm205_vm0, %v792_v2, 0 }
  0x18   :  { %313 = vmatpush1.bf16.msra.mxu0 %v766_v47  ;;  %354 = vmatpush1.bf16.msra.mxu1 %v768_v48 }
  0x19   :  { %314 = vmatprep.subr.bf16.mxu0 %v775_v49  ;;  %355 = vmatprep.subr.bf16.mxu1 %v777_v50 }
  0x1a   :  { %344 = vmatprep.mubr.bf16.mxu0 %v883_v9  ;;  %385 = vmatprep.mubr.bf16.mxu1 %v883_v9 }
  0x1c   :  { %315 = vmatpush1.bf16.msra.mxu0 %v774_v55  ;;  %356 = vmatpush1.bf16.msra.mxu1 %v776_v56 }
  0x1d   :  { %316 = vmatprep.subr.bf16.mxu0 %v783_v57  ;;  %357 = vmatprep.subr.bf16.mxu1 %v785_v58 }
  0x20   :  { %317 = vmatpush1.bf16.msra.mxu0 %v782_v61  ;;  %358 = vmatpush1.bf16.msra.mxu1 %v784_v62  ;;  %v417_v62 = vlaneseq }
  0x21   :  { %798 = vmatprep.subr.msk.bf16.mxu0 %vm205_vm0, %v791_v63  ;;  %800 = vmatprep.subr.msk.bf16.mxu1 %vm205_vm0, %v793_v1 }
  0x22   :  { %v418_v63 = vshrl.u32 %v417_v62, 7 }
  0x24   :  { %319 = vmatpush1.bf16.msra.mxu0 %v219_v3  ;;  %360 = vmatpush1.bf16.msra.mxu1 %v225_v4  ;;  %v419_v0 = vsub.s32 0, %v418_v63 }
  0x27   :  { %799 = vmatmul.mubr.msk.bf16.vlgmr.msra.gmra.mrb[4].mxu0 %vm201_vm1, %v54_v46  ;;  %801 = vmatmul.mubr.msk.bf16.vlgmr.msra.gmra.mrb[4].mxu1 %vm201_vm1, %v54_v46 }
  0x28   :  { %485 = vmatprep.mubr.bf16.mxu0 %v883_v9  ;;  %526 = vmatprep.mubr.bf16.mxu1 %v883_v9 }
  0x8d   :  { %v59_v5 = vpop.permute.xlu0 %58 }
  0x91   :  { %v415_v1 = vpop.permute.xlu0 %414 }
  0x92   :  { %v420_v2 = vrot.slane %v415_v1, %v419_v0 }
  0xea   :  { %v264_v6 = vpop.f32.mrb[0].mxu0  ;;  %v305_v7 = vpop.f32.mrb[0].mxu1 }
  0xeb   :  { %v265_v8 = vadd.f32 %v264_v6, %v59_v5  ;;  %v266_v10 = vpop.f32.mrb[1].mxu0  ;;  %v306_v14 = vadd.f32 %v305_v7, %v59_v5  ;;  %v307_v15 = vpop.f32.mrb[1].mxu1 }
  0xec   :  { %v267_v13 = vadd.f32 %v266_v10, %v59_v5  ;;  %v268_v16 = vpop.f32.mrb[2].mxu0  ;;  %v308_v18 = vadd.f32 %v307_v15, %v59_v5  ;;  %v309_v19 = vpop.f32.mrb[2].mxu1 }
  0xed   :  { %v394_v17 = vmax.f32 %v265_v8, 0.0  ;;  %v269_v20 = vpop.f32.mrb[3].mxu0  ;;  %v396_v22 = vmax.f32 %v306_v14, 0.0  ;;  %v310_v23 = vpop.f32.mrb[3].mxu1 }
  0xee   :  { %v395_v21 = vmax.f32 %v267_v13, 0.0  ;;  %v397_v26 = vmax.f32 %v308_v18, 0.0 }
  0xef   :  { %v403_v25 = vpack.c.bf16 %v394_v17, %v394_v17  ;;  %v405_v29 = vpack.c.bf16 %v396_v22, %v396_v22 }
  0xf0   :  { %v404_v27 = vpack.c.bf16 %v395_v21, %v395_v21  ;;  %v625_v28 = vcombine.low %v394_v17, %v395_v21  ;;  %v406_v30 = vpack.c.bf16 %v397_v26, %v397_v26  ;;  %v626_v31 = vcombine.low %v396_v22, %v397_v26 }
  0xf1   :  { %v430_v32 = vand.u32 %v428_v24, %v403_v25  ;;  %v436_v34 = vand.u32 %v428_v24, %v405_v29 }
  0xf2   :  { %633 = vst [vmem:[%s1072_s5] sm:$0x77] %v625_v28  ;;  %v433_v33 = vand.u32 %v428_v24, %v404_v27  ;;  %634 = vst [vmem:[%s1072_s5 + $0x8] sm:$0x77] %v626_v31  ;;  %v439_v35 = vand.u32 %v428_v24, %v406_v30 }
  0xf4   :  { %453 = vmatprep.subr.bf16.mxu0 %v433_v33  ;;  %494 = vmatprep.subr.bf16.mxu1 %v439_v35 }
  0xf5   :  { %454 = vmatpush1.bf16.msra.mxu0 %v430_v32  ;;  %495 = vmatpush1.bf16.msra.mxu1 %v436_v34 }
  0xf8   :  { %802 = vmatmul.mubr.msk.bf16.vlgmr.msra.gmra.mrb[8].mxu0 %vm421_vm4, %v402_v36  ;;  %803 = vmatmul.mubr.msk.bf16.vlgmr.msra.gmra.mrb[8].mxu1 %vm421_vm4, %v402_v36 }
  0xf9   :  { %567 = vmatprep.mubr.bf16.mxu0 %v883_v9  ;;  %608 = vmatprep.mubr.bf16.mxu1 %v883_v9 }
  0xfa   :  { %v346_v37 = vpop.f32.mrb[4].mxu0  ;;  %v387_v39 = vpop.f32.mrb[4].mxu1 }
  0xfb   :  { %v347_v38 = vadd.f32 %v346_v37, %v59_v5  ;;  %v348_v40 = vpop.f32.mrb[5].mxu0  ;;  %v388_v41 = vadd.f32 %v387_v39, %v59_v5  ;;  %v389_v43 = vpop.f32.mrb[5].mxu1 }
  0xfc   :  { %v349_v42 = vadd.f32 %v348_v40, %v59_v5  ;;  %v350_v44 = vpop.f32.mrb[6].mxu0  ;;  %v390_v46 = vadd.f32 %v389_v43, %v59_v5  ;;  %v391_v47 = vpop.f32.mrb[6].mxu1  ;;  %v885_v43 = vmov 1966171168  }
  0xfd   :  { %v398_v45 = vmax.f32 %v347_v38, 0.0  ;;  %v351_v48 = vpop.f32.mrb[7].mxu0  ;;  %v400_v49 = vmax.f32 %v388_v41, 0.0  ;;  %v392_v51 = vpop.f32.mrb[7].mxu1  ;;  %v698_v44 = vunpack.c.l.s4 %v885_v43 }
  0xfe   :  { %v399_v50 = vmax.f32 %v349_v42, 0.0  ;;  %v401_v53 = vmax.f32 %v390_v46, 0.0 }
  0xff   :  { %v407_v52 = vpack.c.bf16 %v398_v45, %v398_v45  ;;  %v409_v54 = vpack.c.bf16 %v400_v49, %v400_v49  ;;  %v699_v46 = vunpack.c.0.s8 %v698_v44 }
 0x100   :  { %v408_v55 = vpack.c.bf16 %v399_v50, %v399_v50  ;;  %v627_v56 = vcombine.low %v398_v45, %v399_v50  ;;  %v410_v9 = vpack.c.bf16 %v401_v53, %v401_v53  ;;  %v628_v57 = vcombine.low %v400_v49, %v401_v53 }
 0x101   :  { %v442_v59 = vand.u32 %v428_v24, %v407_v52  ;;  %v448_v61 = vand.u32 %v428_v24, %v409_v54  ;;  %v702_v49 = vsub.s32 %v699_v46, %v418_v63 }
 0x102   :  { %635 = vst [vmem:[%s1072_s5 + $0x10] sm:$0x77] %v627_v56  ;;  %v445_v58 = vand.u32 %v428_v24, %v408_v55  ;;  %636 = vst [vmem:[%s1072_s5 + $0x18] sm:$0x77] %v628_v57  ;;  %v451_v60 = vand.u32 %v428_v24, %v410_v9  ;;  %s886_s5 = smov [#allocation3]  }
 0x103   :  { %s752_s13 = sshll.u32 %s886_s5, 4  ;;  %s753_s13 = int_to_ptr.vmem [resolvable:$true] %s752_s13 }
 0x104   :  { %535 = vmatprep.subr.bf16.mxu0 %v445_v58  ;;  %576 = vmatprep.subr.bf16.mxu1 %v451_v60  ;;  %s859_s14 = scalar_lea.vmem %s753_s13, 128  ;;  %p864_p1 = scmp.lt.s32.totalorder %s753_s13, %s753_s13 }
 0x105   :  { %536 = vmatpush1.bf16.msra.mxu0 %v442_v59  ;;  %577 = vmatpush1.bf16.msra.mxu1 %v448_v61  ;;  %p860_p0 = scmp.ne.s32.totalorder %s753_s13, %s859_s14  ;;  %p865_p2 = scmp.lt.s32.totalorder %s859_s14, %s859_s14 }
 0x107   :  { %p866_p3 = por %p865_p2, %p864_p1 }
 0x108   :  { %804 = vmatmul.mubr.msk.bf16.vlgmr.msra.gmra.mrb[12].mxu0 %vm421_vm4, %v402_v36  ;;  %805 = vmatmul.mubr.msk.bf16.vlgmr.msra.gmra.mrb[12].mxu1 %vm421_vm4, %v402_v36 }
 0x109   :  { %p867_p4 = pnand %p866_p3, %p860_p0 }
 0x1cb   :  { %v487_v3 = vpop.f32.mrb[8].mxu0  ;;  %v528_v5 = vpop.f32.mrb[8].mxu1 }
 0x1cc   :  { %v488_v4 = vadd.f32 %v487_v3, %v420_v2  ;;  %v489_v6 = vpop.f32.mrb[9].mxu0  ;;  %v529_v7 = vadd.f32 %v528_v5, %v420_v2  ;;  %v530_v10 = vpop.f32.mrb[9].mxu1 }
 0x1cd   :  { %v490_v8 = vadd.f32 %v489_v6, %v420_v2  ;;  %v491_v11 = vpop.f32.mrb[10].mxu0  ;;  %v531_v13 = vadd.f32 %v530_v10, %v420_v2  ;;  %v532_v14 = vpop.f32.mrb[10].mxu1 }
 0x1ce   :  { %v806_v12 = vmul.f32 -1.442695, %v488_v4  ;;  %v492_v15 = vpop.f32.mrb[11].mxu0  ;;  %v808_v16 = vmul.f32 -1.442695, %v529_v7  ;;  %v533_v18 = vpop.f32.mrb[11].mxu1 }
 0x1cf   :  { %v807_v17 = vmul.f32 -1.442695, %v490_v8  ;;  %v809_v19 = vmul.f32 -1.442695, %v531_v13 }
 0x1d0   :  { %827 = vpow2.f32 %v806_v12 }
 0x1d1   :  { %829 = vpow2.f32 %v808_v16 }
 0x1d2   :  { %831 = vpow2.f32 %v807_v17 }
 0x1d3   :  { %833 = vpow2.f32 %v809_v19 }
 0x1da   :  { %v828_v20 = vpop.eup %827 }
 0x1db   :  { %v830_v21 = vpop.eup %829  ;;  %v661_v22 = vadd.f32 1.0, %v828_v20  ;;  %v569_v23 = vpop.f32.mrb[12].mxu0 }
 0x1dc   :  { %v832_v24 = vpop.eup %831  ;;  %v663_v25 = vadd.f32 1.0, %v830_v21  ;;  %v570_v26 = vadd.f32 %v569_v23, %v420_v2  ;;  %v610_v27 = vpop.f32.mrb[12].mxu1 }
 0x1dd   :  { %v571_v28 = vpop.f32.mrb[13].mxu0  ;;  %v834_v29 = vpop.eup %833  ;;  %835 = vrcp.f32 %v661_v22  ;;  %v662_v30 = vadd.f32 1.0, %v832_v24  ;;  %v611_v31 = vadd.f32 %v610_v27, %v420_v2 }
 0x1de   :  { %v572_v32 = vadd.f32 %v571_v28, %v420_v2  ;;  %v612_v33 = vpop.f32.mrb[13].mxu1  ;;  %v573_v34 = vpop.f32.mrb[14].mxu0  ;;  %837 = vrcp.f32 %v663_v25  ;;  %v664_v35 = vadd.f32 1.0, %v834_v29  ;;  %v810_v36 = vmul.f32 -1.442695, %v570_v26 }
 0x1df   :  { %v613_v37 = vadd.f32 %v612_v33, %v420_v2  ;;  %v614_v38 = vpop.f32.mrb[14].mxu1  ;;  %v574_v39 = vpop.f32.mrb[15].mxu0  ;;  %839 = vrcp.f32 %v662_v30  ;;  %v812_v40 = vmul.f32 -1.442695, %v611_v31 }
 0x1e0   :  { %v811_v41 = vmul.f32 -1.442695, %v572_v32  ;;  %v615_v42 = vpop.f32.mrb[15].mxu1  ;;  %841 = vrcp.f32 %v664_v35 }
 0x1e1   :  { %v813_v45 = vmul.f32 -1.442695, %v613_v37  ;;  %843 = vpow2.f32 %v810_v36 }
 0x1e2   :  { %845 = vpow2.f32 %v812_v40 }
 0x1e3   :  { %847 = vpow2.f32 %v811_v41 }
 0x1e4   :  { %849 = vpow2.f32 %v813_v45 }
 0x1e7   :  { %v836_v47 = vpop.eup %835 }
 0x1e8   :  { %v838_v48 = vpop.eup %837 }
 0x1e9   :  { %v840_v50 = vpop.eup %839 }
 0x1ea   :  { %v842_v51 = vpop.eup %841  ;;  %v693_v52 = vcombine.low %v836_v47, %v840_v50 }
 0x1eb   :  { %v844_v53 = vpop.eup %843  ;;  %v694_v54 = vcombine.low %v838_v48, %v842_v51 }
 0x1ec   :  { %v846_v55 = vpop.eup %845  ;;  %v665_v56 = vadd.f32 1.0, %v844_v53  ;;  %v703_v9 = vrot.slane %v693_v52, %v702_v49 }
 0x1ed   :  { %v848_v57 = vpop.eup %847  ;;  %v667_v58 = vadd.f32 1.0, %v846_v55  ;;  %v710_v59 = vrot.slane %v694_v54, %v702_v49 }
 0x1ee   :  { %v850_v60 = vpop.eup %849  ;;  %851 = vrcp.f32 %v665_v56  ;;  %v666_v61 = vadd.f32 1.0, %v848_v57 }
 0x1ef   :  { %853 = vrcp.f32 %v667_v58  ;;  %v668_v62 = vadd.f32 1.0, %v850_v60  ;;  %v725_v0 = vcombine.low %v703_v9, %v710_v59 }
 0x1f0   :  { %855 = vrcp.f32 %v666_v61 }
 0x1f1   :  { %857 = vrcp.f32 %v668_v62  ;;  %v733_v10 = vrot.slane %v725_v0, %v702_v49 }
 0x1f8   :  { %v852_v63 = vpop.eup %851 }
 0x1f9   :  { %v854_v1 = vpop.eup %853 }
 0x1fa   :  { %v856_v2 = vpop.eup %855 }
 0x1fb   :  { %v858_v3 = vpop.eup %857  ;;  %v695_v4 = vcombine.low %v852_v63, %v856_v2 }
 0x1fc   :  { %v696_v5 = vcombine.low %v854_v1, %v858_v3 }
 0x1fd   :  { %v717_v6 = vrot.slane %v695_v4, %v702_v49 }
 0x1fe   :  { %v724_v7 = vrot.slane %v696_v5, %v702_v49 }
 0x200   :  { %v726_v8 = vcombine.low %v717_v6, %v724_v7 }
 0x202   :  { %v740_v11 = vrot.slane %v726_v8, %v702_v49 }
 0x204   :  { %v741_v12 = vcombine.low %v733_v10, %v740_v11 }
 0x206   :  { %743 = vst [vmem:[#allocation3] sm:$0xff] %v741_v12 }
 0x207   :  { %870 = shalt.err (!%p867_p4)
}
 0x208   :  { %s871_s17 = scalar_lea.hbm %s1073_s6, 128 }
 0x209   :  { %p872_p5 = scmp.ne.s32.totalorder %s1073_s6, %s871_s17  ;;  %p875_p6 = scmp.lt.u32.totalorder %s871_s17, %s1073_s6 }
 0x20b   :  { %p877_p7 = pnand %p875_p6, %p872_p5 }
 0x20d   :  { %880 = shalt.err (!%p877_p7)
}
 0x20e   :  { %755 = dma.vmem_to_hbm [thread:$0]  %s753_s13, 128, %s1073_s6, [#allocation4]  }
 0x20f   :  { %881 = dma.done.wait [#allocation4], 128  }
 0x210   :  { %882 = vsyncadd [#allocation4], 4294967168 }
 0x211   :  { %761 = vsyncpa [#allocation4], 1 }

// kernel: vtn_forward.5
= control target key start
LH: loop header
LB: loop body
LE: loop exit
PB: predicated region body
PF: predicated region fallthrough
CT: control target
= control target key end

     0   :  { %vm58_vm0 = vcmask 392192   ;;  %vm136_vm1 = vcmask 261120   ;;  %s279_s1 = inlined_call_operand.vmem [shape: bf16[48,32], index: 1, kind: input, shape index: {}]   ;;  %s280_s0 = inlined_call_operand.vmem [shape: f32[64,48], index: 0, kind: input, shape index: {}]   ;;  %s281_s2 = inlined_call_operand.vmem [shape: f32[1,32], index: 2, kind: input, shape index: {}]   ;;  %s282_s3 = inlined_call_operand.vmem [shape: f32[64,32], index: 3, kind: output, shape index: {}]  }
   0x1   :  { %v184_v0 = vld [vmem:[%s279_s1] sm:$0xff]   ;;  %v185_v1 = vld [vmem:[%s279_s1 + $0x8] sm:$0xff]   ;;  %v186_v5 = vld [vmem:[%s279_s1 + $0x10] sm:$0xff]  }
   0x2   :  { %164 = vmatprep.subr.bf16.mxu0 %v184_v0  ;;  %178 = vmatprep.subr.bf16.mxu1 %v184_v0  ;;  %v15_v2 = vld [vmem:[%s280_s0] sm:$0xff]  ;;  %v16_v3 = vld [vmem:[%s280_s0 + $0x8] sm:$0xff]  ;;  %v17_v9 = vld [vmem:[%s280_s0 + $0x10] sm:$0xff] }
   0x3   :  { %165 = vmatpush3.bf16.msra.mxu0 %v184_v0  ;;  %181 = vmatpush3.bf16.msra.mxu1 %v184_v0  ;;  %v19_v4 = vld [vmem:[%s280_s0 + $0x20] sm:$0xff]  ;;  %v23_v6 = vpack.c.bf16 %v16_v3, %v15_v2  ;;  %v20_v7 = vld [vmem:[%s280_s0 + $0x28] sm:$0xff]  ;;  %v18_v10 = vld [vmem:[%s280_s0 + $0x18] sm:$0xff] }
   0x4   :  { %166 = vmatprep.subr.bf16.mxu0 %v185_v1  ;;  %179 = vmatprep.subr.bf16.mxu1 %v185_v1  ;;  %v25_v8 = vpack.c.bf16 %v20_v7, %v19_v4  ;;  %v21_v11 = vld [vmem:[%s280_s0 + $0x30] sm:$0xff]  ;;  %v22_v12 = vld [vmem:[%s280_s0 + $0x38] sm:$0xff]  ;;  %v24_v13 = vpack.c.bf16 %v18_v10, %v17_v9  ;;  %v149_v15 = vld [vmem:[%s281_s2] ss:$0 sm:$0xff] }
   0x5   :  { %170 = vmatprep.mubr.msk.bf16.mxu0 %vm58_vm0, %v23_v6  ;;  %v26_v14 = vpack.c.bf16 %v22_v12, %v21_v11 }
   0x6   :  { %174 = vmatprep.mubr.msk.bf16.mxu1 %vm58_vm0, %v25_v8 }
   0x7   :  { %167 = vmatpush3.bf16.msra.mxu0 %v185_v1  ;;  %182 = vmatpush3.bf16.msra.mxu1 %v185_v1 }
   0x8   :  { %168 = vmatprep.subr.bf16.mxu0 %v186_v5  ;;  %180 = vmatprep.subr.bf16.mxu1 %v186_v5 }
   0xb   :  { %169 = vmatpush3.bf16.msra.mxu0 %v186_v5  ;;  %183 = vmatpush3.bf16.msra.mxu1 %v186_v5 }
   0xe   :  { %171 = vmatmul.mubr.msk.bf16.vlgmr.msra.gmra.mrb[0].mxu0 %vm58_vm0, %v24_v13  ;;  %175 = vmatmul.mubr.msk.bf16.vlgmr.msra.gmra.mrb[0].mxu1 %vm58_vm0, %v26_v14 }
  0xe1   :  { %v172_v16 = vpop.f32.mrb[0].mxu0  ;;  %v176_v17 = vpop.f32.mrb[0].mxu1 }
  0xe2   :  { %v114_v18 = vadd.f32 %v172_v16, %v149_v15  ;;  %v130_v19 = vadd.f32 %v176_v17, %v149_v15  ;;  %v105_v20 = vpop.f32.mrb[1].mxu0  ;;  %v121_v21 = vpop.f32.mrb[1].mxu1 }
  0xe3   :  { %v106_v22 = vadd.f32 %v149_v15, %v105_v20  ;;  %v122_v23 = vadd.f32 %v149_v15, %v121_v21  ;;  %v173_v24 = vpop.f32.mrb[2].mxu0  ;;  %v177_v25 = vpop.f32.mrb[2].mxu1 }
  0xe4   :  { %139 = vst.msk [vmem:[%s282_s3 + $0x10] sm:$0xff] %vm136_vm1, %v114_v18  ;;  %143 = vst.msk [vmem:[%s282_s3 + $0x30] sm:$0xff] %vm136_vm1, %v130_v19  ;;  %v117_v26 = vadd.f32 %v173_v24, %v149_v15  ;;  %v133_v27 = vadd.f32 %v177_v25, %v149_v15  ;;  %v108_v28 = vpop.f32.mrb[3].mxu0  ;;  %v124_v29 = vpop.f32.mrb[3].mxu1 }
  0xe5   :  { %137 = vst.msk [vmem:[%s282_s3] sm:$0xff] %vm136_vm1, %v106_v22  ;;  %141 = vst.msk [vmem:[%s282_s3 + $0x20] sm:$0xff] %vm136_vm1, %v122_v23  ;;  %v109_v30 = vadd.f32 %v149_v15, %v108_v28  ;;  %v125_v31 = vadd.f32 %v149_v15, %v124_v29 }
  0xe6   :  { %140 = vst.msk [vmem:[%s282_s3 + $0x18] sm:$0xff] %vm136_vm1, %v117_v26  ;;  %144 = vst.msk [vmem:[%s282_s3 + $0x38] sm:$0xff] %vm136_vm1, %v133_v27 }
  0xe7   :  { %138 = vst.msk [vmem:[%s282_s3 + $0x8] sm:$0xff] %vm136_vm1, %v109_v30  ;;  %142 = vst.msk [vmem:[%s282_s3 + $0x28] sm:$0xff] %vm136_vm1, %v125_v31 }

// kernel: vtn_forward.7
= control target key start
LH: loop header
LB: loop body
LE: loop exit
PB: predicated region body
PF: predicated region fallthrough
CT: control target
= control target key end

     0   :  { %s3260_s0 = inlined_call_operand.hbm [shape: f32[2,2,32], index: 0, kind: input, shape index: {}]   ;;  %s3261_s1 = inlined_call_operand.hbm [shape: f32[1,1,32], index: 1, kind: input, shape index: {}, may-alias: {1,7}]   ;;  %s3262_s2 = inlined_call_operand.hbm [shape: f32[1,1,32], index: 2, kind: input, shape index: {}, may-alias: {2,6,8,12}]   ;;  %s3263_s3 = inlined_call_operand.hbm [shape: bf16[1,32,96], index: 3, kind: input, shape index: {}]   ;;  %s3264_s4 = inlined_call_operand.hbm [shape: f32[1,1,96], index: 4, kind: input, shape index: {}]   ;;  %s3265_s5 = inlined_call_operand.hbm [shape: bf16[1,32,32], index: 5, kind: input, shape index: {}]   ;;  %s3266_s6 = inlined_call_operand.hbm [shape: f32[1,1,32], index: 6, kind: input, shape index: {}, may-alias: {2,6,8,12}]   ;;  %s3267_s7 = inlined_call_operand.hbm [shape: f32[1,1,32], index: 7, kind: input, shape index: {}, may-alias: {1,7}]   ;;  %s3268_s8 = inlined_call_operand.hbm [shape: f32[1,1,32], index: 8, kind: input, shape index: {}, may-alias: {2,6,8,12}]   ;;  %s3269_s9 = inlined_call_operand.hbm [shape: bf16[1,32,128], index: 9, kind: input, shape index: {}]   ;;  %s3270_s10 = inlined_call_operand.hbm [shape: f32[1,1,128], index: 10, kind: input, shape index: {}]   ;;  %s3271_s11 = inlined_call_operand.hbm [shape: bf16[1,128,32], index: 11, kind: input, shape index: {}]   ;;  %s3272_s12 = inlined_call_operand.hbm [shape: f32[1,1,32], index: 12, kind: input, shape index: {}, may-alias: {2,6,8,12}]   ;;  %s3273_s13 = inlined_call_operand.hbm [shape: f32[1,32], index: 13, kind: input, shape index: {}]   ;;  %s3274_s14 = inlined_call_operand.hbm [shape: f32[1,32], index: 14, kind: input, shape index: {}]   ;;  %s3275_s15 = inlined_call_operand.hbm [shape: bf16[32,128], index: 15, kind: input, shape index: {}]   ;;  %s3276_s16 = inlined_call_operand.hbm [shape: f32[1,128], index: 16, kind: input, shape index: {}]   ;;  %s3277_s17 = inlined_call_operand.hbm [shape: f32[4,128], index: 17, kind: output, shape index: {}]  }
   0x1   :  { %3281 = sst [smem:[#allocation41_spill]] %s3260_s0 }
   0x2   :  { %3282 = sst [smem:[#allocation42_spill]] %s3261_s1 }
   0x3   :  { %3283 = sst [smem:[#allocation43_spill]] %s3277_s17 }
   0x4   :  { %22 = vsyncpa [#allocation4], 0 }
   0x5   :  { %23 = vsyncpa [#allocation7], 0 }
   0x6   :  { %24 = vsyncpa [#allocation10], 0 }
   0x7   :  { %25 = vsyncpa [#allocation13], 0 }
   0x8   :  { %26 = vsyncpa [#allocation16], 0 }
   0x9   :  { %27 = vsyncpa [#allocation19], 0 }
   0xa   :  { %28 = vsyncpa [#allocation22], 0 }
   0xb   :  { %29 = vsyncpa [#allocation25], 0 }
   0xc   :  { %30 = vsyncpa [#allocation28], 0 }
   0xd   :  { %31 = vsyncpa [#allocation5], 0  ;;  %s2656_s24 = smov [#allocation6]   ;;  %s2657_s26 = smov [#allocation9]  }
   0xe   :  { %s50_s25 = sshll.u32 %s2656_s24, 4  ;;  %s69_s27 = sshll.u32 %s2657_s26, 4  ;;  %s51_s25 = int_to_ptr.vmem [resolvable:$true] %s50_s25  ;;  %s2786_s27 = int_to_ptr.vmem [resolvable:$true] %s69_s27 }
   0xf   :  { %s3284_s0 = sld [smem:[#allocation42_spill]] }
  0x15   :  { %s2240_s30 = scalar_lea.hbm %s3284_s0, 16 }
  0x16   :  { %p2241_p0 = scmp.ne.s32.totalorder %s3284_s0, %s2240_s30  ;;  %p2244_p1 = scmp.lt.u32.totalorder %s2240_s30, %s3284_s0 }
  0x18   :  { %p2246_p2 = pnand %p2244_p1, %p2241_p0 }
  0x1a   :  { %2249 = shalt.err (!%p2246_p2)
}
  0x1b   :  { %s2250_s21 = scalar_lea.vmem %s51_s25, 16  ;;  %s2254_s22 = scalar_lea.vmem %s51_s25, 32 }
  0x1c   :  { %p2251_p3 = scmp.ne.s32.totalorder %s51_s25, %s2250_s21  ;;  %p2255_p4 = scmp.lt.s32.totalorder %s51_s25, %s51_s25 }
  0x1d   :  { %p2256_p5 = scmp.lt.s32.totalorder %s2254_s22, %s2250_s21 }
  0x1f   :  { %p2257_p6 = por %p2256_p5, %p2255_p4 }
  0x21   :  { %p2258_p7 = pnand %p2257_p6, %p2251_p3 }
  0x23   :  { %2261 = shalt.err (!%p2258_p7)
}
  0x24   :  { %53 = dma.hbm_to_vmem [thread:$0]  %s3284_s0, 16, %s51_s25, [#allocation7]  }
  0x25   :  { %s2262_s29 = scalar_lea.hbm %s3263_s3, 256 }
  0x26   :  { %p2263_p8 = scmp.ne.s32.totalorder %s3263_s3, %s2262_s29  ;;  %p2266_p9 = scmp.lt.u32.totalorder %s2262_s29, %s3263_s3 }
  0x28   :  { %p2268_p10 = pnand %p2266_p9, %p2263_p8 }
  0x2a   :  { %2271 = shalt.err (!%p2268_p10)
}
  0x2b   :  { %s2272_s20 = scalar_lea.vmem %s2786_s27, 256  ;;  %p2277_p12 = scmp.lt.s32.totalorder %s2786_s27, %s2786_s27 }
  0x2c   :  { %p2273_p11 = scmp.ne.s32.totalorder %s2786_s27, %s2272_s20  ;;  %p2278_p13 = scmp.lt.s32.totalorder %s2272_s20, %s2272_s20 }
  0x2e   :  { %p2279_p0 = por %p2278_p13, %p2277_p12 }
  0x30   :  { %p2280_p1 = pnand %p2279_p0, %p2273_p11 }
  0x32   :  { %2283 = shalt.err (!%p2280_p1)
}
  0x33   :  { %s2658_s25 = smov 64   ;;  %s2659_s0 = smov 4  }
  0x34   :  { %75 = dma.hbm_to_vmem [thread:$0]  %s3263_s3, 256, %s2786_s27, [#allocation10], %s2658_s25, %s2658_s25, %s2659_s0  }
  0x35   :  { %s2660_s23 = smov [#allocation12]   ;;  %s2661_s26 = smov [#allocation15]  }
  0x36   :  { %s91_s24 = sshll.u32 %s2660_s23, 4  ;;  %s114_s28 = sshll.u32 %s2661_s26, 4  ;;  %s92_s24 = int_to_ptr.vmem [resolvable:$true] %s91_s24  ;;  %s115_s28 = int_to_ptr.vmem [resolvable:$true] %s114_s28 }
  0x37   :  { %s2284_s30 = scalar_lea.hbm %s3265_s5, 256 }
  0x38   :  { %p2285_p2 = scmp.ne.s32.totalorder %s3265_s5, %s2284_s30  ;;  %p2288_p3 = scmp.lt.u32.totalorder %s2284_s30, %s3265_s5 }
  0x3a   :  { %p2290_p4 = pnand %p2288_p3, %p2285_p2 }
  0x3c   :  { %2293 = shalt.err (!%p2290_p4)
}
  0x3d   :  { %s2294_s3 = scalar_lea.vmem %s92_s24, 256  ;;  %p2299_p6 = scmp.lt.s32.totalorder %s92_s24, %s92_s24 }
  0x3e   :  { %p2295_p5 = scmp.ne.s32.totalorder %s92_s24, %s2294_s3  ;;  %p2300_p7 = scmp.lt.s32.totalorder %s2294_s3, %s2294_s3 }
  0x40   :  { %p2301_p8 = por %p2300_p7, %p2299_p6 }
  0x42   :  { %p2302_p9 = pnand %p2301_p8, %p2295_p5 }
  0x44   :  { %2305 = shalt.err (!%p2302_p9)
}
  0x45   :  { %97 = dma.hbm_to_vmem [thread:$0]  %s3265_s5, 256, %s92_s24, [#allocation13], %s2658_s25, %s2658_s25, %s2659_s0  }
  0x46   :  { %s2306_s17 = scalar_lea.hbm %s3267_s7, 16 }
  0x47   :  { %p2307_p10 = scmp.ne.s32.totalorder %s3267_s7, %s2306_s17  ;;  %p2310_p11 = scmp.lt.u32.totalorder %s2306_s17, %s3267_s7 }
  0x49   :  { %p2312_p12 = pnand %p2310_p11, %p2307_p10 }
  0x4b   :  { %2315 = shalt.err (!%p2312_p12)
}
  0x4c   :  { %s2316_s19 = scalar_lea.vmem %s115_s28, 16  ;;  %s2320_s1 = scalar_lea.vmem %s115_s28, 32 }
  0x4d   :  { %p2317_p13 = scmp.ne.s32.totalorder %s115_s28, %s2316_s19  ;;  %p2321_p0 = scmp.lt.s32.totalorder %s115_s28, %s115_s28 }
  0x4e   :  { %p2322_p1 = scmp.lt.s32.totalorder %s2320_s1, %s2316_s19 }
  0x50   :  { %p2323_p2 = por %p2322_p1, %p2321_p0 }
  0x52   :  { %p2324_p3 = pnand %p2323_p2, %p2317_p13 }
  0x54   :  { %2327 = shalt.err (!%p2324_p3)
}
  0x55   :  { %117 = dma.hbm_to_vmem [thread:$0]  %s3267_s7, 16, %s115_s28, [#allocation16]  }
  0x56   :  { %s2662_s20 = smov [#allocation18]   ;;  %s2663_s27 = smov [#allocation21]  }
  0x57   :  { %s133_s3 = sshll.u32 %s2662_s20, 4  ;;  %s155_s21 = sshll.u32 %s2663_s27, 4  ;;  %s134_s3 = int_to_ptr.vmem [resolvable:$true] %s133_s3  ;;  %s2847_s21 = int_to_ptr.vmem [resolvable:$true] %s155_s21 }
  0x58   :  { %s2328_s17 = scalar_lea.hbm %s3269_s9, 256 }
  0x59   :  { %p2329_p4 = scmp.ne.s32.totalorder %s3269_s9, %s2328_s17  ;;  %p2332_p5 = scmp.lt.u32.totalorder %s2328_s17, %s3269_s9 }
  0x5b   :  { %p2334_p6 = pnand %p2332_p5, %p2329_p4 }
  0x5d   :  { %2337 = shalt.err (!%p2334_p6)
}
  0x5e   :  { %s2338_s7 = scalar_lea.vmem %s134_s3, 256  ;;  %p2343_p8 = scmp.lt.s32.totalorder %s134_s3, %s134_s3 }
  0x5f   :  { %p2339_p7 = scmp.ne.s32.totalorder %s134_s3, %s2338_s7  ;;  %p2344_p9 = scmp.lt.s32.totalorder %s2338_s7, %s2338_s7 }
  0x61   :  { %p2345_p10 = por %p2344_p9, %p2343_p8 }
  0x63   :  { %p2346_p11 = pnand %p2345_p10, %p2339_p7 }
  0x65   :  { %2349 = shalt.err (!%p2346_p11)
}
  0x66   :  { %139 = dma.hbm_to_vmem [thread:$0]  %s3269_s9, 256, %s134_s3, [#allocation19], %s2658_s25, %s2658_s25, %s2659_s0  }
  0x67   :  { %s2350_s24 = scalar_lea.hbm %s3271_s11, 1024 }
  0x68   :  { %p2351_p12 = scmp.ne.s32.totalorder %s3271_s11, %s2350_s24  ;;  %p2354_p13 = scmp.lt.u32.totalorder %s2350_s24, %s3271_s11 }
  0x6a   :  { %p2356_p0 = pnand %p2354_p13, %p2351_p12 }
  0x6c   :  { %2359 = shalt.err (!%p2356_p0)
}
  0x6d   :  { %s2360_s17 = scalar_lea.vmem %s2847_s21, 1024  ;;  %p2365_p2 = scmp.lt.s32.totalorder %s2847_s21, %s2847_s21 }
  0x6e   :  { %p2361_p1 = scmp.ne.s32.totalorder %s2847_s21, %s2360_s17  ;;  %p2366_p3 = scmp.lt.s32.totalorder %s2360_s17, %s2360_s17 }
  0x70   :  { %p2367_p4 = por %p2366_p3, %p2365_p2 }
  0x72   :  { %p2368_p5 = pnand %p2367_p4, %p2361_p1 }
  0x74   :  { %2371 = shalt.err (!%p2368_p5)
}
  0x75   :  { %161 = dma.hbm_to_vmem [thread:$0]  %s3271_s11, 1024, %s2847_s21, [#allocation22], %s2658_s25, %s2658_s25, %s2659_s0  }
  0x76   :  { %s2664_s26 = smov [#allocation24]   ;;  %s2665_s18 = smov [#allocation27]  }
  0x77   :  { %s178_s29 = sshll.u32 %s2664_s26, 4  ;;  %s197_s30 = sshll.u32 %s2665_s18, 4  ;;  %s179_s29 = int_to_ptr.vmem [resolvable:$true] %s178_s29  ;;  %s2884_s30 = int_to_ptr.vmem [resolvable:$true] %s197_s30 }
  0x78   :  { %s2372_s19 = scalar_lea.hbm %s3273_s13, 16 }
  0x79   :  { %p2373_p6 = scmp.ne.s32.totalorder %s3273_s13, %s2372_s19  ;;  %p2376_p7 = scmp.lt.u32.totalorder %s2372_s19, %s3273_s13 }
  0x7b   :  { %p2378_p8 = pnand %p2376_p7, %p2373_p6 }
  0x7d   :  { %2381 = shalt.err (!%p2378_p8)
}
  0x7e   :  { %s2382_s11 = scalar_lea.vmem %s179_s29, 16  ;;  %s2386_s21 = scalar_lea.vmem %s179_s29, 32 }
  0x7f   :  { %p2383_p9 = scmp.ne.s32.totalorder %s179_s29, %s2382_s11  ;;  %p2387_p10 = scmp.lt.s32.totalorder %s179_s29, %s179_s29 }
  0x80   :  { %p2388_p11 = scmp.lt.s32.totalorder %s2386_s21, %s2382_s11 }
  0x82   :  { %p2389_p12 = por %p2388_p11, %p2387_p10 }
  0x84   :  { %p2390_p13 = pnand %p2389_p12, %p2383_p9 }
  0x86   :  { %2393 = shalt.err (!%p2390_p13)
}
  0x87   :  { %181 = dma.hbm_to_vmem [thread:$0]  %s3273_s13, 16, %s179_s29, [#allocation25]  }
  0x88   :  { %s2394_s9 = scalar_lea.hbm %s3275_s15, 256 }
  0x89   :  { %p2395_p0 = scmp.ne.s32.totalorder %s3275_s15, %s2394_s9  ;;  %p2398_p1 = scmp.lt.u32.totalorder %s2394_s9, %s3275_s15 }
  0x8b   :  { %p2400_p2 = pnand %p2398_p1, %p2395_p0 }
  0x8d   :  { %2403 = shalt.err (!%p2400_p2)
}
  0x8e   :  { %s2404_s28 = scalar_lea.vmem %s2884_s30, 256  ;;  %p2409_p4 = scmp.lt.s32.totalorder %s2884_s30, %s2884_s30 }
  0x8f   :  { %p2405_p3 = scmp.ne.s32.totalorder %s2884_s30, %s2404_s28  ;;  %p2410_p5 = scmp.lt.s32.totalorder %s2404_s28, %s2404_s28 }
  0x91   :  { %p2411_p6 = por %p2410_p5, %p2409_p4 }
  0x93   :  { %p2412_p7 = pnand %p2411_p6, %p2405_p3 }
  0x95   :  { %2415 = shalt.err (!%p2412_p7)
}
  0x96   :  { %203 = dma.hbm_to_vmem [thread:$0]  %s3275_s15, 256, %s2884_s30, [#allocation28], %s2658_s25, %s2658_s25, %s2659_s0  }
  0x97   :  { %s2666_s19 = smov [#allocation3]   ;;  %s3285_s20 = sld [smem:[#allocation41_spill]] }
  0x98   :  { %s37_s1 = sshll.u32 %s2666_s19, 4  ;;  %s38_s1 = int_to_ptr.vmem [resolvable:$true] %s37_s1 }
  0x9d   :  { %s2416_s11 = scalar_lea.hbm %s3285_s20, 64 }
  0x9e   :  { %p2417_p8 = scmp.ne.s32.totalorder %s3285_s20, %s2416_s11  ;;  %p2420_p9 = scmp.lt.u32.totalorder %s2416_s11, %s3285_s20 }
  0xa0   :  { %p2422_p10 = pnand %p2420_p9, %p2417_p8 }
  0xa2   :  { %2425 = shalt.err (!%p2422_p10)
}
  0xa3   :  { %s2426_s17 = scalar_lea.vmem %s38_s1, 64  ;;  %p2431_p12 = scmp.lt.s32.totalorder %s38_s1, %s38_s1 }
  0xa4   :  { %p2427_p11 = scmp.ne.s32.totalorder %s38_s1, %s2426_s17  ;;  %p2432_p13 = scmp.lt.s32.totalorder %s2426_s17, %s2426_s17 }
  0xa6   :  { %p2433_p0 = por %p2432_p13, %p2431_p12 }
  0xa8   :  { %p2434_p1 = pnand %p2433_p0, %p2427_p11 }
  0xaa   :  { %2437 = shalt.err (!%p2434_p1)
}
  0xab   :  { %s2667_s15 = smov 32   ;;  %s2668_s0 = smov 2  }
  0xac   :  { %43 = dma.hbm_to_vmem [thread:$0]  %s3285_s20, 64, %s38_s1, [#allocation4], %s2667_s15, %s2667_s15, %s2668_s0  }
  0xad   :  { %s2669_s3 = smov [#allocation8]   ;;  %s2670_s18 = smov [#allocation11]  }
  0xae   :  { %s60_s26 = sshll.u32 %s2669_s3, 4  ;;  %s82_s7 = sshll.u32 %s2670_s18, 4  ;;  %s61_s26 = int_to_ptr.vmem [resolvable:$true] %s60_s26  ;;  %s83_s7 = int_to_ptr.vmem [resolvable:$true] %s82_s7 }
  0xaf   :  { %s2438_s29 = scalar_lea.hbm %s3262_s2, 16 }
  0xb0   :  { %p2439_p2 = scmp.ne.s32.totalorder %s3262_s2, %s2438_s29  ;;  %p2442_p3 = scmp.lt.u32.totalorder %s2438_s29, %s3262_s2 }
  0xb2   :  { %p2444_p4 = pnand %p2442_p3, %p2439_p2 }
  0xb4   :  { %2447 = shalt.err (!%p2444_p4)
}
  0xb5   :  { %s2448_s1 = scalar_lea.vmem %s61_s26, 16  ;;  %s2452_s20 = scalar_lea.vmem %s61_s26, 32 }
  0xb6   :  { %p2449_p5 = scmp.ne.s32.totalorder %s61_s26, %s2448_s1  ;;  %p2453_p6 = scmp.lt.s32.totalorder %s61_s26, %s61_s26 }
  0xb7   :  { %p2454_p7 = scmp.lt.s32.totalorder %s2452_s20, %s2448_s1 }
  0xb9   :  { %p2455_p8 = por %p2454_p7, %p2453_p6 }
  0xbb   :  { %p2456_p9 = pnand %p2455_p8, %p2449_p5 }
  0xbd   :  { %2459 = shalt.err (!%p2456_p9)
}
  0xbe   :  { %63 = dma.hbm_to_vmem [thread:$0]  %s3262_s2, 16, %s61_s26, [#allocation7]  }
  0xbf   :  { %s2460_s17 = scalar_lea.hbm %s3264_s4, 16 }
  0xc0   :  { %p2461_p10 = scmp.ne.s32.totalorder %s3264_s4, %s2460_s17  ;;  %p2464_p11 = scmp.lt.u32.totalorder %s2460_s17, %s3264_s4 }
  0xc2   :  { %p2466_p12 = pnand %p2464_p11, %p2461_p10 }
  0xc4   :  { %2469 = shalt.err (!%p2466_p12)
}
  0xc5   :  { %s2470_s3 = scalar_lea.vmem %s83_s7, 16  ;;  %s2474_s18 = scalar_lea.vmem %s83_s7, 32 }
  0xc6   :  { %p2471_p13 = scmp.ne.s32.totalorder %s83_s7, %s2470_s3  ;;  %p2475_p0 = scmp.lt.s32.totalorder %s83_s7, %s83_s7 }
  0xc7   :  { %p2476_p1 = scmp.lt.s32.totalorder %s2474_s18, %s2470_s3 }
  0xc9   :  { %p2477_p2 = por %p2476_p1, %p2475_p0 }
  0xcb   :  { %p2478_p3 = pnand %p2477_p2, %p2471_p13 }
  0xcd   :  { %2481 = shalt.err (!%p2478_p3)
}
  0xce   :  { %85 = dma.hbm_to_vmem [thread:$0]  %s3264_s4, 16, %s83_s7, [#allocation10]  }
  0xcf   :  { %s2671_s28 = smov [#allocation14]   ;;  %s2672_s29 = smov [#allocation17]  }
  0xd0   :  { %s104_s13 = sshll.u32 %s2671_s28, 4  ;;  %s124_s19 = sshll.u32 %s2672_s29, 4  ;;  %s105_s13 = int_to_ptr.vmem [resolvable:$true] %s104_s13  ;;  %s125_s19 = int_to_ptr.vmem [resolvable:$true] %s124_s19 }
  0xd1   :  { %s2482_s11 = scalar_lea.hbm %s3266_s6, 16 }
  0xd2   :  { %p2483_p4 = scmp.ne.s32.totalorder %s3266_s6, %s2482_s11  ;;  %p2486_p5 = scmp.lt.u32.totalorder %s2482_s11, %s3266_s6 }
  0xd4   :  { %p2488_p6 = pnand %p2486_p5, %p2483_p4 }
  0xd6   :  { %2491 = shalt.err (!%p2488_p6)
}
  0xd7   :  { %s2492_s4 = scalar_lea.vmem %s105_s13, 16  ;;  %s2496_s7 = scalar_lea.vmem %s105_s13, 32 }
  0xd8   :  { %p2493_p7 = scmp.ne.s32.totalorder %s105_s13, %s2492_s4  ;;  %p2497_p8 = scmp.lt.s32.totalorder %s105_s13, %s105_s13 }
  0xd9   :  { %p2498_p9 = scmp.lt.s32.totalorder %s2496_s7, %s2492_s4 }
  0xdb   :  { %p2499_p10 = por %p2498_p9, %p2497_p8 }
  0xdd   :  { %p2500_p11 = pnand %p2499_p10, %p2493_p7 }
  0xdf   :  { %2503 = shalt.err (!%p2500_p11)
}
  0xe0   :  { %107 = dma.hbm_to_vmem [thread:$0]  %s3266_s6, 16, %s105_s13, [#allocation13]  }
  0xe1   :  { %s2504_s0 = scalar_lea.hbm %s3268_s8, 16 }
  0xe2   :  { %p2505_p12 = scmp.ne.s32.totalorder %s3268_s8, %s2504_s0  ;;  %p2508_p13 = scmp.lt.u32.totalorder %s2504_s0, %s3268_s8 }
  0xe4   :  { %p2510_p0 = pnand %p2508_p13, %p2505_p12 }
  0xe6   :  { %2513 = shalt.err (!%p2510_p0)
}
  0xe7   :  { %s2514_s2 = scalar_lea.vmem %s125_s19, 16  ;;  %s2518_s26 = scalar_lea.vmem %s125_s19, 32 }
  0xe8   :  { %p2515_p1 = scmp.ne.s32.totalorder %s125_s19, %s2514_s2  ;;  %p2519_p2 = scmp.lt.s32.totalorder %s125_s19, %s125_s19 }
  0xe9   :  { %p2520_p3 = scmp.lt.s32.totalorder %s2518_s26, %s2514_s2 }
  0xeb   :  { %p2521_p4 = por %p2520_p3, %p2519_p2 }
  0xed   :  { %p2522_p5 = pnand %p2521_p4, %p2515_p1 }
  0xef   :  { %2525 = shalt.err (!%p2522_p5)
}
  0xf0   :  { %127 = dma.hbm_to_vmem [thread:$0]  %s3268_s8, 16, %s125_s19, [#allocation16]  }
  0xf1   :  { %s2673_s13 = smov [#allocation20]   ;;  %s2674_s5 = smov [#allocation23]  }
  0xf2   :  { %s146_s29 = sshll.u32 %s2673_s13, 4  ;;  %s168_s24 = sshll.u32 %s2674_s5, 4  ;;  %s147_s29 = int_to_ptr.vmem [resolvable:$true] %s146_s29  ;;  %s169_s24 = int_to_ptr.vmem [resolvable:$true] %s168_s24 }
  0xf3   :  { %s2526_s20 = scalar_lea.hbm %s3270_s10, 16 }
  0xf4   :  { %p2527_p6 = scmp.ne.s32.totalorder %s3270_s10, %s2526_s20  ;;  %p2530_p7 = scmp.lt.u32.totalorder %s2526_s20, %s3270_s10 }
  0xf6   :  { %p2532_p8 = pnand %p2530_p7, %p2527_p6 }
  0xf8   :  { %2535 = shalt.err (!%p2532_p8)
}
  0xf9   :  { %s2536_s8 = scalar_lea.vmem %s147_s29, 16  ;;  %s2540_s19 = scalar_lea.vmem %s147_s29, 32 }
  0xfa   :  { %p2537_p9 = scmp.ne.s32.totalorder %s147_s29, %s2536_s8  ;;  %p2541_p10 = scmp.lt.s32.totalorder %s147_s29, %s147_s29 }
  0xfb   :  { %p2542_p11 = scmp.lt.s32.totalorder %s2540_s19, %s2536_s8 }
  0xfd   :  { %p2543_p12 = por %p2542_p11, %p2541_p10 }
  0xff   :  { %p2544_p13 = pnand %p2543_p12, %p2537_p9 }
 0x101   :  { %2547 = shalt.err (!%p2544_p13)
}
 0x102   :  { %149 = dma.hbm_to_vmem [thread:$0]  %s3270_s10, 16, %s147_s29, [#allocation19]  }
 0x103   :  { %s2548_s0 = scalar_lea.hbm %s3272_s12, 16 }
 0x104   :  { %p2549_p0 = scmp.ne.s32.totalorder %s3272_s12, %s2548_s0  ;;  %p2552_p1 = scmp.lt.u32.totalorder %s2548_s0, %s3272_s12 }
 0x106   :  { %p2554_p2 = pnand %p2552_p1, %p2549_p0 }
 0x108   :  { %2557 = shalt.err (!%p2554_p2)
}
 0x109   :  { %s2558_s2 = scalar_lea.vmem %s169_s24, 16  ;;  %s2562_s26 = scalar_lea.vmem %s169_s24, 32 }
 0x10a   :  { %p2559_p3 = scmp.ne.s32.totalorder %s169_s24, %s2558_s2  ;;  %p2563_p4 = scmp.lt.s32.totalorder %s169_s24, %s169_s24 }
 0x10b   :  { %p2564_p5 = scmp.lt.s32.totalorder %s2562_s26, %s2558_s2 }
 0x10d   :  { %p2565_p6 = por %p2564_p5, %p2563_p4 }
 0x10f   :  { %p2566_p7 = pnand %p2565_p6, %p2559_p3 }
 0x111   :  { %2569 = shalt.err (!%p2566_p7)
}
 0x112   :  { %171 = dma.hbm_to_vmem [thread:$0]  %s3272_s12, 16, %s169_s24, [#allocation22]  }
 0x113   :  { %s2675_s28 = smov [#allocation26]   ;;  %s2676_s29 = smov [#allocation29]  }
 0x114   :  { %s188_s13 = sshll.u32 %s2675_s28, 4  ;;  %s210_s5 = sshll.u32 %s2676_s29, 4  ;;  %s189_s13 = int_to_ptr.vmem [resolvable:$true] %s188_s13  ;;  %s211_s5 = int_to_ptr.vmem [resolvable:$true] %s210_s5 }
 0x115   :  { %s2570_s20 = scalar_lea.hbm %s3274_s14, 16 }
 0x116   :  { %p2571_p8 = scmp.ne.s32.totalorder %s3274_s14, %s2570_s20  ;;  %p2574_p9 = scmp.lt.u32.totalorder %s2570_s20, %s3274_s14 }
 0x118   :  { %p2576_p10 = pnand %p2574_p9, %p2571_p8 }
 0x11a   :  { %2579 = shalt.err (!%p2576_p10)
}
 0x11b   :  { %s2580_s12 = scalar_lea.vmem %s189_s13, 16  ;;  %s2584_s24 = scalar_lea.vmem %s189_s13, 32 }
 0x11c   :  { %p2581_p11 = scmp.ne.s32.totalorder %s189_s13, %s2580_s12  ;;  %p2585_p12 = scmp.lt.s32.totalorder %s189_s13, %s189_s13 }
 0x11d   :  { %p2586_p13 = scmp.lt.s32.totalorder %s2584_s24, %s2580_s12 }
 0x11f   :  { %p2587_p0 = por %p2586_p13, %p2585_p12 }
 0x121   :  { %p2588_p1 = pnand %p2587_p0, %p2581_p11 }
 0x123   :  { %2591 = shalt.err (!%p2588_p1)
}
 0x124   :  { %191 = dma.hbm_to_vmem [thread:$0]  %s3274_s14, 16, %s189_s13, [#allocation25]  }
 0x125   :  { %s2592_s17 = scalar_lea.hbm %s3276_s16, 16 }
 0x126   :  { %p2593_p2 = scmp.ne.s32.totalorder %s3276_s16, %s2592_s17  ;;  %p2596_p3 = scmp.lt.u32.totalorder %s2592_s17, %s3276_s16 }
 0x128   :  { %p2598_p4 = pnand %p2596_p3, %p2593_p2 }
 0x12a   :  { %2601 = shalt.err (!%p2598_p4)
}
 0x12b   :  { %s2602_s3 = scalar_lea.vmem %s211_s5, 16  ;;  %s2606_s18 = scalar_lea.vmem %s211_s5, 32 }
 0x12c   :  { %p2603_p5 = scmp.ne.s32.totalorder %s211_s5, %s2602_s3  ;;  %p2607_p6 = scmp.lt.s32.totalorder %s211_s5, %s211_s5 }
 0x12d   :  { %p2608_p7 = scmp.lt.s32.totalorder %s2606_s18, %s2602_s3 }
 0x12f   :  { %p2609_p8 = por %p2608_p7, %p2607_p6 }
 0x131   :  { %p2610_p9 = pnand %p2609_p8, %p2603_p5 }
 0x133   :  { %2613 = shalt.err (!%p2610_p9)
}
 0x134   :  { %213 = dma.hbm_to_vmem [thread:$0]  %s3276_s16, 16, %s211_s5, [#allocation28]  }
 0x135   :  { %2636 = dma.done.wait [#allocation4], 64  }
 0x136   :  { %2637 = vsyncadd [#allocation4], 4294967232 }
 0x137   :  { %2638 = dma.done.wait [#allocation7], 32  }
 0x138   :  { %2639 = vsyncadd [#allocation7], 4294967264 }
 0x139   :  { %2640 = dma.done.wait [#allocation10], 272  }
 0x13a   :  { %2641 = vsyncadd [#allocation10], 4294967024 }
 0x13b   :  { %2642 = dma.done.wait [#allocation13], 272  }
 0x13c   :  { %2643 = vsyncadd [#allocation13], 4294967024 }
 0x13d   :  { %2644 = dma.done.wait [#allocation16], 32  }
 0x13e   :  { %2645 = vsyncadd [#allocation16], 4294967264 }
 0x13f   :  { %2646 = dma.done.wait [#allocation19], 272  }
 0x140   :  { %2647 = vsyncadd [#allocation19], 4294967024 }
 0x141   :  { %2648 = dma.done.wait [#allocation22], 1040  }
 0x142   :  { %2649 = vsyncadd [#allocation22], 4294966256 }
 0x143   :  { %2650 = dma.done.wait [#allocation25], 32  }
 0x144   :  { %2651 = vsyncadd [#allocation25], 4294967264 }
 0x145   :  { %2652 = dma.done.wait [#allocation28], 272  }
 0x146   :  { %2653 = vsyncadd [#allocation28], 4294967024  ;;  %vm272_vm0 = vcmask 254976   ;;  %v270_v0 = vld [vmem:[#allocation3] sm:$0x3]  ;;  %v2180_v16 = vld [vmem:[#allocation9] sm:$0xff]   ;;  %v363_v29 = vlaneseq }
 0x147   :  { %v271_v1 = vld [vmem:[#allocation3 + $0x2] sm:$0x3]  ;;  %273 = vst.msk [vmem:[#allocation2] sm:$0x3] %vm272_vm0, %v270_v0  ;;  %v2677_v17 = vmov 0.0   ;;  %vm2678_vm1 = vmmov 0  }
 0x148   :  { %274 = vst.msk [vmem:[#allocation2 + $0x2] sm:$0x3] %vm272_vm0, %v271_v1  ;;  %1992 = vmatprep.subr.bf16.mxu0 %v2677_v17  ;;  %1996 = vmatprep.mubr.msk.bf16.mxu0 %vm2678_vm1, %v2677_v17  ;;  %v2181_v18 = vld [vmem:[#allocation9 + $0x8] sm:$0xff]   ;;  %v2679_v27 = vmov 1983009808   ;;  %v3048_v35 = vshrl.u32 %v363_v29, 7 }
 0x149   :  { %1993 = vmatpush3.bf16.msra.mxu0 %v2180_v16  ;;  %2012 = vmatprep.subr.bf16.mxu1 %v2677_v17  ;;  %v361_v28 = vunpack.c.l.s4 %v2679_v27  ;;  %v1892_v30 = vld [vmem:[#allocation6] ss:$0 sm:$0xff]  ;;  %v1893_v36 = vld [vmem:[#allocation8] ss:$0 sm:$0xff]  ;;  %vm387_vm2 = vcmask 261120   ;;  %s2680_s16 = smov 96  }
 0x14a   :  { %1994 = vmatprep.subr.bf16.mxu0 %v2677_v17  ;;  %2014 = vmatprep.mubr.msk.bf16.mxu1 %vm2678_vm1, %v2677_v17  ;;  %v1894_v44 = vld [vmem:[#allocation11] ss:$0 sm:$0xff]  ;;  %vm447_vm3 = vcmask 64512   ;;  %vm543_vm4 = vcmask 9216   ;;  %s2681_s26 = smov 88   ;;  %vm574_vm5 = vcmask 1040384  }
 0x14b   :  { %v362_v34 = vunpack.c.0.s8 %v361_v28  ;;  %s2682_s10 = smov 120   ;;  %vm570_vm6 = vcmask 15360   ;;  %s2684_s6 = smov 80   ;;  %vm1352_vm7 = vcmask 130048   ;;  %vm1355_vm8 = vcmask 195584  }
 0x14c   :  { %s2685_s28 = smov 112   ;;  %s2686_s13 = smov 48   ;;  %vm1694_vm9 = vcmask 257024  }
 0x14d   :  { %1995 = vmatpush3.bf16.msra.mxu0 %v2181_v18  ;;  %v3051_v40 = vsub.s32 %v362_v34, %v3048_v35  ;;  %s2687_s29 = smov 72   ;;  %s2688_s5 = smov 104  }
 0x14e   :  { %v3028_v2 = vld [vmem:[#allocation2] sm:$0x3]  ;;  %2000 = vmatprep.subr.bf16.mxu0 %v2677_v17  ;;  %s2689_s11 = smov 40   ;;  %s2690_s1 = smov 8  }
 0x14f   :  { %v3030_v3 = vld [vmem:[#allocation2 + $0x2] sm:$0x3]  ;;  %v314_v4 = vsel %vm272_vm0, %v3028_v2, 0.0  ;;  %s2691_s20 = smov 16   ;;  %s2692_s21 = smov 24  }
 0x150   :  { %v317_v5 = vsel %vm272_vm0, %v3030_v3, 0.0  ;;  %315 = vadd.xlane.f32.xlu0 %v314_v4  ;;  %s2695_s27 = smov [#allocation30]  }
 0x151   :  { %s1875_s4 = sshll.u32 %s2695_s27, 4  ;;  %s1876_s4 = int_to_ptr.vmem [resolvable:$true] %s1875_s4 }
 0x152   :  { %s2614_s7 = scalar_lea.vmem %s1876_s4, 64  ;;  %p2619_p11 = scmp.lt.s32.totalorder %s1876_s4, %s1876_s4 }
 0x153   :  { %p2615_p10 = scmp.ne.s32.totalorder %s1876_s4, %s2614_s7  ;;  %p2620_p12 = scmp.lt.s32.totalorder %s2614_s7, %s2614_s7 }
 0x154   :  { %318 = vadd.xlane.f32.xlu0 %v317_v5 }
 0x155   :  { %p2621_p13 = por %p2620_p12, %p2619_p11 }
 0x157   :  { %p2622_p0 = pnand %p2621_p13, %p2615_p10 }
 0x1dd   :  { %v316_v6 = vpop.xlane.xlu0 %315 }
 0x1de   :  { %v321_v7 = vmul.f32 0.03125, %v316_v6 }
 0x1e0   :  { %v323_v8 = vsub.f32 %v3028_v2, %v321_v7 }
 0x1e1   :  { %v319_v9 = vpop.xlane.xlu0 %318 }
 0x1e2   :  { %v322_v10 = vmul.f32 0.03125, %v319_v9  ;;  %v325_v11 = vmul.f32 %v323_v8, %v323_v8 }
 0x1e4   :  { %v324_v12 = vsub.f32 %v3030_v3, %v322_v10  ;;  %v327_v13 = vsel %vm272_vm0, %v325_v11, 0.0 }
 0x1e5   :  { %328 = vadd.xlane.f32.xlu1 %v327_v13 }
 0x1e6   :  { %v326_v14 = vmul.f32 %v324_v12, %v324_v12 }
 0x1e8   :  { %v330_v15 = vsel %vm272_vm0, %v326_v14, 0.0 }
 0x1e9   :  { %331 = vadd.xlane.f32.xlu1 %v330_v15 }
 0x272   :  { %v329_v19 = vpop.xlane.xlu1 %328 }
 0x273   :  { %v333_v20 = vmul.f32 0.03125, %v329_v19 }
 0x275   :  { %v335_v21 = vadd.f32 1e-05, %v333_v20 }
 0x276   :  { %v332_v22 = vpop.xlane.xlu1 %331 }
 0x277   :  { %2196 = vrsqrt.f32 %v335_v21  ;;  %v334_v23 = vmul.f32 0.03125, %v332_v22 }
 0x279   :  { %v336_v24 = vadd.f32 1e-05, %v334_v23 }
 0x27b   :  { %2198 = vrsqrt.f32 %v336_v24 }
 0x281   :  { %v2197_v25 = vpop.eup %2196 }
 0x282   :  { %v339_v26 = vmul.f32 %v2197_v25, %v323_v8 }
 0x284   :  { %v347_v33 = vmul.f32 %v1892_v30, %v339_v26 }
 0x285   :  { %v2199_v31 = vpop.eup %2198 }
 0x286   :  { %v340_v32 = vmul.f32 %v2199_v31, %v324_v12  ;;  %v355_v38 = vadd.f32 %v1893_v36, %v347_v33 }
 0x288   :  { %v348_v37 = vmul.f32 %v1892_v30, %v340_v32 }
 0x28a   :  { %v356_v39 = vadd.f32 %v1893_v36, %v348_v37 }
 0x28c   :  { %v359_v41 = vcombine.low %v355_v38, %v356_v39 }
 0x28e   :  { %v366_v42 = vrot.slane %v359_v41, %v3051_v40 }
 0x290   :  { %v368_v43 = vpack.c.bf16 %v366_v42, %v366_v42 }
 0x292   :  { %1997 = vmatmul.mubr.msk.bf16.vlgmr.msra.gmra.mrb[0].mxu0 %vm387_vm2, %v368_v43 }
 0x293   :  { %2002 = vmatprep.mubr.msk.bf16.mxu0 %vm2678_vm1, %v2677_v17 }
 0x365   :  { %v425_v45 = vpop.f32.mrb[0].mxu0 }
 0x366   :  { %v426_v46 = vadd.f32 %v1894_v44, %v425_v45  ;;  %v1998_v47 = vpop.f32.mrb[1].mxu0 }
 0x367   :  { %v428_v48 = vpop.f32.mrb[2].mxu0 }
 0x368   :  { %v438_v49 = vrot.slane %v426_v46, %v3051_v40  ;;  %v1999_v50 = vpop.f32.mrb[3].mxu0 }
 0x36a   :  { %v439_v51 = vcombine.high %v438_v49, %v438_v49  ;;  %v3058_v52 = vpack.c.bf16 %v438_v49, %v438_v49 }
 0x36c   :  { %v3060_v53 = vpack.c.bf16 %v439_v51, %v439_v51  ;;  %445 = vrot.lane.b32.xlu0 %v3058_v52, %s2680_s16 }
 0x36e   :  { %495 = vrot.lane.b32.xlu1 %v3060_v53, %s2680_s16 }
 0x3de   :  { %v446_v54 = vpop.permute.xlu0 %445 }
 0x3df   :  { %v452_v55 = vsel %vm447_vm3, %v446_v54, 0 }
 0x3e0   :  { %2001 = vmatpush3.bf16.xpose.msra.mxu0 %v452_v55  ;;  %v496_v56 = vpop.permute.xlu1 %495 }
 0x3e1   :  { %2006 = vmatprep.subr.bf16.mxu0 %v2677_v17  ;;  %v501_v57 = vsel %vm447_vm3, %v496_v56, 0 }
 0x3e7   :  { %2003 = vmatmul.mubr.msk.bf16.vlgmr.msra.gmra.mrb[4].mxu0 %vm447_vm3, %v3058_v52 }
 0x3e8   :  { %2007 = vmatpush3.bf16.xpose.msra.mxu0 %v501_v57  ;;  %2008 = vmatprep.mubr.msk.bf16.mxu0 %vm2678_vm1, %v2677_v17 }
 0x3e9   :  { %2018 = vmatprep.subr.bf16.mxu0 %v2677_v17 }
 0x3ef   :  { %2009 = vmatmul.mubr.msk.bf16.vlgmr.msra.gmra.mrb[8].mxu0 %vm447_vm3, %v3060_v53 }
 0x3f0   :  { %2020 = vmatprep.mubr.msk.bf16.mxu0 %vm2678_vm1, %v2677_v17 }
 0x4ba   :  { %v488_v58 = vpop.f32.mrb[4].mxu0 }
 0x4bb   :  { %v2004_v59 = vpop.f32.mrb[5].mxu0  ;;  %v544_v60 = vsel %vm543_vm4, %v488_v58, -inf }
 0x4bc   :  { %545 = vmax.xlane.f32.xlu1 %v544_v60  ;;  %v491_v61 = vpop.f32.mrb[6].mxu0 }
 0x4bd   :  { %v2005_v62 = vpop.f32.mrb[7].mxu0 }
 0x4c2   :  { %v537_v63 = vpop.f32.mrb[8].mxu0 }
 0x4c3   :  { %v2010_v0 = vpop.f32.mrb[9].mxu0  ;;  %v547_v1 = vsel %vm543_vm4, %v537_v63, -inf }
 0x4c4   :  { %548 = vmax.xlane.f32.xlu0 %v547_v1  ;;  %v540_v4 = vpop.f32.mrb[10].mxu0 }
 0x4c5   :  { %v2011_v5 = vpop.f32.mrb[11].mxu0 }
 0x4cd   :  { %618 = vrot.lane.b32.xlu1 %v3060_v53, %s2658_s25 }
 0x4d1   :  { %668 = vrot.lane.b32.xlu1 %v3058_v52, %s2681_s26 }
 0x549   :  { %v546_v6 = vpop.xlane.xlu1 %545 }
 0x54a   :  { %v550_v7 = vsub.f32 %v488_v58, %v546_v6 }
 0x54c   :  { %v552_v8 = vmul.f32 1.442695, %v550_v7 }
 0x54d   :  { %v619_v9 = vpop.permute.xlu1 %618 }
 0x54e   :  { %2200 = vpow2.f32 %v552_v8  ;;  %v624_v10 = vsel %vm574_vm5, %v619_v9, 0 }
 0x54f   :  { %2019 = vmatpush3.bf16.msra.mxu0 %v624_v10 }
 0x550   :  { %2030 = vmatprep.subr.bf16.mxu0 %v2677_v17 }
 0x551   :  { %v549_v11 = vpop.xlane.xlu0 %548  ;;  %v669_v20 = vpop.permute.xlu1 %668 }
 0x552   :  { %v551_v12 = vsub.f32 %v537_v63, %v549_v11  ;;  %v674_v27 = vsel %vm447_vm3, %v669_v20, 0 }
 0x554   :  { %v554_v13 = vmul.f32 1.442695, %v551_v12 }
 0x556   :  { %2202 = vpow2.f32 %v554_v13 }
 0x558   :  { %v2201_v14 = vpop.eup %2200 }
 0x559   :  { %v556_v15 = vsel %vm543_vm4, %v2201_v14, 0.0 }
 0x55a   :  { %557 = vadd.xlane.f32.xlu0 %v556_v15 }
 0x560   :  { %v2203_v16 = vpop.eup %2202 }
 0x561   :  { %v559_v18 = vsel %vm543_vm4, %v2203_v16, 0.0 }
 0x562   :  { %560 = vadd.xlane.f32.xlu1 %v559_v18 }
 0x570   :  { %568 = vrot.lane.b32.xlu0 %v3058_v52, %s2658_s25  ;;  %s2683_s25 = smov 56  }
 0x573   :  { %718 = vrot.lane.b32.xlu1 %v3060_v53, %s2681_s26 }
 0x574   :  { %666 = vrot.lane.b32.xlu0 %v3058_v52, %s2682_s10 }
 0x577   :  { %716 = vrot.lane.b32.xlu1 %v3060_v53, %s2682_s10 }
 0x5e7   :  { %v558_v19 = vpop.xlane.xlu0 %557 }
 0x5e8   :  { %2204 = vrcp.f32 %v558_v19 }
 0x5eb   :  { %v569_v21 = vpop.permute.xlu0 %568 }
 0x5ec   :  { %v576_v22 = vsel %vm574_vm5, %v569_v21, 0 }
 0x5ed   :  { %2013 = vmatpush3.bf16.msra.mxu1 %v576_v22 }
 0x5ee   :  { %2024 = vmatprep.subr.bf16.mxu1 %v2677_v17 }
 0x5ef   :  { %v561_v23 = vpop.xlane.xlu1 %560  ;;  %v667_v32 = vpop.permute.xlu0 %666 }
 0x5f0   :  { %2206 = vrcp.f32 %v561_v23 }
 0x5f2   :  { %v2205_v24 = vpop.eup %2204 }
 0x5f3   :  { %v564_v25 = vmul.f32 %v2205_v24, %v2201_v14  ;;  %v719_v30 = vpop.permute.xlu1 %718 }
 0x5f4   :  { %v724_v33 = vsel %vm447_vm3, %v719_v30, 0 }
 0x5f5   :  { %v566_v26 = vpack.c.bf16 %v564_v25, %v564_v25 }
 0x5f7   :  { %2015 = vmatmul.mubr.msk.bf16.vlgmr.msra.gmra.mrb[0].mxu1 %vm570_vm6, %v566_v26  ;;  %v717_v34 = vpop.permute.xlu1 %716 }
 0x5f8   :  { %2025 = vmatpush3.bf16.xpose.msra.mxu1 %v674_v27  ;;  %2026 = vmatprep.mubr.msk.bf16.mxu1 %vm2678_vm1, %v2677_v17 }
 0x5f9   :  { %2036 = vmatprep.subr.bf16.mxu1 %v2677_v17 }
 0x5fa   :  { %v2207_v28 = vpop.eup %2206 }
 0x5fb   :  { %v565_v29 = vmul.f32 %v2207_v28, %v2203_v16 }
 0x5fd   :  { %v567_v31 = vpack.c.bf16 %v565_v29, %v565_v29 }
 0x5ff   :  { %2021 = vmatmul.mubr.msk.bf16.vlgmr.msra.gmra.mrb[12].mxu0 %vm570_vm6, %v567_v31  ;;  %2027 = vmatmul.mubr.msk.bf16.vlgmr.msra.gmra.mrb[4].mxu1 %vm447_vm3, %v667_v32 }
 0x600   :  { %2031 = vmatpush3.bf16.xpose.msra.mxu0 %v724_v33  ;;  %2032 = vmatprep.mubr.msk.bf16.mxu0 %vm2678_vm1, %v2677_v17 }
 0x601   :  { %2042 = vmatprep.subr.bf16.mxu0 %v2677_v17  ;;  %2038 = vmatprep.mubr.msk.bf16.mxu1 %vm2678_vm1, %v2677_v17 }
 0x607   :  { %2033 = vmatmul.mubr.msk.bf16.vlgmr.msra.gmra.mrb[16].mxu0 %vm447_vm3, %v717_v34 }
 0x608   :  { %2044 = vmatprep.mubr.msk.bf16.mxu0 %vm2678_vm1, %v2677_v17 }
 0x6ca   :  { %v3108_v36 = vpop.f32.mrb[0].mxu1 }
 0x6cb   :  { %v2016_v37 = vpop.f32.mrb[1].mxu1 }
 0x6cc   :  { %v615_v38 = vpop.f32.mrb[2].mxu1 }
 0x6cd   :  { %v2017_v39 = vpop.f32.mrb[3].mxu1 }
 0x6d2   :  { %v3110_v41 = vpop.f32.mrb[12].mxu0  ;;  %v710_v42 = vpop.f32.mrb[4].mxu1 }
 0x6d3   :  { %v2022_v43 = vpop.f32.mrb[13].mxu0  ;;  %v2028_v44 = vpop.f32.mrb[5].mxu1  ;;  %v766_v45 = vsel %vm543_vm4, %v710_v42, -inf }
 0x6d4   :  { %767 = vmax.xlane.f32.xlu0 %v766_v45  ;;  %v663_v46 = vpop.f32.mrb[14].mxu0  ;;  %v713_v47 = vpop.f32.mrb[6].mxu1 }
 0x6d5   :  { %v2023_v48 = vpop.f32.mrb[15].mxu0  ;;  %v2029_v49 = vpop.f32.mrb[7].mxu1 }
 0x6da   :  { %v760_v50 = vpop.f32.mrb[16].mxu0 }
 0x6db   :  { %v2034_v51 = vpop.f32.mrb[17].mxu0  ;;  %v769_v54 = vsel %vm543_vm4, %v760_v50, -inf }
 0x6dc   :  { %770 = vmax.xlane.f32.xlu1 %v769_v54  ;;  %v763_v55 = vpop.f32.mrb[18].mxu0 }
 0x6dd   :  { %v2035_v56 = vpop.f32.mrb[19].mxu0 }
 0x6ed   :  { %838 = vrot.lane.b32.xlu1 %v3060_v53, %s2683_s25 }
 0x6f1   :  { %888 = vrot.lane.b32.xlu1 %v3058_v52, %s2684_s6 }
 0x6f5   :  { %938 = vrot.lane.b32.xlu1 %v3060_v53, %s2684_s6 }
 0x6f9   :  { %936 = vrot.lane.b32.xlu1 %v3060_v53, %s2685_s28 }
 0x761   :  { %v768_v57 = vpop.xlane.xlu0 %767 }
 0x762   :  { %v772_v58 = vsub.f32 %v710_v42, %v768_v57 }
 0x764   :  { %v774_v59 = vmul.f32 1.442695, %v772_v58 }
 0x766   :  { %2208 = vpow2.f32 %v774_v59 }
 0x769   :  { %v771_v60 = vpop.xlane.xlu1 %770 }
 0x76a   :  { %v773_v61 = vsub.f32 %v760_v50, %v771_v60 }
 0x76c   :  { %v776_v62 = vmul.f32 1.442695, %v773_v61 }
 0x76d   :  { %v839_v63 = vpop.permute.xlu1 %838 }
 0x76e   :  { %2210 = vpow2.f32 %v776_v62  ;;  %v844_v0 = vsel %vm574_vm5, %v839_v63, 0 }
 0x76f   :  { %2043 = vmatpush3.bf16.msra.mxu0 %v844_v0 }
 0x770   :  { %v2209_v1 = vpop.eup %2208  ;;  %2054 = vmatprep.subr.bf16.mxu0 %v2677_v17 }
 0x771   :  { %v778_v4 = vsel %vm543_vm4, %v2209_v1, 0.0  ;;  %v889_v14 = vpop.permute.xlu1 %888 }
 0x772   :  { %779 = vadd.xlane.f32.xlu0 %v778_v4  ;;  %v894_v19 = vsel %vm447_vm3, %v889_v14, 0 }
 0x775   :  { %v939_v18 = vpop.permute.xlu1 %938 }
 0x776   :  { %v944_v21 = vsel %vm447_vm3, %v939_v18, 0 }
 0x778   :  { %v2211_v5 = vpop.eup %2210 }
 0x779   :  { %v781_v6 = vsel %vm543_vm4, %v2211_v5, 0.0  ;;  %v937_v23 = vpop.permute.xlu1 %936 }
 0x77a   :  { %782 = vadd.xlane.f32.xlu0 %v781_v6 }
 0x790   :  { %790 = vrot.lane.b32.xlu0 %v3058_v52, %s2683_s25 }
 0x794   :  { %886 = vrot.lane.b32.xlu0 %v3058_v52, %s2685_s28 }
 0x7ff   :  { %v780_v7 = vpop.xlane.xlu0 %779 }
 0x800   :  { %2212 = vrcp.f32 %v780_v7 }
 0x807   :  { %v783_v8 = vpop.xlane.xlu0 %782 }
 0x808   :  { %2214 = vrcp.f32 %v783_v8 }
 0x80a   :  { %v2213_v9 = vpop.eup %2212 }
 0x80b   :  { %v786_v10 = vmul.f32 %v2213_v9, %v2209_v1  ;;  %v791_v11 = vpop.permute.xlu0 %790 }
 0x80c   :  { %v796_v12 = vsel %vm574_vm5, %v791_v11, 0 }
 0x80d   :  { %2037 = vmatpush3.bf16.msra.mxu1 %v796_v12  ;;  %v788_v13 = vpack.c.bf16 %v786_v10, %v786_v10 }
 0x80e   :  { %2048 = vmatprep.subr.bf16.mxu1 %v2677_v17 }
 0x80f   :  { %v887_v22 = vpop.permute.xlu0 %886 }
 0x810   :  { %2039 = vmatmul.mubr.msk.bf16.vlgmr.msra.gmra.mrb[8].mxu1 %vm570_vm6, %v788_v13 }
 0x811   :  { %2050 = vmatprep.mubr.msk.bf16.mxu1 %vm2678_vm1, %v2677_v17 }
 0x812   :  { %v2215_v15 = vpop.eup %2214 }
 0x813   :  { %v787_v16 = vmul.f32 %v2215_v15, %v2211_v5 }
 0x815   :  { %v789_v20 = vpack.c.bf16 %v787_v16, %v787_v16 }
 0x816   :  { %2049 = vmatpush3.bf16.xpose.msra.mxu1 %v894_v19 }
 0x817   :  { %2045 = vmatmul.mubr.msk.bf16.vlgmr.msra.gmra.mrb[20].mxu0 %vm570_vm6, %v789_v20  ;;  %2060 = vmatprep.subr.bf16.mxu1 %v2677_v17 }
 0x818   :  { %2055 = vmatpush3.bf16.xpose.msra.mxu0 %v944_v21  ;;  %2056 = vmatprep.mubr.msk.bf16.mxu0 %vm2678_vm1, %v2677_v17 }
 0x819   :  { %2066 = vmatprep.subr.bf16.mxu0 %v2677_v17 }
 0x81d   :  { %2051 = vmatmul.mubr.msk.bf16.vlgmr.msra.gmra.mrb[12].mxu1 %vm447_vm3, %v887_v22 }
 0x81e   :  { %2062 = vmatprep.mubr.msk.bf16.mxu1 %vm2678_vm1, %v2677_v17 }
 0x81f   :  { %2057 = vmatmul.mubr.msk.bf16.vlgmr.msra.gmra.mrb[24].mxu0 %vm447_vm3, %v937_v23 }
 0x820   :  { %2068 = vmatprep.mubr.msk.bf16.mxu0 %vm2678_vm1, %v2677_v17 }
 0x8e3   :  { %v3142_v24 = vpop.f32.mrb[8].mxu1 }
 0x8e4   :  { %v2040_v25 = vpop.f32.mrb[9].mxu1 }
 0x8e5   :  { %v835_v26 = vpop.f32.mrb[10].mxu1 }
 0x8e6   :  { %v2041_v27 = vpop.f32.mrb[11].mxu1 }
 0x8ea   :  { %v3144_v28 = vpop.f32.mrb[20].mxu0 }
 0x8eb   :  { %v2046_v29 = vpop.f32.mrb[21].mxu0 }
 0x8ec   :  { %v883_v30 = vpop.f32.mrb[22].mxu0 }
 0x8ed   :  { %v2047_v31 = vpop.f32.mrb[23].mxu0 }
 0x8f0   :  { %v930_v32 = vpop.f32.mrb[12].mxu1 }
 0x8f1   :  { %v2052_v33 = vpop.f32.mrb[13].mxu1  ;;  %v986_v34 = vsel %vm543_vm4, %v930_v32, -inf }
 0x8f2   :  { %987 = vmax.xlane.f32.xlu0 %v986_v34  ;;  %v933_v37 = vpop.f32.mrb[14].mxu1  ;;  %v980_v38 = vpop.f32.mrb[24].mxu0 }
 0x8f3   :  { %v2053_v39 = vpop.f32.mrb[15].mxu1  ;;  %v2058_v42 = vpop.f32.mrb[25].mxu0  ;;  %v989_v43 = vsel %vm543_vm4, %v980_v38, -inf }
 0x8f4   :  { %990 = vmax.xlane.f32.xlu1 %v989_v43  ;;  %v983_v44 = vpop.f32.mrb[26].mxu0 }
 0x8f5   :  { %v2059_v45 = vpop.f32.mrb[27].mxu0 }
 0x905   :  { %1058 = vrot.lane.b32.xlu1 %v3060_v53, %s2686_s13 }
 0x909   :  { %1108 = vrot.lane.b32.xlu1 %v3058_v52, %s2687_s29 }
 0x90d   :  { %1158 = vrot.lane.b32.xlu1 %v3060_v53, %s2687_s29 }
 0x911   :  { %1156 = vrot.lane.b32.xlu1 %v3060_v53, %s2688_s5 }
 0x97f   :  { %v988_v46 = vpop.xlane.xlu0 %987 }
 0x980   :  { %v992_v47 = vsub.f32 %v930_v32, %v988_v46 }
 0x981   :  { %v991_v48 = vpop.xlane.xlu1 %990 }
 0x982   :  { %v994_v49 = vmul.f32 1.442695, %v992_v47  ;;  %v993_v50 = vsub.f32 %v980_v38, %v991_v48 }
 0x984   :  { %2216 = vpow2.f32 %v994_v49  ;;  %v996_v51 = vmul.f32 1.442695, %v993_v50 }
 0x985   :  { %v1059_v54 = vpop.permute.xlu1 %1058 }
 0x986   :  { %2218 = vpow2.f32 %v996_v51  ;;  %v1064_v55 = vsel %vm574_vm5, %v1059_v54, 0 }
 0x987   :  { %2067 = vmatpush3.bf16.msra.mxu0 %v1064_v55 }
 0x988   :  { %2078 = vmatprep.subr.bf16.mxu0 %v2677_v17 }
 0x989   :  { %v1109_v1 = vpop.permute.xlu1 %1108 }
 0x98a   :  { %v1114_v9 = vsel %vm447_vm3, %v1109_v1, 0 }
 0x98d   :  { %v1159_v8 = vpop.permute.xlu1 %1158 }
 0x98e   :  { %v2217_v56 = vpop.eup %2216  ;;  %v1164_v11 = vsel %vm447_vm3, %v1159_v8, 0 }
 0x98f   :  { %v998_v57 = vsel %vm543_vm4, %v2217_v56, 0.0 }
 0x990   :  { %v2219_v58 = vpop.eup %2218  ;;  %999 = vadd.xlane.f32.xlu0 %v998_v57 }
 0x991   :  { %v1001_v59 = vsel %vm543_vm4, %v2219_v58, 0.0  ;;  %v1157_v13 = vpop.permute.xlu1 %1156 }
 0x994   :  { %1002 = vadd.xlane.f32.xlu0 %v1001_v59  ;;  %v2182_v59 = vld [vmem:[#allocation12] sm:$0xff]  }
 0x9aa   :  { %1010 = vrot.lane.b32.xlu0 %v3058_v52, %s2686_s13 }
 0x9ae   :  { %1106 = vrot.lane.b32.xlu0 %v3058_v52, %s2688_s5 }
 0xa1d   :  { %v1000_v60 = vpop.xlane.xlu0 %999 }
 0xa1e   :  { %2220 = vrcp.f32 %v1000_v60  ;;  %v2183_v60 = vld [vmem:[#allocation12 + $0x8] sm:$0xff]  }
 0xa21   :  { %v1003_v61 = vpop.xlane.xlu0 %1002 }
 0xa22   :  { %2222 = vrcp.f32 %v1003_v61 }
 0xa25   :  { %v1011_v62 = vpop.permute.xlu0 %1010 }
 0xa26   :  { %v1016_v63 = vsel %vm574_vm5, %v1011_v62, 0 }
 0xa27   :  { %2061 = vmatpush3.bf16.msra.mxu1 %v1016_v63 }
 0xa28   :  { %v2221_v0 = vpop.eup %2220  ;;  %2072 = vmatprep.subr.bf16.mxu1 %v2677_v17 }
 0xa29   :  { %v1006_v4 = vmul.f32 %v2221_v0, %v2217_v56  ;;  %v1107_v12 = vpop.permute.xlu0 %1106 }
 0xa2b   :  { %v1008_v5 = vpack.c.bf16 %v1006_v4, %v1006_v4 }
 0xa2c   :  { %v2223_v6 = vpop.eup %2222 }
 0xa2d   :  { %v1007_v7 = vmul.f32 %v2223_v6, %v2219_v58  ;;  %2063 = vmatmul.mubr.msk.bf16.vlgmr.msra.gmra.mrb[16].mxu1 %vm570_vm6, %v1008_v5 }
 0xa2e   :  { %2074 = vmatprep.mubr.msk.bf16.mxu1 %vm2678_vm1, %v2677_v17 }
 0xa2f   :  { %v1009_v10 = vpack.c.bf16 %v1007_v7, %v1007_v7 }
 0xa30   :  { %2073 = vmatpush3.bf16.xpose.msra.mxu1 %v1114_v9 }
 0xa31   :  { %2069 = vmatmul.mubr.msk.bf16.vlgmr.msra.gmra.mrb[28].mxu0 %vm570_vm6, %v1009_v10  ;;  %2084 = vmatprep.subr.bf16.mxu1 %v2677_v17 }
 0xa32   :  { %2079 = vmatpush3.bf16.xpose.msra.mxu0 %v1164_v11  ;;  %2080 = vmatprep.mubr.msk.bf16.mxu0 %vm2678_vm1, %v2677_v17 }
 0xa33   :  { %2090 = vmatprep.subr.bf16.mxu0 %v2677_v17 }
 0xa37   :  { %2075 = vmatmul.mubr.msk.bf16.vlgmr.msra.gmra.mrb[20].mxu1 %vm447_vm3, %v1107_v12 }
 0xa38   :  { %2086 = vmatprep.mubr.msk.bf16.mxu1 %vm2678_vm1, %v2677_v17 }
 0xa39   :  { %2081 = vmatmul.mubr.msk.bf16.vlgmr.msra.gmra.mrb[32].mxu0 %vm447_vm3, %v1157_v13 }
 0xa3a   :  { %2092 = vmatprep.mubr.msk.bf16.mxu0 %vm2678_vm1, %v2677_v17 }
 0xb00   :  { %v1052_v14 = vpop.f32.mrb[16].mxu1 }
 0xb01   :  { %v2064_v15 = vpop.f32.mrb[17].mxu1 }
 0xb02   :  { %v1055_v16 = vpop.f32.mrb[18].mxu1 }
 0xb03   :  { %v2065_v18 = vpop.f32.mrb[19].mxu1 }
 0xb04   :  { %v1100_v19 = vpop.f32.mrb[28].mxu0 }
 0xb05   :  { %v2070_v20 = vpop.f32.mrb[29].mxu0 }
 0xb06   :  { %v1103_v21 = vpop.f32.mrb[30].mxu0 }
 0xb07   :  { %v2071_v22 = vpop.f32.mrb[31].mxu0 }
 0xb0a   :  { %v1150_v23 = vpop.f32.mrb[20].mxu1 }
 0xb0b   :  { %v2076_v25 = vpop.f32.mrb[21].mxu1  ;;  %v1206_v26 = vsel %vm543_vm4, %v1150_v23, -inf }
 0xb0c   :  { %1207 = vmax.xlane.f32.xlu0 %v1206_v26  ;;  %v1153_v27 = vpop.f32.mrb[22].mxu1  ;;  %v1200_v29 = vpop.f32.mrb[32].mxu0 }
 0xb0d   :  { %v2077_v30 = vpop.f32.mrb[23].mxu1  ;;  %v2082_v31 = vpop.f32.mrb[33].mxu0  ;;  %v1209_v32 = vsel %vm543_vm4, %v1200_v29, -inf }
 0xb0e   :  { %1210 = vmax.xlane.f32.xlu1 %v1209_v32  ;;  %v1203_v33 = vpop.f32.mrb[34].mxu0 }
 0xb0f   :  { %v2083_v34 = vpop.f32.mrb[35].mxu0 }
 0xb1f   :  { %1278 = vrot.lane.b32.xlu1 %v3060_v53, %s2689_s11 }
 0xb23   :  { %1328 = vrot.lane.b32.xlu1 %v3142_v24, %s2690_s1 }
 0xb27   :  { %1330 = vrot.lane.b32.xlu1 %v3144_v28, %s2690_s1 }
 0xb2b   :  { %1338 = vrot.lane.b32.xlu1 %v1100_v19, %s2691_s20 }
 0xb99   :  { %v1208_v37 = vpop.xlane.xlu0 %1207 }
 0xb9a   :  { %v1212_v38 = vsub.f32 %v1150_v23, %v1208_v37  ;;  %v1914_v23 = vld [vmem:[#allocation14] ss:$0 sm:$0xff] }
 0xb9b   :  { %v1211_v39 = vpop.xlane.xlu1 %1210 }
 0xb9c   :  { %v1214_v42 = vmul.f32 1.442695, %v1212_v38  ;;  %v1213_v43 = vsub.f32 %v1200_v29, %v1211_v39 }
 0xb9e   :  { %2224 = vpow2.f32 %v1214_v42  ;;  %v1216_v44 = vmul.f32 1.442695, %v1213_v43 }
 0xb9f   :  { %v1279_v45 = vpop.permute.xlu1 %1278 }
 0xba0   :  { %2226 = vpow2.f32 %v1216_v44  ;;  %v1284_v46 = vsel %vm574_vm5, %v1279_v45, 0 }
 0xba1   :  { %2091 = vmatpush3.bf16.msra.mxu0 %v1284_v46 }
 0xba2   :  { %2104 = vmatprep.subr.bf16.mxu0 %v2677_v17 }
 0xba3   :  { %v1329_v7 = vpop.permute.xlu1 %1328 }
 0xba4   :  { %v1350_v12 = vsel %vm447_vm3, %v3108_v36, %v1329_v7  ;;  %v2189_v7 = vld [vmem:[#allocation21 + $0x18] sm:$0xff]  }
 0xba7   :  { %v1331_v8 = vpop.permute.xlu1 %1330 }
 0xba8   :  { %v2225_v53 = vpop.eup %2224  ;;  %v1351_v13 = vsel %vm447_vm3, %v3110_v41, %v1331_v8  ;;  %v2190_v8 = vld [vmem:[#allocation21 + $0x20] sm:$0xff]  }
 0xba9   :  { %v1218_v24 = vsel %vm543_vm4, %v2225_v53, 0.0 }
 0xbaa   :  { %v2227_v28 = vpop.eup %2226  ;;  %1219 = vadd.xlane.f32.xlu0 %v1218_v24  ;;  %v2185_v24 = vld [vmem:[#allocation18 + $0x8] sm:$0xff]  }
 0xbab   :  { %v1221_v47 = vsel %vm543_vm4, %v2227_v28, 0.0  ;;  %v1339_v10 = vpop.permute.xlu1 %1338 }
 0xbae   :  { %1222 = vadd.xlane.f32.xlu0 %v1221_v47 }
 0xbc4   :  { %1230 = vrot.lane.b32.xlu0 %v3058_v52, %s2689_s11 }
 0xbc8   :  { %1336 = vrot.lane.b32.xlu0 %v1052_v14, %s2691_s20  ;;  %v1354_v14 = vsel %vm1352_vm7, %v1351_v13, %v1339_v10  ;;  %v2192_v10 = vld [vmem:[#allocation21 + $0x30] sm:$0xff]  }
 0xc37   :  { %v1220_v48 = vpop.xlane.xlu0 %1219 }
 0xc38   :  { %2228 = vrcp.f32 %v1220_v48 }
 0xc3b   :  { %v1223_v49 = vpop.xlane.xlu0 %1222 }
 0xc3c   :  { %2230 = vrcp.f32 %v1223_v49 }
 0xc3f   :  { %v1231_v50 = vpop.permute.xlu0 %1230 }
 0xc40   :  { %v1236_v51 = vsel %vm574_vm5, %v1231_v50, 0 }
 0xc41   :  { %2085 = vmatpush3.bf16.msra.mxu1 %v1236_v51 }
 0xc42   :  { %v2229_v54 = vpop.eup %2228  ;;  %2096 = vmatprep.subr.bf16.mxu1 %v2677_v17 }
 0xc43   :  { %v1226_v55 = vmul.f32 %v2229_v54, %v2225_v53  ;;  %v1337_v9 = vpop.permute.xlu0 %1336  ;;  %v2184_v53 = vld [vmem:[#allocation18] sm:$0xff]  }
 0xc44   :  { %v1353_v15 = vsel %vm1352_vm7, %v1350_v12, %v1337_v9  ;;  %v2191_v9 = vld [vmem:[#allocation21 + $0x28] sm:$0xff]   ;;  %v1920_v12 = vld [vmem:[#allocation20] ss:$0 sm:$0xff] }
 0xc45   :  { %v1228_v56 = vpack.c.bf16 %v1226_v55, %v1226_v55 }
 0xc46   :  { %v2231_v57 = vpop.eup %2230 }
 0xc47   :  { %v1227_v58 = vmul.f32 %v2231_v57, %v2227_v28  ;;  %2087 = vmatmul.mubr.msk.bf16.vlgmr.msra.gmra.mrb[24].mxu1 %vm570_vm6, %v1228_v56  ;;  %v1918_v56 = vld [vmem:[#allocation15] ss:$0 sm:$0xff] }
 0xc48   :  { %2100 = vmatprep.mubr.msk.bf16.mxu1 %vm2678_vm1, %v2677_v17  ;;  %2097 = vmatpush3.bf16.msra.mxu1 %v2182_v59  ;;  %v1919_v59 = vld [vmem:[#allocation17] ss:$0 sm:$0xff] }
 0xc49   :  { %v1229_v52 = vpack.c.bf16 %v1227_v58, %v1227_v58  ;;  %2098 = vmatprep.subr.bf16.mxu1 %v2677_v17 }
 0xc4b   :  { %2093 = vmatmul.mubr.msk.bf16.vlgmr.msra.gmra.mrb[36].mxu0 %vm570_vm6, %v1229_v52 }
 0xc4c   :  { %2108 = vmatprep.mubr.msk.bf16.mxu0 %vm2678_vm1, %v2677_v17  ;;  %2099 = vmatpush3.bf16.msra.mxu1 %v2183_v60 }
 0xc4d   :  { %2112 = vmatprep.subr.bf16.mxu1 %v2677_v17  ;;  %2105 = vmatpush3.bf16.msra.mxu0 %v2184_v53 }
 0xc4e   :  { %2106 = vmatprep.subr.bf16.mxu0 %v2677_v17 }
 0xc51   :  { %2107 = vmatpush3.bf16.msra.mxu0 %v2185_v24  ;;  %v2694_v24 = vmov 842150450  }
 0xc52   :  { %2132 = vmatprep.subr.bf16.mxu0 %v2677_v17 }
 0xd1a   :  { %v1272_v61 = vpop.f32.mrb[24].mxu1 }
 0xd1b   :  { %1344 = vrot.lane.b32.xlu0 %v1272_v61, %s2692_s21  ;;  %v2088_v62 = vpop.f32.mrb[25].mxu1 }
 0xd1c   :  { %v1275_v63 = vpop.f32.mrb[26].mxu1 }
 0xd1d   :  { %v2089_v0 = vpop.f32.mrb[27].mxu1 }
 0xd1e   :  { %v1320_v1 = vpop.f32.mrb[36].mxu0 }
 0xd1f   :  { %1346 = vrot.lane.b32.xlu1 %v1320_v1, %s2692_s21  ;;  %v2094_v4 = vpop.f32.mrb[37].mxu0 }
 0xd20   :  { %v1323_v5 = vpop.f32.mrb[38].mxu0  ;;  %v2186_v4 = vld [vmem:[#allocation21] sm:$0xff]  }
 0xd21   :  { %v2095_v6 = vpop.f32.mrb[39].mxu0  ;;  %v2187_v5 = vld [vmem:[#allocation21 + $0x8] sm:$0xff]  }
 0xd22   :  { %v2188_v6 = vld [vmem:[#allocation21 + $0x10] sm:$0xff]  }
 0xd8d   :  { %v1345_v11 = vpop.permute.xlu0 %1344 }
 0xd8e   :  { %v1356_v18 = vsel %vm1355_vm8, %v1353_v15, %v1345_v11  ;;  %v2193_v11 = vld [vmem:[#allocation21 + $0x38] sm:$0xff]  }
 0xd91   :  { %v1347_v16 = vpop.permute.xlu1 %1346 }
 0xd92   :  { %v1357_v19 = vsel %vm1355_vm8, %v1354_v14, %v1347_v16 }
 0xd93   :  { %v1360_v20 = vcombine.low %v1356_v18, %v1357_v19 }
 0xd95   :  { %v1367_v21 = vrot.slane %v1360_v20, %v3051_v40 }
 0xd97   :  { %v1369_v22 = vpack.c.bf16 %v1367_v21, %v1367_v21 }
 0xd99   :  { %2101 = vmatmul.mubr.msk.bf16.vlgmr.msra.gmra.mrb[28].mxu1 %vm387_vm2, %v1369_v22 }
 0xd9a   :  { %2128 = vmatprep.mubr.msk.bf16.mxu1 %vm2678_vm1, %v2677_v17  ;;  %2113 = vmatpush3.bf16.msra.mxu1 %v2186_v4  ;;  %v1934_v4 = vld [vmem:[#allocation26] ss:$0 sm:$0xff] }
 0xd9b   :  { %2114 = vmatprep.subr.bf16.mxu1 %v2677_v17 }
 0xd9e   :  { %2115 = vmatpush3.bf16.msra.mxu1 %v2187_v5 }
 0xd9f   :  { %2116 = vmatprep.subr.bf16.mxu1 %v2677_v17 }
 0xda2   :  { %2117 = vmatpush3.bf16.msra.mxu1 %v2188_v6  ;;  %v1784_v6 = vrot.slane %v1934_v4, %v3051_v40 }
 0xda3   :  { %2118 = vmatprep.subr.bf16.mxu1 %v2677_v17 }
 0xda6   :  { %2119 = vmatpush3.bf16.msra.mxu1 %v2189_v7 }
 0xda7   :  { %2120 = vmatprep.subr.bf16.mxu1 %v2677_v17 }
 0xdaa   :  { %2121 = vmatpush3.bf16.msra.mxu1 %v2190_v8 }
 0xdab   :  { %2122 = vmatprep.subr.bf16.mxu1 %v2677_v17 }
 0xdae   :  { %2123 = vmatpush3.bf16.msra.mxu1 %v2191_v9 }
 0xdaf   :  { %2124 = vmatprep.subr.bf16.mxu1 %v2677_v17 }
 0xdb2   :  { %2125 = vmatpush3.bf16.msra.mxu1 %v2192_v10 }
 0xdb3   :  { %2126 = vmatprep.subr.bf16.mxu1 %v2677_v17 }
 0xdb6   :  { %2127 = vmatpush3.bf16.msra.mxu1 %v2193_v11 }
 0xe6c   :  { %v1425_v25 = vpop.f32.mrb[28].mxu1 }
 0xe6d   :  { %v1426_v36 = vadd.f32 %v1914_v23, %v1425_v25  ;;  %v2102_v26 = vpop.f32.mrb[29].mxu1 }
 0xe6e   :  { %v1428_v27 = vpop.f32.mrb[30].mxu1 }
 0xe6f   :  { %v1438_v41 = vrot.slane %v1426_v36, %v3051_v40  ;;  %v2103_v29 = vpop.f32.mrb[31].mxu1 }
 0xe70   :  { %v1924_v29 = vld [vmem:[#allocation23] ss:$0 sm:$0xff] }
 0xe71   :  { %v1439_v30 = vcombine.high %v1438_v41, %v1438_v41  ;;  %v3206_v31 = vadd.f32 %v1438_v41, %v3028_v2 }
 0xe73   :  { %v1444_v32 = vsel %vm272_vm0, %v3206_v31, 0.0  ;;  %v3211_v33 = vadd.f32 %v1439_v30, %v3030_v3 }
 0xe74   :  { %1445 = vadd.xlane.f32.xlu0 %v1444_v32 }
 0xe75   :  { %v1447_v34 = vsel %vm272_vm0, %v3211_v33, 0.0 }
 0xe76   :  { %1448 = vadd.xlane.f32.xlu1 %v1447_v34 }
 0xf01   :  { %v1446_v37 = vpop.xlane.xlu0 %1445 }
 0xf02   :  { %v1450_v38 = vmul.f32 0.03125, %v1446_v37 }
 0xf03   :  { %v1449_v39 = vpop.xlane.xlu1 %1448 }
 0xf04   :  { %v1452_v42 = vsub.f32 %v3206_v31, %v1450_v38  ;;  %v1451_v43 = vmul.f32 0.03125, %v1449_v39 }
 0xf06   :  { %v1453_v2 = vsub.f32 %v3211_v33, %v1451_v43  ;;  %v1454_v44 = vmul.f32 %v1452_v42, %v1452_v42 }
 0xf08   :  { %v1456_v45 = vsel %vm272_vm0, %v1454_v44, 0.0  ;;  %v1455_v46 = vmul.f32 %v1453_v2, %v1453_v2 }
 0xf09   :  { %1457 = vadd.xlane.f32.xlu0 %v1456_v45 }
 0xf0a   :  { %v1459_v3 = vsel %vm272_vm0, %v1455_v46, 0.0 }
 0xf0d   :  { %1460 = vadd.xlane.f32.xlu0 %v1459_v3  ;;  %v2693_v3 = vmov 269488144  }
 0xf0e   :  { %v1701_v53 = vunpack.c.l.s4 %v2693_v3 }
 0xf96   :  { %v1458_v28 = vpop.xlane.xlu0 %1457 }
 0xf97   :  { %v1462_v47 = vmul.f32 0.03125, %v1458_v28  ;;  %v1708_v28 = vunpack.c.l.s4 %v2694_v24 }
 0xf99   :  { %v1464_v48 = vadd.f32 1e-05, %v1462_v47  ;;  %v1702_v47 = vunpack.c.0.s8 %v1701_v53 }
 0xf9a   :  { %v1461_v49 = vpop.xlane.xlu0 %1460 }
 0xf9b   :  { %2232 = vrsqrt.f32 %v1464_v48  ;;  %v1463_v50 = vmul.f32 0.03125, %v1461_v49  ;;  %v1709_v48 = vunpack.c.0.s8 %v1708_v28 }
 0xf9d   :  { %v1465_v51 = vadd.f32 1e-05, %v1463_v50 }
 0xf9f   :  { %2234 = vrsqrt.f32 %v1465_v51 }
 0xfa5   :  { %v2233_v54 = vpop.eup %2232 }
 0xfa6   :  { %v1468_v55 = vmul.f32 %v2233_v54, %v1452_v42 }
 0xfa8   :  { %v1476_v58 = vmul.f32 %v1918_v56, %v1468_v55 }
 0xfa9   :  { %v2235_v57 = vpop.eup %2234 }
 0xfaa   :  { %v1469_v52 = vmul.f32 %v2235_v57, %v1453_v2  ;;  %v1484_v61 = vadd.f32 %v1919_v59, %v1476_v58 }
 0xfac   :  { %v1477_v60 = vmul.f32 %v1918_v56, %v1469_v52 }
 0xfae   :  { %v1485_v62 = vadd.f32 %v1919_v59, %v1477_v60 }
 0xfb0   :  { %v1488_v63 = vcombine.low %v1484_v61, %v1485_v62  ;;  %v2194_v61 = vld [vmem:[#allocation27] sm:$0xff]   ;;  %v2195_v62 = vld [vmem:[#allocation27 + $0x8] sm:$0xff]  }
 0xfb2   :  { %v1495_v0 = vrot.slane %v1488_v63, %v3051_v40 }
 0xfb4   :  { %v1497_v1 = vpack.c.bf16 %v1495_v0, %v1495_v0 }
 0xfb6   :  { %2109 = vmatmul.mubr.msk.bf16.vlgmr.msra.gmra.mrb[40].mxu0 %vm387_vm2, %v1497_v1  ;;  %v1933_v1 = vld [vmem:[#allocation24] ss:$0 sm:$0xff] }
 0xfb7   :  { %2136 = vmatprep.mubr.msk.bf16.mxu0 %vm2678_vm1, %v2677_v17  ;;  %2133 = vmatpush3.bf16.msra.mxu0 %v2194_v61  ;;  %v1767_v5 = vrot.slane %v1933_v1, %v3051_v40 }
 0xfb8   :  { %2134 = vmatprep.subr.bf16.mxu0 %v2677_v17 }
 0xfb9   :  { %v1768_v8 = vcombine.high %v1767_v5, %v1767_v5 }
 0xfbb   :  { %2135 = vmatpush3.bf16.msra.mxu0 %v2195_v62 }
0x1089   :  { %v1553_v13 = vpop.f32.mrb[40].mxu0 }
0x108a   :  { %v1554_v14 = vadd.f32 %v1920_v12, %v1553_v13  ;;  %v2110_v15 = vpop.f32.mrb[41].mxu0  ;;  %v1785_v13 = vcombine.high %v1784_v6, %v1784_v6 }
0x108b   :  { %v1556_v16 = vpop.f32.mrb[42].mxu0 }
0x108c   :  { %v1559_v18 = vmul.f32 %v1554_v14, %v1554_v14  ;;  %v2111_v19 = vpop.f32.mrb[43].mxu0 }
0x108e   :  { %v1560_v20 = vmul.f32 %v1559_v18, %v1554_v14 }
0x1090   :  { %v1561_v21 = vmul.f32 0.044715, %v1560_v20 }
0x1092   :  { %v1562_v22 = vadd.f32 %v1561_v21, %v1554_v14  ;;  %v1935_v21 = vld [vmem:[#allocation29] ss:$0 sm:$0xff] }
0x1094   :  { %v1563_v23 = vmul.f32 0.7978846, %v1562_v22 }
0x1096   :  { %2236 = vtanh.f32 %v1563_v23 }
0x10a0   :  { %v2237_v25 = vpop.eup %2236 }
0x10a1   :  { %v1565_v36 = vadd.f32 1.0, %v2237_v25 }
0x10a3   :  { %v1566_v26 = vmul.f32 0.5, %v1565_v36 }
0x10a5   :  { %v1567_v27 = vmul.f32 %v1566_v26, %v1554_v14 }
0x10a7   :  { %v1568_v41 = vpack.c.bf16 %v1567_v27, %v1567_v27 }
0x10a9   :  { %2129 = vmatmul.mubr.bf16.vlgmr.msra.gmra.mrb[32].mxu1 %v1568_v41 }
0x117c   :  { %v1657_v30 = vpop.f32.mrb[32].mxu1 }
0x117d   :  { %v1658_v32 = vadd.f32 %v1924_v29, %v1657_v30  ;;  %v2130_v34 = vpop.f32.mrb[33].mxu1 }
0x117e   :  { %v1660_v37 = vpop.f32.mrb[34].mxu1 }
0x117f   :  { %v1670_v38 = vrot.slane %v1658_v32, %v3051_v40  ;;  %v2131_v39 = vpop.f32.mrb[35].mxu1 }
0x1181   :  { %v1671_v42 = vcombine.high %v1670_v38, %v1670_v38  ;;  %v1674_v43 = vadd.f32 %v1670_v38, %v3206_v31  ;;  %v1705_v31 = vsub.s32 %v1702_v47, %v3048_v35 }
0x1183   :  { %v1675_v2 = vadd.f32 %v1671_v42, %v3211_v33  ;;  %1676 = vst.msk [vmem:[#allocation2] sm:$0x3] %vm272_vm0, %v1674_v43  ;;  %v1712_v33 = vsub.s32 %v1709_v48, %v3048_v35 }
0x1185   :  { %1677 = vst.msk [vmem:[#allocation2 + $0x2] sm:$0x3] %vm272_vm0, %v1675_v2  ;;  %v1685_v44 = vcombine.low %v1674_v43, %v1675_v2 }
0x1187   :  { %v1692_v45 = vrot.slane %v1685_v44, %v3051_v40 }
0x1189   :  { %v1695_v46 = vsel %vm1694_vm9, %v1692_v45, 0.0 }
0x118a   :  { %1696 = vadd.xlane.f32.xlu0 %v1695_v46 }
0x1217   :  { %v1697_v49 = vpop.xlane.xlu0 %1696 }
0x1218   :  { %v1698_v50 = vmul.f32 0.03125, %v1697_v49 }
0x121a   :  { %v1706_v51 = vrot.slane %v1698_v50, %v1705_v31  ;;  %v1713_v54 = vrot.slane %v1698_v50, %v1712_v33 }
0x121c   :  { %v1716_v55 = vsub.f32 %v1674_v43, %v1706_v51  ;;  %v1717_v56 = vsub.f32 %v1675_v2, %v1713_v54 }
0x121e   :  { %v1718_v57 = vmul.f32 %v1716_v55, %v1716_v55  ;;  %v1719_v58 = vmul.f32 %v1717_v56, %v1717_v56 }
0x1220   :  { %v1722_v52 = vcombine.low %v1718_v57, %v1719_v58 }
0x1222   :  { %v1729_v59 = vrot.slane %v1722_v52, %v3051_v40 }
0x1224   :  { %v1731_v60 = vsel %vm1694_vm9, %v1729_v59, 0.0 }
0x1225   :  { %1732 = vadd.xlane.f32.xlu1 %v1731_v60 }
0x12b2   :  { %v1733_v35 = vpop.xlane.xlu1 %1732 }
0x12b3   :  { %v1734_v63 = vmul.f32 0.03125, %v1733_v35 }
0x12b5   :  { %v1735_v0 = vadd.f32 1e-05, %v1734_v63 }
0x12b7   :  { %2238 = vrsqrt.f32 %v1735_v0 }
0x12c1   :  { %v2239_v7 = vpop.eup %2238 }
0x12c2   :  { %v1744_v9 = vrot.slane %v2239_v7, %v1705_v31  ;;  %v1751_v10 = vrot.slane %v2239_v7, %v1712_v33 }
0x12c4   :  { %v1754_v11 = vmul.f32 %v1744_v9, %v1716_v55  ;;  %v1755_v12 = vmul.f32 %v1751_v10, %v1717_v56 }
0x12c6   :  { %v1771_v14 = vmul.f32 %v1767_v5, %v1754_v11  ;;  %v1772_v17 = vmul.f32 %v1768_v8, %v1755_v12 }
0x12c8   :  { %v1788_v15 = vadd.f32 %v1784_v6, %v1771_v14  ;;  %v1789_v16 = vadd.f32 %v1785_v13, %v1772_v17 }
0x12ca   :  { %v1792_v18 = vcombine.low %v1788_v15, %v1789_v16 }
0x12cc   :  { %v1799_v19 = vrot.slane %v1792_v18, %v3051_v40 }
0x12ce   :  { %v1801_v20 = vpack.c.bf16 %v1799_v19, %v1799_v19 }
0x12d0   :  { %2137 = vmatmul.mubr.msk.bf16.vlgmr.msra.gmra.mrb[44].mxu0 %vm387_vm2, %v1801_v20 }
0x13a3   :  { %v1862_v22 = vpop.f32.mrb[44].mxu0 }
0x13a4   :  { %v1863_v23 = vadd.f32 %v1935_v21, %v1862_v22  ;;  %v2138_v25 = vpop.f32.mrb[45].mxu0 }
0x13a5   :  { %v1865_v36 = vpop.f32.mrb[46].mxu0 }
0x13a6   :  { %1868 = vst [vmem:[#allocation30] sm:$0xf] %v1863_v23  ;;  %v2139_v26 = vpop.f32.mrb[47].mxu0 }
0x13a7   :  { %2625 = shalt.err (!%p2622_p0)
}
0x13a8   :  { %s3286_s8 = sld [smem:[#allocation43_spill]] }
0x13ae   :  { %s2626_s19 = scalar_lea.hbm %s3286_s8, 64 }
0x13af   :  { %p2627_p1 = scmp.ne.s32.totalorder %s3286_s8, %s2626_s19  ;;  %p2630_p2 = scmp.lt.u32.totalorder %s2626_s19, %s3286_s8 }
0x13b1   :  { %p2632_p3 = pnand %p2630_p2, %p2627_p1 }
0x13b3   :  { %2635 = shalt.err (!%p2632_p3)
}
0x13b4   :  { %1878 = dma.vmem_to_hbm [thread:$0]  %s1876_s4, 64, %s3286_s8, [#allocation5]  }
0x13b5   :  { %2654 = dma.done.wait [#allocation5], 64  }
0x13b6   :  { %2655 = vsyncadd [#allocation5], 4294967232 }
0x13b7   :  { %1882 = vsyncpa [#allocation4], 1 }
0x13b8   :  { %1883 = vsyncpa [#allocation7], 1 }
0x13b9   :  { %1884 = vsyncpa [#allocation10], 1 }
0x13ba   :  { %1885 = vsyncpa [#allocation13], 1 }
0x13bb   :  { %1886 = vsyncpa [#allocation16], 1 }
0x13bc   :  { %1887 = vsyncpa [#allocation19], 1 }
0x13bd   :  { %1888 = vsyncpa [#allocation22], 1 }
0x13be   :  { %1889 = vsyncpa [#allocation25], 1 }
0x13bf   :  { %1890 = vsyncpa [#allocation28], 1 }
0x13c0   :  { %1891 = vsyncpa [#allocation5], 1 }

// kernel: vtn_forward.6
= control target key start
LH: loop header
LB: loop body
LE: loop exit
PB: predicated region body
PF: predicated region fallthrough
CT: control target
= control target key end

     0   :  { %s8791_s0 = inlined_call_operand.hbm [shape: f32[4,17,32], index: 0, kind: input, shape index: {}]   ;;  %s8792_s1 = inlined_call_operand.hbm [shape: f32[1,1,32], index: 1, kind: input, shape index: {}, may-alias: {1,7}]   ;;  %s8793_s2 = inlined_call_operand.hbm [shape: f32[1,1,32], index: 2, kind: input, shape index: {}, may-alias: {2,6,8,12}]   ;;  %s8794_s3 = inlined_call_operand.hbm [shape: bf16[1,32,96], index: 3, kind: input, shape index: {}]   ;;  %s8795_s4 = inlined_call_operand.hbm [shape: f32[1,1,96], index: 4, kind: input, shape index: {}]   ;;  %s8796_s5 = inlined_call_operand.hbm [shape: bf16[1,32,32], index: 5, kind: input, shape index: {}]   ;;  %s8797_s6 = inlined_call_operand.hbm [shape: f32[1,1,32], index: 6, kind: input, shape index: {}, may-alias: {2,6,8,12}]   ;;  %s8798_s7 = inlined_call_operand.hbm [shape: f32[1,1,32], index: 7, kind: input, shape index: {}, may-alias: {1,7}]   ;;  %s8799_s8 = inlined_call_operand.hbm [shape: f32[1,1,32], index: 8, kind: input, shape index: {}, may-alias: {2,6,8,12}]   ;;  %s8800_s9 = inlined_call_operand.hbm [shape: bf16[1,32,128], index: 9, kind: input, shape index: {}]   ;;  %s8801_s10 = inlined_call_operand.hbm [shape: f32[1,1,128], index: 10, kind: input, shape index: {}]   ;;  %s8802_s11 = inlined_call_operand.hbm [shape: bf16[1,128,32], index: 11, kind: input, shape index: {}]   ;;  %s8803_s12 = inlined_call_operand.hbm [shape: f32[1,1,32], index: 12, kind: input, shape index: {}, may-alias: {2,6,8,12}]   ;;  %s8804_s13 = inlined_call_operand.hbm [shape: f32[1,32], index: 13, kind: input, shape index: {}]   ;;  %s8805_s14 = inlined_call_operand.hbm [shape: f32[1,32], index: 14, kind: input, shape index: {}]   ;;  %s8806_s15 = inlined_call_operand.hbm [shape: f32[2,2,32], index: 15, kind: output, shape index: {}]  }
   0x1   :  { %8819 = sst [smem:[#allocation43_spill]] %s8791_s0 }
   0x2   :  { %8820 = sst [smem:[#allocation44_spill]] %s8792_s1 }
   0x3   :  { %8821 = sst [smem:[#allocation45_spill]] %s8793_s2 }
   0x4   :  { %8822 = sst [smem:[#allocation46_spill]] %s8794_s3 }
   0x5   :  { %8823 = sst [smem:[#allocation47_spill]] %s8795_s4 }
   0x6   :  { %8824 = sst [smem:[#allocation48_spill]] %s8806_s15 }
   0x7   :  { %20 = vsyncpa [#allocation4], 0 }
   0x8   :  { %22 = vsyncpa [#allocation4 + $0x1], 0 }
   0x9   :  { %23 = vsyncpa [#allocation7], 0 }
   0xa   :  { %24 = vsyncpa [#allocation10], 0 }
   0xb   :  { %25 = vsyncpa [#allocation13], 0 }
   0xc   :  { %26 = vsyncpa [#allocation16], 0 }
   0xd   :  { %27 = vsyncpa [#allocation19], 0 }
   0xe   :  { %28 = vsyncpa [#allocation22], 0 }
   0xf   :  { %29 = vsyncpa [#allocation25], 0 }
  0x10   :  { %30 = vsyncpa [#allocation5], 0 }
  0x11   :  { %32 = vsyncpa [#allocation5 + $0x1], 0  ;;  %s7399_s18 = smov 0   ;;  %s7401_s19 = smov 0  }
  0x12   :  { %s7403_s20 = smov 0   ;;  %s7405_s21 = smov 0  }
  0x13   :  { %s7407_s22 = smov 0   ;;  %s7409_s23 = smov 0  }
  0x14 LB: > { %8825 = sst [smem:[#allocation37_spill]] %s7259_s18  ;;  %s8807_s24 = sadd.s32 4294967295, %s7279_s23   ;;  %s7279_s23 = sphi %s7409_s23, %s38_s23   ;;  %s7275_s22 = sphi %s7407_s22, %s8867_s22   ;;  %s7271_s21 = sphi %s7405_s21, %s8866_s21   ;;  %s7267_s20 = sphi %s7403_s20, %s8865_s20   ;;  %s7263_s19 = sphi %s7401_s19, %s8864_s19   ;;  %s7259_s18 = sphi %s7399_s18, %s8863_s18  }
  0x15   : > { %8826 = sst [smem:[#allocation38_spill]] %s7263_s19  ;;  %p5929_p0 = scmp.ge.s32.totalorder %s7279_s23, 1 }
  0x16   : > { %8827 = sst [smem:[#allocation39_spill]] %s7267_s20  ;;  %p7433_p1 = scmp.eq.s32.totalorder %s8807_s24, 0 }
  0x17   : > { %8828 = sst [smem:[#allocation40_spill]] %s7271_s21  ;;  %p461_p2 = scmp.lt.s32.totalorder %s7279_s23, 3 }
  0x18   : > { %s8829_s25 = scalar_select %p7433_p1, 1, 0 }
  0x19   : > { %p7438_p3 = pnand %p5929_p0, %p461_p2  ;;  %s7281_s27 = smov [#allocation6]  }
  0x1a   : > { %8830 = sst [smem:[#allocation41_spill]] %s8829_s25  ;;  %s476_s28 = sshll.u32 %s7281_s27, 4  ;;  %s477_s28 = int_to_ptr.vmem [resolvable:$true] %s476_s28 }
  0x1b   : > { %s8831_s26 = scalar_select %p7438_p3, 1, 0 }
  0x1c   : > { %p6430_p5 = pneg %p7438_p3  ;;  %s7282_s29 = smov [#allocation9]  }
  0x1d   : > { %8832 = sst [smem:[#allocation42_spill]] %s8831_s26  ;;  %s502_s30 = sshll.u32 %s7282_s29, 4  ;;  %s7451_s30 = int_to_ptr.vmem [resolvable:$true] %s502_s30 }
  0x1e   : > { %p7447_p6 = pnand %p6430_p5, %p7433_p1  ;;  %s7283_s17 = smov [#allocation12]  }
  0x1f   : > { %s7453_s24 = sshll.u32 %s7283_s17, 4  ;;  %s8834_s1 = sld [smem:[#allocation44_spill]]  ;;  %s532_s24 = int_to_ptr.vmem [resolvable:$true] %s7453_s24 }
  0x20   : > { %p7463_p8 = pneg %p7447_p6 }
  0x25   : > { %s6747_s27 = scalar_lea.hbm %s8834_s1, 16 }
  0x26   : > { %p6748_p7 = scmp.ne.s32.totalorder %s8834_s1, %s6747_s27  ;;  %p6754_p11 = scmp.lt.u32.totalorder %s6747_s27, %s8834_s1 }
  0x28   : > { %p6750_p9 = pnand %p7463_p8, %p6748_p7 }
  0x2a   : > { %p6751_p10 = pneg %p6750_p9 }
  0x2c   : > { %p6756_p12 = pnand %p6754_p11, %p6751_p10 }
  0x2e   : > { %6759 = shalt.err (!%p6756_p12)
}
  0x2f   : > { %s6760_s15 = scalar_lea.vmem %s477_s28, 16  ;;  %s6767_s0 = scalar_lea.vmem %s477_s28, 32 }
  0x30   : > { %p6761_p13 = scmp.ne.s32.totalorder %s477_s28, %s6760_s15  ;;  %p6768_p5 = scmp.lt.s32.totalorder %s477_s28, %s477_s28 }
  0x31   : > { %p6769_p4 = scmp.lt.s32.totalorder %s6767_s0, %s6760_s15 }
  0x32   : > { %p6763_p0 = pnand %p6761_p13, %p7463_p8 }
  0x33   : > { %p6770_p3 = por %p6769_p4, %p6768_p5 }
  0x34   : > { %p6764_p2 = pneg %p6763_p0 }
  0x36   : > { %p6771_p1 = pnand %p6770_p3, %p6764_p2 }
  0x38   : > { %6774 = shalt.err (!%p6771_p1)
}
  0x39   : > { %6433 = dma.hbm_to_vmem [thread:$0]  (!%p7447_p6), %s8834_s1, 16, %s477_s28, [#allocation7]  }
  0x3a   : > { %s8836_s3 = sld [smem:[#allocation46_spill]] }
  0x40   : > { %s6775_s17 = scalar_lea.hbm %s8836_s3, 256 }
  0x41   : > { %p6776_p7 = scmp.ne.s32.totalorder %s8836_s3, %s6775_s17  ;;  %p6782_p1 = scmp.lt.u32.totalorder %s6775_s17, %s8836_s3 }
  0x43   : > { %p6778_p9 = pnand %p6776_p7, %p7463_p8 }
  0x45   : > { %p6779_p4 = pneg %p6778_p9 }
  0x47   : > { %p6784_p3 = pnand %p6782_p1, %p6779_p4 }
  0x49   : > { %6787 = shalt.err (!%p6784_p3)
}
  0x4a   : > { %s6788_s28 = scalar_lea.vmem %s7451_s30, 256  ;;  %p6796_p13 = scmp.lt.s32.totalorder %s7451_s30, %s7451_s30 }
  0x4b   : > { %p6789_p10 = scmp.ne.s32.totalorder %s7451_s30, %s6788_s28  ;;  %p6797_p0 = scmp.lt.s32.totalorder %s6788_s28, %s6788_s28 }
  0x4d   : > { %p6791_p11 = pnand %p6789_p10, %p7463_p8  ;;  %p6798_p2 = por %p6797_p0, %p6796_p13 }
  0x4f   : > { %p6792_p12 = pneg %p6791_p11 }
  0x51   : > { %p6799_p5 = pnand %p6798_p2, %p6792_p12 }
  0x53   : > { %6802 = shalt.err (!%p6799_p5)
}
  0x54   : > { %s7284_s18 = smov 64   ;;  %s7285_s19 = smov 4  }
  0x55   : > { %6439 = dma.hbm_to_vmem [thread:$0]  (!%p7447_p6), %s8836_s3, 256, %s7451_s30, [#allocation10], %s7284_s18, %s7284_s18, %s7285_s19  }
  0x56   : > { %s6803_s17 = scalar_lea.hbm %s8796_s5, 256 }
  0x57   : > { %p6804_p7 = scmp.ne.s32.totalorder %s8796_s5, %s6803_s17  ;;  %p6810_p1 = scmp.lt.u32.totalorder %s6803_s17, %s8796_s5 }
  0x59   : > { %p6806_p9 = pnand %p6804_p7, %p7463_p8 }
  0x5b   : > { %p6807_p4 = pneg %p6806_p9 }
  0x5d   : > { %p6812_p3 = pnand %p6810_p1, %p6807_p4 }
  0x5f   : > { %6815 = shalt.err (!%p6812_p3)
}
  0x60   : > { %s6816_s21 = scalar_lea.vmem %s532_s24, 256  ;;  %p6824_p13 = scmp.lt.s32.totalorder %s532_s24, %s532_s24 }
  0x61   : > { %p6817_p10 = scmp.ne.s32.totalorder %s532_s24, %s6816_s21  ;;  %p6825_p0 = scmp.lt.s32.totalorder %s6816_s21, %s6816_s21 }
  0x63   : > { %p6819_p11 = pnand %p6817_p10, %p7463_p8  ;;  %p6826_p2 = por %p6825_p0, %p6824_p13 }
  0x65   : > { %p6820_p12 = pneg %p6819_p11 }
  0x67   : > { %p6827_p5 = pnand %p6826_p2, %p6820_p12 }
  0x69   : > { %6830 = shalt.err (!%p6827_p5)
}
  0x6a   : > { %6445 = dma.hbm_to_vmem [thread:$0]  (!%p7447_p6), %s8796_s5, 256, %s532_s24, [#allocation13], %s7284_s18, %s7284_s18, %s7285_s19  }
  0x6b   : > { %s7286_s26 = smov [#allocation15]   ;;  %s7287_s27 = smov [#allocation18]  }
  0x6c   : > { %s560_s25 = sshll.u32 %s7286_s26, 4  ;;  %s586_s17 = sshll.u32 %s7287_s27, 4  ;;  %s561_s25 = int_to_ptr.vmem [resolvable:$true] %s560_s25  ;;  %s587_s17 = int_to_ptr.vmem [resolvable:$true] %s586_s17 }
  0x6d   : > { %s6831_s28 = scalar_lea.hbm %s8798_s7, 16 }
  0x6e   : > { %p6832_p7 = scmp.ne.s32.totalorder %s8798_s7, %s6831_s28  ;;  %p6838_p1 = scmp.lt.u32.totalorder %s6831_s28, %s8798_s7 }
  0x70   : > { %p6834_p9 = pnand %p6832_p7, %p7463_p8 }
  0x72   : > { %p6835_p4 = pneg %p6834_p9 }
  0x74   : > { %p6840_p3 = pnand %p6838_p1, %p6835_p4 }
  0x76   : > { %6843 = shalt.err (!%p6840_p3)
}
  0x77   : > { %s6844_s24 = scalar_lea.vmem %s561_s25, 16  ;;  %s6851_s30 = scalar_lea.vmem %s561_s25, 32 }
  0x78   : > { %p6845_p10 = scmp.ne.s32.totalorder %s561_s25, %s6844_s24  ;;  %p6852_p13 = scmp.lt.s32.totalorder %s561_s25, %s561_s25 }
  0x79   : > { %p6853_p0 = scmp.lt.s32.totalorder %s6851_s30, %s6844_s24 }
  0x7a   : > { %p6847_p11 = pnand %p6845_p10, %p7463_p8 }
  0x7b   : > { %p6854_p2 = por %p6853_p0, %p6852_p13 }
  0x7c   : > { %p6848_p12 = pneg %p6847_p11 }
  0x7e   : > { %p6855_p5 = pnand %p6854_p2, %p6848_p12 }
  0x80   : > { %6858 = shalt.err (!%p6855_p5)
}
  0x81   : > { %6451 = dma.hbm_to_vmem [thread:$0]  (!%p7447_p6), %s8798_s7, 16, %s561_s25, [#allocation16]  }
  0x82   : > { %s6859_s15 = scalar_lea.hbm %s8800_s9, 256 }
  0x83   : > { %p6860_p7 = scmp.ne.s32.totalorder %s8800_s9, %s6859_s15  ;;  %p6866_p1 = scmp.lt.u32.totalorder %s6859_s15, %s8800_s9 }
  0x85   : > { %p6862_p9 = pnand %p6860_p7, %p7463_p8 }
  0x87   : > { %p6863_p4 = pneg %p6862_p9 }
  0x89   : > { %p6868_p3 = pnand %p6866_p1, %p6863_p4 }
  0x8b   : > { %6871 = shalt.err (!%p6868_p3)
}
  0x8c   : > { %s6872_s24 = scalar_lea.vmem %s587_s17, 256  ;;  %p6880_p13 = scmp.lt.s32.totalorder %s587_s17, %s587_s17 }
  0x8d   : > { %p6873_p10 = scmp.ne.s32.totalorder %s587_s17, %s6872_s24  ;;  %p6881_p0 = scmp.lt.s32.totalorder %s6872_s24, %s6872_s24 }
  0x8f   : > { %p6875_p11 = pnand %p6873_p10, %p7463_p8  ;;  %p6882_p2 = por %p6881_p0, %p6880_p13 }
  0x91   : > { %p6876_p12 = pneg %p6875_p11 }
  0x93   : > { %p6883_p5 = pnand %p6882_p2, %p6876_p12 }
  0x95   : > { %6886 = shalt.err (!%p6883_p5)
}
  0x96   : > { %6457 = dma.hbm_to_vmem [thread:$0]  (!%p7447_p6), %s8800_s9, 256, %s587_s17, [#allocation19], %s7284_s18, %s7284_s18, %s7285_s19  }
  0x97   : > { %s7288_s3 = smov [#allocation21]   ;;  %s7289_s20 = smov [#allocation24]  }
  0x98   : > { %s615_s26 = sshll.u32 %s7288_s3, 4  ;;  %s642_s27 = sshll.u32 %s7289_s20, 4  ;;  %s616_s26 = int_to_ptr.vmem [resolvable:$true] %s615_s26  ;;  %s643_s27 = int_to_ptr.vmem [resolvable:$true] %s642_s27 }
  0x99   : > { %s6887_s28 = scalar_lea.hbm %s8802_s11, 1024 }
  0x9a   : > { %p6888_p7 = scmp.ne.s32.totalorder %s8802_s11, %s6887_s28  ;;  %p6894_p1 = scmp.lt.u32.totalorder %s6887_s28, %s8802_s11 }
  0x9c   : > { %p6890_p9 = pnand %p6888_p7, %p7463_p8 }
  0x9e   : > { %p6891_p4 = pneg %p6890_p9 }
  0xa0   : > { %p6896_p3 = pnand %p6894_p1, %p6891_p4 }
  0xa2   : > { %6899 = shalt.err (!%p6896_p3)
}
  0xa3   : > { %s6900_s17 = scalar_lea.vmem %s616_s26, 1024  ;;  %p6908_p13 = scmp.lt.s32.totalorder %s616_s26, %s616_s26 }
  0xa4   : > { %p6901_p10 = scmp.ne.s32.totalorder %s616_s26, %s6900_s17  ;;  %p6909_p0 = scmp.lt.s32.totalorder %s6900_s17, %s6900_s17 }
  0xa6   : > { %p6903_p11 = pnand %p6901_p10, %p7463_p8  ;;  %p6910_p2 = por %p6909_p0, %p6908_p13 }
  0xa8   : > { %p6904_p12 = pneg %p6903_p11 }
  0xaa   : > { %p6911_p5 = pnand %p6910_p2, %p6904_p12 }
  0xac   : > { %6914 = shalt.err (!%p6911_p5)
}
  0xad   : > { %6463 = dma.hbm_to_vmem [thread:$0]  (!%p7447_p6), %s8802_s11, 1024, %s616_s26, [#allocation22], %s7284_s18, %s7284_s18, %s7285_s19  }
  0xae   : > { %s6915_s0 = scalar_lea.hbm %s8804_s13, 16 }
  0xaf   : > { %p6916_p7 = scmp.ne.s32.totalorder %s8804_s13, %s6915_s0  ;;  %p6922_p1 = scmp.lt.u32.totalorder %s6915_s0, %s8804_s13 }
  0xb1   : > { %p6918_p9 = pnand %p6916_p7, %p7463_p8 }
  0xb3   : > { %p6919_p4 = pneg %p6918_p9 }
  0xb5   : > { %p6924_p3 = pnand %p6922_p1, %p6919_p4 }
  0xb7   : > { %6927 = shalt.err (!%p6924_p3)
}
  0xb8   : > { %s6928_s25 = scalar_lea.vmem %s643_s27, 16  ;;  %s6935_s18 = scalar_lea.vmem %s643_s27, 32 }
  0xb9   : > { %p6929_p10 = scmp.ne.s32.totalorder %s643_s27, %s6928_s25  ;;  %p6936_p13 = scmp.lt.s32.totalorder %s643_s27, %s643_s27 }
  0xba   : > { %p6937_p0 = scmp.lt.s32.totalorder %s6935_s18, %s6928_s25 }
  0xbb   : > { %p6931_p11 = pnand %p6929_p10, %p7463_p8 }
  0xbc   : > { %p6938_p2 = por %p6937_p0, %p6936_p13 }
  0xbd   : > { %p6932_p12 = pneg %p6931_p11 }
  0xbf   : > { %p6939_p5 = pnand %p6938_p2, %p6932_p12 }
  0xc1   : > { %6942 = shalt.err (!%p6939_p5)
}
  0xc2   : > { %6469 = dma.hbm_to_vmem [thread:$0]  (!%p7447_p6), %s8804_s13, 16, %s643_s27, [#allocation25]  }
  0xc3   : > { %s7290_s17 = smov [#allocation8]   ;;  %s7291_s3 = smov [#allocation11]  }
  0xc4   : > { %s489_s30 = sshll.u32 %s7290_s17, 4  ;;  %s518_s20 = sshll.u32 %s7291_s3, 4  ;;  %s490_s30 = int_to_ptr.vmem [resolvable:$true] %s489_s30  ;;  %s519_s20 = int_to_ptr.vmem [resolvable:$true] %s518_s20 }
  0xc5   : > { %s8837_s2 = sld [smem:[#allocation45_spill]] }
  0xcb   : > { %s6943_s28 = scalar_lea.hbm %s8837_s2, 16 }
  0xcc   : > { %p6944_p7 = scmp.ne.s32.totalorder %s8837_s2, %s6943_s28  ;;  %p6950_p1 = scmp.lt.u32.totalorder %s6943_s28, %s8837_s2 }
  0xce   : > { %p6946_p9 = pnand %p6944_p7, %p7463_p8 }
  0xd0   : > { %p6947_p4 = pneg %p6946_p9 }
  0xd2   : > { %p6952_p3 = pnand %p6950_p1, %p6947_p4 }
  0xd4   : > { %6955 = shalt.err (!%p6952_p3)
}
  0xd5   : > { %s6956_s27 = scalar_lea.vmem %s490_s30, 16  ;;  %s6963_s18 = scalar_lea.vmem %s490_s30, 32 }
  0xd6   : > { %p6957_p10 = scmp.ne.s32.totalorder %s490_s30, %s6956_s27  ;;  %p6964_p13 = scmp.lt.s32.totalorder %s490_s30, %s490_s30 }
  0xd7   : > { %p6965_p0 = scmp.lt.s32.totalorder %s6963_s18, %s6956_s27 }
  0xd8   : > { %p6959_p11 = pnand %p6957_p10, %p7463_p8 }
  0xd9   : > { %p6966_p2 = por %p6965_p0, %p6964_p13 }
  0xda   : > { %p6960_p12 = pneg %p6959_p11 }
  0xdc   : > { %p6967_p5 = pnand %p6966_p2, %p6960_p12 }
  0xde   : > { %6970 = shalt.err (!%p6967_p5)
}
  0xdf   : > { %6436 = dma.hbm_to_vmem [thread:$0]  (!%p7447_p6), %s8837_s2, 16, %s490_s30, [#allocation7]  }
  0xe0   : > { %s8838_s4 = sld [smem:[#allocation47_spill]] }
  0xe6   : > { %s6971_s15 = scalar_lea.hbm %s8838_s4, 16 }
  0xe7   : > { %p6972_p7 = scmp.ne.s32.totalorder %s8838_s4, %s6971_s15  ;;  %p6978_p1 = scmp.lt.u32.totalorder %s6971_s15, %s8838_s4 }
  0xe9   : > { %p6974_p9 = pnand %p6972_p7, %p7463_p8 }
  0xeb   : > { %p6975_p4 = pneg %p6974_p9 }
  0xed   : > { %p6980_p3 = pnand %p6978_p1, %p6975_p4 }
  0xef   : > { %6983 = shalt.err (!%p6980_p3)
}
  0xf0   : > { %s6984_s24 = scalar_lea.vmem %s519_s20, 16  ;;  %s6991_s30 = scalar_lea.vmem %s519_s20, 32 }
  0xf1   : > { %p6985_p10 = scmp.ne.s32.totalorder %s519_s20, %s6984_s24  ;;  %p6992_p13 = scmp.lt.s32.totalorder %s519_s20, %s519_s20 }
  0xf2   : > { %p6993_p0 = scmp.lt.s32.totalorder %s6991_s30, %s6984_s24 }
  0xf3   : > { %p6987_p11 = pnand %p6985_p10, %p7463_p8 }
  0xf4   : > { %p6994_p2 = por %p6993_p0, %p6992_p13 }
  0xf5   : > { %p6988_p12 = pneg %p6987_p11 }
  0xf7   : > { %p6995_p5 = pnand %p6994_p2, %p6988_p12 }
  0xf9   : > { %6998 = shalt.err (!%p6995_p5)
}
  0xfa   : > { %6442 = dma.hbm_to_vmem [thread:$0]  (!%p7447_p6), %s8838_s4, 16, %s519_s20, [#allocation10]  }
  0xfb   : > { %s7292_s18 = smov [#allocation14]   ;;  %s7293_s26 = smov [#allocation17]  }
  0xfc   : > { %s547_s19 = sshll.u32 %s7292_s18, 4  ;;  %s573_s17 = sshll.u32 %s7293_s26, 4  ;;  %s548_s19 = int_to_ptr.vmem [resolvable:$true] %s547_s19  ;;  %s574_s17 = int_to_ptr.vmem [resolvable:$true] %s573_s17 }
  0xfd   : > { %s6999_s0 = scalar_lea.hbm %s8797_s6, 16 }
  0xfe   : > { %p7000_p7 = scmp.ne.s32.totalorder %s8797_s6, %s6999_s0  ;;  %p7006_p1 = scmp.lt.u32.totalorder %s6999_s0, %s8797_s6 }
 0x100   : > { %p7002_p9 = pnand %p7000_p7, %p7463_p8 }
 0x102   : > { %p7003_p4 = pneg %p7002_p9 }
 0x104   : > { %p7008_p3 = pnand %p7006_p1, %p7003_p4 }
 0x106   : > { %7011 = shalt.err (!%p7008_p3)
}
 0x107   : > { %s7012_s20 = scalar_lea.vmem %s548_s19, 16  ;;  %s7019_s30 = scalar_lea.vmem %s548_s19, 32 }
 0x108   : > { %p7013_p10 = scmp.ne.s32.totalorder %s548_s19, %s7012_s20  ;;  %p7020_p13 = scmp.lt.s32.totalorder %s548_s19, %s548_s19 }
 0x109   : > { %p7021_p0 = scmp.lt.s32.totalorder %s7019_s30, %s7012_s20 }
 0x10a   : > { %p7015_p11 = pnand %p7013_p10, %p7463_p8 }
 0x10b   : > { %p7022_p2 = por %p7021_p0, %p7020_p13 }
 0x10c   : > { %p7016_p12 = pneg %p7015_p11 }
 0x10e   : > { %p7023_p5 = pnand %p7022_p2, %p7016_p12 }
 0x110   : > { %7026 = shalt.err (!%p7023_p5)
}
 0x111   : > { %6448 = dma.hbm_to_vmem [thread:$0]  (!%p7447_p6), %s8797_s6, 16, %s548_s19, [#allocation13]  }
 0x112   : > { %s7027_s3 = scalar_lea.hbm %s8799_s8, 16 }
 0x113   : > { %p7028_p7 = scmp.ne.s32.totalorder %s8799_s8, %s7027_s3  ;;  %p7034_p1 = scmp.lt.u32.totalorder %s7027_s3, %s8799_s8 }
 0x115   : > { %p7030_p9 = pnand %p7028_p7, %p7463_p8 }
 0x117   : > { %p7031_p4 = pneg %p7030_p9 }
 0x119   : > { %p7036_p3 = pnand %p7034_p1, %p7031_p4 }
 0x11b   : > { %7039 = shalt.err (!%p7036_p3)
}
 0x11c   : > { %s7040_s1 = scalar_lea.vmem %s574_s17, 16  ;;  %s7047_s19 = scalar_lea.vmem %s574_s17, 32 }
 0x11d   : > { %p7041_p10 = scmp.ne.s32.totalorder %s574_s17, %s7040_s1  ;;  %p7048_p13 = scmp.lt.s32.totalorder %s574_s17, %s574_s17 }
 0x11e   : > { %p7049_p0 = scmp.lt.s32.totalorder %s7047_s19, %s7040_s1 }
 0x11f   : > { %p7043_p11 = pnand %p7041_p10, %p7463_p8 }
 0x120   : > { %p7050_p2 = por %p7049_p0, %p7048_p13 }
 0x121   : > { %p7044_p12 = pneg %p7043_p11 }
 0x123   : > { %p7051_p5 = pnand %p7050_p2, %p7044_p12 }
 0x125   : > { %7054 = shalt.err (!%p7051_p5)
}
 0x126   : > { %6454 = dma.hbm_to_vmem [thread:$0]  (!%p7447_p6), %s8799_s8, 16, %s574_s17, [#allocation16]  }
 0x127   : > { %s7294_s30 = smov [#allocation20]   ;;  %s7295_s27 = smov [#allocation23]  }
 0x128   : > { %s602_s25 = sshll.u32 %s7294_s30, 4  ;;  %s631_s18 = sshll.u32 %s7295_s27, 4  ;;  %s603_s25 = int_to_ptr.vmem [resolvable:$true] %s602_s25  ;;  %s632_s18 = int_to_ptr.vmem [resolvable:$true] %s631_s18 }
 0x129   : > { %s7055_s15 = scalar_lea.hbm %s8801_s10, 16 }
 0x12a   : > { %p7056_p7 = scmp.ne.s32.totalorder %s8801_s10, %s7055_s15  ;;  %p7062_p1 = scmp.lt.u32.totalorder %s7055_s15, %s8801_s10 }
 0x12c   : > { %p7058_p9 = pnand %p7056_p7, %p7463_p8 }
 0x12e   : > { %p7059_p4 = pneg %p7058_p9 }
 0x130   : > { %p7064_p3 = pnand %p7062_p1, %p7059_p4 }
 0x132   : > { %7067 = shalt.err (!%p7064_p3)
}
 0x133   : > { %s7068_s17 = scalar_lea.vmem %s603_s25, 16  ;;  %s7075_s19 = scalar_lea.vmem %s603_s25, 32 }
 0x134   : > { %p7069_p10 = scmp.ne.s32.totalorder %s603_s25, %s7068_s17  ;;  %p7076_p13 = scmp.lt.s32.totalorder %s603_s25, %s603_s25 }
 0x135   : > { %p7077_p0 = scmp.lt.s32.totalorder %s7075_s19, %s7068_s17 }
 0x136   : > { %p7071_p11 = pnand %p7069_p10, %p7463_p8 }
 0x137   : > { %p7078_p2 = por %p7077_p0, %p7076_p13 }
 0x138   : > { %p7072_p12 = pneg %p7071_p11 }
 0x13a   : > { %p7079_p5 = pnand %p7078_p2, %p7072_p12 }
 0x13c   : > { %7082 = shalt.err (!%p7079_p5)
}
 0x13d   : > { %6460 = dma.hbm_to_vmem [thread:$0]  (!%p7447_p6), %s8801_s10, 16, %s603_s25, [#allocation19]  }
 0x13e   : > { %s7083_s26 = scalar_lea.hbm %s8803_s12, 16 }
 0x13f   : > { %p7084_p7 = scmp.ne.s32.totalorder %s8803_s12, %s7083_s26  ;;  %p7090_p1 = scmp.lt.u32.totalorder %s7083_s26, %s8803_s12 }
 0x141   : > { %p7086_p9 = pnand %p7084_p7, %p7463_p8 }
 0x143   : > { %p7087_p4 = pneg %p7086_p9 }
 0x145   : > { %p7092_p3 = pnand %p7090_p1, %p7087_p4 }
 0x147   : > { %7095 = shalt.err (!%p7092_p3)
}
 0x148   : > { %s7096_s21 = scalar_lea.vmem %s632_s18, 16  ;;  %s7103_s25 = scalar_lea.vmem %s632_s18, 32 }
 0x149   : > { %p7097_p10 = scmp.ne.s32.totalorder %s632_s18, %s7096_s21  ;;  %p7104_p13 = scmp.lt.s32.totalorder %s632_s18, %s632_s18 }
 0x14a   : > { %p7105_p0 = scmp.lt.s32.totalorder %s7103_s25, %s7096_s21 }
 0x14b   : > { %p7099_p11 = pnand %p7097_p10, %p7463_p8 }
 0x14c   : > { %p7106_p2 = por %p7105_p0, %p7104_p13 }
 0x14d   : > { %p7100_p12 = pneg %p7099_p11 }
 0x14f   : > { %p7107_p5 = pnand %p7106_p2, %p7100_p12 }
 0x151   : > { %7110 = shalt.err (!%p7107_p5)
}
 0x152   : > { %6466 = dma.hbm_to_vmem [thread:$0]  (!%p7447_p6), %s8803_s12, 16, %s632_s18, [#allocation22]  }
 0x153   : > { %s7296_s19 = smov [#allocation26]   ;;  %s7111_s27 = scalar_lea.hbm %s8805_s14, 16 }
 0x154   : > { %s653_s24 = sshll.u32 %s7296_s19, 4  ;;  %p7112_p7 = scmp.ne.s32.totalorder %s8805_s14, %s7111_s27  ;;  %s654_s24 = int_to_ptr.vmem [resolvable:$true] %s653_s24 }
 0x155   : > { %p7118_p1 = scmp.lt.u32.totalorder %s7111_s27, %s8805_s14 }
 0x156   : > { %p7114_p9 = pnand %p7112_p7, %p7463_p8 }
 0x158   : > { %p7115_p4 = pneg %p7114_p9 }
 0x15a   : > { %p7120_p3 = pnand %p7118_p1, %p7115_p4 }
 0x15c   : > { %7123 = shalt.err (!%p7120_p3)
}
 0x15d   : > { %s7124_s18 = scalar_lea.vmem %s654_s24, 16  ;;  %s7131_s28 = scalar_lea.vmem %s654_s24, 32 }
 0x15e   : > { %p7125_p10 = scmp.ne.s32.totalorder %s654_s24, %s7124_s18  ;;  %p7132_p13 = scmp.lt.s32.totalorder %s654_s24, %s654_s24 }
 0x15f   : > { %p7133_p0 = scmp.lt.s32.totalorder %s7131_s28, %s7124_s18 }
 0x160   : > { %p7127_p11 = pnand %p7125_p10, %p7463_p8 }
 0x161   : > { %p7134_p2 = por %p7133_p0, %p7132_p13 }
 0x162   : > { %p7128_p12 = pneg %p7127_p11 }
 0x164   : > { %p7135_p5 = pnand %p7134_p2, %p7128_p12 }
 0x166   : > { %7138 = shalt.err (!%p7135_p5)
}
 0x167   : > { %s8839_s1 = sld [smem:[#allocation39_spill]]  ;;  %s8840_s17 = sld [smem:[#allocation38_spill]] }
 0x168   : > { %s8841_s29 = sld [smem:[#allocation37_spill]]  ;;  %s8842_s19 = sld [smem:[#allocation41_spill]] }
 0x169   : > { %6472 = dma.hbm_to_vmem [thread:$0]  (!%p7447_p6), %s8805_s14, 16, %s654_s24, [#allocation25]  }
 0x16a   : > { %s5928_s20 = sadd.s32 4294967294, %s7279_s23   ;;  %s50_s30 = sadd.s32 1, %s7275_s22 }
 0x16b   : > { %p52_p8 = scmp.ge.s32.totalorder %s50_s30, 2  ;;  %p65_p9 = scmp.eq.s32.totalorder %s7279_s23, 0 }
 0x16c   : > { %s8844_s26 = sadd.s32 4294967295, %s7279_s23   ;;  %p454_p13 = scmp.eq.s32.totalorder %s5928_s20, 1 }
 0x16d   : > { %s57_s16 = sadd.s32 1, %s8839_s1  ;;  %p64_p7 = scmp.ne.s32.totalorder %s8839_s1, %s8840_s17 }
 0x16e   : > { %s8869_s30 = smov (%p52_p8, %s50_s30), 0  ;;  %p70_p1 = scmp.ne.s32.totalorder %s8840_s17, %s8841_s29 }
 0x16f   : > { %p7739_p4 = por %p65_p9, %p64_p7  ;;  %s54_s24 = ssub.s32 %s7275_s22, %s8869_s30 }
 0x170   : > { %p448_p6 = scmp.eq.s32.totalorder %s8844_s26, 1  ;;  %p55_p3 = scmp.eq.s32.totalorder %s54_s24, 0 }
 0x171   : > { %p8845_p10 = scmp.ne.s32.totalorder %s8842_s19, 0  ;;  %p7762_p0 = por %p454_p13, %p70_p1 }
 0x172   : > { %p7755_p12 = por %p448_p6, %p64_p7  ;;  %p6495_p2 = scmp.lt.s32.totalorder %s7279_s23, 2 }
 0x173   : > { %p7751_p11 = por %p8845_p10, %p70_p1  ;;  %s664_s28 = sand.u32 1, %s8839_s1  }
 0x174   : > { %s8847_s15 = scalar_select %p7755_p12, 1, 0 }
 0x175   : > { %s7760_s0 = scalar_select %p55_p3, %s8839_s1, %s57_s16  }
 0x176   : > { %s8848_s18 = scalar_select %p7762_p0, 1, 0 }
 0x177   : > { %s6368_s21 = smul.u32 768, %s7275_s22  ;;  %s8849_s19 = sld [smem:[#allocation43_spill]] }
 0x178   : > { %s6367_s25 = smul.u32 48, %s664_s28  ;;  %p7776_p5 = pnand %p6495_p2, %p7739_p4 }
 0x179   : > { %s7782_s2 = scalar_lea.sflag [#allocation4], %s664_s28 }
 0x17a   : > { %s668_s16 = scalar_lea.vmem [#allocation3], %s6367_s25  ;;  %p7141_p7 = pneg %p7776_p5 }
 0x17b   : > { %s676_s1 = sshll.u32 %s668_s16, 4  ;;  %s7780_s1 = int_to_ptr.vmem [resolvable:$true] %s676_s1 }
 0x17d   : > { %s8850_s24 = smov %s8849_s19  ;;  %s7772_s26 = scalar_lea.hbm %s8849_s19, %s6368_s21 }
 0x17e   : > { %s7139_s17 = scalar_lea.hbm %s7772_s26, 768  ;;  %s7144_s29 = scalar_lea.hbm %s8850_s24, 1536 }
 0x17f   : > { %p7140_p8 = scmp.ne.s32.totalorder %s7772_s26, %s7139_s17  ;;  %p7145_p4 = scmp.lt.u32.totalorder %s7772_s26, %s8850_s24 }
 0x180   : > { %p7146_p6 = scmp.lt.u32.totalorder %s7144_s29, %s7139_s17  ;;  %p7148_p10 = scmp.lt.u32.totalorder %s7139_s17, %s7772_s26 }
 0x181   : > { %p7142_p9 = pnand %p7141_p7, %p7140_p8 }
 0x182   : > { %p7147_p3 = por %p7146_p6, %p7145_p4 }
 0x183   : > { %p7143_p1 = pneg %p7142_p9 }
 0x184   : > { %p7149_p13 = por %p7148_p10, %p7147_p3 }
 0x186   : > { %p7150_p2 = pnand %p7149_p13, %p7143_p1 }
 0x188   : > { %7153 = shalt.err (!%p7150_p2)
}
 0x189   : > { %s7154_s28 = scalar_lea.vmem %s7780_s1, 768  ;;  %s7297_s25 = smov [#allocation3]  }
 0x18a   : > { %p7155_p8 = scmp.ne.s32.totalorder %s7780_s1, %s7154_s28  ;;  %s7159_s16 = sshll.u32 %s7297_s25, 4  ;;  %s7160_s16 = int_to_ptr.vmem [resolvable:$false] %s7159_s16 }
 0x18b   : > { %s7161_s4 = scalar_lea.vmem %s7160_s16, 1536  ;;  %p7162_p12 = scmp.lt.s32.totalorder %s7780_s1, %s7160_s16 }
 0x18c   : > { %p7157_p9 = pnand %p7155_p8, %p7141_p7  ;;  %p7163_p4 = scmp.lt.s32.totalorder %s7161_s4, %s7154_s28 }
 0x18e   : > { %p7158_p0 = pneg %p7157_p9  ;;  %p7164_p6 = por %p7163_p4, %p7162_p12 }
 0x190   : > { %p7165_p3 = pnand %p7164_p6, %p7158_p0 }
 0x192   : > { %7168 = shalt.err (!%p7165_p3)
}
 0x193   : > { %s7298_s17 = smov 128   ;;  %s7299_s27 = smov 8  }
 0x194   : > { %6476 = dma.hbm_to_vmem [thread:$0]  (!%p7776_p5), %s7772_s26, 768, %s7780_s1, %s7782_s2, %s7298_s17, %s7298_s17, %s7299_s27  }
 0x195   : > { %s8852_s21 = sld [smem:[#allocation42_spill]] }
 0x19b   : > { %p8853_p7 = scmp.ne.s32.totalorder %s8852_s21, 0 }
 0x19c   : > { %s8854_s29 = sld [smem:[#allocation38_spill]] (!%p8853_p7) }
 0x19d   : > { %688 = sbr.rel (%p8853_p7) target bundleno = 5246 (0x147e), region = 80 }
 0x1a2   : > { %s7813_s19 = sand.u32 (!%p8853_p7), 1, %s8854_s29  }
 0x1a3   : > { %s6369_s28 = smul.u32 (!%p8853_p7), 48, %s7813_s19  ;;  %s691_s25 = scalar_lea.sflag (!%p8853_p7), [#allocation4], %s7813_s19 }
 0x1a5   : > { %s694_s16 = scalar_lea.vmem [#allocation3], %s6369_s28 }
 0x1a6   : > { %7222 = dma.done.wait (%p7751_p11), %s691_s25, 768  }
 0x1a7   : > { %7224 = vsyncadd (%p7751_p11), %s691_s25, 4294966528  ;;  %s8855_s4 = sld [smem:[#allocation41_spill]] }
 0x1ad   : > { %p8856_p12 = scmp.ne.s32.totalorder %s8855_s4, 0 }
 0x1af   : > { %7226 = dma.done.wait (%p8856_p12), [#allocation7], 32  }
 0x1b0   : > { %7228 = vsyncadd (%p8856_p12), [#allocation7], 4294967264 }
 0x1b1   : > { %7230 = dma.done.wait (%p8856_p12), [#allocation10], 272  }
 0x1b2   : > { %7232 = vsyncadd (%p8856_p12), [#allocation10], 4294967024 }
 0x1b3   : > { %7234 = dma.done.wait (%p8856_p12), [#allocation13], 272  }
 0x1b4   : > { %7236 = vsyncadd (%p8856_p12), [#allocation13], 4294967024 }
 0x1b5   : > { %7238 = dma.done.wait (%p8856_p12), [#allocation16], 32  }
 0x1b6   : > { %7240 = vsyncadd (%p8856_p12), [#allocation16], 4294967264 }
 0x1b7   : > { %7242 = dma.done.wait (%p8856_p12), [#allocation19], 272  }
 0x1b8   : > { %7244 = vsyncadd (%p8856_p12), [#allocation19], 4294967024 }
 0x1b9   : > { %7246 = dma.done.wait (%p8856_p12), [#allocation22], 1040  }
 0x1ba   : > { %7248 = vsyncadd (%p8856_p12), [#allocation22], 4294966256 }
 0x1bb   : > { %7250 = dma.done.wait (%p8856_p12), [#allocation25], 32  }
 0x1bc   : > { %7252 = vsyncadd (%p8856_p12), [#allocation25], 4294967264  ;;  %vm809_vm0 = vcmask 261120   ;;  %vm812_vm1 = vcmask 253952   ;;  %v803_v0 = vld [vmem:[%s694_s16] sm:$0xff]  ;;  %v806_v1 = vld [vmem:[%s694_s16 + $0x18] sm:$0xff] }
 0x1bd   : > { %v804_v2 = vld [vmem:[%s694_s16 + $0x8] sm:$0xff]  ;;  %810 = vst.msk [vmem:[#allocation2] sm:$0xff] %vm809_vm0, %v803_v0  ;;  %814 = vst.msk [vmem:[#allocation2 + $0x18] sm:$0xff] %vm809_vm0, %v806_v1  ;;  %v807_v3 = vld [vmem:[%s694_s16 + $0x20] sm:$0xff]  ;;  %v7300_v49 = vmov 0.0   ;;  %vm7301_vm2 = vmmov 0  }
 0x1be   : > { %811 = vst.msk [vmem:[#allocation2 + $0x8] sm:$0xff] %vm809_vm0, %v804_v2  ;;  %v805_v4 = vld [vmem:[%s694_s16 + $0x10] sm:$0x1]  ;;  %v808_v5 = vld [vmem:[%s694_s16 + $0x28] sm:$0x1]  ;;  %815 = vst.msk [vmem:[#allocation2 + $0x20] sm:$0xff] %vm809_vm0, %v807_v3  ;;  %6147 = vmatprep.subr.bf16.mxu1 %v7300_v49  ;;  %6151 = vmatprep.mubr.msk.bf16.mxu1 %vm7301_vm2, %v7300_v49  ;;  %v974_v2 = vlaneseq }
 0x1bf   : > { %813 = vst.msk [vmem:[#allocation2 + $0x10] sm:$0x1] %vm812_vm1, %v805_v4  ;;  %816 = vst.msk [vmem:[#allocation2 + $0x28] sm:$0x1] %vm812_vm1, %v808_v5  ;;  %v6595_v48 = vld [vmem:[#allocation9] sm:$0xff]   ;;  %v6596_v50 = vld [vmem:[#allocation9 + $0x8] sm:$0xff]  }
 0x1c0   : > { %6148 = vmatpush3.bf16.msra.mxu1 %v6595_v48  ;;  %v7302_v0 = vmov 1966171168   ;;  %vm1959_vm3 = vcmask 64512   ;;  %s7303_s2 = smov 96   ;;  %vm2093_vm4 = vcmask 131072   ;;  %vm2086_vm5 = vcmask 138240  }
 0x1c1   : > { %6149 = vmatprep.subr.bf16.mxu1 %v7300_v49  ;;  %v972_v1 = vunpack.c.l.s4 %v7302_v0  ;;  %s7304_s3 = smov 64   ;;  %vm2169_vm6 = vcmask 1040384   ;;  %s7306_s26 = smov 88   ;;  %vm3353_vm7 = vcmask 130048   ;;  %vm3360_vm8 = vcmask 195584  }
 0x1c2   : > { %s7307_s20 = smov 120   ;;  %s7308_s1 = smov 56   ;;  %vm5623_vm9 = vcmask 1041409   ;;  %vm5626_vm10 = vcmask 254976  }
 0x1c3   : > { %s7309_s17 = smov 80   ;;  %s7310_s27 = smov 112  }
 0x1c4   : > { %v817_v6 = vld [vmem:[#allocation2] sm:$0xff]  ;;  %v820_v7 = vld [vmem:[#allocation2 + $0x18] sm:$0xff]  ;;  %6150 = vmatpush3.bf16.msra.mxu1 %v6596_v50  ;;  %s7311_s21 = smov 48   ;;  %s7312_s29 = smov 72  }
 0x1c5   : > { %v818_v8 = vld [vmem:[#allocation2 + $0x8] sm:$0xff]  ;;  %v860_v9 = vsel %vm809_vm0, %v817_v6, 0.0  ;;  %v870_v10 = vsel %vm809_vm0, %v820_v7, 0.0  ;;  %v821_v11 = vld [vmem:[#allocation2 + $0x20] sm:$0xff]  ;;  %s7313_s28 = smov 104   ;;  %s7314_s25 = smov 40  }
 0x1c6   : > { %861 = vadd.xlane.f32.xlu0 %v860_v9  ;;  %871 = vadd.xlane.f32.xlu1 %v870_v10  ;;  %v863_v12 = vsel %vm809_vm0, %v818_v8, 0.0  ;;  %v873_v13 = vsel %vm809_vm0, %v821_v11, 0.0  ;;  %v819_v14 = vld [vmem:[#allocation2 + $0x10] sm:$0x1]  ;;  %v822_v15 = vld [vmem:[#allocation2 + $0x28] sm:$0x1] }
 0x1c7   : > { %v867_v16 = vsel %vm812_vm1, %v819_v14, 0.0  ;;  %v876_v17 = vsel %vm812_vm1, %v822_v15, 0.0  ;;  %v5964_v10 = vld [vmem:[#allocation6] ss:$0 sm:$0xff]  ;;  %s7315_s16 = smov 8   ;;  %s7316_s4 = smov 16  }
 0x1c8   : > { %p8859_p0 = scmp.ne.s32.totalorder %s8847_s15, 0 }
 0x1ca   : > { %864 = vadd.xlane.f32.xlu0 %v863_v12  ;;  %874 = vadd.xlane.f32.xlu1 %v873_v13  ;;  %v5965_v13 = vld [vmem:[#allocation8] ss:$0 sm:$0xff] }
 0x1ce   : > { %868 = vadd.xlane.f32.xlu0 %v867_v16  ;;  %877 = vadd.xlane.f32.xlu1 %v876_v17 }
 0x253   : > { %v862_v18 = vpop.xlane.xlu0 %861  ;;  %v872_v19 = vpop.xlane.xlu1 %871 }
 0x254   : > { %v880_v20 = vmul.f32 0.03125, %v862_v18  ;;  %v883_v21 = vmul.f32 0.03125, %v872_v19 }
 0x256   : > { %v7861_v22 = vsub.f32 %v817_v6, %v880_v20  ;;  %v7863_v23 = vsub.f32 %v820_v7, %v883_v21  ;;  %v973_v7 = vunpack.c.0.s8 %v972_v1 }
 0x257   : > { %v865_v24 = vpop.xlane.xlu0 %864  ;;  %v875_v25 = vpop.xlane.xlu1 %874 }
 0x258   : > { %v881_v26 = vmul.f32 0.03125, %v865_v24  ;;  %v884_v27 = vmul.f32 0.03125, %v875_v25  ;;  %v892_v28 = vmul.f32 %v7861_v22, %v7861_v22  ;;  %v895_v29 = vmul.f32 %v7863_v23, %v7863_v23 }
 0x25a   : > { %v7869_v30 = vsub.f32 %v818_v8, %v881_v26  ;;  %v7871_v31 = vsub.f32 %v821_v11, %v884_v27  ;;  %v898_v32 = vsel %vm809_vm0, %v892_v28, 0.0  ;;  %v907_v35 = vsel %vm809_vm0, %v895_v29, 0.0 }
 0x25b   : > { %899 = vadd.xlane.f32.xlu0 %v898_v32  ;;  %v869_v33 = vpop.xlane.xlu0 %868  ;;  %v878_v34 = vpop.xlane.xlu1 %877  ;;  %v975_v8 = vshrl.u32 %v974_v2, 7 }
 0x25c   : > { %v882_v36 = vmul.f32 0.03125, %v869_v33  ;;  %v885_v37 = vmul.f32 0.03125, %v878_v34  ;;  %v893_v38 = vmul.f32 %v7869_v30, %v7869_v30  ;;  %v896_v39 = vmul.f32 %v7871_v31, %v7871_v31 }
 0x25e   : > { %v7879_v40 = vsub.f32 %v819_v14, %v882_v36  ;;  %v7881_v41 = vsub.f32 %v822_v15, %v885_v37  ;;  %v901_v42 = vsel %vm809_vm0, %v893_v38, 0.0  ;;  %v910_v43 = vsel %vm809_vm0, %v896_v39, 0.0 }
 0x25f   : > { %908 = vadd.xlane.f32.xlu0 %v907_v35  ;;  %902 = vadd.xlane.f32.xlu1 %v901_v42  ;;  %v7896_v14 = vsub.s32 %v973_v7, %v975_v8 }
 0x260   : > { %v894_v44 = vmul.f32 %v7879_v40, %v7879_v40  ;;  %v897_v45 = vmul.f32 %v7881_v41, %v7881_v41 }
 0x262   : > { %v904_v46 = vsel %vm812_vm1, %v894_v44, 0.0  ;;  %v913_v47 = vsel %vm812_vm1, %v897_v45, 0.0 }
 0x263   : > { %911 = vadd.xlane.f32.xlu1 %v910_v43  ;;  %905 = vadd.xlane.f32.xlu0 %v904_v46 }
 0x267   : > { %914 = vadd.xlane.f32.xlu1 %v913_v47 }
 0x2e8   : > { %v900_v51 = vpop.xlane.xlu0 %899 }
 0x2e9   : > { %v916_v52 = vmul.f32 0.03125, %v900_v51 }
 0x2eb   : > { %v922_v53 = vadd.f32 1e-05, %v916_v52 }
 0x2ec   : > { %v903_v54 = vpop.xlane.xlu1 %902  ;;  %v909_v55 = vpop.xlane.xlu0 %908 }
 0x2ed   : > { %6609 = vrsqrt.f32 %v922_v53  ;;  %v917_v56 = vmul.f32 0.03125, %v903_v54  ;;  %v919_v57 = vmul.f32 0.03125, %v909_v55 }
 0x2ef   : > { %v923_v58 = vadd.f32 1e-05, %v917_v56  ;;  %v925_v59 = vadd.f32 1e-05, %v919_v57 }
 0x2f0   : > { %v912_v60 = vpop.xlane.xlu1 %911  ;;  %v906_v61 = vpop.xlane.xlu0 %905 }
 0x2f1   : > { %6611 = vrsqrt.f32 %v923_v58  ;;  %v920_v62 = vmul.f32 0.03125, %v912_v60  ;;  %v918_v63 = vmul.f32 0.03125, %v906_v61 }
 0x2f2   : > { %6613 = vrsqrt.f32 %v925_v59 }
 0x2f3   : > { %v926_v3 = vadd.f32 1e-05, %v920_v62  ;;  %v924_v4 = vadd.f32 1e-05, %v918_v63 }
 0x2f4   : > { %v915_v5 = vpop.xlane.xlu1 %914 }
 0x2f5   : > { %6615 = vrsqrt.f32 %v926_v3  ;;  %v921_v6 = vmul.f32 0.03125, %v915_v5 }
 0x2f6   : > { %6617 = vrsqrt.f32 %v924_v4 }
 0x2f7   : > { %v6610_v9 = vpop.eup %6609  ;;  %v927_v11 = vadd.f32 1e-05, %v921_v6 }
 0x2f8   : > { %v934_v12 = vmul.f32 %v6610_v9, %v7861_v22 }
 0x2f9   : > { %6619 = vrsqrt.f32 %v927_v11 }
 0x2fa   : > { %v946_v15 = vmul.f32 %v5964_v10, %v934_v12 }
 0x2fb   : > { %v6612_v16 = vpop.eup %6611 }
 0x2fc   : > { %v6614_v17 = vpop.eup %6613  ;;  %v958_v18 = vadd.f32 %v5965_v13, %v946_v15  ;;  %v935_v19 = vmul.f32 %v6612_v16, %v7869_v30 }
 0x2fd   : > { %v937_v20 = vmul.f32 %v6614_v17, %v7863_v23 }
 0x2fe   : > { %v970_v21 = vcombine.high %v958_v18, %v958_v18  ;;  %v977_v24 = vrot.slane %v958_v18, %v7896_v14  ;;  %v947_v25 = vmul.f32 %v5964_v10, %v935_v19 }
 0x2ff   : > { %v6616_v26 = vpop.eup %6615  ;;  %v949_v27 = vmul.f32 %v5964_v10, %v937_v20 }
 0x300   : > { %v6618_v28 = vpop.eup %6617  ;;  %v959_v22 = vadd.f32 %v5965_v13, %v947_v25  ;;  %v938_v29 = vmul.f32 %v6616_v26, %v7871_v31  ;;  %v984_v32 = vrot.slane %v970_v21, %v7896_v14  ;;  %v985_v33 = vcombine.high %v977_v24, %v977_v24 }
 0x301   : > { %v961_v34 = vadd.f32 %v5965_v13, %v949_v27  ;;  %v936_v35 = vmul.f32 %v6618_v28, %v7879_v40  ;;  %v993_v30 = vrot.slane %v977_v24, %v7896_v14 }
 0x302   : > { %v1019_v36 = vcombine.high %v959_v22, %v959_v22  ;;  %v1026_v23 = vrot.slane %v959_v22, %v7896_v14  ;;  %v950_v37 = vmul.f32 %v5964_v10, %v938_v29  ;;  %v986_v38 = vcombine.high %v984_v32, %v984_v32 }
 0x303   : > { %v6620_v39 = vpop.eup %6619  ;;  %v1082_v42 = vcombine.high %v961_v34, %v961_v34  ;;  %v1089_v43 = vrot.slane %v961_v34, %v7896_v14  ;;  %v948_v44 = vmul.f32 %v5964_v10, %v936_v35  ;;  %v1000_v31 = vrot.slane %v984_v32, %v7896_v14 }
 0x304   : > { %v962_v45 = vadd.f32 %v5965_v13, %v950_v37  ;;  %v939_v46 = vmul.f32 %v6620_v39, %v7881_v41  ;;  %v1007_v47 = vrot.slane %v985_v33, %v7896_v14  ;;  %v1014_v40 = vrot.slane %v986_v38, %v7896_v14 }
 0x305   : > { %v960_v48 = vadd.f32 %v5965_v13, %v948_v44  ;;  %v1033_v50 = vrot.slane %v1019_v36, %v7896_v14  ;;  %v1034_v51 = vcombine.high %v1026_v23, %v1026_v23  ;;  %v1042_v52 = vrot.slane %v1026_v23, %v7896_v14 }
 0x306   : > { %v1131_v53 = vcombine.high %v962_v45, %v962_v45  ;;  %v1138_v54 = vrot.slane %v962_v45, %v7896_v14  ;;  %v951_v55 = vmul.f32 %v5964_v10, %v939_v46  ;;  %v1194_v56 = vcombine.low %v993_v30, %v1007_v47 }
 0x307   : > { %v1074_v57 = vrot.slane %v960_v48, %v7896_v14  ;;  %v1035_v58 = vcombine.high %v1033_v50, %v1033_v50  ;;  %v1049_v41 = vrot.slane %v1033_v50, %v7896_v14  ;;  %v1056_v59 = vrot.slane %v1034_v51, %v7896_v14 }
 0x308   : > { %v7917_v60 = vadd.f32 %v5965_v13, %v951_v55  ;;  %v5966_v61 = vcombine.high %v993_v30, %v1007_v47  ;;  %v1196_v62 = vcombine.low %v1000_v31, %v1014_v40  ;;  %v5967_v63 = vcombine.high %v1000_v31, %v1014_v40 }
 0x309   : > { %v1063_v0 = vrot.slane %v1035_v58, %v7896_v14  ;;  %v1204_v1 = vrot.slane %v1194_v56, %v7896_v14  ;;  %v1243_v2 = vcombine.low %v1042_v52, %v1056_v59  ;;  %v5968_v3 = vcombine.high %v1042_v52, %v1056_v59 }
 0x30a   : > { %v1211_v4 = vrot.slane %v5966_v61, %v7896_v14  ;;  %v1218_v5 = vrot.slane %v1196_v62, %v7896_v14  ;;  %v1225_v6 = vrot.slane %v5967_v63, %v7896_v14  ;;  %v1081_v7 = vrot.slane %v1074_v57, %v7896_v14 }
 0x30b   : > { %v1245_v8 = vcombine.low %v1049_v41, %v1063_v0  ;;  %v5969_v9 = vcombine.high %v1049_v41, %v1063_v0  ;;  %v1253_v10 = vrot.slane %v1243_v2, %v7896_v14  ;;  %v1260_v11 = vrot.slane %v5968_v3, %v7896_v14 }
 0x30c   : > { %v1226_v12 = vcombine.low %v1204_v1, %v1211_v4  ;;  %v1227_v13 = vcombine.low %v1218_v5, %v1225_v6  ;;  %v1096_v15 = vrot.slane %v1082_v42, %v7896_v14  ;;  %v1097_v16 = vcombine.high %v1089_v43, %v1089_v43 }
 0x30d   : > { %v1267_v17 = vrot.slane %v1245_v8, %v7896_v14  ;;  %v1274_v18 = vrot.slane %v5969_v9, %v7896_v14  ;;  %v1275_v19 = vcombine.low %v1253_v10, %v1260_v11  ;;  %v1105_v20 = vrot.slane %v1089_v43, %v7896_v14 }
 0x30e   : > { %v1234_v21 = vrot.slane %v1226_v12, %v7896_v14  ;;  %v1241_v24 = vrot.slane %v1227_v13, %v7896_v14  ;;  %v1098_v25 = vcombine.high %v1096_v15, %v1096_v15  ;;  %v1112_v26 = vrot.slane %v1096_v15, %v7896_v14 }
 0x30f   : > { %v1276_v27 = vcombine.low %v1267_v17, %v1274_v18  ;;  %v1283_v28 = vrot.slane %v1275_v19, %v7896_v14  ;;  %v1119_v22 = vrot.slane %v1097_v16, %v7896_v14  ;;  %v1127_v29 = vcombine.high %v1105_v20, %v1105_v20  ;;  %v7967_v19 = vld [vmem:[#allocation11] ss:$0 sm:$0xff] }
 0x310   : > { %v1242_v32 = vcombine.low %v1234_v21, %v1241_v24  ;;  %v1126_v33 = vrot.slane %v1098_v25, %v7896_v14  ;;  %v1128_v34 = vcombine.high %v1112_v26, %v1112_v26  ;;  %v1145_v35 = vrot.slane %v1131_v53, %v7896_v14 }
 0x311   : > { %v1290_v30 = vrot.slane %v1276_v27, %v7896_v14  ;;  %v1129_v36 = vcombine.high %v1119_v22, %v1119_v22  ;;  %v1146_v23 = vcombine.high %v1138_v54, %v1138_v54  ;;  %v1154_v37 = vrot.slane %v1138_v54, %v7896_v14 }
 0x312   : > { %v1130_v38 = vcombine.high %v1126_v33, %v1126_v33  ;;  %v1147_v39 = vcombine.high %v1145_v35, %v1145_v35  ;;  %v1161_v42 = vrot.slane %v1145_v35, %v7896_v14  ;;  %v1292_v43 = vcombine.low %v1081_v7, %v1105_v20 }
 0x313   : > { %v1291_v44 = vcombine.low %v1283_v28, %v1290_v30  ;;  %v1168_v31 = vrot.slane %v1146_v23, %v7896_v14  ;;  %v1176_v45 = vcombine.high %v1154_v37, %v1154_v37  ;;  %v1293_v46 = vcombine.low %v1119_v22, %v1127_v29 }
 0x314   : > { %v1175_v47 = vrot.slane %v1147_v39, %v7896_v14  ;;  %v1177_v40 = vcombine.high %v1161_v42, %v1161_v42  ;;  %v1294_v48 = vcombine.low %v1129_v36, %v1112_v26  ;;  %v1295_v50 = vcombine.low %v1126_v33, %v1128_v34 }
 0x315   : > { %v1410_v51 = vpack.c.bf16 %v1291_v44, %v1242_v32  ;;  %v1178_v52 = vcombine.high %v1168_v31, %v1168_v31  ;;  %v1302_v53 = vrot.slane %v1292_v43, %v7896_v14  ;;  %v1309_v54 = vrot.slane %v1293_v46, %v7896_v14 }
 0x316   : > { %v1316_v55 = vrot.slane %v1294_v48, %v7896_v14  ;;  %v1323_v56 = vrot.slane %v1295_v50, %v7896_v14  ;;  %v1341_v57 = vcombine.low %v1130_v38, %v1154_v37  ;;  %v1342_v58 = vcombine.low %v1168_v31, %v1176_v45 }
 0x317   : > { %6152 = vmatmul.mubr.msk.bf16.vlgmr.msra.gmra.mrb[0].mxu1 %vm809_vm0, %v1410_v51  ;;  %v1324_v41 = vcombine.low %v1302_v53, %v1309_v54  ;;  %v1343_v59 = vcombine.low %v1178_v52, %v1161_v42  ;;  %v1344_v61 = vcombine.low %v1175_v47, %v1177_v40  ;;  %v1186_v1 = vrot.slane %v7917_v60, %v7896_v14 }
 0x318   : > { %6155 = vmatprep.mubr.msk.bf16.mxu1 %vm7301_vm2, %v7300_v49  ;;  %v1325_v62 = vcombine.low %v1316_v55, %v1323_v56  ;;  %v1351_v63 = vrot.slane %v1341_v57, %v7896_v14  ;;  %v1358_v0 = vrot.slane %v1342_v58, %v7896_v14  ;;  %v1179_v4 = vcombine.high %v1175_v47, %v1175_v47 }
 0x319   : > { %v1365_v2 = vrot.slane %v1343_v59, %v7896_v14  ;;  %v1372_v3 = vrot.slane %v1344_v61, %v7896_v14  ;;  %v1332_v6 = vrot.slane %v1324_v41, %v7896_v14  ;;  %v1193_v9 = vrot.slane %v1186_v1, %v7896_v14 }
 0x31a   : > { %v1373_v5 = vcombine.low %v1351_v63, %v1358_v0  ;;  %v1339_v7 = vrot.slane %v1325_v62, %v7896_v14 }
 0x31b   : > { %v1374_v8 = vcombine.low %v1365_v2, %v1372_v3  ;;  %v1390_v12 = vcombine.low %v1179_v4, %v1193_v9 }
 0x31c   : > { %v1381_v10 = vrot.slane %v1373_v5, %v7896_v14  ;;  %v1340_v13 = vcombine.low %v1332_v6, %v1339_v7 }
 0x31d   : > { %v1388_v11 = vrot.slane %v1374_v8, %v7896_v14  ;;  %v1397_v16 = vrot.slane %v1390_v12, %v7896_v14 }
 0x31f   : > { %v1389_v60 = vcombine.low %v1381_v10, %v1388_v11  ;;  %v1404_v17 = vrot.slane %v1397_v16, %v7896_v14 }
 0x321   : > { %v1411_v15 = vpack.c.bf16 %v1389_v60, %v1340_v13  ;;  %v1412_v18 = vpack.c.bf16 %v1404_v17, %v1404_v17 }
 0x323   : > { %6156 = vmatmul.mubr.msk.bf16.gmra.mrb[4].mxu1 %vm809_vm0, %v1411_v15 }
 0x324   : > { %6159 = vmatprep.mubr.msk.bf16.mxu1 %vm7301_vm2, %v7300_v49 }
 0x32b   : > { %6160 = vmatmul.mubr.msk.bf16.gmra.mrb[8].mxu1 %vm809_vm0, %v1412_v18 }
 0x3ea   : > { %v1474_v20 = vpop.f32.mrb[0].mxu1 }
 0x3eb   : > { %v1475_v21 = vadd.f32 %v7967_v19, %v1474_v20  ;;  %v6153_v24 = vpop.f32.mrb[1].mxu1 }
 0x3ec   : > { %v1477_v25 = vpop.f32.mrb[2].mxu1 }
 0x3ed   : > { %v1501_v26 = vcombine.high %v1475_v21, %v1475_v21  ;;  %v1508_v27 = vrot.slane %v1475_v21, %v7896_v14  ;;  %v1478_v28 = vadd.f32 %v7967_v19, %v1477_v25  ;;  %v6154_v22 = vpop.f32.mrb[3].mxu1 }
 0x3ef   : > { %v1515_v29 = vrot.slane %v1501_v26, %v7896_v14  ;;  %v1516_v32 = vcombine.high %v1508_v27, %v1508_v27  ;;  %v1550_v33 = vcombine.high %v1478_v28, %v1478_v28  ;;  %v1557_v34 = vrot.slane %v1478_v28, %v7896_v14 }
 0x3f0   : > { %v1524_v30 = vrot.slane %v1508_v27, %v7896_v14 }
 0x3f1   : > { %v1517_v35 = vcombine.high %v1515_v29, %v1515_v29  ;;  %v1538_v36 = vrot.slane %v1516_v32, %v7896_v14  ;;  %v1564_v23 = vrot.slane %v1550_v33, %v7896_v14  ;;  %v1531_v37 = vrot.slane %v1515_v29, %v7896_v14 }
 0x3f2   : > { %v1565_v38 = vcombine.high %v1557_v34, %v1557_v34  ;;  %v1573_v31 = vrot.slane %v1557_v34, %v7896_v14 }
 0x3f3   : > { %v1545_v39 = vrot.slane %v1517_v35, %v7896_v14  ;;  %v1719_v42 = vcombine.low %v1524_v30, %v1538_v36  ;;  %v5976_v43 = vcombine.high %v1524_v30, %v1538_v36  ;;  %v1566_v44 = vcombine.high %v1564_v23, %v1564_v23 }
 0x3f4   : > { %v1587_v45 = vrot.slane %v1565_v38, %v7896_v14  ;;  %v1580_v50 = vrot.slane %v1564_v23, %v7896_v14 }
 0x3f5   : > { %v1721_v46 = vcombine.low %v1531_v37, %v1545_v39  ;;  %v5977_v47 = vcombine.high %v1531_v37, %v1545_v39  ;;  %v1729_v40 = vrot.slane %v1719_v42, %v7896_v14  ;;  %v1736_v48 = vrot.slane %v5976_v43, %v7896_v14 }
 0x3f6   : > { %v1594_v51 = vrot.slane %v1566_v44, %v7896_v14  ;;  %v1768_v52 = vcombine.low %v1573_v31, %v1587_v45  ;;  %v5978_v53 = vcombine.high %v1573_v31, %v1587_v45  ;;  %v1482_v54 = vpop.f32.mrb[4].mxu1 }
 0x3f7   : > { %v1743_v55 = vrot.slane %v1721_v46, %v7896_v14  ;;  %v1750_v56 = vrot.slane %v5977_v47, %v7896_v14  ;;  %v1751_v57 = vcombine.low %v1729_v40, %v1736_v48  ;;  %v1483_v58 = vadd.f32 %v7967_v19, %v1482_v54  ;;  %v6157_v41 = vpop.f32.mrb[5].mxu1 }
 0x3f8   : > { %v1770_v59 = vcombine.low %v1580_v50, %v1594_v51  ;;  %v5979_v61 = vcombine.high %v1580_v50, %v1594_v51  ;;  %v1778_v62 = vrot.slane %v1768_v52, %v7896_v14  ;;  %v1785_v63 = vrot.slane %v5978_v53, %v7896_v14  ;;  %v1485_v0 = vpop.f32.mrb[6].mxu1 }
 0x3f9   : > { %v1752_v1 = vcombine.low %v1743_v55, %v1750_v56  ;;  %v1759_v2 = vrot.slane %v1751_v57, %v7896_v14  ;;  %v1599_v3 = vcombine.high %v1483_v58, %v1483_v58  ;;  %v1606_v4 = vrot.slane %v1483_v58, %v7896_v14  ;;  %v6158_v5 = vpop.f32.mrb[7].mxu1 }
 0x3fa   : > { %v1792_v6 = vrot.slane %v1770_v59, %v7896_v14  ;;  %v1799_v7 = vrot.slane %v5979_v61, %v7896_v14  ;;  %v1800_v8 = vcombine.low %v1778_v62, %v1785_v63  ;;  %v1486_v9 = vadd.f32 %v7967_v19, %v1485_v0 }
 0x3fb   : > { %v1766_v10 = vrot.slane %v1752_v1, %v7896_v14  ;;  %v1613_v11 = vrot.slane %v1599_v3, %v7896_v14  ;;  %v1614_v12 = vcombine.high %v1606_v4, %v1606_v4  ;;  %v1622_v13 = vrot.slane %v1606_v4, %v7896_v14 }
 0x3fc   : > { %v1801_v60 = vcombine.low %v1792_v6, %v1799_v7  ;;  %v1808_v15 = vrot.slane %v1800_v8, %v7896_v14  ;;  %v1648_v16 = vcombine.high %v1486_v9, %v1486_v9  ;;  %v1655_v17 = vrot.slane %v1486_v9, %v7896_v14 }
 0x3fd   : > { %v1767_v18 = vcombine.low %v1759_v2, %v1766_v10  ;;  %v1615_v20 = vcombine.high %v1613_v11, %v1613_v11  ;;  %v1629_v21 = vrot.slane %v1613_v11, %v7896_v14  ;;  %v1636_v24 = vrot.slane %v1614_v12, %v7896_v14 }
 0x3fe   : > { %v1815_v25 = vrot.slane %v1801_v60, %v7896_v14  ;;  %v1644_v26 = vcombine.high %v1622_v13, %v1622_v13  ;;  %v1823_v27 = vrot.slane %v1622_v13, %v7896_v14  ;;  %v1662_v28 = vrot.slane %v1648_v16, %v7896_v14  ;;  %v1490_v22 = vpop.f32.mrb[8].mxu1 }
 0x3ff   : > { %v1643_v29 = vrot.slane %v1615_v20, %v7896_v14  ;;  %v1645_v32 = vcombine.high %v1629_v21, %v1629_v21  ;;  %v1646_v33 = vcombine.high %v1636_v24, %v1636_v24  ;;  %v1663_v34 = vcombine.high %v1655_v17, %v1655_v17  ;;  %v6161_v35 = vpop.f32.mrb[9].mxu1 }
 0x400   : > { %v1816_v30 = vcombine.low %v1808_v15, %v1815_v25  ;;  %v1830_v36 = vrot.slane %v1823_v27, %v7896_v14  ;;  %v1831_v23 = vcombine.low %v1636_v24, %v1644_v26  ;;  %v1664_v37 = vcombine.high %v1662_v28, %v1662_v28  ;;  %v1493_v38 = vpop.f32.mrb[10].mxu1 }
 0x401   : > { %v1832_v39 = vcombine.low %v1646_v33, %v1629_v21  ;;  %v1833_v42 = vcombine.low %v1643_v29, %v1645_v32  ;;  %v1647_v43 = vcombine.high %v1643_v29, %v1643_v29  ;;  %v1671_v44 = vrot.slane %v1655_v17, %v7896_v14  ;;  %v6162_v31 = vpop.f32.mrb[11].mxu1 }
 0x402   : > { %v8008_v45 = vpack.c.bf16 %v1816_v30, %v1767_v18  ;;  %v1841_v46 = vrot.slane %v1831_v23, %v7896_v14  ;;  %v8011_v47 = vpack.c.bf16 %v1830_v36, %v1830_v36  ;;  %v1678_v40 = vrot.slane %v1662_v28, %v7896_v14 }
 0x403   : > { %v1848_v48 = vrot.slane %v1832_v39, %v7896_v14  ;;  %v1685_v50 = vrot.slane %v1663_v34, %v7896_v14  ;;  %v1692_v51 = vrot.slane %v1664_v37, %v7896_v14  ;;  %v1693_v52 = vcombine.high %v1671_v44, %v1671_v44 }
 0x404   : > { %v1694_v53 = vcombine.high %v1678_v40, %v1678_v40  ;;  %v1834_v54 = vcombine.low %v1647_v43, %v1671_v44  ;;  %v1491_v55 = vadd.f32 %v7967_v19, %v1490_v22  ;;  %1957 = vrot.lane.b32.xlu1 %v8011_v47, %s7303_s2  ;;  %v1855_v58 = vrot.slane %v1833_v42, %v7896_v14 }
 0x405   : > { %v1863_v56 = vcombine.low %v1841_v46, %v1848_v48  ;;  %v1695_v57 = vcombine.high %v1685_v50, %v1685_v50  ;;  %1955 = vrot.lane.b32.xlu0 %v8008_v45, %s7303_s2  ;;  %v1880_v59 = vcombine.low %v1685_v50, %v1693_v52  ;;  %v1696_v61 = vcombine.high %v1692_v51, %v1692_v51 }
 0x406   : > { %v1862_v41 = vrot.slane %v1834_v54, %v7896_v14  ;;  %v1703_v62 = vrot.slane %v1491_v55, %v7896_v14  ;;  %6167 = vmatprep.mubr.msk.bf16.mxu1 %vm1959_vm3, %v8008_v45  ;;  %v1882_v63 = vcombine.low %v1692_v51, %v1694_v53 }
 0x407   : > { %v1881_v19 = vcombine.low %v1695_v57, %v1678_v40  ;;  %v1871_v4 = vrot.slane %v1863_v56, %v7896_v14  ;;  %v1890_v6 = vrot.slane %v1880_v59, %v7896_v14 }
 0x408   : > { %v1864_v0 = vcombine.low %v1855_v58, %v1862_v41  ;;  %v1704_v1 = vcombine.high %v1703_v62, %v1703_v62  ;;  %v1711_v2 = vrot.slane %v1703_v62, %v7896_v14  ;;  %v1904_v8 = vrot.slane %v1882_v63, %v7896_v14 }
 0x409   : > { %v1897_v3 = vrot.slane %v1881_v19, %v7896_v14 }
 0x40a   : > { %v1878_v5 = vrot.slane %v1864_v0, %v7896_v14  ;;  %v1883_v7 = vcombine.low %v1696_v61, %v1711_v2  ;;  %v1718_v11 = vrot.slane %v1704_v1, %v7896_v14  ;;  %v7305_v1 = vmov 0  }
 0x40b   : > { %v1912_v10 = vcombine.low %v1890_v6, %v1897_v3  ;;  %v8083_v2 = vsel %vm2169_vm6, 65535, %v7305_v1 }
 0x40c   : > { %v1879_v9 = vcombine.low %v1871_v4, %v1878_v5  ;;  %v1911_v12 = vrot.slane %v1883_v7, %v7896_v14  ;;  %v1935_v16 = vrot.slane %v1718_v11, %v7896_v14 }
 0x40d   : > { %v1920_v60 = vrot.slane %v1912_v10, %v7896_v14 }
 0x40e   : > { %v1913_v13 = vcombine.low %v1904_v8, %v1911_v12  ;;  %v1942_v18 = vrot.slane %v1935_v16, %v7896_v14 }
 0x410   : > { %v1927_v15 = vrot.slane %v1913_v13, %v7896_v14  ;;  %v8045_v21 = vpack.c.bf16 %v1942_v18, %v1942_v18 }
 0x412   : > { %v1928_v17 = vcombine.low %v1920_v60, %v1927_v15 }
 0x414   : > { %v8039_v20 = vpack.c.bf16 %v1928_v17, %v1879_v9 }
 0x416   : > { %2022 = vrot.lane.b32.xlu1 %v8039_v20, %s7303_s2  ;;  %6175 = vmatprep.mubr.msk.bf16.mxu0 %vm1959_vm3, %v8039_v20 }
 0x41a   : > { %2024 = vrot.lane.b32.xlu1 %v8045_v21, %s7303_s2  ;;  %s7317_s2 = smov 24  }
 0x476   : > { %v1958_v26 = vpop.permute.xlu1 %1957 }
 0x477   : > { %v1956_v24 = vpop.permute.xlu0 %1955  ;;  %v1970_v27 = vsel %vm1959_vm3, %v1958_v26, 0 }
 0x478   : > { %6351 = vmatprep.subr.msk.bf16.mxu1 %vm1959_vm3, %v1956_v24  ;;  %v1967_v25 = vsel %vm1959_vm3, %v1956_v24, 0 }
 0x479   : > { %6164 = vmatpush3.bf16.xpose.msra.mxu1 %v1967_v25 }
 0x47a   : > { %6352 = vmatprep.subr.msk.bf16.mxu1 %vm1959_vm3, %v1958_v26 }
 0x481   : > { %6166 = vmatpush3.bf16.xpose.msra.mxu1 %v1970_v27 }
 0x488   : > { %v2023_v28 = vpop.permute.xlu1 %2022  ;;  %6168 = vmatmul.mubr.msk.bf16.vlgmr.msra.gmra.mrb[12].mxu1 %vm1959_vm3, %v8011_v47 }
 0x489   : > { %6353 = vmatprep.subr.msk.bf16.mxu0 %vm1959_vm3, %v2023_v28  ;;  %v2033_v22 = vsel %vm1959_vm3, %v2023_v28, 0 }
 0x48a   : > { %6172 = vmatpush3.bf16.xpose.msra.mxu0 %v2033_v22 }
 0x48c   : > { %v2025_v29 = vpop.permute.xlu1 %2024 }
 0x48d   : > { %6354 = vmatprep.subr.msk.bf16.mxu0 %vm1959_vm3, %v2025_v29  ;;  %v2036_v32 = vsel %vm1959_vm3, %v2025_v29, 0 }
 0x492   : > { %6174 = vmatpush3.bf16.xpose.msra.mxu0 %v2036_v32 }
 0x499   : > { %6176 = vmatmul.mubr.msk.bf16.vlgmr.msra.gmra.mrb[0].mxu0 %vm1959_vm3, %v8045_v21 }
 0x55b   : > { %v6169_v33 = vpop.f32.mrb[12].mxu1 }
 0x55c   : > { %v2006_v34 = vpop.f32.mrb[13].mxu1  ;;  %v2094_v35 = vsel %vm2093_vm4, %v6169_v33, -inf }
 0x55d   : > { %2095 = vmax.xlane.f32.xlu0 %v2094_v35  ;;  %v6170_v30 = vpop.f32.mrb[14].mxu1  ;;  %v2087_v37 = vsel %vm2086_vm5, %v2006_v34, -inf }
 0x55e   : > { %v2009_v36 = vpop.f32.mrb[15].mxu1 }
 0x55f   : > { %v2090_v23 = vsel %vm2086_vm5, %v2009_v36, -inf }
 0x560   : > { %2091 = vmax.xlane.f32.xlu1 %v2090_v23 }
 0x561   : > { %2088 = vmax.xlane.f32.xlu0 %v2087_v37 }
 0x56c   : > { %v6177_v38 = vpop.f32.mrb[0].mxu0 }
 0x56d   : > { %v2072_v39 = vpop.f32.mrb[1].mxu0  ;;  %v2103_v42 = vsel %vm2093_vm4, %v6177_v38, -inf }
 0x56e   : > { %v6178_v43 = vpop.f32.mrb[2].mxu0  ;;  %2104 = vmax.xlane.f32.xlu1 %v2103_v42  ;;  %v2097_v44 = vsel %vm2086_vm5, %v2072_v39, -inf }
 0x56f   : > { %v2075_v31 = vpop.f32.mrb[3].mxu0  ;;  %2098 = vmax.xlane.f32.xlu0 %v2097_v44 }
 0x570   : > { %v2100_v46 = vsel %vm2086_vm5, %v2075_v31, -inf }
 0x573   : > { %2101 = vmax.xlane.f32.xlu0 %v2100_v46 }
 0x57f   : > { %2160 = vrot.lane.b32.xlu1 %v8011_v47, %s7304_s3 }
 0x583   : > { %2223 = vrot.lane.b32.xlu1 %v8039_v20, %s7304_s3 }
 0x587   : > { %2225 = vrot.lane.b32.xlu1 %v8045_v21, %s7304_s3 }
 0x589   : > { %2158 = vrot.lane.b32.xlu0 %v8008_v45, %s7304_s3  ;;  %s8857_s3 = sld [smem:[#allocation40_spill]] }
 0x5ea   : > { %v2096_v40 = vpop.xlane.xlu0 %2095 }
 0x5eb   : > { %v2108_v48 = vsub.f32 %v6169_v33, %v2096_v40 }
 0x5ed   : > { %v2116_v50 = vmul.f32 1.442695, %v2108_v48  ;;  %v2092_v51 = vpop.xlane.xlu1 %2091 }
 0x5ee   : > { %v2107_v52 = vsub.f32 %v2009_v36, %v2092_v51  ;;  %v2089_v53 = vpop.xlane.xlu0 %2088 }
 0x5ef   : > { %6621 = vpow2.f32 %v2116_v50  ;;  %v2106_v54 = vsub.f32 %v2006_v34, %v2089_v53 }
 0x5f0   : > { %v2114_v55 = vmul.f32 1.442695, %v2107_v52 }
 0x5f1   : > { %v2112_v56 = vmul.f32 1.442695, %v2106_v54 }
 0x5f2   : > { %6623 = vpow2.f32 %v2114_v55 }
 0x5f3   : > { %6625 = vpow2.f32 %v2112_v56 }
 0x5f9   : > { %v8071_v57 = vpop.eup %6621 }
 0x5fa   : > { %v2130_v58 = vsel %vm2093_vm4, %v8071_v57, 0.0 }
 0x5fb   : > { %2131 = vadd.xlane.f32.xlu0 %v2130_v58  ;;  %v2105_v59 = vpop.xlane.xlu1 %2104 }
 0x5fc   : > { %v8075_v41 = vpop.eup %6623  ;;  %v2099_v61 = vpop.xlane.xlu0 %2098  ;;  %v2111_v7 = vsub.f32 %v6177_v38, %v2105_v59 }
 0x5fd   : > { %v8077_v62 = vpop.eup %6625  ;;  %v2127_v19 = vsel %vm2086_vm5, %v8075_v41, 0.0  ;;  %v2109_v10 = vsub.f32 %v2072_v39, %v2099_v61 }
 0x5fe   : > { %2128 = vadd.xlane.f32.xlu1 %v2127_v19  ;;  %v2124_v63 = vsel %vm2086_vm5, %v8077_v62, 0.0  ;;  %v2122_v9 = vmul.f32 1.442695, %v2111_v7 }
 0x5ff   : > { %2125 = vadd.xlane.f32.xlu0 %v2124_v63  ;;  %v2161_v3 = vpop.permute.xlu1 %2160  ;;  %v2118_v12 = vmul.f32 1.442695, %v2109_v10 }
 0x600   : > { %v2102_v0 = vpop.xlane.xlu0 %2101  ;;  %v2173_v5 = vand.u32 %v8083_v2, %v2161_v3  ;;  %6627 = vpow2.f32 %v2122_v9 }
 0x601   : > { %v2110_v8 = vsub.f32 %v2075_v31, %v2102_v0 }
 0x603   : > { %v2224_v6 = vpop.permute.xlu1 %2223  ;;  %v2120_v11 = vmul.f32 1.442695, %v2110_v8 }
 0x604   : > { %v2159_v4 = vpop.permute.xlu0 %2158 }
 0x605   : > { %6179 = vmatprep.subr.bf16.mxu1 %v2159_v4  ;;  %6629 = vpow2.f32 %v2120_v11 }
 0x606   : > { %6180 = vmatpush3.bf16.msra.mxu1 %v2159_v4  ;;  %6631 = vpow2.f32 %v2118_v12 }
 0x607   : > { %6181 = vmatprep.subr.bf16.mxu1 %v2173_v5  ;;  %v2226_v24 = vpop.permute.xlu1 %2225 }
 0x608   : > { %v2235_v39 = vand.u32 %v2226_v24, %v8083_v2 }
 0x60a   : > { %6182 = vmatpush3.bf16.msra.mxu1 %v2173_v5  ;;  %v6628_v13 = vpop.eup %6627 }
 0x60b   : > { %6187 = vmatprep.subr.bf16.mxu1 %v2224_v6  ;;  %v2139_v15 = vsel %vm2093_vm4, %v6628_v13, 0.0 }
 0x60f   : > { %2291 = vrot.lane.b32.xlu1 %v8011_v47, %s7306_s26  ;;  %v6630_v60 = vpop.eup %6629 }
 0x610   : > { %v6632_v16 = vpop.eup %6631  ;;  %v2136_v17 = vsel %vm2086_vm5, %v6630_v60, 0.0 }
 0x611   : > { %v2133_v18 = vsel %vm2086_vm5, %v6632_v16, 0.0 }
 0x615   : > { %2289 = vrot.lane.b32.xlu0 %v8008_v45, %s7306_s26 }
 0x633   : > { %2140 = vadd.xlane.f32.xlu1 %v2139_v15 }
 0x634   : > { %2137 = vadd.xlane.f32.xlu0 %v2136_v17 }
 0x637   : > { %2134 = vadd.xlane.f32.xlu1 %v2133_v18 }
 0x648   : > { %2285 = vrot.lane.b32.xlu1 %v8008_v45, %s7307_s20 }
 0x64a   : > { %2357 = vrot.lane.b32.xlu0 %v8039_v20, %s7306_s26 }
 0x64c   : > { %2359 = vrot.lane.b32.xlu1 %v8045_v21, %s7306_s26  ;;  %s5963_s26 = sshll.u32 %s7813_s19, 1 }
 0x64e   : > { %2287 = vrot.lane.b32.xlu0 %v8011_v47, %s7307_s20 }
 0x650   : > { %2355 = vrot.lane.b32.xlu1 %v8045_v21, %s7307_s20 }
 0x652   : > { %2353 = vrot.lane.b32.xlu0 %v8039_v20, %s7307_s20  ;;  %s6054_s20 = sshll.u32 %s8857_s3, 5 }
 0x688   : > { %v2132_v25 = vpop.xlane.xlu0 %2131 }
 0x689   : > { %6633 = vrcp.f32 %v2132_v25 }
 0x68b   : > { %v2129_v26 = vpop.xlane.xlu1 %2128 }
 0x68c   : > { %6635 = vrcp.f32 %v2129_v26  ;;  %v2126_v27 = vpop.xlane.xlu0 %2125 }
 0x68d   : > { %6637 = vrcp.f32 %v2126_v27 }
 0x68f   : > { %v2292_v29 = vpop.permute.xlu1 %2291 }
 0x690   : > { %v2290_v28 = vpop.permute.xlu0 %2289  ;;  %v2303_v23 = vsel %vm1959_vm3, %v2292_v29, 0 }
 0x691   : > { %6355 = vmatprep.subr.msk.bf16.mxu0 %vm1959_vm3, %v2290_v28  ;;  %v2300_v22 = vsel %vm1959_vm3, %v2290_v28, 0 }
 0x692   : > { %6196 = vmatpush3.bf16.xpose.msra.mxu0 %v2300_v22 }
 0x693   : > { %6356 = vmatprep.subr.msk.bf16.mxu0 %vm1959_vm3, %v2292_v29  ;;  %v6634_v32 = vpop.eup %6633 }
 0x694   : > { %v2150_v30 = vmul.f32 %v6634_v32, %v8071_v57 }
 0x696   : > { %v6636_v33 = vpop.eup %6635  ;;  %v2155_v38 = vpack.c.bf16 %v2150_v30, %v2150_v30 }
 0x697   : > { %v6638_v34 = vpop.eup %6637  ;;  %v2149_v35 = vmul.f32 %v6636_v33, %v8075_v41 }
 0x698   : > { %v2148_v36 = vmul.f32 %v6638_v34, %v8077_v62 }
 0x69a   : > { %6198 = vmatpush3.bf16.xpose.msra.mxu0 %v2303_v23  ;;  %v2154_v37 = vpack.c.bf16 %v2149_v35, %v2148_v36 }
 0x69c   : > { %6183 = vmatprep.mubr.msk.bf16.mxu1 %vm2086_vm5, %v2154_v37 }
 0x69d   : > { %6184 = vmatmul.mubr.msk.bf16.vlgmr.msra.gmra.mrb[16].mxu1 %vm2086_vm5, %v2155_v38 }
 0x69e   : > { %6188 = vmatpush3.bf16.msra.mxu1 %v2224_v6 }
 0x69f   : > { %6189 = vmatprep.subr.bf16.mxu1 %v2235_v39 }
 0x6a2   : > { %6190 = vmatpush3.bf16.msra.mxu1 %v2235_v39 }
 0x6c0   : > { %v2141_v42 = vpop.xlane.xlu1 %2140 }
 0x6c1   : > { %v2138_v43 = vpop.xlane.xlu0 %2137  ;;  %6639 = vrcp.f32 %v2141_v42 }
 0x6c2   : > { %6641 = vrcp.f32 %v2138_v43 }
 0x6c4   : > { %v2135_v44 = vpop.xlane.xlu1 %2134 }
 0x6c5   : > { %6643 = vrcp.f32 %v2135_v44  ;;  %v2358_v31 = vpop.permute.xlu0 %2357 }
 0x6c6   : > { %6357 = vmatprep.subr.msk.bf16.mxu1 %vm1959_vm3, %v2358_v31  ;;  %v2368_v58 = vsel %vm1959_vm3, %v2358_v31, 0 }
 0x6c8   : > { %v2286_v46 = vpop.permute.xlu1 %2285 }
 0x6c9   : > { %v2288_v40 = vpop.permute.xlu0 %2287  ;;  %6199 = vmatprep.mubr.msk.bf16.mxu0 %vm1959_vm3, %v2286_v46 }
 0x6ca   : > { %6200 = vmatmul.mubr.msk.bf16.vlgmr.msra.gmra.mrb[4].mxu0 %vm1959_vm3, %v2288_v40 }
 0x6cb   : > { %v6640_v48 = vpop.eup %6639 }
 0x6cc   : > { %v6642_v50 = vpop.eup %6641  ;;  %v2153_v52 = vmul.f32 %v6640_v48, %v6628_v13  ;;  %v2360_v41 = vpop.permute.xlu1 %2359 }
 0x6cd   : > { %v2152_v54 = vmul.f32 %v6642_v50, %v6630_v60  ;;  %v2354_v57 = vpop.permute.xlu0 %2353  ;;  %v2371_v59 = vsel %vm1959_vm3, %v2360_v41, 0 }
 0x6ce   : > { %v2157_v56 = vpack.c.bf16 %v2153_v52, %v2153_v52 }
 0x6cf   : > { %v6644_v51 = vpop.eup %6643 }
 0x6d0   : > { %v2151_v53 = vmul.f32 %v6644_v51, %v6632_v16  ;;  %v2356_v61 = vpop.permute.xlu1 %2355 }
 0x6d2   : > { %v2156_v55 = vpack.c.bf16 %v2152_v54, %v2151_v53 }
 0x6d4   : > { %6191 = vmatprep.mubr.msk.bf16.mxu1 %vm2086_vm5, %v2156_v55 }
 0x6d5   : > { %6192 = vmatmul.mubr.msk.bf16.vlgmr.msra.gmra.mrb[20].mxu1 %vm2086_vm5, %v2157_v56 }
 0x6d6   : > { %6204 = vmatpush3.bf16.xpose.msra.mxu1 %v2368_v58  ;;  %6207 = vmatprep.mubr.msk.bf16.mxu1 %vm1959_vm3, %v2354_v57 }
 0x6d7   : > { %6358 = vmatprep.subr.msk.bf16.mxu1 %vm1959_vm3, %v2360_v41 }
 0x6de   : > { %6206 = vmatpush3.bf16.xpose.msra.mxu1 %v2371_v59 }
 0x6e5   : > { %6208 = vmatmul.mubr.msk.bf16.vlgmr.msra.gmra.mrb[24].mxu1 %vm1959_vm3, %v2356_v61 }
 0x770   : > { %v8117_v62 = vpop.f32.mrb[16].mxu1 }
 0x771   : > { %v8119_v19 = vpop.f32.mrb[17].mxu1 }
 0x772   : > { %v6186_v63 = vpop.f32.mrb[18].mxu1 }
 0x773   : > { %v8121_v0 = vpop.f32.mrb[19].mxu1 }
 0x79d   : > { %v6201_v1 = vpop.f32.mrb[4].mxu0 }
 0x79e   : > { %v2339_v3 = vpop.f32.mrb[5].mxu0  ;;  %v2427_v8 = vsel %vm2093_vm4, %v6201_v1, -inf }
 0x79f   : > { %v6202_v4 = vpop.f32.mrb[6].mxu0  ;;  %v2421_v5 = vsel %vm2086_vm5, %v2339_v3, -inf }
 0x7a0   : > { %2422 = vmax.xlane.f32.xlu0 %v2421_v5  ;;  %v2342_v6 = vpop.f32.mrb[7].mxu0 }
 0x7a1   : > { %v2424_v7 = vsel %vm2086_vm5, %v2342_v6, -inf }
 0x7a2   : > { %2425 = vmax.xlane.f32.xlu1 %v2424_v7 }
 0x7a4   : > { %2428 = vmax.xlane.f32.xlu0 %v2427_v8 }
 0x7a8   : > { %v8126_v9 = vpop.f32.mrb[20].mxu1 }
 0x7a9   : > { %v8128_v10 = vpop.f32.mrb[21].mxu1 }
 0x7aa   : > { %v6194_v11 = vpop.f32.mrb[22].mxu1 }
 0x7ab   : > { %v8130_v12 = vpop.f32.mrb[23].mxu1 }
 0x7b8   : > { %v6209_v13 = vpop.f32.mrb[24].mxu1 }
 0x7b9   : > { %v2407_v60 = vpop.f32.mrb[25].mxu1  ;;  %v2436_v15 = vsel %vm2093_vm4, %v6209_v13, -inf }
 0x7ba   : > { %2437 = vmax.xlane.f32.xlu1 %v2436_v15  ;;  %v6210_v16 = vpop.f32.mrb[26].mxu1  ;;  %v2430_v17 = vsel %vm2086_vm5, %v2407_v60, -inf }
 0x7bb   : > { %2431 = vmax.xlane.f32.xlu0 %v2430_v17  ;;  %v2410_v18 = vpop.f32.mrb[27].mxu1 }
 0x7bc   : > { %v2433_v24 = vsel %vm2086_vm5, %v2410_v18, -inf }
 0x7bf   : > { %2434 = vmax.xlane.f32.xlu0 %v2433_v24 }
 0x82d   : > { %v2423_v25 = vpop.xlane.xlu0 %2422 }
 0x82e   : > { %v2439_v26 = vsub.f32 %v2339_v3, %v2423_v25 }
 0x82f   : > { %v2426_v27 = vpop.xlane.xlu1 %2425 }
 0x830   : > { %v2445_v28 = vmul.f32 1.442695, %v2439_v26  ;;  %v2440_v22 = vsub.f32 %v2342_v6, %v2426_v27 }
 0x831   : > { %v2429_v29 = vpop.xlane.xlu0 %2428 }
 0x832   : > { %6645 = vpow2.f32 %v2445_v28  ;;  %v2447_v32 = vmul.f32 1.442695, %v2440_v22  ;;  %v2441_v33 = vsub.f32 %v6201_v1, %v2429_v29 }
 0x834   : > { %6647 = vpow2.f32 %v2447_v32  ;;  %v2449_v34 = vmul.f32 1.442695, %v2441_v33 }
 0x836   : > { %6649 = vpow2.f32 %v2449_v34 }
 0x83c   : > { %v8135_v35 = vpop.eup %6645 }
 0x83d   : > { %v2457_v30 = vsel %vm2086_vm5, %v8135_v35, 0.0 }
 0x83e   : > { %v8139_v36 = vpop.eup %6647  ;;  %2458 = vadd.xlane.f32.xlu0 %v2457_v30 }
 0x83f   : > { %v2460_v23 = vsel %vm2086_vm5, %v8139_v36, 0.0 }
 0x840   : > { %v8143_v37 = vpop.eup %6649  ;;  %2461 = vadd.xlane.f32.xlu1 %v2460_v23 }
 0x841   : > { %v2463_v38 = vsel %vm2093_vm4, %v8143_v37, 0.0 }
 0x842   : > { %2464 = vadd.xlane.f32.xlu0 %v2463_v38 }
 0x847   : > { %v2438_v44 = vpop.xlane.xlu1 %2437 }
 0x848   : > { %v2432_v39 = vpop.xlane.xlu0 %2431  ;;  %v2444_v46 = vsub.f32 %v6209_v13, %v2438_v44 }
 0x849   : > { %v2442_v48 = vsub.f32 %v2407_v60, %v2432_v39 }
 0x84a   : > { %v2455_v40 = vmul.f32 1.442695, %v2444_v46 }
 0x84b   : > { %v2451_v50 = vmul.f32 1.442695, %v2442_v48 }
 0x84c   : > { %v2435_v42 = vpop.xlane.xlu0 %2434 }
 0x84d   : > { %v2443_v43 = vsub.f32 %v2410_v18, %v2435_v42 }
 0x84f   : > { %v2453_v31 = vmul.f32 1.442695, %v2443_v43 }
 0x851   : > { %2493 = vrot.lane.b32.xlu1 %v8011_v47, %s7308_s1  ;;  %6651 = vpow2.f32 %v2453_v31 }
 0x852   : > { %6653 = vpow2.f32 %v2455_v40 }
 0x853   : > { %6655 = vpow2.f32 %v2451_v50 }
 0x855   : > { %2553 = vrot.lane.b32.xlu1 %v8039_v20, %s7308_s1 }
 0x858   : > { %2491 = vrot.lane.b32.xlu0 %v8008_v45, %s7308_s1 }
 0x859   : > { %2555 = vrot.lane.b32.xlu1 %v8045_v21, %s7308_s1  ;;  %s796_s1 = scalar_lea.vmem [#allocation27], %s5963_s26 }
 0x85b   : > { %v8153_v51 = vpop.eup %6651 }
 0x85c   : > { %2619 = vrot.lane.b32.xlu0 %v8008_v45, %s7309_s17  ;;  %v2469_v52 = vsel %vm2086_vm5, %v8153_v51, 0.0  ;;  %v8157_v53 = vpop.eup %6653 }
 0x85d   : > { %2621 = vrot.lane.b32.xlu1 %v8011_v47, %s7309_s17  ;;  %v2472_v54 = vsel %vm2093_vm4, %v8157_v53, 0.0  ;;  %v8161_v55 = vpop.eup %6655 }
 0x85e   : > { %v2466_v56 = vsel %vm2086_vm5, %v8161_v55, 0.0 }
 0x87b   : > { %2470 = vadd.xlane.f32.xlu0 %v2469_v52 }
 0x881   : > { %2473 = vadd.xlane.f32.xlu1 %v2472_v54 }
 0x885   : > { %2467 = vadd.xlane.f32.xlu1 %v2466_v56 }
 0x891   : > { %2687 = vrot.lane.b32.xlu0 %v8039_v20, %s7309_s17 }
 0x895   : > { %2617 = vrot.lane.b32.xlu0 %v8011_v47, %s7310_s27 }
 0x896   : > { %2615 = vrot.lane.b32.xlu1 %v8008_v45, %s7310_s27 }
 0x899   : > { %2683 = vrot.lane.b32.xlu0 %v8039_v20, %s7310_s27 }
 0x89a   : > { %2689 = vrot.lane.b32.xlu1 %v8045_v21, %s7309_s17  ;;  %s5692_s17 = sshll.u32 %s796_s1, 4  ;;  %s8742_s17 = int_to_ptr.vmem [resolvable:$true] %s5692_s17 }
 0x89e   : > { %2685 = vrot.lane.b32.xlu1 %v8045_v21, %s7310_s27 }
 0x8cb   : > { %v2459_v57 = vpop.xlane.xlu0 %2458 }
 0x8cc   : > { %6657 = vrcp.f32 %v2459_v57 }
 0x8cd   : > { %v2462_v58 = vpop.xlane.xlu1 %2461 }
 0x8ce   : > { %6659 = vrcp.f32 %v2462_v58 }
 0x8cf   : > { %v2465_v41 = vpop.xlane.xlu0 %2464 }
 0x8d0   : > { %6661 = vrcp.f32 %v2465_v41 }
 0x8d1   : > { %v2494_v59 = vpop.permute.xlu1 %2493 }
 0x8d2   : > { %v2503_v63 = vand.u32 %v2494_v59, %v8083_v2 }
 0x8d3   : > { %v2492_v61 = vpop.permute.xlu0 %2491 }
 0x8d4   : > { %6211 = vmatprep.subr.bf16.mxu0 %v2492_v61 }
 0x8d5   : > { %6212 = vmatpush3.bf16.msra.mxu0 %v2492_v61  ;;  %v2554_v1 = vpop.permute.xlu1 %2553 }
 0x8d6   : > { %v6658_v3 = vpop.eup %6657  ;;  %6213 = vmatprep.subr.bf16.mxu0 %v2503_v63  ;;  %6219 = vmatprep.subr.bf16.mxu1 %v2554_v1 }
 0x8d7   : > { %6220 = vmatpush3.bf16.msra.mxu1 %v2554_v1  ;;  %v2620_v5 = vpop.permute.xlu0 %2619  ;;  %v2481_v7 = vmul.f32 %v6658_v3, %v8135_v35 }
 0x8d8   : > { %v6660_v4 = vpop.eup %6659  ;;  %v2630_v17 = vsel %vm1959_vm3, %v2620_v5, 0 }
 0x8d9   : > { %6214 = vmatpush3.bf16.msra.mxu0 %v2503_v63  ;;  %v2556_v6 = vpop.permute.xlu1 %2555  ;;  %v2482_v8 = vmul.f32 %v6660_v4, %v8139_v36 }
 0x8da   : > { %v6662_v11 = vpop.eup %6661  ;;  %v2565_v13 = vand.u32 %v2556_v6, %v8083_v2  ;;  %6359 = vmatprep.subr.msk.bf16.mxu0 %vm1959_vm3, %v2620_v5 }
 0x8db   : > { %v2483_v60 = vmul.f32 %v6662_v11, %v8143_v37  ;;  %v2487_v15 = vpack.c.bf16 %v2482_v8, %v2481_v7 }
 0x8dc   : > { %6221 = vmatprep.subr.bf16.mxu1 %v2565_v13 }
 0x8dd   : > { %6215 = vmatprep.mubr.msk.bf16.mxu0 %vm2086_vm5, %v2487_v15  ;;  %6222 = vmatpush3.bf16.msra.mxu1 %v2565_v13  ;;  %v2488_v16 = vpack.c.bf16 %v2483_v60, %v2483_v60  ;;  %v2622_v18 = vpop.permute.xlu1 %2621 }
 0x8de   : > { %v2633_v24 = vsel %vm1959_vm3, %v2622_v18, 0 }
 0x8df   : > { %6216 = vmatmul.mubr.msk.bf16.vlgmr.msra.gmra.mrb[8].mxu0 %vm2086_vm5, %v2488_v16 }
 0x8e2   : > { %6228 = vmatpush3.bf16.xpose.msra.mxu0 %v2630_v17 }
 0x8e3   : > { %6360 = vmatprep.subr.msk.bf16.mxu0 %vm1959_vm3, %v2622_v18 }
 0x8ea   : > { %6230 = vmatpush3.bf16.xpose.msra.mxu0 %v2633_v24 }
 0x908   : > { %v2471_v25 = vpop.xlane.xlu0 %2470 }
 0x90c   : > { %v2688_v26 = vpop.permute.xlu0 %2687 }
 0x90d   : > { %6361 = vmatprep.subr.msk.bf16.mxu1 %vm1959_vm3, %v2688_v26  ;;  %v2698_v38 = vsel %vm1959_vm3, %v2688_v26, 0 }
 0x90e   : > { %v2474_v27 = vpop.xlane.xlu1 %2473 }
 0x90f   : > { %6663 = vrcp.f32 %v2474_v27 }
 0x910   : > { %6665 = vrcp.f32 %v2471_v25  ;;  %v2618_v29 = vpop.permute.xlu0 %2617 }
 0x912   : > { %v2468_v28 = vpop.xlane.xlu1 %2467 }
 0x913   : > { %6667 = vrcp.f32 %v2468_v28 }
 0x914   : > { %v2684_v39 = vpop.permute.xlu0 %2683 }
 0x916   : > { %v2616_v22 = vpop.permute.xlu1 %2615 }
 0x917   : > { %6231 = vmatprep.mubr.msk.bf16.mxu0 %vm1959_vm3, %v2616_v22 }
 0x918   : > { %6232 = vmatmul.mubr.msk.bf16.vlgmr.msra.gmra.mrb[12].mxu0 %vm1959_vm3, %v2618_v29 }
 0x919   : > { %v6664_v32 = vpop.eup %6663 }
 0x91a   : > { %v6666_v33 = vpop.eup %6665  ;;  %v2486_v35 = vmul.f32 %v6664_v32, %v8157_v53  ;;  %v2690_v42 = vpop.permute.xlu1 %2689 }
 0x91b   : > { %v2485_v36 = vmul.f32 %v6666_v33, %v8153_v51  ;;  %v2701_v43 = vsel %vm1959_vm3, %v2690_v42, 0 }
 0x91c   : > { %v2490_v37 = vpack.c.bf16 %v2486_v35, %v2486_v35 }
 0x91d   : > { %v6668_v34 = vpop.eup %6667 }
 0x91e   : > { %v2484_v30 = vmul.f32 %v6668_v34, %v8161_v55  ;;  %v2686_v44 = vpop.permute.xlu1 %2685 }
 0x920   : > { %v2489_v23 = vpack.c.bf16 %v2485_v36, %v2484_v30 }
 0x922   : > { %6223 = vmatprep.mubr.msk.bf16.mxu1 %vm2086_vm5, %v2489_v23 }
 0x923   : > { %6224 = vmatmul.mubr.msk.bf16.vlgmr.msra.gmra.mrb[28].mxu1 %vm2086_vm5, %v2490_v37 }
 0x924   : > { %6236 = vmatpush3.bf16.xpose.msra.mxu1 %v2698_v38  ;;  %6239 = vmatprep.mubr.msk.bf16.mxu1 %vm1959_vm3, %v2684_v39 }
 0x925   : > { %6362 = vmatprep.subr.msk.bf16.mxu1 %vm1959_vm3, %v2690_v42 }
 0x92c   : > { %6238 = vmatpush3.bf16.xpose.msra.mxu1 %v2701_v43 }
 0x933   : > { %6240 = vmatmul.mubr.msk.bf16.vlgmr.msra.gmra.mrb[32].mxu1 %vm1959_vm3, %v2686_v44 }
 0x9b2   : > { %v8195_v31 = vpop.f32.mrb[8].mxu0 }
 0x9b3   : > { %v8197_v46 = vpop.f32.mrb[9].mxu0 }
 0x9b4   : > { %v6218_v40 = vpop.f32.mrb[10].mxu0 }
 0x9b5   : > { %v8199_v48 = vpop.f32.mrb[11].mxu0 }
 0x9eb   : > { %v6233_v50 = vpop.f32.mrb[12].mxu0 }
 0x9ec   : > { %v2669_v51 = vpop.f32.mrb[13].mxu0  ;;  %v2757_v56 = vsel %vm2093_vm4, %v6233_v50, -inf }
 0x9ed   : > { %v6234_v52 = vpop.f32.mrb[14].mxu0  ;;  %v2751_v53 = vsel %vm2086_vm5, %v2669_v51, -inf }
 0x9ee   : > { %2752 = vmax.xlane.f32.xlu0 %v2751_v53  ;;  %v2672_v54 = vpop.f32.mrb[15].mxu0 }
 0x9ef   : > { %v2754_v55 = vsel %vm2086_vm5, %v2672_v54, -inf }
 0x9f0   : > { %2755 = vmax.xlane.f32.xlu1 %v2754_v55 }
 0x9f2   : > { %2758 = vmax.xlane.f32.xlu0 %v2757_v56 }
 0x9f6   : > { %v8204_v57 = vpop.f32.mrb[28].mxu1 }
 0x9f7   : > { %v8206_v58 = vpop.f32.mrb[29].mxu1 }
 0x9f8   : > { %v6226_v41 = vpop.f32.mrb[30].mxu1 }
 0x9f9   : > { %v8208_v59 = vpop.f32.mrb[31].mxu1 }
 0xa06   : > { %v6241_v61 = vpop.f32.mrb[32].mxu1 }
 0xa07   : > { %v2737_v63 = vpop.f32.mrb[33].mxu1  ;;  %v2766_v1 = vsel %vm2093_vm4, %v6241_v61, -inf }
 0xa08   : > { %2767 = vmax.xlane.f32.xlu1 %v2766_v1  ;;  %v6242_v3 = vpop.f32.mrb[34].mxu1  ;;  %v2760_v4 = vsel %vm2086_vm5, %v2737_v63, -inf }
 0xa09   : > { %2761 = vmax.xlane.f32.xlu0 %v2760_v4  ;;  %v2740_v5 = vpop.f32.mrb[35].mxu1 }
 0xa0a   : > { %v2763_v6 = vsel %vm2086_vm5, %v2740_v5, -inf }
 0xa0d   : > { %2764 = vmax.xlane.f32.xlu0 %v2763_v6 }
 0xa7b   : > { %v2753_v7 = vpop.xlane.xlu0 %2752 }
 0xa7c   : > { %v2769_v8 = vsub.f32 %v2669_v51, %v2753_v7 }
 0xa7d   : > { %v2756_v11 = vpop.xlane.xlu1 %2755 }
 0xa7e   : > { %v2775_v13 = vmul.f32 1.442695, %v2769_v8  ;;  %v2770_v60 = vsub.f32 %v2672_v54, %v2756_v11 }
 0xa7f   : > { %v2759_v15 = vpop.xlane.xlu0 %2758 }
 0xa80   : > { %6669 = vpow2.f32 %v2775_v13  ;;  %v2777_v16 = vmul.f32 1.442695, %v2770_v60  ;;  %v2771_v17 = vsub.f32 %v6233_v50, %v2759_v15 }
 0xa82   : > { %6671 = vpow2.f32 %v2777_v16  ;;  %v2779_v18 = vmul.f32 1.442695, %v2771_v17 }
 0xa84   : > { %6673 = vpow2.f32 %v2779_v18 }
 0xa8a   : > { %v8213_v24 = vpop.eup %6669 }
 0xa8b   : > { %v2787_v25 = vsel %vm2086_vm5, %v8213_v24, 0.0 }
 0xa8c   : > { %v8217_v26 = vpop.eup %6671  ;;  %2788 = vadd.xlane.f32.xlu0 %v2787_v25 }
 0xa8d   : > { %v2790_v27 = vsel %vm2086_vm5, %v8217_v26, 0.0 }
 0xa8e   : > { %v8221_v28 = vpop.eup %6673  ;;  %2791 = vadd.xlane.f32.xlu1 %v2790_v27 }
 0xa8f   : > { %v2793_v22 = vsel %vm2093_vm4, %v8221_v28, 0.0 }
 0xa90   : > { %2794 = vadd.xlane.f32.xlu0 %v2793_v22 }
 0xa95   : > { %v2768_v34 = vpop.xlane.xlu1 %2767 }
 0xa96   : > { %v2762_v29 = vpop.xlane.xlu0 %2761  ;;  %v2774_v30 = vsub.f32 %v6241_v61, %v2768_v34 }
 0xa97   : > { %v2772_v23 = vsub.f32 %v2737_v63, %v2762_v29 }
 0xa98   : > { %v2785_v36 = vmul.f32 1.442695, %v2774_v30 }
 0xa99   : > { %v2781_v37 = vmul.f32 1.442695, %v2772_v23 }
 0xa9a   : > { %v2765_v32 = vpop.xlane.xlu0 %2764 }
 0xa9b   : > { %v2773_v33 = vsub.f32 %v2740_v5, %v2765_v32 }
 0xa9d   : > { %v2783_v35 = vmul.f32 1.442695, %v2773_v33 }
 0xa9f   : > { %2823 = vrot.lane.b32.xlu1 %v8011_v47, %s7311_s21  ;;  %6675 = vpow2.f32 %v2783_v35 }
 0xaa0   : > { %6677 = vpow2.f32 %v2785_v36 }
 0xaa1   : > { %6679 = vpow2.f32 %v2781_v37 }
 0xaa3   : > { %2883 = vrot.lane.b32.xlu1 %v8039_v20, %s7311_s21 }
 0xaa6   : > { %2821 = vrot.lane.b32.xlu0 %v8008_v45, %s7311_s21 }
 0xaa7   : > { %2885 = vrot.lane.b32.xlu1 %v8045_v21, %s7311_s21 }
 0xaa9   : > { %v8231_v38 = vpop.eup %6675 }
 0xaaa   : > { %2949 = vrot.lane.b32.xlu0 %v8008_v45, %s7312_s29  ;;  %v2799_v39 = vsel %vm2086_vm5, %v8231_v38, 0.0  ;;  %v8235_v42 = vpop.eup %6677 }
 0xaab   : > { %2951 = vrot.lane.b32.xlu1 %v8011_v47, %s7312_s29  ;;  %v2802_v43 = vsel %vm2093_vm4, %v8235_v42, 0.0  ;;  %v8239_v44 = vpop.eup %6679 }
 0xaac   : > { %v2796_v40 = vsel %vm2086_vm5, %v8239_v44, 0.0 }
 0xac9   : > { %2800 = vadd.xlane.f32.xlu0 %v2799_v39 }
 0xacf   : > { %2803 = vadd.xlane.f32.xlu1 %v2802_v43 }
 0xad3   : > { %2797 = vadd.xlane.f32.xlu1 %v2796_v40 }
 0xadf   : > { %3017 = vrot.lane.b32.xlu0 %v8039_v20, %s7312_s29 }
 0xae3   : > { %2947 = vrot.lane.b32.xlu0 %v8011_v47, %s7313_s28 }
 0xae4   : > { %2945 = vrot.lane.b32.xlu1 %v8008_v45, %s7313_s28 }
 0xae7   : > { %3013 = vrot.lane.b32.xlu0 %v8039_v20, %s7313_s28 }
 0xae8   : > { %3019 = vrot.lane.b32.xlu1 %v8045_v21, %s7312_s29  ;;  %s8858_s29 = sld [smem:[#allocation48_spill]] }
 0xaec   : > { %3015 = vrot.lane.b32.xlu1 %v8045_v21, %s7313_s28 }
 0xaee   : > { %s8740_s28 = scalar_lea.hbm %s8858_s29, %s6054_s20 }
 0xb19   : > { %v2789_v50 = vpop.xlane.xlu0 %2788 }
 0xb1a   : > { %6681 = vrcp.f32 %v2789_v50 }
 0xb1b   : > { %v2792_v51 = vpop.xlane.xlu1 %2791 }
 0xb1c   : > { %6683 = vrcp.f32 %v2792_v51 }
 0xb1d   : > { %v2795_v52 = vpop.xlane.xlu0 %2794 }
 0xb1e   : > { %6685 = vrcp.f32 %v2795_v52 }
 0xb1f   : > { %v2824_v53 = vpop.permute.xlu1 %2823 }
 0xb20   : > { %v2833_v55 = vand.u32 %v2824_v53, %v8083_v2 }
 0xb21   : > { %v2822_v54 = vpop.permute.xlu0 %2821 }
 0xb22   : > { %6243 = vmatprep.subr.bf16.mxu0 %v2822_v54 }
 0xb23   : > { %6244 = vmatpush3.bf16.msra.mxu0 %v2822_v54  ;;  %v2884_v56 = vpop.permute.xlu1 %2883 }
 0xb24   : > { %v6682_v41 = vpop.eup %6681  ;;  %6245 = vmatprep.subr.bf16.mxu0 %v2833_v55  ;;  %6251 = vmatprep.subr.bf16.mxu1 %v2884_v56 }
 0xb25   : > { %6252 = vmatpush3.bf16.msra.mxu1 %v2884_v56  ;;  %v2950_v63 = vpop.permute.xlu0 %2949  ;;  %v2811_v3 = vmul.f32 %v6682_v41, %v8213_v24 }
 0xb26   : > { %v6684_v61 = vpop.eup %6683  ;;  %v2960_v13 = vsel %vm1959_vm3, %v2950_v63, 0 }
 0xb27   : > { %6246 = vmatpush3.bf16.msra.mxu0 %v2833_v55  ;;  %v2886_v1 = vpop.permute.xlu1 %2885  ;;  %v2812_v4 = vmul.f32 %v6684_v61, %v8217_v26 }
 0xb28   : > { %v6686_v5 = vpop.eup %6685  ;;  %v2895_v6 = vand.u32 %v2886_v1, %v8083_v2  ;;  %6363 = vmatprep.subr.msk.bf16.mxu0 %vm1959_vm3, %v2950_v63 }
 0xb29   : > { %v2813_v7 = vmul.f32 %v6686_v5, %v8221_v28  ;;  %v2817_v8 = vpack.c.bf16 %v2812_v4, %v2811_v3 }
 0xb2a   : > { %6253 = vmatprep.subr.bf16.mxu1 %v2895_v6 }
 0xb2b   : > { %6247 = vmatprep.mubr.msk.bf16.mxu0 %vm2086_vm5, %v2817_v8  ;;  %6254 = vmatpush3.bf16.msra.mxu1 %v2895_v6  ;;  %v2818_v11 = vpack.c.bf16 %v2813_v7, %v2813_v7  ;;  %v2952_v60 = vpop.permute.xlu1 %2951 }
 0xb2c   : > { %v2963_v15 = vsel %vm1959_vm3, %v2952_v60, 0 }
 0xb2d   : > { %6248 = vmatmul.mubr.msk.bf16.vlgmr.msra.gmra.mrb[16].mxu0 %vm2086_vm5, %v2818_v11 }
 0xb30   : > { %6260 = vmatpush3.bf16.xpose.msra.mxu0 %v2960_v13 }
 0xb31   : > { %6364 = vmatprep.subr.msk.bf16.mxu0 %vm1959_vm3, %v2952_v60 }
 0xb38   : > { %6262 = vmatpush3.bf16.xpose.msra.mxu0 %v2963_v15 }
 0xb56   : > { %v2801_v16 = vpop.xlane.xlu0 %2800 }
 0xb5a   : > { %v3018_v17 = vpop.permute.xlu0 %3017 }
 0xb5b   : > { %6365 = vmatprep.subr.msk.bf16.mxu1 %vm1959_vm3, %v3018_v17  ;;  %v3028_v30 = vsel %vm1959_vm3, %v3018_v17, 0 }
 0xb5c   : > { %v2804_v18 = vpop.xlane.xlu1 %2803 }
 0xb5d   : > { %6687 = vrcp.f32 %v2804_v18 }
 0xb5e   : > { %6689 = vrcp.f32 %v2801_v16  ;;  %v2948_v26 = vpop.permute.xlu0 %2947 }
 0xb60   : > { %v2798_v24 = vpop.xlane.xlu1 %2797 }
 0xb61   : > { %6691 = vrcp.f32 %v2798_v24 }
 0xb62   : > { %v3014_v36 = vpop.permute.xlu0 %3013 }
 0xb64   : > { %v2946_v25 = vpop.permute.xlu1 %2945 }
 0xb65   : > { %6263 = vmatprep.mubr.msk.bf16.mxu0 %vm1959_vm3, %v2946_v25 }
 0xb66   : > { %6264 = vmatmul.mubr.msk.bf16.vlgmr.msra.gmra.mrb[20].mxu0 %vm1959_vm3, %v2948_v26 }
 0xb67   : > { %v6688_v27 = vpop.eup %6687 }
 0xb68   : > { %v6690_v28 = vpop.eup %6689  ;;  %v2816_v29 = vmul.f32 %v6688_v27, %v8235_v42  ;;  %v3020_v23 = vpop.permute.xlu1 %3019 }
 0xb69   : > { %v2815_v33 = vmul.f32 %v6690_v28, %v8231_v38  ;;  %v3031_v37 = vsel %vm1959_vm3, %v3020_v23, 0 }
 0xb6a   : > { %v2820_v35 = vpack.c.bf16 %v2816_v29, %v2816_v29 }
 0xb6b   : > { %v6692_v22 = vpop.eup %6691 }
 0xb6c   : > { %v2814_v32 = vmul.f32 %v6692_v22, %v8239_v44  ;;  %v3016_v39 = vpop.permute.xlu1 %3015 }
 0xb6e   : > { %v2819_v34 = vpack.c.bf16 %v2815_v33, %v2814_v32 }
 0xb70   : > { %6255 = vmatprep.mubr.msk.bf16.mxu1 %vm2086_vm5, %v2819_v34 }
 0xb71   : > { %6256 = vmatmul.mubr.msk.bf16.vlgmr.msra.gmra.mrb[36].mxu1 %vm2086_vm5, %v2820_v35 }
 0xb72   : > { %6268 = vmatpush3.bf16.xpose.msra.mxu1 %v3028_v30  ;;  %6271 = vmatprep.mubr.msk.bf16.mxu1 %vm1959_vm3, %v3014_v36 }
 0xb73   : > { %6366 = vmatprep.subr.msk.bf16.mxu1 %vm1959_vm3, %v3020_v23 }
 0xb7a   : > { %6270 = vmatpush3.bf16.xpose.msra.mxu1 %v3031_v37 }
 0xb81   : > { %6272 = vmatmul.mubr.msk.bf16.vlgmr.msra.gmra.mrb[40].mxu1 %vm1959_vm3, %v3016_v39 }
 0xc00   : > { %v8273_v38 = vpop.f32.mrb[16].mxu0 }
 0xc01   : > { %v8275_v42 = vpop.f32.mrb[17].mxu0 }
 0xc02   : > { %v6250_v43 = vpop.f32.mrb[18].mxu0 }
 0xc03   : > { %v8277_v44 = vpop.f32.mrb[19].mxu0 }
 0xc39   : > { %v6265_v40 = vpop.f32.mrb[20].mxu0 }
 0xc3a   : > { %v2999_v50 = vpop.f32.mrb[21].mxu0  ;;  %v3087_v55 = vsel %vm2093_vm4, %v6265_v40, -inf }
 0xc3b   : > { %v6266_v51 = vpop.f32.mrb[22].mxu0  ;;  %v3081_v52 = vsel %vm2086_vm5, %v2999_v50, -inf }
 0xc3c   : > { %3082 = vmax.xlane.f32.xlu0 %v3081_v52  ;;  %v3002_v53 = vpop.f32.mrb[23].mxu0 }
 0xc3d   : > { %v3084_v54 = vsel %vm2086_vm5, %v3002_v53, -inf }
 0xc3e   : > { %3085 = vmax.xlane.f32.xlu1 %v3084_v54 }
 0xc40   : > { %3088 = vmax.xlane.f32.xlu0 %v3087_v55 }
 0xc44   : > { %v8282_v56 = vpop.f32.mrb[36].mxu1 }
 0xc45   : > { %v8284_v41 = vpop.f32.mrb[37].mxu1 }
 0xc46   : > { %v6258_v61 = vpop.f32.mrb[38].mxu1 }
 0xc47   : > { %v8286_v63 = vpop.f32.mrb[39].mxu1 }
 0xc54   : > { %v6273_v1 = vpop.f32.mrb[40].mxu1 }
 0xc55   : > { %v3067_v3 = vpop.f32.mrb[41].mxu1  ;;  %v3096_v4 = vsel %vm2093_vm4, %v6273_v1, -inf }
 0xc56   : > { %3097 = vmax.xlane.f32.xlu1 %v3096_v4  ;;  %v6274_v5 = vpop.f32.mrb[42].mxu1  ;;  %v3090_v6 = vsel %vm2086_vm5, %v3067_v3, -inf }
 0xc57   : > { %3091 = vmax.xlane.f32.xlu0 %v3090_v6  ;;  %v3070_v7 = vpop.f32.mrb[43].mxu1 }
 0xc58   : > { %v3093_v8 = vsel %vm2086_vm5, %v3070_v7, -inf }
 0xc5b   : > { %3094 = vmax.xlane.f32.xlu0 %v3093_v8 }
 0xcc9   : > { %v3083_v11 = vpop.xlane.xlu0 %3082 }
 0xcca   : > { %v3099_v13 = vsub.f32 %v2999_v50, %v3083_v11 }
 0xccb   : > { %v3086_v60 = vpop.xlane.xlu1 %3085 }
 0xccc   : > { %v3105_v15 = vmul.f32 1.442695, %v3099_v13  ;;  %v3100_v16 = vsub.f32 %v3002_v53, %v3086_v60 }
 0xccd   : > { %v3089_v17 = vpop.xlane.xlu0 %3088 }
 0xcce   : > { %6693 = vpow2.f32 %v3105_v15  ;;  %v3107_v18 = vmul.f32 1.442695, %v3100_v16  ;;  %v3101_v24 = vsub.f32 %v6265_v40, %v3089_v17 }
 0xcd0   : > { %6695 = vpow2.f32 %v3107_v18  ;;  %v3109_v25 = vmul.f32 1.442695, %v3101_v24 }
 0xcd2   : > { %6697 = vpow2.f32 %v3109_v25 }
 0xcd8   : > { %v6694_v26 = vpop.eup %6693 }
 0xcd9   : > { %v3117_v27 = vsel %vm2086_vm5, %v6694_v26, 0.0 }
 0xcda   : > { %v6696_v28 = vpop.eup %6695  ;;  %3118 = vadd.xlane.f32.xlu0 %v3117_v27 }
 0xcdb   : > { %v3120_v22 = vsel %vm2086_vm5, %v6696_v28, 0.0 }
 0xcdc   : > { %v6698_v29 = vpop.eup %6697  ;;  %3121 = vadd.xlane.f32.xlu1 %v3120_v22 }
 0xcdd   : > { %v3123_v32 = vsel %vm2093_vm4, %v6698_v29, 0.0 }
 0xcde   : > { %3124 = vadd.xlane.f32.xlu0 %v3123_v32 }
 0xce3   : > { %v3098_v33 = vpop.xlane.xlu1 %3097 }
 0xce4   : > { %v3104_v34 = vsub.f32 %v6273_v1, %v3098_v33  ;;  %v3092_v35 = vpop.xlane.xlu0 %3091 }
 0xce5   : > { %v3102_v30 = vsub.f32 %v3067_v3, %v3092_v35 }
 0xce6   : > { %v3115_v36 = vmul.f32 1.442695, %v3104_v34 }
 0xce7   : > { %v3111_v23 = vmul.f32 1.442695, %v3102_v30  ;;  %v6597_v30 = vld [vmem:[#allocation12] sm:$0xff]  }
 0xce8   : > { %6699 = vpow2.f32 %v3115_v36  ;;  %v3095_v37 = vpop.xlane.xlu0 %3094  ;;  %v6598_v36 = vld [vmem:[#allocation12 + $0x8] sm:$0xff]  }
 0xce9   : > { %v3103_v39 = vsub.f32 %v3070_v7, %v3095_v37  ;;  %6701 = vpow2.f32 %v3111_v23 }
 0xceb   : > { %v3113_v43 = vmul.f32 1.442695, %v3103_v39 }
 0xced   : > { %6703 = vpow2.f32 %v3113_v43 }
 0xcf2   : > { %v6700_v40 = vpop.eup %6699 }
 0xcf3   : > { %v3132_v50 = vsel %vm2093_vm4, %v6700_v40, 0.0  ;;  %v6702_v51 = vpop.eup %6701 }
 0xcf4   : > { %3133 = vadd.xlane.f32.xlu1 %v3132_v50  ;;  %v3126_v53 = vsel %vm2086_vm5, %v6702_v51, 0.0 }
 0xcf7   : > { %v6704_v52 = vpop.eup %6703 }
 0xcf8   : > { %3127 = vadd.xlane.f32.xlu1 %v3126_v53  ;;  %v3129_v54 = vsel %vm2086_vm5, %v6704_v52, 0.0 }
 0xcf9   : > { %3130 = vadd.xlane.f32.xlu0 %v3129_v54 }
 0xd09   : > { %3153 = vrot.lane.b32.xlu1 %v8011_v47, %s7314_s25 }
 0xd0d   : > { %3213 = vrot.lane.b32.xlu1 %v8039_v20, %s7314_s25 }
 0xd0f   : > { %3151 = vrot.lane.b32.xlu0 %v8008_v45, %s7314_s25 }
 0xd11   : > { %3215 = vrot.lane.b32.xlu1 %v8045_v21, %s7314_s25  ;;  %s5679_s25 = scalar_lea.sflag [#allocation5], %s7813_s19 }
 0xd13   : > { %3281 = vrot.lane.b32.xlu0 %v8197_v46, %s7315_s16 }
 0xd15   : > { %3283 = vrot.lane.b32.xlu1 %v8199_v48, %s7315_s16 }
 0xd17   : > { %3305 = vrot.lane.b32.xlu0 %v8275_v42, %s7316_s4 }
 0xd19   : > { %3307 = vrot.lane.b32.xlu1 %v8277_v44, %s7316_s4 }
 0xd67   : > { %v3119_v47 = vpop.xlane.xlu0 %3118 }
 0xd68   : > { %6705 = vrcp.f32 %v3119_v47 }
 0xd69   : > { %v3122_v20 = vpop.xlane.xlu1 %3121 }
 0xd6a   : > { %6707 = vrcp.f32 %v3122_v20 }
 0xd6b   : > { %v3125_v46 = vpop.xlane.xlu0 %3124 }
 0xd6c   : > { %6709 = vrcp.f32 %v3125_v46 }
 0xd72   : > { %v6706_v45 = vpop.eup %6705 }
 0xd73   : > { %v3141_v55 = vmul.f32 %v6706_v45, %v6694_v26 }
 0xd74   : > { %v6708_v21 = vpop.eup %6707 }
 0xd75   : > { %v3142_v61 = vmul.f32 %v6708_v21, %v6696_v28 }
 0xd76   : > { %v6710_v4 = vpop.eup %6709 }
 0xd77   : > { %v3147_v1 = vpack.c.bf16 %v3142_v61, %v3141_v55  ;;  %v3143_v7 = vmul.f32 %v6710_v4, %v6698_v29 }
 0xd79   : > { %6279 = vmatprep.mubr.msk.bf16.mxu0 %vm2086_vm5, %v3147_v1  ;;  %v3148_v16 = vpack.c.bf16 %v3143_v7, %v3143_v7 }
 0xd81   : > { %v3134_v48 = vpop.xlane.xlu1 %3133 }
 0xd82   : > { %6711 = vrcp.f32 %v3134_v48 }
 0xd85   : > { %v3128_v3 = vpop.xlane.xlu1 %3127 }
 0xd86   : > { %6713 = vrcp.f32 %v3128_v3  ;;  %v3131_v42 = vpop.xlane.xlu0 %3130 }
 0xd87   : > { %6715 = vrcp.f32 %v3131_v42 }
 0xd89   : > { %v3154_v44 = vpop.permute.xlu1 %3153 }
 0xd8a   : > { %v3163_v5 = vand.u32 %v3154_v44, %v8083_v2  ;;  %v3152_v6 = vpop.permute.xlu0 %3151 }
 0xd8b   : > { %6275 = vmatprep.subr.bf16.mxu0 %v3152_v6 }
 0xd8c   : > { %6276 = vmatpush3.bf16.msra.mxu0 %v3152_v6  ;;  %v6712_v11 = vpop.eup %6711 }
 0xd8d   : > { %6277 = vmatprep.subr.bf16.mxu0 %v3163_v5  ;;  %v3214_v8 = vpop.permute.xlu1 %3213  ;;  %v3146_v18 = vmul.f32 %v6712_v11, %v6700_v40 }
 0xd8e   : > { %6283 = vmatprep.subr.bf16.mxu1 %v3214_v8 }
 0xd8f   : > { %6284 = vmatpush3.bf16.msra.mxu1 %v3214_v8  ;;  %v3150_v27 = vpack.c.bf16 %v3146_v18, %v3146_v18 }
 0xd90   : > { %v6714_v13 = vpop.eup %6713  ;;  %6278 = vmatpush3.bf16.msra.mxu0 %v3163_v5 }
 0xd91   : > { %v6716_v60 = vpop.eup %6715  ;;  %v3216_v15 = vpop.permute.xlu1 %3215  ;;  %v3144_v17 = vmul.f32 %v6714_v13, %v6702_v51  ;;  %6291 = vmatprep.subr.bf16.mxu0 %v7300_v49 }
 0xd92   : > { %v3225_v24 = vand.u32 %v3216_v15, %v8083_v2  ;;  %v3145_v25 = vmul.f32 %v6716_v60, %v6704_v52 }
 0xd93   : > { %6280 = vmatmul.mubr.msk.bf16.vlgmr.msra.gmra.mrb[24].mxu0 %vm2086_vm5, %v3148_v16 }
 0xd94   : > { %6285 = vmatprep.subr.bf16.mxu1 %v3225_v24  ;;  %v3149_v26 = vpack.c.bf16 %v3145_v25, %v3144_v17  ;;  %6295 = vmatprep.mubr.msk.bf16.mxu0 %vm7301_vm2, %v7300_v49 }
 0xd95   : > { %6286 = vmatpush3.bf16.msra.mxu1 %v3225_v24  ;;  %6292 = vmatpush3.bf16.msra.mxu0 %v6597_v30 }
 0xd96   : > { %6287 = vmatprep.mubr.msk.bf16.mxu1 %vm2086_vm5, %v3149_v26  ;;  %6307 = vmatprep.subr.bf16.mxu1 %v7300_v49 }
 0xd97   : > { %6293 = vmatprep.subr.bf16.mxu0 %v7300_v49 }
 0xd98   : > { %6288 = vmatmul.mubr.msk.bf16.vlgmr.msra.gmra.mrb[44].mxu1 %vm2086_vm5, %v3150_v27 }
 0xd99   : > { %6311 = vmatprep.mubr.msk.bf16.mxu1 %vm7301_vm2, %v7300_v49  ;;  %6294 = vmatpush3.bf16.msra.mxu0 %v6598_v36 }
 0xd9a   : > { %6323 = vmatprep.subr.bf16.mxu0 %v7300_v49 }
 0xe66   : > { %v6281_v2 = vpop.f32.mrb[24].mxu0 }
 0xe67   : > { %v3199_v28 = vpop.f32.mrb[25].mxu0 }
 0xe68   : > { %3329 = vrot.lane.b32.xlu0 %v3199_v28, %s7317_s2  ;;  %v6282_v22 = vpop.f32.mrb[26].mxu0 }
 0xe69   : > { %v3202_v29 = vpop.f32.mrb[27].mxu0 }
 0xe6a   : > { %3331 = vrot.lane.b32.xlu1 %v3202_v29, %s7317_s2 }
 0xe6b   : > { %v6289_v32 = vpop.f32.mrb[44].mxu1 }
 0xe6c   : > { %3287 = vrot.lane.b32.xlu0 %v8206_v58, %s7315_s16  ;;  %v3261_v33 = vpop.f32.mrb[45].mxu1  ;;  %v3282_v58 = vpop.permute.xlu0 %3281 }
 0xe6d   : > { %v6290_v34 = vpop.f32.mrb[46].mxu1 }
 0xe6e   : > { %3311 = vrot.lane.b32.xlu1 %v8284_v41, %s7316_s4  ;;  %v3264_v35 = vpop.f32.mrb[47].mxu1 }
 0xe70   : > { %3289 = vrot.lane.b32.xlu0 %v8208_v59, %s7315_s16  ;;  %v3284_v59 = vpop.permute.xlu1 %3283  ;;  %v3306_v41 = vpop.permute.xlu0 %3305 }
 0xe71   : > { %v3348_v37 = vsel %vm1959_vm3, %v8121_v0, %v3284_v59 }
 0xe72   : > { %3335 = vrot.lane.b32.xlu1 %v3261_v33, %s7317_s2 }
 0xe74   : > { %3313 = vrot.lane.b32.xlu0 %v8286_v63, %s7316_s4  ;;  %v3308_v63 = vpop.permute.xlu1 %3307 }
 0xe76   : > { %3337 = vrot.lane.b32.xlu1 %v3264_v35, %s7317_s2 }
 0xe78   : > { %3285 = vrot.lane.b32.xlu0 %v8195_v31, %s7315_s16  ;;  %v3347_v31 = vsel %vm1959_vm3, %v8119_v19, %v3282_v58 }
 0xe7a   : > { %3309 = vrot.lane.b32.xlu1 %v8273_v38, %s7316_s4  ;;  %v3354_v38 = vsel %vm3353_vm7, %v3347_v31, %v3306_v41 }
 0xe7c   : > { %3333 = vrot.lane.b32.xlu0 %v6281_v2, %s7317_s2 }
 0xe7e   : > { %3291 = vrot.lane.b32.xlu1 %v8204_v57, %s7315_s16  ;;  %s7169_s16 = scalar_lea.vmem %s8742_s17, 32 }
 0xe7f   : > { %p7170_p11 = scmp.ne.s32.totalorder %s8742_s17, %s7169_s16 }
 0xe80   : > { %3315 = vrot.lane.b32.xlu0 %v8282_v56, %s7316_s4  ;;  %v3355_v56 = vsel %vm3353_vm7, %v3348_v37, %v3308_v63  ;;  %s7318_s4 = smov [#allocation27]  }
 0xe81   : > { %p7171_p5 = pnand %p7170_p11, %p8859_p0 }
 0xe82   : > { %3339 = vrot.lane.b32.xlu1 %v6289_v32, %s7317_s2  ;;  %s7173_s2 = sshll.u32 %s7318_s4, 4  ;;  %s7174_s2 = int_to_ptr.vmem [resolvable:$false] %s7173_s2 }
 0xe83   : > { %p7172_p1 = pneg %p7171_p5  ;;  %s7175_s3 = scalar_lea.vmem %s7174_s2, 64 }
 0xe84   : > { %p7176_p10 = scmp.lt.s32.totalorder %s8742_s17, %s7174_s2  ;;  %p7177_p13 = scmp.lt.s32.totalorder %s7175_s3, %s7169_s16 }
 0xe86   : > { %p7178_p2 = por %p7177_p13, %p7176_p10 }
 0xe88   : > { %p7179_p8 = pnand %p7178_p2, %p7172_p1 }
 0xeda   : > { %v3330_v23 = vpop.permute.xlu0 %3329 }
 0xedb   : > { %v3361_v57 = vsel %vm3360_vm8, %v3354_v38, %v3330_v23 }
 0xedc   : > { %v3373_v39 = vcombine.high %v3361_v57, %v3361_v57  ;;  %v3380_v43 = vrot.slane %v3361_v57, %v7896_v14  ;;  %v3332_v40 = vpop.permute.xlu1 %3331 }
 0xedd   : > { %v3362_v50 = vsel %vm3360_vm8, %v3355_v56, %v3332_v40 }
 0xede   : > { %v3387_v51 = vrot.slane %v3373_v39, %v7896_v14  ;;  %v3388_v52 = vcombine.high %v3380_v43, %v3380_v43  ;;  %v3422_v19 = vcombine.high %v3362_v50, %v3362_v50  ;;  %v3288_v53 = vpop.permute.xlu0 %3287  ;;  %v3396_v54 = vrot.slane %v3380_v43, %v7896_v14 }
 0xedf   : > { %v3429_v47 = vrot.slane %v3362_v50, %v7896_v14  ;;  %v3350_v21 = vsel %vm1959_vm3, %v8128_v10, %v3288_v53 }
 0xee0   : > { %v3389_v0 = vcombine.high %v3387_v51, %v3387_v51  ;;  %v3410_v20 = vrot.slane %v3388_v52, %v7896_v14  ;;  %v3436_v45 = vrot.slane %v3422_v19, %v7896_v14  ;;  %v3312_v55 = vpop.permute.xlu1 %3311  ;;  %v3403_v61 = vrot.slane %v3387_v51, %v7896_v14 }
 0xee1   : > { %v3437_v1 = vcombine.high %v3429_v47, %v3429_v47  ;;  %v3445_v4 = vrot.slane %v3429_v47, %v7896_v14  ;;  %v3357_v7 = vsel %vm3353_vm7, %v3350_v21, %v3312_v55 }
 0xee2   : > { %v3417_v46 = vrot.slane %v3389_v0, %v7896_v14  ;;  %v3597_v48 = vcombine.low %v3396_v54, %v3410_v20  ;;  %v6012_v3 = vcombine.high %v3396_v54, %v3410_v20  ;;  %v3438_v42 = vcombine.high %v3436_v45, %v3436_v45  ;;  %v3290_v44 = vpop.permute.xlu0 %3289 }
 0xee3   : > { %v3452_v5 = vrot.slane %v3436_v45, %v7896_v14  ;;  %v3459_v6 = vrot.slane %v3437_v1, %v7896_v14  ;;  %v3351_v34 = vsel %vm1959_vm3, %v8130_v12, %v3290_v44 }
 0xee4   : > { %v3599_v8 = vcombine.low %v3403_v61, %v3417_v46  ;;  %v6013_v10 = vcombine.high %v3403_v61, %v3417_v46  ;;  %v3607_v11 = vrot.slane %v3597_v48, %v7896_v14  ;;  %v3614_v13 = vrot.slane %v6012_v3, %v7896_v14  ;;  %v3336_v60 = vpop.permute.xlu1 %3335 }
 0xee5   : > { %v3466_v15 = vrot.slane %v3438_v42, %v7896_v14  ;;  %v3646_v16 = vcombine.low %v3445_v4, %v3459_v6  ;;  %v6014_v17 = vcombine.high %v3445_v4, %v3459_v6  ;;  %v3364_v18 = vsel %vm3360_vm8, %v3357_v7, %v3336_v60 }
 0xee6   : > { %v3621_v24 = vrot.slane %v3599_v8, %v7896_v14  ;;  %v3628_v25 = vrot.slane %v6013_v10, %v7896_v14  ;;  %v3629_v26 = vcombine.low %v3607_v11, %v3614_v13  ;;  %v3485_v27 = vcombine.high %v3364_v18, %v3364_v18  ;;  %v3314_v2 = vpop.permute.xlu0 %3313 }
 0xee7   : > { %v3648_v28 = vcombine.low %v3452_v5, %v3466_v15  ;;  %v6015_v22 = vcombine.high %v3452_v5, %v3466_v15  ;;  %v3656_v29 = vrot.slane %v3646_v16, %v7896_v14  ;;  %v3663_v32 = vrot.slane %v6014_v17, %v7896_v14 }
 0xee8   : > { %v3630_v33 = vcombine.low %v3621_v24, %v3628_v25  ;;  %v3492_v35 = vrot.slane %v3364_v18, %v7896_v14  ;;  %v3499_v30 = vrot.slane %v3485_v27, %v7896_v14  ;;  %v3338_v36 = vpop.permute.xlu1 %3337  ;;  %v3358_v41 = vsel %vm3353_vm7, %v3351_v34, %v3314_v2 }
 0xee9   : > { %v3670_v58 = vrot.slane %v3648_v28, %v7896_v14  ;;  %v3677_v59 = vrot.slane %v6015_v22, %v7896_v14  ;;  %v3637_v37 = vrot.slane %v3629_v26, %v7896_v14  ;;  %v3678_v12 = vcombine.low %v3656_v29, %v3663_v32 }
 0xeea   : > { %v3500_v63 = vcombine.high %v3492_v35, %v3492_v35  ;;  %v3501_v31 = vcombine.high %v3499_v30, %v3499_v30  ;;  %v8377_v38 = vrot.slane %v3492_v35, %v7896_v14  ;;  %v3286_v23 = vpop.permute.xlu0 %3285  ;;  %v3515_v57 = vrot.slane %v3499_v30, %v7896_v14 }
 0xeeb   : > { %v3365_v56 = vsel %vm3360_vm8, %v3358_v41, %v3338_v36  ;;  %v3644_v39 = vrot.slane %v3630_v33, %v7896_v14  ;;  %v3679_v52 = vcombine.low %v3670_v58, %v3677_v59  ;;  %v3349_v54 = vsel %vm1959_vm3, %v8117_v62, %v3286_v23 }
 0xeec   : > { %v3522_v43 = vrot.slane %v3500_v63, %v7896_v14  ;;  %v3529_v40 = vrot.slane %v3501_v31, %v7896_v14  ;;  %v3534_v50 = vcombine.high %v3365_v56, %v3365_v56  ;;  %v3310_v51 = vpop.permute.xlu1 %3309  ;;  %v3531_v19 = vcombine.high %v3515_v57, %v3515_v57 }
 0xeed   : > { %v3541_v53 = vrot.slane %v3365_v56, %v7896_v14  ;;  %v3530_v47 = vcombine.high %v8377_v38, %v8377_v38  ;;  %v3686_v55 = vrot.slane %v3678_v12, %v7896_v14  ;;  %v3356_v46 = vsel %vm3353_vm7, %v3349_v54, %v3310_v51 }
 0xeee   : > { %v3532_v0 = vcombine.high %v3522_v43, %v3522_v43  ;;  %v3533_v20 = vcombine.high %v3529_v40, %v3529_v40  ;;  %v3548_v45 = vrot.slane %v3534_v50, %v7896_v14  ;;  %v3334_v21 = vpop.permute.xlu0 %3333  ;;  %v3698_v3 = vcombine.low %v3529_v40, %v3531_v19 }
 0xeef   : > { %v3549_v61 = vcombine.high %v3541_v53, %v3541_v53  ;;  %v3557_v1 = vrot.slane %v3541_v53, %v7896_v14  ;;  %v3693_v4 = vrot.slane %v3679_v52, %v7896_v14  ;;  %v3696_v8 = vcombine.low %v3522_v43, %v3530_v47 }
 0xef0   : > { %v3697_v48 = vcombine.low %v3532_v0, %v3515_v57  ;;  %v3550_v42 = vcombine.high %v3548_v45, %v3548_v45  ;;  %v3564_v62 = vrot.slane %v3548_v45, %v7896_v14  ;;  %v3292_v44 = vpop.permute.xlu1 %3291  ;;  %v3363_v13 = vsel %vm3360_vm8, %v3356_v46, %v3334_v21  ;;  %v6016_v0 = vld [vmem:[#allocation14] ss:$0 sm:$0xff] }
 0xef1   : > { %v3571_v5 = vrot.slane %v3549_v61, %v7896_v14  ;;  %v3579_v6 = vcombine.high %v3557_v1, %v3557_v1  ;;  %v3744_v7 = vcombine.low %v3533_v20, %v3557_v1  ;;  %v3477_v18 = vrot.slane %v3363_v13, %v7896_v14 }
 0xef2   : > { %v3578_v10 = vrot.slane %v3550_v42, %v7896_v14  ;;  %v3580_v11 = vcombine.high %v3564_v62, %v3564_v62  ;;  %v3316_v60 = vpop.permute.xlu0 %3315  ;;  %v3719_v24 = vrot.slane %v3697_v48, %v7896_v14  ;;  %v3726_v25 = vrot.slane %v3698_v3, %v7896_v14 }
 0xef3   : > { %v3581_v15 = vcombine.high %v3571_v5, %v3571_v5  ;;  %v3745_v16 = vcombine.low %v3571_v5, %v3579_v6  ;;  %v3754_v17 = vrot.slane %v3744_v7, %v7896_v14  ;;  %v3352_v27 = vsel %vm1959_vm3, %v8126_v9, %v3292_v44 }
 0xef4   : > { %v3747_v26 = vcombine.low %v3578_v10, %v3580_v11  ;;  %v3340_v2 = vpop.permute.xlu1 %3339  ;;  %v3484_v29 = vrot.slane %v3477_v18, %v7896_v14  ;;  %v3359_v32 = vsel %vm3353_vm7, %v3352_v27, %v3316_v60  ;;  %v3645_v34 = vcombine.low %v3637_v37, %v3644_v39 }
 0xef5   : > { %v3746_v28 = vcombine.low %v3581_v15, %v3564_v62  ;;  %v3761_v22 = vrot.slane %v3745_v16, %v7896_v14  ;;  %v3694_v35 = vcombine.low %v3686_v55, %v3693_v4  ;;  %v3366_v30 = vsel %vm3360_vm8, %v3359_v32, %v3340_v2 }
 0xef6   : > { %v3775_v33 = vrot.slane %v3747_v26, %v7896_v14  ;;  %v3695_v59 = vcombine.low %v3484_v29, %v8377_v38  ;;  %v3589_v9 = vrot.slane %v3366_v30, %v7896_v14  ;;  %v3712_v41 = vrot.slane %v3696_v8, %v7896_v14 }
 0xef7   : > { %v3768_v36 = vrot.slane %v3746_v28, %v7896_v14  ;;  %v3776_v58 = vcombine.low %v3754_v17, %v3761_v22  ;;  %v3728_v63 = vcombine.low %v3719_v24, %v3726_v25  ;;  %v3813_v31 = vpack.c.bf16 %v3694_v35, %v3645_v34 }
 0xef8   : > { %v3705_v12 = vrot.slane %v3695_v59, %v7896_v14  ;;  %v3582_v57 = vcombine.high %v3578_v10, %v3578_v10  ;;  %v3596_v37 = vrot.slane %v3589_v9, %v7896_v14 }
 0xef9   : > { %v3777_v23 = vcombine.low %v3768_v36, %v3775_v33  ;;  %6296 = vmatmul.mubr.msk.bf16.vlgmr.msra.gmra.mrb[28].mxu0 %vm809_vm0, %v3813_v31  ;;  %v3784_v38 = vrot.slane %v3776_v58, %v7896_v14  ;;  %v3742_v50 = vrot.slane %v3728_v63, %v7896_v14 }
 0xefa   : > { %v3727_v56 = vcombine.low %v3705_v12, %v3712_v41  ;;  %v3793_v39 = vcombine.low %v3582_v57, %v3596_v37  ;;  %6299 = vmatprep.mubr.msk.bf16.mxu0 %vm7301_vm2, %v7300_v49 }
 0xefb   : > { %v3791_v43 = vrot.slane %v3777_v23, %v7896_v14 }
 0xefc   : > { %v3735_v40 = vrot.slane %v3727_v56, %v7896_v14  ;;  %v3800_v19 = vrot.slane %v3793_v39, %v7896_v14 }
 0xefd   : > { %v3792_v51 = vcombine.low %v3784_v38, %v3791_v43 }
 0xefe   : > { %v3743_v52 = vcombine.low %v3735_v40, %v3742_v50  ;;  %v3807_v54 = vrot.slane %v3800_v19, %v7896_v14 }
 0xf00   : > { %v3814_v53 = vpack.c.bf16 %v3792_v51, %v3743_v52  ;;  %v3815_v47 = vpack.c.bf16 %v3807_v54, %v3807_v54 }
 0xf02   : > { %6300 = vmatmul.mubr.msk.bf16.gmra.mrb[32].mxu0 %vm809_vm0, %v3814_v53 }
 0xf03   : > { %6303 = vmatprep.mubr.msk.bf16.mxu0 %vm7301_vm2, %v7300_v49 }
 0xf0a   : > { %6304 = vmatmul.mubr.msk.bf16.gmra.mrb[36].mxu0 %vm809_vm0, %v3815_v47 }
 0xf0b   : > { %6339 = vmatprep.mubr.msk.bf16.mxu0 %vm7301_vm2, %v7300_v49 }
 0xfcc   : > { %v3877_v20 = vpop.f32.mrb[28].mxu0 }
 0xfcd   : > { %v3878_v45 = vadd.f32 %v6016_v0, %v3877_v20  ;;  %v6297_v21 = vpop.f32.mrb[29].mxu0 }
 0xfce   : > { %v3880_v55 = vpop.f32.mrb[30].mxu0 }
 0xfcf   : > { %v3904_v61 = vcombine.high %v3878_v45, %v3878_v45  ;;  %v3911_v1 = vrot.slane %v3878_v45, %v7896_v14  ;;  %v3881_v46 = vadd.f32 %v6016_v0, %v3880_v55  ;;  %v6298_v48 = vpop.f32.mrb[31].mxu0 }
 0xfd1   : > { %v3918_v3 = vrot.slane %v3904_v61, %v7896_v14  ;;  %v3919_v42 = vcombine.high %v3911_v1, %v3911_v1  ;;  %v3953_v62 = vcombine.high %v3881_v46, %v3881_v46  ;;  %v3960_v44 = vrot.slane %v3881_v46, %v7896_v14 }
 0xfd2   : > { %v3927_v5 = vrot.slane %v3911_v1, %v7896_v14 }
 0xfd3   : > { %v3920_v4 = vcombine.high %v3918_v3, %v3918_v3  ;;  %v3941_v6 = vrot.slane %v3919_v42, %v7896_v14  ;;  %v3967_v7 = vrot.slane %v3953_v62, %v7896_v14  ;;  %v3934_v8 = vrot.slane %v3918_v3, %v7896_v14 }
 0xfd4   : > { %v3968_v10 = vcombine.high %v3960_v44, %v3960_v44  ;;  %v3976_v17 = vrot.slane %v3960_v44, %v7896_v14 }
 0xfd5   : > { %v3948_v11 = vrot.slane %v3920_v4, %v7896_v14  ;;  %v4122_v13 = vcombine.low %v3927_v5, %v3941_v6  ;;  %v6022_v60 = vcombine.high %v3927_v5, %v3941_v6  ;;  %v3969_v15 = vcombine.high %v3967_v7, %v3967_v7  ;;  %v3885_v16 = vpop.f32.mrb[32].mxu0 }
 0xfd6   : > { %v3990_v18 = vrot.slane %v3968_v10, %v7896_v14  ;;  %v3886_v24 = vadd.f32 %v6016_v0, %v3885_v16  ;;  %v6301_v25 = vpop.f32.mrb[33].mxu0  ;;  %v3983_v28 = vrot.slane %v3967_v7, %v7896_v14 }
 0xfd7   : > { %v4124_v26 = vcombine.low %v3934_v8, %v3948_v11  ;;  %v6023_v27 = vcombine.high %v3934_v8, %v3948_v11  ;;  %v8442_v2 = vrot.slane %v4122_v13, %v7896_v14  ;;  %v3888_v22 = vpop.f32.mrb[34].mxu0  ;;  %v8446_v29 = vrot.slane %v6022_v60, %v7896_v14 }
 0xfd8   : > { %v3997_v32 = vrot.slane %v3969_v15, %v7896_v14  ;;  %v4171_v33 = vcombine.low %v3976_v17, %v3990_v18  ;;  %v4002_v34 = vcombine.high %v3886_v24, %v3886_v24  ;;  %v6302_v35 = vpop.f32.mrb[35].mxu0  ;;  %v4009_v30 = vrot.slane %v3886_v24, %v7896_v14 }
 0xfd9   : > { %v4146_v36 = vrot.slane %v4124_v26, %v7896_v14  ;;  %v6024_v58 = vcombine.high %v3976_v17, %v3990_v18  ;;  %v3889_v31 = vadd.f32 %v6016_v0, %v3888_v22  ;;  %v4153_v23 = vrot.slane %v6023_v27, %v7896_v14 }
 0xfda   : > { %v4173_v59 = vcombine.low %v3983_v28, %v3997_v32  ;;  %v4016_v9 = vrot.slane %v4002_v34, %v7896_v14  ;;  %v4017_v41 = vcombine.high %v4009_v30, %v4009_v30  ;;  %v8453_v63 = vrot.slane %v4009_v30, %v7896_v14 }
 0xfdb   : > { %v4154_v12 = vcombine.low %v8442_v2, %v8446_v29  ;;  %v6025_v57 = vcombine.high %v3983_v28, %v3997_v32  ;;  %v4181_v37 = vrot.slane %v4171_v33, %v7896_v14  ;;  %v4188_v50 = vrot.slane %v6024_v58, %v7896_v14 }
 0xfdc   : > { %v4018_v56 = vcombine.high %v4016_v9, %v4016_v9  ;;  %v4032_v39 = vrot.slane %v4016_v9, %v7896_v14  ;;  %v4039_v38 = vrot.slane %v4017_v41, %v7896_v14  ;;  %v4047_v43 = vcombine.high %v8453_v63, %v8453_v63 }
 0xfdd   : > { %v3893_v40 = vpop.f32.mrb[36].mxu0  ;;  %v4051_v51 = vcombine.high %v3889_v31, %v3889_v31  ;;  %v4058_v52 = vrot.slane %v3889_v31, %v7896_v14  ;;  %v4195_v54 = vrot.slane %v4173_v59, %v7896_v14  ;;  %v4202_v7 = vrot.slane %v6025_v57, %v7896_v14  ;;  %v6741_v57 = vld [vmem:[#allocation2] sm:$0xff] }
 0xfde   : > { %v3894_v19 = vadd.f32 %v6016_v0, %v3893_v40  ;;  %v6305_v53 = vpop.f32.mrb[37].mxu0  ;;  %v4046_v47 = vrot.slane %v4018_v56, %v7896_v14  ;;  %v4048_v20 = vcombine.high %v4032_v39, %v4032_v39  ;;  %v4049_v45 = vcombine.high %v4039_v38, %v4039_v38 }
 0xfdf   : > { %v3896_v21 = vpop.f32.mrb[38].mxu0  ;;  %v4234_v55 = vcombine.low %v4039_v38, %v4047_v43  ;;  %v4065_v61 = vrot.slane %v4051_v51, %v7896_v14  ;;  %v4066_v1 = vcombine.high %v4058_v52, %v4058_v52  ;;  %v4074_v46 = vrot.slane %v4058_v52, %v7896_v14 }
 0xfe0   : > { %v6306_v48 = vpop.f32.mrb[39].mxu0  ;;  %v4235_v3 = vcombine.low %v4049_v45, %v4032_v39  ;;  %v4236_v42 = vcombine.low %v4046_v47, %v4048_v20  ;;  %v4050_v62 = vcombine.high %v4046_v47, %v4046_v47  ;;  %v8470_v0 = vrot.slane %v3894_v19, %v7896_v14  ;;  %v6743_v47 = vld [vmem:[#allocation2 + $0x18] sm:$0xff] }
 0xfe1   : > { %v4067_v44 = vcombine.high %v4065_v61, %v4065_v61  ;;  %v4081_v4 = vrot.slane %v4065_v61, %v7896_v14  ;;  %v4088_v5 = vrot.slane %v4066_v1, %v7896_v14  ;;  %v4096_v6 = vcombine.high %v4074_v46, %v4074_v46 }
 0xfe2   : > { %v4203_v8 = vcombine.low %v4181_v37, %v4188_v50  ;;  %v4237_v10 = vcombine.low %v4050_v62, %v4074_v46  ;;  %v4155_v11 = vcombine.low %v4146_v36, %v4153_v23  ;;  %v4251_v17 = vrot.slane %v4235_v3, %v7896_v14  ;;  %v6742_v50 = vld [vmem:[#allocation2 + $0x8] sm:$0xff]  ;;  %v6745_v46 = vld [vmem:[#allocation2 + $0x10] sm:$0x1] }
 0xfe3   : > { %v4095_v13 = vrot.slane %v4067_v44, %v7896_v14  ;;  %v4097_v60 = vcombine.high %v4081_v4, %v4081_v4  ;;  %v4098_v15 = vcombine.high %v4088_v5, %v4088_v5  ;;  %v4283_v16 = vcombine.low %v4088_v5, %v4096_v6 }
 0xfe4   : > { %v4258_v18 = vrot.slane %v4236_v42, %v7896_v14  ;;  %v4265_v24 = vrot.slane %v4237_v10, %v7896_v14  ;;  %v4114_v25 = vrot.slane %v8470_v0, %v7896_v14  ;;  %v4244_v26 = vrot.slane %v4234_v55, %v7896_v14  ;;  %v6744_v55 = vld [vmem:[#allocation2 + $0x20] sm:$0xff] }
 0xfe5   : > { %v4284_v27 = vcombine.low %v4098_v15, %v4081_v4  ;;  %v4285_v2 = vcombine.low %v4095_v13, %v4097_v60  ;;  %v4099_v28 = vcombine.high %v4095_v13, %v4095_v13  ;;  %v4162_v29 = vrot.slane %v4154_v12, %v7896_v14 }
 0xfe6   : > { %v4267_v22 = vcombine.low %v4258_v18, %v4265_v24  ;;  %v4169_v32 = vrot.slane %v4155_v11, %v7896_v14  ;;  %v4204_v33 = vcombine.low %v4195_v54, %v4202_v7  ;;  %v4293_v34 = vrot.slane %v4283_v16, %v7896_v14 }
 0xfe7   : > { %v4300_v35 = vrot.slane %v4284_v27, %v7896_v14  ;;  %v4286_v30 = vcombine.low %v4099_v28, %v4114_v25  ;;  %v4211_v36 = vrot.slane %v4203_v8, %v7896_v14  ;;  %v4266_v9 = vcombine.low %v4244_v26, %v4251_v17 }
 0xfe8   : > { %v4170_v58 = vcombine.low %v4162_v29, %v4169_v32  ;;  %v4218_v59 = vrot.slane %v4204_v33, %v7896_v14  ;;  %v4281_v41 = vrot.slane %v4267_v22, %v7896_v14  ;;  %v4307_v31 = vrot.slane %v4285_v2, %v7896_v14 }
 0xfe9   : > { %v4314_v23 = vrot.slane %v4286_v30, %v7896_v14  ;;  %v4315_v12 = vcombine.low %v4293_v34, %v4300_v35  ;;  %v4274_v39 = vrot.slane %v4266_v9, %v7896_v14  ;;  %v4226_v43 = vrot.slane %v8453_v63, %v7896_v14  ;;  %v6746_v34 = vld [vmem:[#allocation2 + $0x28] sm:$0x1] }
 0xfea   : > { %v8491_v37 = vadd.f32 %v6741_v57, %v4170_v58  ;;  %v4219_v56 = vcombine.low %v4211_v36, %v4218_v59  ;;  %v4107_v42 = vcombine.high %v8470_v0, %v8470_v0  ;;  %v6599_v59 = vld [vmem:[#allocation18] sm:$0xff]   ;;  %v6600_v9 = vld [vmem:[#allocation18 + $0x8] sm:$0xff]  }
 0xfeb   : > { %v4316_v38 = vcombine.low %v4307_v31, %v4314_v23  ;;  %v4282_v52 = vcombine.low %v4274_v39, %v4281_v41  ;;  %v4323_v19 = vrot.slane %v4315_v12, %v7896_v14  ;;  %v4233_v21 = vrot.slane %v4226_v43, %v7896_v14  ;;  %6308 = vmatpush3.bf16.msra.mxu1 %v6599_v59 }
 0xfec   : > { %v4358_v40 = vsel %vm809_vm0, %v8491_v37, 0.0  ;;  %v8498_v51 = vadd.f32 %v6742_v50, %v4219_v56  ;;  %v4121_v5 = vrot.slane %v4107_v42, %v7896_v14  ;;  %6309 = vmatprep.subr.bf16.mxu1 %v7300_v49 }
 0xfed   : > { %4359 = vadd.xlane.f32.xlu0 %v4358_v40  ;;  %v4330_v53 = vrot.slane %v4316_v38, %v7896_v14  ;;  %v8504_v20 = vadd.f32 %v6743_v47, %v4282_v52  ;;  %v8513_v48 = vadd.f32 %v6745_v46, %v4233_v21 }
 0xfee   : > { %v4361_v54 = vsel %vm809_vm0, %v8498_v51, 0.0  ;;  %v4338_v60 = vrot.slane %v4121_v5, %v7896_v14 }
 0xfef   : > { %4362 = vadd.xlane.f32.xlu1 %v4361_v54  ;;  %v4331_v63 = vcombine.low %v4323_v19, %v4330_v53  ;;  %v4367_v45 = vsel %vm809_vm0, %v8504_v20, 0.0  ;;  %v4364_v3 = vsel %vm812_vm1, %v8513_v48, 0.0  ;;  %6310 = vmatpush3.bf16.msra.mxu1 %v6600_v9 }
 0xff0   : > { %v4345_v2 = vrot.slane %v4338_v60, %v7896_v14 }
 0xff1   : > { %4368 = vadd.xlane.f32.xlu0 %v4367_v45  ;;  %v8509_v61 = vadd.f32 %v6744_v55, %v4331_v63  ;;  %v8553_v45 = vld [vmem:[#allocation15] ss:$0 sm:$0xff] }
 0xff2   : > { %v8545_v35 = vadd.f32 %v6746_v34, %v4345_v2 }
 0xff3   : > { %v4370_v1 = vsel %vm809_vm0, %v8509_v61, 0.0 }
 0xff4   : > { %v4373_v58 = vsel %vm812_vm1, %v8545_v35, 0.0 }
 0xff5   : > { %4371 = vadd.xlane.f32.xlu0 %v4370_v1 }
 0xff9   : > { %4365 = vadd.xlane.f32.xlu0 %v4364_v3  ;;  %v8558_v3 = vld [vmem:[#allocation17] ss:$0 sm:$0xff] }
0x107a   : > { %v4360_v62 = vpop.xlane.xlu0 %4359 }
0x107b   : > { %v4376_v44 = vmul.f32 0.03125, %v4360_v62 }
0x107c   : > { %v4363_v4 = vpop.xlane.xlu1 %4362 }
0x107d   : > { %v4382_v6 = vsub.f32 %v8491_v37, %v4376_v44  ;;  %v4377_v7 = vmul.f32 0.03125, %v4363_v4 }
0x107e   : > { %v4369_v8 = vpop.xlane.xlu0 %4368 }
0x107f   : > { %v8522_v10 = vsub.f32 %v8498_v51, %v4377_v7  ;;  %v4388_v11 = vmul.f32 %v4382_v6, %v4382_v6  ;;  %v4379_v13 = vmul.f32 0.03125, %v4369_v8 }
0x1081   : > { %v4394_v15 = vsel %vm809_vm0, %v4388_v11, 0.0  ;;  %v4389_v0 = vmul.f32 %v8522_v10, %v8522_v10  ;;  %v8529_v16 = vsub.f32 %v8504_v20, %v4379_v13 }
0x1082   : > { %4395 = vadd.xlane.f32.xlu1 %v4394_v15  ;;  %v4372_v17 = vpop.xlane.xlu0 %4371 }
0x1083   : > { %v4397_v18 = vsel %vm809_vm0, %v4389_v0, 0.0  ;;  %v4380_v24 = vmul.f32 0.03125, %v4372_v17  ;;  %v4391_v25 = vmul.f32 %v8529_v16, %v8529_v16 }
0x1084   : > { %4398 = vadd.xlane.f32.xlu0 %v4397_v18 }
0x1085   : > { %v8535_v26 = vsub.f32 %v8509_v61, %v4380_v24  ;;  %v4403_v27 = vsel %vm809_vm0, %v4391_v25, 0.0 }
0x1086   : > { %4404 = vadd.xlane.f32.xlu1 %v4403_v27  ;;  %v4366_v28 = vpop.xlane.xlu0 %4365 }
0x1087   : > { %v4378_v22 = vmul.f32 0.03125, %v4366_v28  ;;  %v4392_v29 = vmul.f32 %v8535_v26, %v8535_v26 }
0x1089   : > { %v8542_v32 = vsub.f32 %v8513_v48, %v4378_v22  ;;  %v4406_v33 = vsel %vm809_vm0, %v4392_v29, 0.0 }
0x108a   : > { %4407 = vadd.xlane.f32.xlu0 %v4406_v33 }
0x108b   : > { %v4390_v30 = vmul.f32 %v8542_v32, %v8542_v32 }
0x108d   : > { %v4400_v36 = vsel %vm812_vm1, %v4390_v30, 0.0 }
0x108e   : > { %4401 = vadd.xlane.f32.xlu1 %v4400_v36  ;;  %4374 = vadd.xlane.f32.xlu0 %v4373_v58 }
0x110f   : > { %v4396_v41 = vpop.xlane.xlu1 %4395 }
0x1110   : > { %v4412_v31 = vmul.f32 0.03125, %v4396_v41 }
0x1111   : > { %v4399_v23 = vpop.xlane.xlu0 %4398 }
0x1112   : > { %v4418_v12 = vadd.f32 1e-05, %v4412_v31  ;;  %v4413_v57 = vmul.f32 0.03125, %v4399_v23 }
0x1113   : > { %v4405_v56 = vpop.xlane.xlu1 %4404 }
0x1114   : > { %6717 = vrsqrt.f32 %v4418_v12  ;;  %v4419_v39 = vadd.f32 1e-05, %v4413_v57  ;;  %v4415_v38 = vmul.f32 0.03125, %v4405_v56 }
0x1116   : > { %6719 = vrsqrt.f32 %v4419_v39  ;;  %v4421_v43 = vadd.f32 1e-05, %v4415_v38 }
0x1117   : > { %v4408_v40 = vpop.xlane.xlu0 %4407 }
0x1118   : > { %6721 = vrsqrt.f32 %v4421_v43  ;;  %v4416_v50 = vmul.f32 0.03125, %v4408_v40 }
0x111a   : > { %v4422_v52 = vadd.f32 1e-05, %v4416_v50 }
0x111b   : > { %v4375_v19 = vpop.xlane.xlu0 %4374  ;;  %v4402_v53 = vpop.xlane.xlu1 %4401 }
0x111c   : > { %6723 = vrsqrt.f32 %v4422_v52  ;;  %v4381_v54 = vmul.f32 0.03125, %v4375_v19  ;;  %v4414_v47 = vmul.f32 0.03125, %v4402_v53 }
0x111e   : > { %v6718_v63 = vpop.eup %6717  ;;  %v8556_v21 = vsub.f32 %v8545_v35, %v4381_v54  ;;  %v4420_v55 = vadd.f32 1e-05, %v4414_v47 }
0x111f   : > { %v4430_v1 = vmul.f32 %v6718_v63, %v4382_v6 }
0x1120   : > { %v6720_v46 = vpop.eup %6719  ;;  %6725 = vrsqrt.f32 %v4420_v55  ;;  %v4393_v42 = vmul.f32 %v8556_v21, %v8556_v21 }
0x1121   : > { %v4442_v62 = vmul.f32 %v8553_v45, %v4430_v1  ;;  %v4431_v44 = vmul.f32 %v6720_v46, %v8522_v10 }
0x1122   : > { %v6722_v4 = vpop.eup %6721  ;;  %v4409_v5 = vsel %vm812_vm1, %v4393_v42, 0.0 }
0x1123   : > { %v4454_v7 = vadd.f32 %v8558_v3, %v4442_v62  ;;  %v4443_v8 = vmul.f32 %v8553_v45, %v4431_v44  ;;  %v4433_v6 = vmul.f32 %v6722_v4, %v8529_v16  ;;  %4410 = vadd.xlane.f32.xlu1 %v4409_v5 }
0x1125   : > { %v4466_v11 = vcombine.high %v4454_v7, %v4454_v7  ;;  %v4473_v13 = vrot.slane %v4454_v7, %v7896_v14  ;;  %v4455_v60 = vadd.f32 %v8558_v3, %v4443_v8  ;;  %v4445_v15 = vmul.f32 %v8553_v45, %v4433_v6 }
0x1126   : > { %v6724_v0 = vpop.eup %6723 }
0x1127   : > { %v4480_v10 = vrot.slane %v4466_v11, %v7896_v14  ;;  %v4481_v17 = vcombine.high %v4473_v13, %v4473_v13  ;;  %v4515_v18 = vcombine.high %v4455_v60, %v4455_v60  ;;  %v4489_v24 = vrot.slane %v4473_v13, %v7896_v14 }
0x1128   : > { %v4522_v25 = vrot.slane %v4455_v60, %v7896_v14  ;;  %v4457_v27 = vadd.f32 %v8558_v3, %v4445_v15  ;;  %v4434_v16 = vmul.f32 %v6724_v0, %v8535_v26 }
0x1129   : > { %v4482_v2 = vcombine.high %v4480_v10, %v4480_v10  ;;  %v4496_v28 = vrot.slane %v4480_v10, %v7896_v14  ;;  %v4503_v22 = vrot.slane %v4481_v17, %v7896_v14  ;;  %v4529_v29 = vrot.slane %v4515_v18, %v7896_v14 }
0x112a   : > { %v6726_v33 = vpop.eup %6725  ;;  %v4530_v34 = vcombine.high %v4522_v25, %v4522_v25  ;;  %v4538_v30 = vrot.slane %v4522_v25, %v7896_v14  ;;  %v4578_v36 = vcombine.high %v4457_v27, %v4457_v27  ;;  %v4585_v58 = vrot.slane %v4457_v27, %v7896_v14 }
0x112b   : > { %v4531_v59 = vcombine.high %v4529_v29, %v4529_v29  ;;  %v4545_v9 = vrot.slane %v4529_v29, %v7896_v14  ;;  %v4446_v41 = vmul.f32 %v8553_v45, %v4434_v16  ;;  %v4432_v26 = vmul.f32 %v6726_v33, %v8542_v32 }
0x112c   : > { %v4552_v31 = vrot.slane %v4530_v34, %v7896_v14  ;;  %v4592_v23 = vrot.slane %v4578_v36, %v7896_v14  ;;  %v4593_v12 = vcombine.high %v4585_v58, %v4585_v58  ;;  %v4510_v57 = vrot.slane %v4482_v2, %v7896_v14 }
0x112d   : > { %v4458_v56 = vadd.f32 %v8558_v3, %v4446_v41  ;;  %v4444_v39 = vmul.f32 %v8553_v45, %v4432_v26  ;;  %v4559_v38 = vrot.slane %v4531_v59, %v7896_v14  ;;  %v4690_v43 = vcombine.low %v4489_v24, %v4503_v22 }
0x112e   : > { %v6028_v40 = vcombine.high %v4489_v24, %v4503_v22  ;;  %v4692_v50 = vcombine.low %v4496_v28, %v4510_v57  ;;  %v6029_v52 = vcombine.high %v4496_v28, %v4510_v57  ;;  %v4739_v19 = vcombine.low %v4538_v30, %v4552_v31 }
0x112f   : > { %v4627_v53 = vcombine.high %v4458_v56, %v4458_v56  ;;  %v4634_v32 = vrot.slane %v4458_v56, %v7896_v14  ;;  %v4456_v54 = vadd.f32 %v8558_v3, %v4444_v39  ;;  %v4700_v47 = vrot.slane %v4690_v43, %v7896_v14 }
0x1130   : > { %v4707_v63 = vrot.slane %v6028_v40, %v7896_v14  ;;  %v4714_v55 = vrot.slane %v4692_v50, %v7896_v14  ;;  %v4721_v1 = vrot.slane %v6029_v52, %v7896_v14  ;;  %v6030_v46 = vcombine.high %v4538_v30, %v4552_v31 }
0x1131   : > { %v4641_v42 = vrot.slane %v4627_v53, %v7896_v14  ;;  %v4642_v62 = vcombine.high %v4634_v32, %v4634_v32  ;;  %v4570_v44 = vrot.slane %v4456_v54, %v7896_v14  ;;  %v4741_v4 = vcombine.low %v4545_v9, %v4559_v38 }
0x1132   : > { %v4722_v5 = vcombine.low %v4700_v47, %v4707_v63  ;;  %v4723_v7 = vcombine.low %v4714_v55, %v4721_v1  ;;  %v6031_v8 = vcombine.high %v4545_v9, %v4559_v38  ;;  %v4749_v6 = vrot.slane %v4739_v19, %v7896_v14 }
0x1133   : > { %v4756_v11 = vrot.slane %v6030_v46, %v7896_v14  ;;  %v4763_v13 = vrot.slane %v4741_v4, %v7896_v14  ;;  %v4577_v60 = vrot.slane %v4570_v44, %v7896_v14  ;;  %v4594_v15 = vcombine.high %v4592_v23, %v4592_v23 }
0x1134   : > { %v4730_v0 = vrot.slane %v4722_v5, %v7896_v14  ;;  %v4737_v10 = vrot.slane %v4723_v7, %v7896_v14  ;;  %v4770_v17 = vrot.slane %v6031_v8, %v7896_v14  ;;  %v4601_v18 = vrot.slane %v4585_v58, %v7896_v14 }
0x1135   : > { %v4771_v24 = vcombine.low %v4749_v6, %v4756_v11  ;;  %v4608_v25 = vrot.slane %v4592_v23, %v7896_v14  ;;  %v4615_v27 = vrot.slane %v4593_v12, %v7896_v14  ;;  %v4622_v16 = vrot.slane %v4594_v15, %v7896_v14 }
0x1136   : > { %v4738_v2 = vcombine.low %v4730_v0, %v4737_v10  ;;  %v4772_v28 = vcombine.low %v4763_v13, %v4770_v17  ;;  %v4623_v22 = vcombine.high %v4601_v18, %v4601_v18  ;;  %v4643_v29 = vcombine.high %v4641_v42, %v4641_v42  ;;  %v6601_v0 = vld [vmem:[#allocation21] sm:$0xff]   ;;  %v6602_v10 = vld [vmem:[#allocation21 + $0x8] sm:$0xff]   ;;  %v6603_v17 = vld [vmem:[#allocation21 + $0x10] sm:$0xff]  }
0x1137   : > { %v4779_v33 = vrot.slane %v4771_v24, %v7896_v14  ;;  %v4624_v34 = vcombine.high %v4608_v25, %v4608_v25  ;;  %v4625_v30 = vcombine.high %v4615_v27, %v4615_v27  ;;  %v4626_v36 = vcombine.high %v4622_v16, %v4622_v16  ;;  %6324 = vmatpush3.bf16.msra.mxu0 %v6601_v0  ;;  %v6605_v24 = vld [vmem:[#allocation21 + $0x20] sm:$0xff]  }
0x1138   : > { %v4786_v59 = vrot.slane %v4772_v28, %v7896_v14  ;;  %v4650_v58 = vrot.slane %v4634_v32, %v7896_v14  ;;  %v4657_v9 = vrot.slane %v4641_v42, %v7896_v14  ;;  %v4664_v41 = vrot.slane %v4642_v62, %v7896_v14  ;;  %6325 = vmatprep.subr.bf16.mxu0 %v7300_v49 }
0x1139   : > { %v8615_v26 = vrot.slane %v4643_v29, %v7896_v14  ;;  %v4788_v31 = vcombine.low %v4577_v60, %v4601_v18  ;;  %v4789_v23 = vcombine.low %v4615_v27, %v4623_v22  ;;  %v4790_v12 = vcombine.low %v4625_v30, %v4608_v25  ;;  %v6604_v18 = vld [vmem:[#allocation21 + $0x18] sm:$0xff]   ;;  %v6606_v25 = vld [vmem:[#allocation21 + $0x28] sm:$0xff]   ;;  %v6607_v27 = vld [vmem:[#allocation21 + $0x30] sm:$0xff]  }
0x113a   : > { %v4787_v57 = vcombine.low %v4779_v33, %v4786_v59  ;;  %v4672_v56 = vcombine.high %v4650_v58, %v4650_v58  ;;  %v4673_v39 = vcombine.high %v4657_v9, %v4657_v9  ;;  %v4674_v38 = vcombine.high %v4664_v41, %v4664_v41 }
0x113b   : > { %v4791_v43 = vcombine.low %v4622_v16, %v4624_v34  ;;  %v4798_v40 = vrot.slane %v4788_v31, %v7896_v14  ;;  %v4805_v50 = vrot.slane %v4789_v23, %v7896_v14  ;;  %v4812_v52 = vrot.slane %v4790_v12, %v7896_v14  ;;  %6326 = vmatpush3.bf16.msra.mxu0 %v6602_v10  ;;  %v6608_v16 = vld [vmem:[#allocation21 + $0x38] sm:$0xff]  }
0x113c   : > { %v4906_v19 = vpack.c.bf16 %v4787_v57, %v4738_v2  ;;  %v4837_v53 = vcombine.low %v4626_v36, %v4650_v58  ;;  %v4838_v32 = vcombine.low %v4664_v41, %v4672_v56  ;;  %v4839_v54 = vcombine.low %v4674_v38, %v4657_v9  ;;  %6327 = vmatprep.subr.bf16.mxu0 %v7300_v49 }
0x113d   : > { %v4819_v47 = vrot.slane %v4791_v43, %v7896_v14  ;;  %v4820_v63 = vcombine.low %v4798_v40, %v4805_v50  ;;  %v4840_v55 = vcombine.low %v8615_v26, %v4673_v39  ;;  %v4675_v59 = vcombine.high %v8615_v26, %v8615_v26 }
0x113e   : > { %6312 = vmatmul.mubr.msk.bf16.vlgmr.msra.gmra.mrb[48].mxu1 %vm809_vm0, %v4906_v19  ;;  %v4847_v1 = vrot.slane %v4837_v53, %v7896_v14  ;;  %v4854_v46 = vrot.slane %v4838_v32, %v7896_v14  ;;  %v4861_v42 = vrot.slane %v4839_v54, %v7896_v14 }
0x113f   : > { %6315 = vmatprep.mubr.msk.bf16.mxu1 %vm7301_vm2, %v7300_v49  ;;  %v4821_v62 = vcombine.low %v4812_v52, %v4819_v47  ;;  %v4828_v44 = vrot.slane %v4820_v63, %v7896_v14  ;;  %v4868_v4 = vrot.slane %v4840_v55, %v7896_v14  ;;  %6328 = vmatpush3.bf16.msra.mxu0 %v6603_v17 }
0x1140   : > { %v4869_v5 = vcombine.low %v4847_v1, %v4854_v46  ;;  %6329 = vmatprep.subr.bf16.mxu0 %v7300_v49 }
0x1141   : > { %v4835_v7 = vrot.slane %v4821_v62, %v7896_v14  ;;  %v4870_v8 = vcombine.low %v4861_v42, %v4868_v4 }
0x1142   : > { %v4877_v11 = vrot.slane %v4869_v5, %v7896_v14 }
0x1143   : > { %v4836_v6 = vcombine.low %v4828_v44, %v4835_v7  ;;  %v4884_v13 = vrot.slane %v4870_v8, %v7896_v14  ;;  %6330 = vmatpush3.bf16.msra.mxu0 %v6604_v18 }
0x1144   : > { %6331 = vmatprep.subr.bf16.mxu0 %v7300_v49 }
0x1145   : > { %v4885_v60 = vcombine.low %v4877_v11, %v4884_v13 }
0x1147   : > { %v4907_v15 = vpack.c.bf16 %v4885_v60, %v4836_v6  ;;  %6332 = vmatpush3.bf16.msra.mxu0 %v6605_v24 }
0x1148   : > { %6333 = vmatprep.subr.bf16.mxu0 %v7300_v49 }
0x1149   : > { %6316 = vmatmul.mubr.msk.bf16.gmra.mrb[52].mxu1 %vm809_vm0, %v4907_v15 }
0x114a   : > { %6319 = vmatprep.mubr.msk.bf16.mxu1 %vm7301_vm2, %v7300_v49 }
0x114b   : > { %6334 = vmatpush3.bf16.msra.mxu0 %v6606_v25 }
0x114c   : > { %6335 = vmatprep.subr.bf16.mxu0 %v7300_v49 }
0x114f   : > { %6336 = vmatpush3.bf16.msra.mxu0 %v6607_v27 }
0x1150   : > { %6337 = vmatprep.subr.bf16.mxu0 %v7300_v49 }
0x1153   : > { %6338 = vmatpush3.bf16.msra.mxu0 %v6608_v16 }
0x11b0   : > { %v4411_v2 = vpop.xlane.xlu1 %4410 }
0x11b1   : > { %v4417_v28 = vmul.f32 0.03125, %v4411_v2 }
0x11b3   : > { %v4423_v22 = vadd.f32 1e-05, %v4417_v28 }
0x11b5   : > { %6727 = vrsqrt.f32 %v4423_v22 }
0x11bf   : > { %v6728_v29 = vpop.eup %6727 }
0x11c0   : > { %v4435_v33 = vmul.f32 %v6728_v29, %v8556_v21  ;;  %v6032_v21 = vld [vmem:[#allocation20] ss:$0 sm:$0xff] }
0x11c2   : > { %v4447_v34 = vmul.f32 %v8553_v45, %v4435_v33 }
0x11c4   : > { %v4459_v30 = vadd.f32 %v8558_v3, %v4447_v34 }
0x11c6   : > { %v4682_v36 = vrot.slane %v4459_v30, %v7896_v14 }
0x11c8   : > { %v4689_v58 = vrot.slane %v4682_v36, %v7896_v14 }
0x11ca   : > { %v4886_v9 = vcombine.low %v4675_v59, %v4689_v58 }
0x11cc   : > { %v4893_v41 = vrot.slane %v4886_v9, %v7896_v14 }
0x11ce   : > { %v4900_v31 = vrot.slane %v4893_v41, %v7896_v14 }
0x11d0   : > { %v4908_v23 = vpack.c.bf16 %v4900_v31, %v4900_v31 }
0x11d2   : > { %6320 = vmatmul.mubr.msk.bf16.gmra.mrb[56].mxu1 %vm809_vm0, %v4908_v23 }
0x1211   : > { %v4970_v12 = vpop.f32.mrb[48].mxu1 }
0x1212   : > { %v4971_v45 = vadd.f32 %v6032_v21, %v4970_v12  ;;  %v6313_v57 = vpop.f32.mrb[49].mxu1 }
0x1213   : > { %v4973_v3 = vpop.f32.mrb[50].mxu1 }
0x1214   : > { %v4992_v56 = vmul.f32 %v4971_v45, %v4971_v45  ;;  %v4974_v39 = vadd.f32 %v6032_v21, %v4973_v3  ;;  %v6314_v38 = vpop.f32.mrb[51].mxu1 }
0x1216   : > { %v4997_v43 = vmul.f32 %v4992_v56, %v4971_v45  ;;  %v4993_v26 = vmul.f32 %v4974_v39, %v4974_v39 }
0x1218   : > { %v5002_v40 = vmul.f32 0.044715, %v4997_v43  ;;  %v4998_v50 = vmul.f32 %v4993_v26, %v4974_v39 }
0x121a   : > { %v5007_v52 = vadd.f32 %v5002_v40, %v4971_v45  ;;  %v5003_v19 = vmul.f32 0.044715, %v4998_v50  ;;  %v8657_v50 = vld [vmem:[#allocation23] ss:$0 sm:$0xff] }
0x121c   : > { %v5012_v53 = vmul.f32 0.7978846, %v5007_v52  ;;  %v5008_v32 = vadd.f32 %v5003_v19, %v4974_v39  ;;  %v4978_v54 = vpop.f32.mrb[52].mxu1 }
0x121d   : > { %v4979_v47 = vadd.f32 %v6032_v21, %v4978_v54  ;;  %v6317_v63 = vpop.f32.mrb[53].mxu1 }
0x121e   : > { %6729 = vtanh.f32 %v5012_v53  ;;  %v5013_v55 = vmul.f32 0.7978846, %v5008_v32  ;;  %v4981_v1 = vpop.f32.mrb[54].mxu1 }
0x121f   : > { %v4994_v46 = vmul.f32 %v4979_v47, %v4979_v47  ;;  %v4982_v42 = vadd.f32 %v6032_v21, %v4981_v1  ;;  %v6318_v62 = vpop.f32.mrb[55].mxu1 }
0x1220   : > { %6731 = vtanh.f32 %v5013_v55 }
0x1221   : > { %v4999_v44 = vmul.f32 %v4994_v46, %v4979_v47  ;;  %v4995_v4 = vmul.f32 %v4982_v42, %v4982_v42 }
0x1223   : > { %v5004_v5 = vmul.f32 0.044715, %v4999_v44  ;;  %v5000_v7 = vmul.f32 %v4995_v4, %v4982_v42 }
0x1225   : > { %v5009_v8 = vadd.f32 %v5004_v5, %v4979_v47  ;;  %v5005_v6 = vmul.f32 0.044715, %v5000_v7 }
0x1227   : > { %v5014_v11 = vmul.f32 0.7978846, %v5009_v8  ;;  %v5010_v13 = vadd.f32 %v5005_v6, %v4982_v42 }
0x1228   : > { %v6730_v60 = vpop.eup %6729 }
0x1229   : > { %v5022_v15 = vadd.f32 1.0, %v6730_v60  ;;  %6733 = vtanh.f32 %v5014_v11  ;;  %v5015_v0 = vmul.f32 0.7978846, %v5010_v13 }
0x122a   : > { %v6732_v10 = vpop.eup %6731 }
0x122b   : > { %v5027_v17 = vmul.f32 0.5, %v5022_v15  ;;  %v5023_v18 = vadd.f32 1.0, %v6732_v10  ;;  %6735 = vtanh.f32 %v5015_v0 }
0x122d   : > { %v5028_v24 = vmul.f32 0.5, %v5023_v18  ;;  %v5032_v25 = vmul.f32 %v5027_v17, %v4971_v45 }
0x122f   : > { %v5033_v27 = vmul.f32 %v5028_v24, %v4974_v39 }
0x1231   : > { %v5037_v16 = vpack.c.bf16 %v5033_v27, %v5032_v25 }
0x1233   : > { %v6734_v2 = vpop.eup %6733  ;;  %6340 = vmatmul.mubr.bf16.vlgmr.msra.gmra.mrb[40].mxu0 %v5037_v16 }
0x1234   : > { %6343 = vmatprep.mubr.msk.bf16.mxu0 %vm7301_vm2, %v7300_v49  ;;  %v5024_v28 = vadd.f32 1.0, %v6734_v2 }
0x1235   : > { %v6736_v22 = vpop.eup %6735 }
0x1236   : > { %v5025_v29 = vadd.f32 1.0, %v6736_v22  ;;  %v5029_v33 = vmul.f32 0.5, %v5024_v28 }
0x1238   : > { %v5030_v34 = vmul.f32 0.5, %v5025_v29  ;;  %v5034_v30 = vmul.f32 %v5029_v33, %v4979_v47 }
0x123a   : > { %v5035_v36 = vmul.f32 %v5030_v34, %v4982_v42 }
0x123c   : > { %v5038_v59 = vpack.c.bf16 %v5035_v36, %v5034_v30 }
0x123e   : > { %6344 = vmatmul.mubr.bf16.gmra.mrb[44].mxu0 %v5038_v59 }
0x123f   : > { %6347 = vmatprep.mubr.msk.bf16.mxu0 %vm7301_vm2, %v7300_v49 }
0x12a5   : > { %v4986_v58 = vpop.f32.mrb[56].mxu1 }
0x12a6   : > { %v4987_v9 = vadd.f32 %v6032_v21, %v4986_v58  ;;  %v6321_v41 = vpop.f32.mrb[57].mxu1 }
0x12a7   : > { %v4989_v31 = vpop.f32.mrb[58].mxu1 }
0x12a8   : > { %v4996_v23 = vmul.f32 %v4987_v9, %v4987_v9  ;;  %v6322_v12 = vpop.f32.mrb[59].mxu1 }
0x12aa   : > { %v5001_v45 = vmul.f32 %v4996_v23, %v4987_v9 }
0x12ac   : > { %v5006_v57 = vmul.f32 0.044715, %v5001_v45 }
0x12ae   : > { %v5011_v3 = vadd.f32 %v5006_v57, %v4987_v9 }
0x12b0   : > { %v5016_v56 = vmul.f32 0.7978846, %v5011_v3 }
0x12b2   : > { %6737 = vtanh.f32 %v5016_v56 }
0x12bc   : > { %v6738_v39 = vpop.eup %6737 }
0x12bd   : > { %v5026_v38 = vadd.f32 1.0, %v6738_v39 }
0x12bf   : > { %v5031_v43 = vmul.f32 0.5, %v5026_v38 }
0x12c1   : > { %v5036_v26 = vmul.f32 %v5031_v43, %v4987_v9 }
0x12c3   : > { %v5039_v40 = vpack.c.bf16 %v5036_v26, %v5036_v26 }
0x12c5   : > { %6348 = vmatmul.mubr.bf16.gmra.mrb[48].mxu0 %v5039_v40 }
0x1306   : > { %v5128_v49 = vpop.f32.mrb[40].mxu0 }
0x1307   : > { %v5129_v21 = vadd.f32 %v8657_v50, %v5128_v49  ;;  %v6341_v52 = vpop.f32.mrb[41].mxu0 }
0x1308   : > { %v5131_v19 = vpop.f32.mrb[42].mxu0 }
0x1309   : > { %v5155_v53 = vcombine.high %v5129_v21, %v5129_v21  ;;  %v5162_v32 = vrot.slane %v5129_v21, %v7896_v14  ;;  %v5132_v54 = vadd.f32 %v8657_v50, %v5131_v19  ;;  %v6342_v47 = vpop.f32.mrb[43].mxu0 }
0x130b   : > { %v5169_v63 = vrot.slane %v5155_v53, %v7896_v14  ;;  %v5170_v55 = vcombine.high %v5162_v32, %v5162_v32  ;;  %v5204_v1 = vcombine.high %v5132_v54, %v5132_v54  ;;  %v5211_v46 = vrot.slane %v5132_v54, %v7896_v14 }
0x130c   : > { %v5178_v62 = vrot.slane %v5162_v32, %v7896_v14 }
0x130d   : > { %v5171_v42 = vcombine.high %v5169_v63, %v5169_v63  ;;  %v5192_v44 = vrot.slane %v5170_v55, %v7896_v14  ;;  %v5218_v4 = vrot.slane %v5204_v1, %v7896_v14  ;;  %v5185_v5 = vrot.slane %v5169_v63, %v7896_v14 }
0x130e   : > { %v5219_v7 = vcombine.high %v5211_v46, %v5211_v46  ;;  %v5227_v60 = vrot.slane %v5211_v46, %v7896_v14 }
0x130f   : > { %v5199_v8 = vrot.slane %v5171_v42, %v7896_v14  ;;  %v5373_v6 = vcombine.low %v5178_v62, %v5192_v44  ;;  %v6047_v11 = vcombine.high %v5178_v62, %v5192_v44  ;;  %v5220_v13 = vcombine.high %v5218_v4, %v5218_v4 }
0x1310   : > { %v5241_v15 = vrot.slane %v5219_v7, %v7896_v14  ;;  %v5234_v17 = vrot.slane %v5218_v4, %v7896_v14 }
0x1311   : > { %v5375_v0 = vcombine.low %v5185_v5, %v5199_v8  ;;  %v6048_v10 = vcombine.high %v5185_v5, %v5199_v8  ;;  %v5136_v18 = vpop.f32.mrb[44].mxu0  ;;  %v5248_v24 = vrot.slane %v5220_v13, %v7896_v14  ;;  %v5383_v28 = vrot.slane %v5373_v6, %v7896_v14 }
0x1312   : > { %v5422_v25 = vcombine.low %v5227_v60, %v5241_v15  ;;  %v6049_v27 = vcombine.high %v5227_v60, %v5241_v15  ;;  %v5137_v16 = vadd.f32 %v8657_v50, %v5136_v18  ;;  %v6345_v2 = vpop.f32.mrb[45].mxu0  ;;  %v5390_v22 = vrot.slane %v6047_v11, %v7896_v14 }
0x1313   : > { %v5397_v29 = vrot.slane %v5375_v0, %v7896_v14  ;;  %v5404_v33 = vrot.slane %v6048_v10, %v7896_v14  ;;  %v5139_v34 = vpop.f32.mrb[46].mxu0  ;;  %v5424_v30 = vcombine.low %v5234_v17, %v5248_v24  ;;  %v6050_v36 = vcombine.high %v5234_v17, %v5248_v24 }
0x1314   : > { %v5432_v59 = vrot.slane %v5422_v25, %v7896_v14  ;;  %v5439_v58 = vrot.slane %v6049_v27, %v7896_v14  ;;  %v6346_v9 = vpop.f32.mrb[47].mxu0  ;;  %v5253_v41 = vcombine.high %v5137_v16, %v5137_v16  ;;  %v5260_v31 = vrot.slane %v5137_v16, %v7896_v14 }
0x1315   : > { %v5140_v23 = vadd.f32 %v8657_v50, %v5139_v34  ;;  %v5406_v12 = vcombine.low %v5397_v29, %v5404_v33  ;;  %v5446_v45 = vrot.slane %v5424_v30, %v7896_v14  ;;  %v5453_v57 = vrot.slane %v6050_v36, %v7896_v14 }
0x1316   : > { %v5454_v3 = vcombine.low %v5432_v59, %v5439_v58  ;;  %v5405_v56 = vcombine.low %v5383_v28, %v5390_v22  ;;  %v5267_v39 = vrot.slane %v5253_v41, %v7896_v14  ;;  %v5268_v38 = vcombine.high %v5260_v31, %v5260_v31 }
0x1317   : > { %v5276_v43 = vrot.slane %v5260_v31, %v7896_v14  ;;  %v5455_v26 = vcombine.low %v5446_v45, %v5453_v57  ;;  %v5302_v49 = vcombine.high %v5140_v23, %v5140_v23  ;;  %v5309_v21 = vrot.slane %v5140_v23, %v7896_v14 }
0x1318   : > { %v5462_v40 = vrot.slane %v5454_v3, %v7896_v14  ;;  %v5269_v52 = vcombine.high %v5267_v39, %v5267_v39  ;;  %v5283_v19 = vrot.slane %v5267_v39, %v7896_v14  ;;  %v5290_v53 = vrot.slane %v5268_v38, %v7896_v14 }
0x1319   : > { %v5298_v32 = vcombine.high %v5276_v43, %v5276_v43  ;;  %v5469_v54 = vrot.slane %v5455_v26, %v7896_v14  ;;  %v5477_v47 = vrot.slane %v5276_v43, %v7896_v14  ;;  %v5317_v63 = vcombine.high %v5309_v21, %v5309_v21 }
0x131a   : > { %v5420_v55 = vrot.slane %v5406_v12, %v7896_v14  ;;  %v5297_v1 = vrot.slane %v5269_v52, %v7896_v14  ;;  %v5299_v46 = vcombine.high %v5283_v19, %v5283_v19  ;;  %v5300_v42 = vcombine.high %v5290_v53, %v5290_v53 }
0x131b   : > { %v5485_v62 = vcombine.low %v5290_v53, %v5298_v32  ;;  %v5470_v44 = vcombine.low %v5462_v40, %v5469_v54  ;;  %v5484_v4 = vrot.slane %v5477_v47, %v7896_v14  ;;  %v5316_v5 = vrot.slane %v5302_v49, %v7896_v14 }
0x131c   : > { %v5325_v7 = vrot.slane %v5309_v21, %v7896_v14  ;;  %v5486_v8 = vcombine.low %v5300_v42, %v5283_v19  ;;  %v5487_v6 = vcombine.low %v5297_v1, %v5299_v46  ;;  %v5301_v11 = vcombine.high %v5297_v1, %v5297_v1 }
0x131d   : > { %v5604_v13 = vadd.f32 %v5470_v44, %v8498_v51  ;;  %v5605_v60 = vadd.f32 %v5484_v4, %v8513_v48  ;;  %v5339_v15 = vrot.slane %v5317_v63, %v7896_v14  ;;  %v5413_v0 = vrot.slane %v5405_v56, %v7896_v14 }
0x131e   : > { %v5495_v10 = vrot.slane %v5485_v62, %v7896_v14  ;;  %v5502_v17 = vrot.slane %v5486_v8, %v7896_v14  ;;  %v5347_v18 = vcombine.high %v5325_v7, %v5325_v7  ;;  %v5488_v24 = vcombine.low %v5301_v11, %v5325_v7 }
0x131f   : > { %5610 = vst.msk [vmem:[#allocation2 + $0x8] sm:$0xff] %vm809_vm0, %v5604_v13  ;;  %v5332_v25 = vrot.slane %v5316_v5, %v7896_v14  ;;  %v5349_v27 = vcombine.high %v5339_v15, %v5339_v15  ;;  %v5421_v51 = vcombine.low %v5413_v0, %v5420_v55  ;;  %v5509_v48 = vrot.slane %v5487_v6, %v7896_v14 }
0x1320   : > { %5611 = vst.msk [vmem:[#allocation2 + $0x10] sm:$0x1] %vm812_vm1, %v5605_v60  ;;  %v5517_v16 = vcombine.low %v5495_v10, %v5502_v17  ;;  %v5516_v2 = vrot.slane %v5488_v24, %v7896_v14  ;;  %v5534_v28 = vcombine.low %v5339_v15, %v5347_v18  ;;  %v5318_v12 = vcombine.high %v5316_v5, %v5316_v5  ;;  %v6051_v17 = vld [vmem:[#allocation24] ss:$0 sm:$0xff] }
0x1321   : > { %v5535_v22 = vcombine.low %v5349_v27, %v5332_v25  ;;  %v5603_v29 = vadd.f32 %v5421_v51, %v8491_v37  ;;  %v5348_v3 = vcombine.high %v5332_v25, %v5332_v25  ;;  %v6052_v27 = vld [vmem:[#allocation26] ss:$0 sm:$0xff] }
0x1322   : > { %v5518_v33 = vcombine.low %v5509_v48, %v5516_v2  ;;  %v5544_v34 = vrot.slane %v5534_v28, %v7896_v14  ;;  %v5525_v36 = vrot.slane %v5517_v16, %v7896_v14  ;;  %v5346_v57 = vrot.slane %v5318_v12, %v7896_v14 }
0x1323   : > { %v5551_v30 = vrot.slane %v5535_v22, %v7896_v14  ;;  %5609 = vst.msk [vmem:[#allocation2] sm:$0xff] %vm809_vm0, %v5603_v29 }
0x1324   : > { %v5532_v59 = vrot.slane %v5518_v33, %v7896_v14  ;;  %v5536_v26 = vcombine.low %v5346_v57, %v5348_v3  ;;  %v5350_v40 = vcombine.high %v5346_v57, %v5346_v57 }
0x1325   : > { %v5566_v58 = vcombine.low %v5544_v34, %v5551_v30 }
0x1326   : > { %v5533_v9 = vcombine.low %v5525_v36, %v5532_v59  ;;  %v5558_v53 = vrot.slane %v5536_v26, %v7896_v14 }
0x1327   : > { %v5574_v63 = vrot.slane %v5566_v58, %v7896_v14 }
0x1328   : > { %v5606_v41 = vadd.f32 %v5533_v9, %v8504_v20 }
0x132a   : > { %v5622_v31 = vrot.slane %v5606_v41, 7  ;;  %5612 = vst.msk [vmem:[#allocation2 + $0x18] sm:$0xff] %vm809_vm0, %v5606_v41 }
0x132c   : > { %v5624_v37 = vsel %vm5623_vm9, %v5622_v31, %v5603_v29 }
0x132d   : > { %v5627_v23 = vsel %vm5626_vm10, %v5624_v37, 0.0 }
0x132e   : > { %5628 = vadd.xlane.f32.xlu0 %v5627_v23 }
0x1398   : > { %v5144_v45 = vpop.f32.mrb[48].mxu0 }
0x1399   : > { %v5145_v56 = vadd.f32 %v8657_v50, %v5144_v45  ;;  %v6349_v39 = vpop.f32.mrb[49].mxu0 }
0x139a   : > { %v5147_v38 = vpop.f32.mrb[50].mxu0 }
0x139b   : > { %v5357_v20 = vrot.slane %v5145_v56, %v7896_v14  ;;  %v6350_v43 = vpop.f32.mrb[51].mxu0 }
0x139d   : > { %v5358_v49 = vcombine.high %v5357_v20, %v5357_v20  ;;  %v5365_v21 = vrot.slane %v5357_v20, %v7896_v14 }
0x139f   : > { %v5372_v52 = vrot.slane %v5358_v49, %v7896_v14  ;;  %v5537_v19 = vcombine.low %v5350_v40, %v5365_v21 }
0x13a1   : > { %v5565_v32 = vrot.slane %v5537_v19, %v7896_v14  ;;  %v5589_v54 = vrot.slane %v5372_v52, %v7896_v14 }
0x13a3   : > { %v5567_v50 = vcombine.low %v5558_v53, %v5565_v32  ;;  %v5596_v47 = vrot.slane %v5589_v54, %v7896_v14 }
0x13a5   : > { %v5581_v55 = vrot.slane %v5567_v50, %v7896_v14  ;;  %v5608_v1 = vadd.f32 %v5596_v47, %v8545_v35 }
0x13a7   : > { %v5582_v46 = vcombine.low %v5574_v63, %v5581_v55  ;;  %5614 = vst.msk [vmem:[#allocation2 + $0x28] sm:$0x1] %vm812_vm1, %v5608_v1 }
0x13a9   : > { %v5607_v42 = vadd.f32 %v5582_v46, %v8509_v61 }
0x13ab   : > { %5613 = vst.msk [vmem:[#allocation2 + $0x20] sm:$0xff] %vm809_vm0, %v5607_v42 }
0x13bb   : > { %v5629_v62 = vpop.xlane.xlu0 %5628 }
0x13bc   : > { %v5630_v44 = vmul.f32 0.03125, %v5629_v62 }
0x13be   : > { %v5632_v4 = vrot.slane %v5630_v44, 1  ;;  %v5635_v5 = vsub.f32 %v5603_v29, %v5630_v44 }
0x13c0   : > { %v5636_v7 = vsub.f32 %v5606_v41, %v5632_v4  ;;  %v5637_v6 = vmul.f32 %v5635_v5, %v5635_v5 }
0x13c2   : > { %v5638_v8 = vmul.f32 %v5636_v7, %v5636_v7 }
0x13c4   : > { %v5641_v11 = vrot.slane %v5638_v8, 7 }
0x13c6   : > { %v5642_v14 = vsel %vm5623_vm9, %v5641_v11, %v5637_v6 }
0x13c7   : > { %v5644_v35 = vsel %vm5626_vm10, %v5642_v14, 0.0 }
0x13c8   : > { %5645 = vadd.xlane.f32.xlu1 %v5644_v35 }
0x1455   : > { %v5646_v13 = vpop.xlane.xlu1 %5645 }
0x1456   : > { %v5647_v60 = vmul.f32 0.03125, %v5646_v13 }
0x1458   : > { %v5648_v61 = vadd.f32 1e-05, %v5647_v60 }
0x145a   : > { %6739 = vrsqrt.f32 %v5648_v61 }
0x1464   : > { %v6740_v15 = vpop.eup %6739 }
0x1465   : > { %v5651_v0 = vrot.slane %v6740_v15, 1  ;;  %v5654_v10 = vmul.f32 %v6740_v15, %v5635_v5 }
0x1467   : > { %v5655_v18 = vmul.f32 %v5651_v0, %v5636_v7  ;;  %v5662_v24 = vmul.f32 %v6051_v17, %v5654_v10 }
0x1469   : > { %v5663_v25 = vmul.f32 %v6051_v17, %v5655_v18  ;;  %v5670_v16 = vadd.f32 %v6052_v27, %v5662_v24 }
0x146b   : > { %v5671_v51 = vadd.f32 %v6052_v27, %v5663_v25 }
0x146d   : > { %v5674_v48 = vrot.slane %v5671_v51, 7 }
0x146f   : > { %v5675_v2 = vsel %vm5623_vm9, %v5674_v48, %v5670_v16 }
0x1470   : > { %5677 = vst.msk [vmem:[%s796_s1] sm:$0x3] %vm5626_vm10, %v5675_v2 }
0x1471   : > { %7182 = shalt.err (!%p7179_p8)
}
0x1472   : > { %s7183_s19 = scalar_lea.hbm %s8740_s28, 32  ;;  %s7187_s1 = scalar_lea.hbm %s8858_s29, 64 }
0x1473   : > { %p7184_p9 = scmp.ne.s32.totalorder %s8740_s28, %s7183_s19  ;;  %p7188_p3 = scmp.lt.u32.totalorder %s8740_s28, %s8858_s29 }
0x1474   : > { %p7189_p7 = scmp.lt.u32.totalorder %s7187_s1, %s7183_s19  ;;  %p7191_p11 = scmp.lt.u32.totalorder %s7183_s19, %s8740_s28 }
0x1475   : > { %p7185_p4 = pnand %p7184_p9, %p8859_p0 }
0x1476   : > { %p7190_p12 = por %p7189_p7, %p7188_p3 }
0x1477   : > { %p7186_p6 = pneg %p7185_p4 }
0x1478   : > { %p7192_p5 = por %p7191_p11, %p7190_p12 }
0x147a   : > { %p7193_p1 = pnand %p7192_p5, %p7186_p6 }
0x147c   : > { %7196 = shalt.err (!%p7193_p1)
}
0x147d   : > { %6428 = dma.vmem_to_hbm [thread:$0]  (%p8859_p0), %s8742_s17, 32, %s8740_s28, %s5679_s25  }
0x147e PF: > { %s8860_s16 = sld [smem:[#allocation37_spill]]  ;;  %p8861_p10 = scmp.ne.s32.totalorder %s8848_s18, 0 }
0x147f   : > { %p8862_p13 = scmp.ge.s32.totalorder %s7279_s23, 2 }
0x1481   : > { %p6478_p2 = pnand %p8862_p13, %p8861_p10 }
0x1484   : > { %s5704_s4 = sand.u32 1, %s8860_s16  }
0x1485   : > { %s5705_s2 = scalar_lea.sflag [#allocation5], %s5704_s4 }
0x1486   : > { %7254 = dma.done.wait (!%p6478_p2), %s5705_s2, 32  }
0x1487   : > { %7256 = vsyncadd (!%p6478_p2), %s5705_s2, 4294967264  ;;  %s38_s23 = sadd.s32 1, %s7279_s23   ;;  %s8863_s18 = sld [smem:[#allocation38_spill]] }
0x1488   : > { %p35_p8 = scmp.ge.s32.totalorder %s38_s23, 4   ;;  %s8864_s19 = sld [smem:[#allocation39_spill]] }
0x1489   : > { %s8865_s20 = smov %s7760_s0  ;;  %s8866_s21 = smov %s7275_s22 }
0x148a   : > { %s8867_s22 = smov %s8869_s30  ;;  %37 = sbr.rel (!%p35_p8) target bundleno = 20 (0x14), region = 201 }
0x1491   :  { %5710 = vsyncpa [#allocation4], 1 }
0x1492   :  { %5712 = vsyncpa [#allocation4 + $0x1], 1 }
0x1493   :  { %5713 = vsyncpa [#allocation7], 1 }
0x1494   :  { %5714 = vsyncpa [#allocation10], 1 }
0x1495   :  { %5715 = vsyncpa [#allocation13], 1 }
0x1496   :  { %5716 = vsyncpa [#allocation16], 1 }
0x1497   :  { %5717 = vsyncpa [#allocation19], 1 }
0x1498   :  { %5718 = vsyncpa [#allocation22], 1 }
0x1499   :  { %5719 = vsyncpa [#allocation25], 1 }
0x149a   :  { %5720 = vsyncpa [#allocation5], 1 }
0x149b   :  { %5722 = vsyncpa [#allocation5 + $0x1], 1 }

</bundles_post_ra>
